<compile_context>
chip_gen: v6e
topology: v6e:2x2x1
jax: 0.10.0
libtpu: 0.0.40
codegen_flags: <defaults>
</compile_context>

<pallas_src>
import functools
import math

import jax
import jax.numpy as jnp
from jax.experimental import pallas as pl
from jax.experimental.pallas import tpu as pltpu


# ----------------------------- fused GAT kernel -----------------------------
def _gat_fused_kernel(x_ref, adj_ref, w1_ref, as1_ref, ad1_ref,
                      w2_ref, as2_ref, ad2_ref,
                      xout_ref, attn_ref,
                      att_cat_ref, bd_ref,
                      *, nheads, nhid, alpha):
    f32 = jnp.float32
    N = adj_ref.shape[0]
    neg_big = f32(-9000000000000000.0)
    adj_pos = adj_ref[...] > 0.0                       # (N, N) mask, loaded once

    def elu(z):                                        # F.elu, alpha=1
        return jnp.where(z > 0.0, z, jnp.exp(jnp.minimum(z, 0.0)) - 1.0)

    def leaky(z):                                      # LeakyReLU(negative_slope=alpha)
        return jnp.where(z > 0.0, z, alpha * z)

    # Block-diagonal scratch: only diagonal blocks are ever (re)written per
    # layer, so zero the off-diagonal zeros exactly once.
    bd_ref[...] = jnp.zeros_like(bd_ref)

    def gat_layer(wh_all, asrc, adst, attn_base):
        # wh_all: (N, H*nhid); asrc/adst: (H*nhid, H) block-packed so that one
        # matmul yields every head's attention source/target logit vector.
        e_src = jnp.dot(wh_all, asrc, preferred_element_type=f32)   # (N, H)
        e_dst = jnp.dot(wh_all, adst, preferred_element_type=f32)   # (N, H)
        e_dst_t = e_dst.T                                           # (H, N) - one tiny XLU transpose

        for h in range(nheads):                                     # static unroll (H = 4)
            e = leaky(e_src[:, h:h + 1] + e_dst_t[h:h + 1, :])      # (N, N)
            e = jnp.where(adj_pos, e, neg_big)
            e = e - jnp.max(e, axis=1, keepdims=True)               # stabilized row softmax
            p = jnp.exp(e)                                          # EUP
            # row-wise exact reciprocal (N ops) instead of an (N,N) divide
            inv = pl.reciprocal(jnp.sum(p, axis=1, keepdims=True))  # (N, 1)
            att = p * inv                                           # VPU broadcast multiply
            attn_ref[attn_base + h] = att                           # lane-dense (N, N) store
            att_cat_ref[:, h * N:(h + 1) * N] = att                 # lane-concat slab for packed matmul
            # diagonal block of the (H*N, H*nhid) packed Wh matrix
            bd_ref[h * N:(h + 1) * N, h * nhid:(h + 1) * nhid] = \
                wh_all[:, h * nhid:(h + 1) * nhid]

        # one MXU-shaped matmul (K = H*N, Nout = H*nhid) replaces 4 skinny ones;
        # its column-block h equals att_h @ Wh_h, i.e. the concatenated output.
        out_cat = jnp.dot(att_cat_ref[...], bd_ref[...],
                          preferred_element_type=f32)               # (N, H*nhid)
        return elu(out_cat)                                         # per-head ELU (concat=True)

    # ---------------- layer 1 ----------------
    wh1 = jnp.dot(x_ref[...], w1_ref[...], preferred_element_type=f32)   # (N, H*nhid)
    x1 = elu(gat_layer(wh1, as1_ref[...], ad1_ref[...], 0))              # GAT's extra ELU

    # ---------------- bridge: single K = H*nhid matmul ----------------
    wh2 = jnp.dot(x1, w2_ref[...], preferred_element_type=f32)           # (N, H*nhid)

    # ---------------- layer 2 ----------------
    x2 = elu(gat_layer(wh2, as2_ref[...], ad2_ref[...], nheads))         # final ELU
    xout_ref[...] = x2                                                   # one full store


# ------------------------------ host wrapper ---------------------------------
def _pack_attention_vecs(a_list, nhid, nheads):
    """Pack per-head a-vectors (2*nhid, 1) into block matrices (H*nhid, H)
    so that Wh_all @ A gives all heads' Wh1 (or Wh2) columns in one matmul."""
    A_src = jnp.zeros((nheads * nhid, nheads), jnp.float32)
    A_dst = jnp.zeros((nheads * nhid, nheads), jnp.float32)
    for h, a in enumerate(a_list):
        A_src = A_src.at[h * nhid:(h + 1) * nhid, h].set(a[:nhid, 0])
        A_dst = A_dst.at[h * nhid:(h + 1) * nhid, h].set(a[nhid:, 0])
    return A_src, A_dst


def gat_forward(x, adj, params, *, nheads, nhid, alpha):
    N, nfeat = x.shape
    HF = nheads * nhid
    # The torch module requires in_features of layer 2 == nheads*nhid.
    assert nfeat == HF, "GAT spec requires nfeat == nheads * nhid"

    w1_all = jnp.concatenate(params["W1"], axis=1)          # (nfeat, H*nhid)
    w2_all = jnp.concatenate(params["W2"], axis=1)          # (H*nhid, H*nhid)
    as1, ad1 = _pack_attention_vecs(params["a1"], nhid, nheads)
    as2, ad2 = _pack_attention_vecs(params["a2"], nhid, nheads)

    kernel = functools.partial(_gat_fused_kernel, nheads=nheads, nhid=nhid,
                               alpha=alpha)
    # Single fused call, no grid: every operand is a full-array VMEM block.
    x_out, attn = pl.pallas_call(
        kernel,
        out_shape=(jax.ShapeDtypeStruct((N, HF), jnp.float32),
                   jax.ShapeDtypeStruct((2 * nheads, N, N), jnp.float32)),
        scratch_shapes=[
            pltpu.VMEM((N, nheads * N), jnp.float32),        # lane-concat att slab
            pltpu.VMEM((nheads * N, HF), jnp.float32),       # block-diag packed Wh
        ],
    )(x, adj, w1_all, as1, ad1, w2_all, as2, ad2)
    return x_out, attn


# --------------------------- pure-JAX reference ------------------------------
def gat_reference(x, adj, params, *, nheads, nhid, alpha):
    def layer(h_in, W_list, a_list):
        outs, attns = [], []
        for Wm, a in zip(W_list, a_list):
            Wh = h_in @ Wm
            e = Wh @ a[:nhid, :] + (Wh @ a[nhid:, :]).T
            e = jax.nn.leaky_relu(e, negative_slope=alpha)
            e = jnp.where(adj > 0, e, -9000000000000000.0)
            att = jax.nn.softmax(e, axis=1)
            outs.append(jax.nn.elu(att @ Wh))
            attns.append(att)
        return jnp.concatenate(outs, axis=1), attns

    x1, a1 = layer(x, params["W1"], params["a1"])
    x1 = jax.nn.elu(x1)
    x2, a2 = layer(x1, params["W2"], params["a2"])
    return jax.nn.elu(x2), jnp.stack(a1 + a2, axis=0)


# ------------------------------- params --------------------------------------
def init_params(key, nfeat, nhid, nheads):
    def xavier(k, shape, gain=1.414):
        fan_in, fan_out = shape
        bound = gain * math.sqrt(6.0 / (fan_in + fan_out))
        return jax.random.uniform(k, shape, jnp.float32, -bound, bound)

    keys = jax.random.split(key, 4 * nheads)
    W1 = [xavier(keys[4 * h + 0], (nfeat, nhid)) for h in range(nheads)]
    a1 = [xavier(keys[4 * h + 1], (2 * nhid, 1)) for h in range(nheads)]
    W2 = [xavier(keys[4 * h + 2], (nfeat, nhid)) for h in range(nheads)]
    a2 = [xavier(keys[4 * h + 3], (2 * nhid, 1)) for h in range(nheads)]
    return {"W1": W1, "a1": a1, "W2": W2, "a2": a2}


if __name__ == "__main__":
    # small, module-consistent shapes: N nodes, nfeat = nheads * nhid
    N, NFEAT, NHID, NHEADS = 128, 32, 8, 4
    ALPHA = 0.2          # LeakyReLU negative slope
    # dropout = 0.6 in the spec -> identity in eval mode (not applied here)

    key = jax.random.PRNGKey(0)
    kp, kx, ka = jax.random.split(key, 3)
    params = init_params(kp, NFEAT, NHID, NHEADS)
    x = jax.random.normal(kx, (N, NFEAT), jnp.float32)
    adj = (jax.random.uniform(ka, (N, N)) < 0.25).astype(jnp.float32)
    adj = jnp.maximum(adj, jnp.eye(N, dtype=jnp.float32))    # self loops

    x_out, attn = gat_forward(x, adj, params, nheads=NHEADS, nhid=NHID, alpha=ALPHA)
    x_out, attn = jax.block_until_ready((x_out, attn))
    assert x_out.shape == (N, NHEADS * NHID)
    assert attn.shape == (2 * NHEADS, N, N)

    x_ref, attn_ref = gat_reference(x, adj, params, nheads=NHEADS, nhid=NHID, alpha=ALPHA)
    err_x = float(jnp.max(jnp.abs(x_out - x_ref)))
    err_a = float(jnp.max(jnp.abs(attn - attn_ref)))
    assert err_x < 1e-4 and err_a < 1e-4, f"mismatch vs reference: x={err_x} attn={err_a}"

    print("KERNEL_OK")
</pallas_src>

<mosaic_0001>
module attributes {stable_mosaic.version = 11 : i64} {
  func.func @_gat_fused_kernel(%arg0: memref<128x32xf32, #tpu.memory_space<vmem>>, %arg1: memref<128x128xf32, #tpu.memory_space<vmem>>, %arg2: memref<32x32xf32, #tpu.memory_space<vmem>>, %arg3: memref<32x4xf32, #tpu.memory_space<vmem>>, %arg4: memref<32x4xf32, #tpu.memory_space<vmem>>, %arg5: memref<32x32xf32, #tpu.memory_space<vmem>>, %arg6: memref<32x4xf32, #tpu.memory_space<vmem>>, %arg7: memref<32x4xf32, #tpu.memory_space<vmem>>, %arg8: memref<128x32xf32, #tpu.memory_space<vmem>>, %arg9: memref<8x128x128xf32, #tpu.memory_space<vmem>>, %arg10: memref<128x512xf32, #tpu.memory_space<vmem>>, %arg11: memref<512x32xf32, #tpu.memory_space<vmem>>) attributes {dimension_semantics = [], scalar_prefetch = 0 : i64, scratch_operands = 2 : i64, tpu.core_type = #tpu.core_type<tc>} {
    %c0 = arith.constant 0 : index
    %c0_0 = arith.constant 0 : index
    %0 = vector.load %arg1[%c0, %c0_0] : memref<128x128xf32, #tpu.memory_space<vmem>>, vector<128x128xf32>
    %cst = arith.constant 0.000000e+00 : f32
    %1 = vector.broadcast %cst : f32 to vector<128x128xf32>
    %2 = arith.cmpf ogt, %0, %1 : vector<128x128xf32>
    %cst_1 = arith.constant 0.000000e+00 : f32
    %3 = vector.broadcast %cst_1 : f32 to vector<512x32xf32>
    %c0_2 = arith.constant 0 : index
    %c0_3 = arith.constant 0 : index
    %4 = vector.load %arg11[%c0_2, %c0_3] : memref<512x32xf32, #tpu.memory_space<vmem>>, vector<512x32xf32>
    tpu.vector_store %arg11[%c0_2, %c0_3], %3 {strides = array<i32>} : memref<512x32xf32, #tpu.memory_space<vmem>>, vector<512x32xf32>,
    %c0_4 = arith.constant 0 : index
    %c0_5 = arith.constant 0 : index
    %5 = vector.load %arg0[%c0_4, %c0_5] : memref<128x32xf32, #tpu.memory_space<vmem>>, vector<128x32xf32>
    %c0_6 = arith.constant 0 : index
    %c0_7 = arith.constant 0 : index
    %6 = vector.load %arg2[%c0_6, %c0_7] : memref<32x32xf32, #tpu.memory_space<vmem>>, vector<32x32xf32>
    %cst_8 = arith.constant dense<0.000000e+00> : vector<128x32xf32>
    %7 = tpu.matmul %5, %6, %cst_8 {dimension_numbers = #tpu.dot_dimension_numbers<[1], [0], [0], [1], [0, 0, 1, 1], [], []>} : vector<128x32xf32>, vector<32x32xf32>, vector<128x32xf32> -> vector<128x32xf32>
    %c0_9 = arith.constant 0 : index
    %c0_10 = arith.constant 0 : index
    %8 = vector.load %arg3[%c0_9, %c0_10] : memref<32x4xf32, #tpu.memory_space<vmem>>, vector<32x4xf32>
    %c0_11 = arith.constant 0 : index
    %c0_12 = arith.constant 0 : index
    %9 = vector.load %arg4[%c0_11, %c0_12] : memref<32x4xf32, #tpu.memory_space<vmem>>, vector<32x4xf32>
    %cst_13 = arith.constant dense<0.000000e+00> : vector<128x4xf32>
    %10 = tpu.matmul %7, %8, %cst_13 {dimension_numbers = #tpu.dot_dimension_numbers<[1], [0], [0], [1], [0, 0, 1, 1], [], []>} : vector<128x32xf32>, vector<32x4xf32>, vector<128x4xf32> -> vector<128x4xf32>
    %cst_14 = arith.constant dense<0.000000e+00> : vector<128x4xf32>
    %11 = tpu.matmul %7, %9, %cst_14 {dimension_numbers = #tpu.dot_dimension_numbers<[1], [0], [0], [1], [0, 0, 1, 1], [], []>} : vector<128x32xf32>, vector<32x4xf32>, vector<128x4xf32> -> vector<128x4xf32>
    %12 = tpu.transpose %11, [1, 0] : vector<128x4xf32> -> vector<4x128xf32>
    %13 = vector.extract_strided_slice %10 {offsets = [0, 0], sizes = [128, 1], strides = [1, 1]} : vector<128x4xf32> to vector<128x1xf32>
    %14 = vector.extract_strided_slice %12 {offsets = [0, 0], sizes = [1, 128], strides = [1, 1]} : vector<4x128xf32> to vector<1x128xf32>
    %15 = vector.broadcast %13 : vector<128x1xf32> to vector<128x128xf32>
    %16 = vector.broadcast %14 : vector<1x128xf32> to vector<128x128xf32>
    %17 = arith.addf %15, %16 : vector<128x128xf32>
    %cst_15 = arith.constant 0.000000e+00 : f32
    %18 = vector.broadcast %cst_15 : f32 to vector<128x128xf32>
    %19 = arith.cmpf ogt, %17, %18 : vector<128x128xf32>
    %cst_16 = arith.constant 2.000000e-01 : f32
    %20 = vector.broadcast %cst_16 : f32 to vector<128x128xf32>
    %21 = arith.mulf %20, %17 : vector<128x128xf32>
    %22 = arith.select %19, %17, %21 : vector<128x128xi1>, vector<128x128xf32>
    %cst_17 = arith.constant -9.000000e+15 : f32
    %23 = vector.broadcast %cst_17 : f32 to vector<128x128xf32>
    %24 = arith.select %2, %22, %23 : vector<128x128xi1>, vector<128x128xf32>
    %cst_18 = arith.constant dense<0xFF800000> : vector<128xf32>
    %25 = vector.multi_reduction <maximumf>, %24, %cst_18 [1] : vector<128x128xf32> to vector<128xf32>
    %26 = vector.shape_cast %25 : vector<128xf32> to vector<128x1xf32>
    %27 = vector.broadcast %26 : vector<128x1xf32> to vector<128x128xf32>
    %28 = arith.subf %24, %27 : vector<128x128xf32>
    %29 = math.exp %28 : vector<128x128xf32>
    %cst_19 = arith.constant dense<0.000000e+00> : vector<128xf32>
    %30 = vector.multi_reduction <add>, %29, %cst_19 [1] : vector<128x128xf32> to vector<128xf32>
    %31 = vector.shape_cast %30 : vector<128xf32> to vector<128x1xf32>
    %32 = tpu.reciprocal %31 : vector<128x1xf32> -> vector<128x1xf32>
    %33 = vector.broadcast %32 : vector<128x1xf32> to vector<128x128xf32>
    %34 = arith.mulf %29, %33 : vector<128x128xf32>
    %c0_20 = arith.constant 0 : index
    %c0_21 = arith.constant 0 : index
    %c0_22 = arith.constant 0 : index
    %35 = vector.load %arg9[%c0_20, %c0_21, %c0_22] : memref<8x128x128xf32, #tpu.memory_space<vmem>>, vector<1x128x128xf32>
    %36 = vector.shape_cast %35 : vector<1x128x128xf32> to vector<128x128xf32>
    %37 = vector.shape_cast %34 : vector<128x128xf32> to vector<1x128x128xf32>
    tpu.vector_store %arg9[%c0_20, %c0_21, %c0_22], %37 {strides = array<i32>} : memref<8x128x128xf32, #tpu.memory_space<vmem>>, vector<1x128x128xf32>,
    %c0_23 = arith.constant 0 : index
    %c0_24 = arith.constant 0 : index
    %38 = vector.load %arg10[%c0_23, %c0_24] : memref<128x512xf32, #tpu.memory_space<vmem>>, vector<128x128xf32>
    tpu.vector_store %arg10[%c0_23, %c0_24], %34 {strides = array<i32>} : memref<128x512xf32, #tpu.memory_space<vmem>>, vector<128x128xf32>,
    %39 = vector.extract_strided_slice %7 {offsets = [0, 0], sizes = [128, 8], strides = [1, 1]} : vector<128x32xf32> to vector<128x8xf32>
    %c0_25 = arith.constant 0 : index
    %c0_26 = arith.constant 0 : index
    %40 = vector.load %arg11[%c0_25, %c0_26] : memref<512x32xf32, #tpu.memory_space<vmem>>, vector<128x8xf32>
    tpu.vector_store %arg11[%c0_25, %c0_26], %39 {strides = array<i32>} : memref<512x32xf32, #tpu.memory_space<vmem>>, vector<128x8xf32>,
    %41 = vector.extract_strided_slice %10 {offsets = [0, 1], sizes = [128, 1], strides = [1, 1]} : vector<128x4xf32> to vector<128x1xf32>
    %42 = vector.extract_strided_slice %12 {offsets = [1, 0], sizes = [1, 128], strides = [1, 1]} : vector<4x128xf32> to vector<1x128xf32>
    %43 = vector.broadcast %41 : vector<128x1xf32> to vector<128x128xf32>
    %44 = vector.broadcast %42 : vector<1x128xf32> to vector<128x128xf32>
    %45 = arith.addf %43, %44 : vector<128x128xf32>
    %cst_27 = arith.constant 0.000000e+00 : f32
    %46 = vector.broadcast %cst_27 : f32 to vector<128x128xf32>
    %47 = arith.cmpf ogt, %45, %46 : vector<128x128xf32>
    %cst_28 = arith.constant 2.000000e-01 : f32
    %48 = vector.broadcast %cst_28 : f32 to vector<128x128xf32>
    %49 = arith.mulf %48, %45 : vector<128x128xf32>
    %50 = arith.select %47, %45, %49 : vector<128x128xi1>, vector<128x128xf32>
    %cst_29 = arith.constant -9.000000e+15 : f32
    %51 = vector.broadcast %cst_29 : f32 to vector<128x128xf32>
    %52 = arith.select %2, %50, %51 : vector<128x128xi1>, vector<128x128xf32>
    %cst_30 = arith.constant dense<0xFF800000> : vector<128xf32>
    %53 = vector.multi_reduction <maximumf>, %52, %cst_30 [1] : vector<128x128xf32> to vector<128xf32>
    %54 = vector.shape_cast %53 : vector<128xf32> to vector<128x1xf32>
    %55 = vector.broadcast %54 : vector<128x1xf32> to vector<128x128xf32>
    %56 = arith.subf %52, %55 : vector<128x128xf32>
    %57 = math.exp %56 : vector<128x128xf32>
    %cst_31 = arith.constant dense<0.000000e+00> : vector<128xf32>
    %58 = vector.multi_reduction <add>, %57, %cst_31 [1] : vector<128x128xf32> to vector<128xf32>
    %59 = vector.shape_cast %58 : vector<128xf32> to vector<128x1xf32>
    %60 = tpu.reciprocal %59 : vector<128x1xf32> -> vector<128x1xf32>
    %61 = vector.broadcast %60 : vector<128x1xf32> to vector<128x128xf32>
    %62 = arith.mulf %57, %61 : vector<128x128xf32>
    %c1 = arith.constant 1 : index
    %c0_32 = arith.constant 0 : index
    %c0_33 = arith.constant 0 : index
    %63 = vector.load %arg9[%c1, %c0_32, %c0_33] : memref<8x128x128xf32, #tpu.memory_space<vmem>>, vector<1x128x128xf32>
    %64 = vector.shape_cast %63 : vector<1x128x128xf32> to vector<128x128xf32>
    %65 = vector.shape_cast %62 : vector<128x128xf32> to vector<1x128x128xf32>
    tpu.vector_store %arg9[%c1, %c0_32, %c0_33], %65 {strides = array<i32>} : memref<8x128x128xf32, #tpu.memory_space<vmem>>, vector<1x128x128xf32>,
    %c0_34 = arith.constant 0 : index
    %c128 = arith.constant 128 : index
    %66 = vector.load %arg10[%c0_34, %c128] : memref<128x512xf32, #tpu.memory_space<vmem>>, vector<128x128xf32>
    tpu.vector_store %arg10[%c0_34, %c128], %62 {strides = array<i32>} : memref<128x512xf32, #tpu.memory_space<vmem>>, vector<128x128xf32>,
    %67 = vector.extract_strided_slice %7 {offsets = [0, 8], sizes = [128, 8], strides = [1, 1]} : vector<128x32xf32> to vector<128x8xf32>
    %c128_35 = arith.constant 128 : index
    %c8 = arith.constant 8 : index
    %68 = vector.load %arg11[%c128_35, %c8] : memref<512x32xf32, #tpu.memory_space<vmem>>, vector<128x8xf32>
    tpu.vector_store %arg11[%c128_35, %c8], %67 {strides = array<i32>} : memref<512x32xf32, #tpu.memory_space<vmem>>, vector<128x8xf32>,
    %69 = vector.extract_strided_slice %10 {offsets = [0, 2], sizes = [128, 1], strides = [1, 1]} : vector<128x4xf32> to vector<128x1xf32>
    %70 = vector.extract_strided_slice %12 {offsets = [2, 0], sizes = [1, 128], strides = [1, 1]} : vector<4x128xf32> to vector<1x128xf32>
    %71 = vector.broadcast %69 : vector<128x1xf32> to vector<128x128xf32>
    %72 = vector.broadcast %70 : vector<1x128xf32> to vector<128x128xf32>
    %73 = arith.addf %71, %72 : vector<128x128xf32>
    %cst_36 = arith.constant 0.000000e+00 : f32
    %74 = vector.broadcast %cst_36 : f32 to vector<128x128xf32>
    %75 = arith.cmpf ogt, %73, %74 : vector<128x128xf32>
    %cst_37 = arith.constant 2.000000e-01 : f32
    %76 = vector.broadcast %cst_37 : f32 to vector<128x128xf32>
    %77 = arith.mulf %76, %73 : vector<128x128xf32>
    %78 = arith.select %75, %73, %77 : vector<128x128xi1>, vector<128x128xf32>
    %cst_38 = arith.constant -9.000000e+15 : f32
    %79 = vector.broadcast %cst_38 : f32 to vector<128x128xf32>
    %80 = arith.select %2, %78, %79 : vector<128x128xi1>, vector<128x128xf32>
    %cst_39 = arith.constant dense<0xFF800000> : vector<128xf32>
    %81 = vector.multi_reduction <maximumf>, %80, %cst_39 [1] : vector<128x128xf32> to vector<128xf32>
    %82 = vector.shape_cast %81 : vector<128xf32> to vector<128x1xf32>
    %83 = vector.broadcast %82 : vector<128x1xf32> to vector<128x128xf32>
    %84 = arith.subf %80, %83 : vector<128x128xf32>
    %85 = math.exp %84 : vector<128x128xf32>
    %cst_40 = arith.constant dense<0.000000e+00> : vector<128xf32>
    %86 = vector.multi_reduction <add>, %85, %cst_40 [1] : vector<128x128xf32> to vector<128xf32>
    %87 = vector.shape_cast %86 : vector<128xf32> to vector<128x1xf32>
    %88 = tpu.reciprocal %87 : vector<128x1xf32> -> vector<128x1xf32>
    %89 = vector.broadcast %88 : vector<128x1xf32> to vector<128x128xf32>
    %90 = arith.mulf %85, %89 : vector<128x128xf32>
    %c2 = arith.constant 2 : index
    %c0_41 = arith.constant 0 : index
    %c0_42 = arith.constant 0 : index
    %91 = vector.load %arg9[%c2, %c0_41, %c0_42] : memref<8x128x128xf32, #tpu.memory_space<vmem>>, vector<1x128x128xf32>
    %92 = vector.shape_cast %91 : vector<1x128x128xf32> to vector<128x128xf32>
    %93 = vector.shape_cast %90 : vector<128x128xf32> to vector<1x128x128xf32>
    tpu.vector_store %arg9[%c2, %c0_41, %c0_42], %93 {strides = array<i32>} : memref<8x128x128xf32, #tpu.memory_space<vmem>>, vector<1x128x128xf32>,
    %c0_43 = arith.constant 0 : index
    %c256 = arith.constant 256 : index
    %94 = vector.load %arg10[%c0_43, %c256] : memref<128x512xf32, #tpu.memory_space<vmem>>, vector<128x128xf32>
    tpu.vector_store %arg10[%c0_43, %c256], %90 {strides = array<i32>} : memref<128x512xf32, #tpu.memory_space<vmem>>, vector<128x128xf32>,
    %95 = vector.extract_strided_slice %7 {offsets = [0, 16], sizes = [128, 8], strides = [1, 1]} : vector<128x32xf32> to vector<128x8xf32>
    %c256_44 = arith.constant 256 : index
    %c16 = arith.constant 16 : index
    %96 = vector.load %arg11[%c256_44, %c16] : memref<512x32xf32, #tpu.memory_space<vmem>>, vector<128x8xf32>
    tpu.vector_store %arg11[%c256_44, %c16], %95 {strides = array<i32>} : memref<512x32xf32, #tpu.memory_space<vmem>>, vector<128x8xf32>,
    %97 = vector.extract_strided_slice %10 {offsets = [0, 3], sizes = [128, 1], strides = [1, 1]} : vector<128x4xf32> to vector<128x1xf32>
    %98 = vector.extract_strided_slice %12 {offsets = [3, 0], sizes = [1, 128], strides = [1, 1]} : vector<4x128xf32> to vector<1x128xf32>
    %99 = vector.broadcast %97 : vector<128x1xf32> to vector<128x128xf32>
    %100 = vector.broadcast %98 : vector<1x128xf32> to vector<128x128xf32>
    %101 = arith.addf %99, %100 : vector<128x128xf32>
    %cst_45 = arith.constant 0.000000e+00 : f32
    %102 = vector.broadcast %cst_45 : f32 to vector<128x128xf32>
    %103 = arith.cmpf ogt, %101, %102 : vector<128x128xf32>
    %cst_46 = arith.constant 2.000000e-01 : f32
    %104 = vector.broadcast %cst_46 : f32 to vector<128x128xf32>
    %105 = arith.mulf %104, %101 : vector<128x128xf32>
    %106 = arith.select %103, %101, %105 : vector<128x128xi1>, vector<128x128xf32>
    %cst_47 = arith.constant -9.000000e+15 : f32
    %107 = vector.broadcast %cst_47 : f32 to vector<128x128xf32>
    %108 = arith.select %2, %106, %107 : vector<128x128xi1>, vector<128x128xf32>
    %cst_48 = arith.constant dense<0xFF800000> : vector<128xf32>
    %109 = vector.multi_reduction <maximumf>, %108, %cst_48 [1] : vector<128x128xf32> to vector<128xf32>
    %110 = vector.shape_cast %109 : vector<128xf32> to vector<128x1xf32>
    %111 = vector.broadcast %110 : vector<128x1xf32> to vector<128x128xf32>
    %112 = arith.subf %108, %111 : vector<128x128xf32>
    %113 = math.exp %112 : vector<128x128xf32>
    %cst_49 = arith.constant dense<0.000000e+00> : vector<128xf32>
    %114 = vector.multi_reduction <add>, %113, %cst_49 [1] : vector<128x128xf32> to vector<128xf32>
    %115 = vector.shape_cast %114 : vector<128xf32> to vector<128x1xf32>
    %116 = tpu.reciprocal %115 : vector<128x1xf32> -> vector<128x1xf32>
    %117 = vector.broadcast %116 : vector<128x1xf32> to vector<128x128xf32>
    %118 = arith.mulf %113, %117 : vector<128x128xf32>
    %c3 = arith.constant 3 : index
    %c0_50 = arith.constant 0 : index
    %c0_51 = arith.constant 0 : index
    %119 = vector.load %arg9[%c3, %c0_50, %c0_51] : memref<8x128x128xf32, #tpu.memory_space<vmem>>, vector<1x128x128xf32>
    %120 = vector.shape_cast %119 : vector<1x128x128xf32> to vector<128x128xf32>
    %121 = vector.shape_cast %118 : vector<128x128xf32> to vector<1x128x128xf32>
    tpu.vector_store %arg9[%c3, %c0_50, %c0_51], %121 {strides = array<i32>} : memref<8x128x128xf32, #tpu.memory_space<vmem>>, vector<1x128x128xf32>,
    %c0_52 = arith.constant 0 : index
    %c384 = arith.constant 384 : index
    %122 = vector.load %arg10[%c0_52, %c384] : memref<128x512xf32, #tpu.memory_space<vmem>>, vector<128x128xf32>
    tpu.vector_store %arg10[%c0_52, %c384], %118 {strides = array<i32>} : memref<128x512xf32, #tpu.memory_space<vmem>>, vector<128x128xf32>,
    %123 = vector.extract_strided_slice %7 {offsets = [0, 24], sizes = [128, 8], strides = [1, 1]} : vector<128x32xf32> to vector<128x8xf32>
    %c384_53 = arith.constant 384 : index
    %c24 = arith.constant 24 : index
    %124 = vector.load %arg11[%c384_53, %c24] : memref<512x32xf32, #tpu.memory_space<vmem>>, vector<128x8xf32>
    tpu.vector_store %arg11[%c384_53, %c24], %123 {strides = array<i32>} : memref<512x32xf32, #tpu.memory_space<vmem>>, vector<128x8xf32>,
    %c0_54 = arith.constant 0 : index
    %c0_55 = arith.constant 0 : index
    %125 = vector.load %arg10[%c0_54, %c0_55] : memref<128x512xf32, #tpu.memory_space<vmem>>, vector<128x512xf32>
    %c0_56 = arith.constant 0 : index
    %c0_57 = arith.constant 0 : index
    %126 = vector.load %arg11[%c0_56, %c0_57] : memref<512x32xf32, #tpu.memory_space<vmem>>, vector<512x32xf32>
    %cst_58 = arith.constant dense<0.000000e+00> : vector<128x32xf32>
    %127 = tpu.matmul %125, %126, %cst_58 {dimension_numbers = #tpu.dot_dimension_numbers<[1], [0], [0], [1], [0, 0, 1, 1], [], []>} : vector<128x512xf32>, vector<512x32xf32>, vector<128x32xf32> -> vector<128x32xf32>
    %cst_59 = arith.constant 0.000000e+00 : f32
    %128 = vector.broadcast %cst_59 : f32 to vector<128x32xf32>
    %129 = arith.cmpf ogt, %127, %128 : vector<128x32xf32>
    %cst_60 = arith.constant 0.000000e+00 : f32
    %130 = vector.broadcast %cst_60 : f32 to vector<128x32xf32>
    %131 = arith.minimumf %127, %130 : vector<128x32xf32>
    %132 = math.exp %131 : vector<128x32xf32>
    %cst_61 = arith.constant 1.000000e+00 : f32
    %133 = vector.broadcast %cst_61 : f32 to vector<128x32xf32>
    %134 = arith.subf %132, %133 : vector<128x32xf32>
    %135 = arith.select %129, %127, %134 : vector<128x32xi1>, vector<128x32xf32>
    %cst_62 = arith.constant 0.000000e+00 : f32
    %136 = vector.broadcast %cst_62 : f32 to vector<128x32xf32>
    %137 = arith.cmpf ogt, %135, %136 : vector<128x32xf32>
    %cst_63 = arith.constant 0.000000e+00 : f32
    %138 = vector.broadcast %cst_63 : f32 to vector<128x32xf32>
    %139 = arith.minimumf %135, %138 : vector<128x32xf32>
    %140 = math.exp %139 : vector<128x32xf32>
    %cst_64 = arith.constant 1.000000e+00 : f32
    %141 = vector.broadcast %cst_64 : f32 to vector<128x32xf32>
    %142 = arith.subf %140, %141 : vector<128x32xf32>
    %143 = arith.select %137, %135, %142 : vector<128x32xi1>, vector<128x32xf32>
    %c0_65 = arith.constant 0 : index
    %c0_66 = arith.constant 0 : index
    %144 = vector.load %arg5[%c0_65, %c0_66] : memref<32x32xf32, #tpu.memory_space<vmem>>, vector<32x32xf32>
    %cst_67 = arith.constant dense<0.000000e+00> : vector<128x32xf32>
    %145 = tpu.matmul %143, %144, %cst_67 {dimension_numbers = #tpu.dot_dimension_numbers<[1], [0], [0], [1], [0, 0, 1, 1], [], []>} : vector<128x32xf32>, vector<32x32xf32>, vector<128x32xf32> -> vector<128x32xf32>
    %c0_68 = arith.constant 0 : index
    %c0_69 = arith.constant 0 : index
    %146 = vector.load %arg6[%c0_68, %c0_69] : memref<32x4xf32, #tpu.memory_space<vmem>>, vector<32x4xf32>
    %c0_70 = arith.constant 0 : index
    %c0_71 = arith.constant 0 : index
    %147 = vector.load %arg7[%c0_70, %c0_71] : memref<32x4xf32, #tpu.memory_space<vmem>>, vector<32x4xf32>
    %cst_72 = arith.constant dense<0.000000e+00> : vector<128x4xf32>
    %148 = tpu.matmul %145, %146, %cst_72 {dimension_numbers = #tpu.dot_dimension_numbers<[1], [0], [0], [1], [0, 0, 1, 1], [], []>} : vector<128x32xf32>, vector<32x4xf32>, vector<128x4xf32> -> vector<128x4xf32>
    %cst_73 = arith.constant dense<0.000000e+00> : vector<128x4xf32>
    %149 = tpu.matmul %145, %147, %cst_73 {dimension_numbers = #tpu.dot_dimension_numbers<[1], [0], [0], [1], [0, 0, 1, 1], [], []>} : vector<128x32xf32>, vector<32x4xf32>, vector<128x4xf32> -> vector<128x4xf32>
    %150 = tpu.transpose %149, [1, 0] : vector<128x4xf32> -> vector<4x128xf32>
    %151 = vector.extract_strided_slice %148 {offsets = [0, 0], sizes = [128, 1], strides = [1, 1]} : vector<128x4xf32> to vector<128x1xf32>
    %152 = vector.extract_strided_slice %150 {offsets = [0, 0], sizes = [1, 128], strides = [1, 1]} : vector<4x128xf32> to vector<1x128xf32>
    %153 = vector.broadcast %151 : vector<128x1xf32> to vector<128x128xf32>
    %154 = vector.broadcast %152 : vector<1x128xf32> to vector<128x128xf32>
    %155 = arith.addf %153, %154 : vector<128x128xf32>
    %cst_74 = arith.constant 0.000000e+00 : f32
    %156 = vector.broadcast %cst_74 : f32 to vector<128x128xf32>
    %157 = arith.cmpf ogt, %155, %156 : vector<128x128xf32>
    %cst_75 = arith.constant 2.000000e-01 : f32
    %158 = vector.broadcast %cst_75 : f32 to vector<128x128xf32>
    %159 = arith.mulf %158, %155 : vector<128x128xf32>
    %160 = arith.select %157, %155, %159 : vector<128x128xi1>, vector<128x128xf32>
    %cst_76 = arith.constant -9.000000e+15 : f32
    %161 = vector.broadcast %cst_76 : f32 to vector<128x128xf32>
    %162 = arith.select %2, %160, %161 : vector<128x128xi1>, vector<128x128xf32>
    %cst_77 = arith.constant dense<0xFF800000> : vector<128xf32>
    %163 = vector.multi_reduction <maximumf>, %162, %cst_77 [1] : vector<128x128xf32> to vector<128xf32>
    %164 = vector.shape_cast %163 : vector<128xf32> to vector<128x1xf32>
    %165 = vector.broadcast %164 : vector<128x1xf32> to vector<128x128xf32>
    %166 = arith.subf %162, %165 : vector<128x128xf32>
    %167 = math.exp %166 : vector<128x128xf32>
    %cst_78 = arith.constant dense<0.000000e+00> : vector<128xf32>
    %168 = vector.multi_reduction <add>, %167, %cst_78 [1] : vector<128x128xf32> to vector<128xf32>
    %169 = vector.shape_cast %168 : vector<128xf32> to vector<128x1xf32>
    %170 = tpu.reciprocal %169 : vector<128x1xf32> -> vector<128x1xf32>
    %171 = vector.broadcast %170 : vector<128x1xf32> to vector<128x128xf32>
    %172 = arith.mulf %167, %171 : vector<128x128xf32>
    %c4 = arith.constant 4 : index
    %c0_79 = arith.constant 0 : index
    %c0_80 = arith.constant 0 : index
    %173 = vector.load %arg9[%c4, %c0_79, %c0_80] : memref<8x128x128xf32, #tpu.memory_space<vmem>>, vector<1x128x128xf32>
    %174 = vector.shape_cast %173 : vector<1x128x128xf32> to vector<128x128xf32>
    %175 = vector.shape_cast %172 : vector<128x128xf32> to vector<1x128x128xf32>
    tpu.vector_store %arg9[%c4, %c0_79, %c0_80], %175 {strides = array<i32>} : memref<8x128x128xf32, #tpu.memory_space<vmem>>, vector<1x128x128xf32>,
    %c0_81 = arith.constant 0 : index
    %c0_82 = arith.constant 0 : index
    %176 = vector.load %arg10[%c0_81, %c0_82] : memref<128x512xf32, #tpu.memory_space<vmem>>, vector<128x128xf32>
    tpu.vector_store %arg10[%c0_81, %c0_82], %172 {strides = array<i32>} : memref<128x512xf32, #tpu.memory_space<vmem>>, vector<128x128xf32>,
    %177 = vector.extract_strided_slice %145 {offsets = [0, 0], sizes = [128, 8], strides = [1, 1]} : vector<128x32xf32> to vector<128x8xf32>
    %c0_83 = arith.constant 0 : index
    %c0_84 = arith.constant 0 : index
    %178 = vector.load %arg11[%c0_83, %c0_84] : memref<512x32xf32, #tpu.memory_space<vmem>>, vector<128x8xf32>
    tpu.vector_store %arg11[%c0_83, %c0_84], %177 {strides = array<i32>} : memref<512x32xf32, #tpu.memory_space<vmem>>, vector<128x8xf32>,
    %179 = vector.extract_strided_slice %148 {offsets = [0, 1], sizes = [128, 1], strides = [1, 1]} : vector<128x4xf32> to vector<128x1xf32>
    %180 = vector.extract_strided_slice %150 {offsets = [1, 0], sizes = [1, 128], strides = [1, 1]} : vector<4x128xf32> to vector<1x128xf32>
    %181 = vector.broadcast %179 : vector<128x1xf32> to vector<128x128xf32>
    %182 = vector.broadcast %180 : vector<1x128xf32> to vector<128x128xf32>
    %183 = arith.addf %181, %182 : vector<128x128xf32>
    %cst_85 = arith.constant 0.000000e+00 : f32
    %184 = vector.broadcast %cst_85 : f32 to vector<128x128xf32>
    %185 = arith.cmpf ogt, %183, %184 : vector<128x128xf32>
    %cst_86 = arith.constant 2.000000e-01 : f32
    %186 = vector.broadcast %cst_86 : f32 to vector<128x128xf32>
    %187 = arith.mulf %186, %183 : vector<128x128xf32>
    %188 = arith.select %185, %183, %187 : vector<128x128xi1>, vector<128x128xf32>
    %cst_87 = arith.constant -9.000000e+15 : f32
    %189 = vector.broadcast %cst_87 : f32 to vector<128x128xf32>
    %190 = arith.select %2, %188, %189 : vector<128x128xi1>, vector<128x128xf32>
    %cst_88 = arith.constant dense<0xFF800000> : vector<128xf32>
    %191 = vector.multi_reduction <maximumf>, %190, %cst_88 [1] : vector<128x128xf32> to vector<128xf32>
    %192 = vector.shape_cast %191 : vector<128xf32> to vector<128x1xf32>
    %193 = vector.broadcast %192 : vector<128x1xf32> to vector<128x128xf32>
    %194 = arith.subf %190, %193 : vector<128x128xf32>
    %195 = math.exp %194 : vector<128x128xf32>
    %cst_89 = arith.constant dense<0.000000e+00> : vector<128xf32>
    %196 = vector.multi_reduction <add>, %195, %cst_89 [1] : vector<128x128xf32> to vector<128xf32>
    %197 = vector.shape_cast %196 : vector<128xf32> to vector<128x1xf32>
    %198 = tpu.reciprocal %197 : vector<128x1xf32> -> vector<128x1xf32>
    %199 = vector.broadcast %198 : vector<128x1xf32> to vector<128x128xf32>
    %200 = arith.mulf %195, %199 : vector<128x128xf32>
    %c5 = arith.constant 5 : index
    %c0_90 = arith.constant 0 : index
    %c0_91 = arith.constant 0 : index
    %201 = vector.load %arg9[%c5, %c0_90, %c0_91] : memref<8x128x128xf32, #tpu.memory_space<vmem>>, vector<1x128x128xf32>
    %202 = vector.shape_cast %201 : vector<1x128x128xf32> to vector<128x128xf32>
    %203 = vector.shape_cast %200 : vector<128x128xf32> to vector<1x128x128xf32>
    tpu.vector_store %arg9[%c5, %c0_90, %c0_91], %203 {strides = array<i32>} : memref<8x128x128xf32, #tpu.memory_space<vmem>>, vector<1x128x128xf32>,
    %c0_92 = arith.constant 0 : index
    %c128_93 = arith.constant 128 : index
    %204 = vector.load %arg10[%c0_92, %c128_93] : memref<128x512xf32, #tpu.memory_space<vmem>>, vector<128x128xf32>
    tpu.vector_store %arg10[%c0_92, %c128_93], %200 {strides = array<i32>} : memref<128x512xf32, #tpu.memory_space<vmem>>, vector<128x128xf32>,
    %205 = vector.extract_strided_slice %145 {offsets = [0, 8], sizes = [128, 8], strides = [1, 1]} : vector<128x32xf32> to vector<128x8xf32>
    %c128_94 = arith.constant 128 : index
    %c8_95 = arith.constant 8 : index
    %206 = vector.load %arg11[%c128_94, %c8_95] : memref<512x32xf32, #tpu.memory_space<vmem>>, vector<128x8xf32>
    tpu.vector_store %arg11[%c128_94, %c8_95], %205 {strides = array<i32>} : memref<512x32xf32, #tpu.memory_space<vmem>>, vector<128x8xf32>,
    %207 = vector.extract_strided_slice %148 {offsets = [0, 2], sizes = [128, 1], strides = [1, 1]} : vector<128x4xf32> to vector<128x1xf32>
    %208 = vector.extract_strided_slice %150 {offsets = [2, 0], sizes = [1, 128], strides = [1, 1]} : vector<4x128xf32> to vector<1x128xf32>
    %209 = vector.broadcast %207 : vector<128x1xf32> to vector<128x128xf32>
    %210 = vector.broadcast %208 : vector<1x128xf32> to vector<128x128xf32>
    %211 = arith.addf %209, %210 : vector<128x128xf32>
    %cst_96 = arith.constant 0.000000e+00 : f32
    %212 = vector.broadcast %cst_96 : f32 to vector<128x128xf32>
    %213 = arith.cmpf ogt, %211, %212 : vector<128x128xf32>
    %cst_97 = arith.constant 2.000000e-01 : f32
    %214 = vector.broadcast %cst_97 : f32 to vector<128x128xf32>
    %215 = arith.mulf %214, %211 : vector<128x128xf32>
    %216 = arith.select %213, %211, %215 : vector<128x128xi1>, vector<128x128xf32>
    %cst_98 = arith.constant -9.000000e+15 : f32
    %217 = vector.broadcast %cst_98 : f32 to vector<128x128xf32>
    %218 = arith.select %2, %216, %217 : vector<128x128xi1>, vector<128x128xf32>
    %cst_99 = arith.constant dense<0xFF800000> : vector<128xf32>
    %219 = vector.multi_reduction <maximumf>, %218, %cst_99 [1] : vector<128x128xf32> to vector<128xf32>
    %220 = vector.shape_cast %219 : vector<128xf32> to vector<128x1xf32>
    %221 = vector.broadcast %220 : vector<128x1xf32> to vector<128x128xf32>
    %222 = arith.subf %218, %221 : vector<128x128xf32>
    %223 = math.exp %222 : vector<128x128xf32>
    %cst_100 = arith.constant dense<0.000000e+00> : vector<128xf32>
    %224 = vector.multi_reduction <add>, %223, %cst_100 [1] : vector<128x128xf32> to vector<128xf32>
    %225 = vector.shape_cast %224 : vector<128xf32> to vector<128x1xf32>
    %226 = tpu.reciprocal %225 : vector<128x1xf32> -> vector<128x1xf32>
    %227 = vector.broadcast %226 : vector<128x1xf32> to vector<128x128xf32>
    %228 = arith.mulf %223, %227 : vector<128x128xf32>
    %c6 = arith.constant 6 : index
    %c0_101 = arith.constant 0 : index
    %c0_102 = arith.constant 0 : index
    %229 = vector.load %arg9[%c6, %c0_101, %c0_102] : memref<8x128x128xf32, #tpu.memory_space<vmem>>, vector<1x128x128xf32>
    %230 = vector.shape_cast %229 : vector<1x128x128xf32> to vector<128x128xf32>
    %231 = vector.shape_cast %228 : vector<128x128xf32> to vector<1x128x128xf32>
    tpu.vector_store %arg9[%c6, %c0_101, %c0_102], %231 {strides = array<i32>} : memref<8x128x128xf32, #tpu.memory_space<vmem>>, vector<1x128x128xf32>,
    %c0_103 = arith.constant 0 : index
    %c256_104 = arith.constant 256 : index
    %232 = vector.load %arg10[%c0_103, %c256_104] : memref<128x512xf32, #tpu.memory_space<vmem>>, vector<128x128xf32>
    tpu.vector_store %arg10[%c0_103, %c256_104], %228 {strides = array<i32>} : memref<128x512xf32, #tpu.memory_space<vmem>>, vector<128x128xf32>,
    %233 = vector.extract_strided_slice %145 {offsets = [0, 16], sizes = [128, 8], strides = [1, 1]} : vector<128x32xf32> to vector<128x8xf32>
    %c256_105 = arith.constant 256 : index
    %c16_106 = arith.constant 16 : index
    %234 = vector.load %arg11[%c256_105, %c16_106] : memref<512x32xf32, #tpu.memory_space<vmem>>, vector<128x8xf32>
    tpu.vector_store %arg11[%c256_105, %c16_106], %233 {strides = array<i32>} : memref<512x32xf32, #tpu.memory_space<vmem>>, vector<128x8xf32>,
    %235 = vector.extract_strided_slice %148 {offsets = [0, 3], sizes = [128, 1], strides = [1, 1]} : vector<128x4xf32> to vector<128x1xf32>
    %236 = vector.extract_strided_slice %150 {offsets = [3, 0], sizes = [1, 128], strides = [1, 1]} : vector<4x128xf32> to vector<1x128xf32>
    %237 = vector.broadcast %235 : vector<128x1xf32> to vector<128x128xf32>
    %238 = vector.broadcast %236 : vector<1x128xf32> to vector<128x128xf32>
    %239 = arith.addf %237, %238 : vector<128x128xf32>
    %cst_107 = arith.constant 0.000000e+00 : f32
    %240 = vector.broadcast %cst_107 : f32 to vector<128x128xf32>
    %241 = arith.cmpf ogt, %239, %240 : vector<128x128xf32>
    %cst_108 = arith.constant 2.000000e-01 : f32
    %242 = vector.broadcast %cst_108 : f32 to vector<128x128xf32>
    %243 = arith.mulf %242, %239 : vector<128x128xf32>
    %244 = arith.select %241, %239, %243 : vector<128x128xi1>, vector<128x128xf32>
    %cst_109 = arith.constant -9.000000e+15 : f32
    %245 = vector.broadcast %cst_109 : f32 to vector<128x128xf32>
    %246 = arith.select %2, %244, %245 : vector<128x128xi1>, vector<128x128xf32>
    %cst_110 = arith.constant dense<0xFF800000> : vector<128xf32>
    %247 = vector.multi_reduction <maximumf>, %246, %cst_110 [1] : vector<128x128xf32> to vector<128xf32>
    %248 = vector.shape_cast %247 : vector<128xf32> to vector<128x1xf32>
    %249 = vector.broadcast %248 : vector<128x1xf32> to vector<128x128xf32>
    %250 = arith.subf %246, %249 : vector<128x128xf32>
    %251 = math.exp %250 : vector<128x128xf32>
    %cst_111 = arith.constant dense<0.000000e+00> : vector<128xf32>
    %252 = vector.multi_reduction <add>, %251, %cst_111 [1] : vector<128x128xf32> to vector<128xf32>
    %253 = vector.shape_cast %252 : vector<128xf32> to vector<128x1xf32>
    %254 = tpu.reciprocal %253 : vector<128x1xf32> -> vector<128x1xf32>
    %255 = vector.broadcast %254 : vector<128x1xf32> to vector<128x128xf32>
    %256 = arith.mulf %251, %255 : vector<128x128xf32>
    %c7 = arith.constant 7 : index
    %c0_112 = arith.constant 0 : index
    %c0_113 = arith.constant 0 : index
    %257 = vector.load %arg9[%c7, %c0_112, %c0_113] : memref<8x128x128xf32, #tpu.memory_space<vmem>>, vector<1x128x128xf32>
    %258 = vector.shape_cast %257 : vector<1x128x128xf32> to vector<128x128xf32>
    %259 = vector.shape_cast %256 : vector<128x128xf32> to vector<1x128x128xf32>
    tpu.vector_store %arg9[%c7, %c0_112, %c0_113], %259 {strides = array<i32>} : memref<8x128x128xf32, #tpu.memory_space<vmem>>, vector<1x128x128xf32>,
    %c0_114 = arith.constant 0 : index
    %c384_115 = arith.constant 384 : index
    %260 = vector.load %arg10[%c0_114, %c384_115] : memref<128x512xf32, #tpu.memory_space<vmem>>, vector<128x128xf32>
    tpu.vector_store %arg10[%c0_114, %c384_115], %256 {strides = array<i32>} : memref<128x512xf32, #tpu.memory_space<vmem>>, vector<128x128xf32>,
    %261 = vector.extract_strided_slice %145 {offsets = [0, 24], sizes = [128, 8], strides = [1, 1]} : vector<128x32xf32> to vector<128x8xf32>
    %c384_116 = arith.constant 384 : index
    %c24_117 = arith.constant 24 : index
    %262 = vector.load %arg11[%c384_116, %c24_117] : memref<512x32xf32, #tpu.memory_space<vmem>>, vector<128x8xf32>
    tpu.vector_store %arg11[%c384_116, %c24_117], %261 {strides = array<i32>} : memref<512x32xf32, #tpu.memory_space<vmem>>, vector<128x8xf32>,
    %c0_118 = arith.constant 0 : index
    %c0_119 = arith.constant 0 : index
    %263 = vector.load %arg10[%c0_118, %c0_119] : memref<128x512xf32, #tpu.memory_space<vmem>>, vector<128x512xf32>
    %c0_120 = arith.constant 0 : index
    %c0_121 = arith.constant 0 : index
    %264 = vector.load %arg11[%c0_120, %c0_121] : memref<512x32xf32, #tpu.memory_space<vmem>>, vector<512x32xf32>
    %cst_122 = arith.constant dense<0.000000e+00> : vector<128x32xf32>
    %265 = tpu.matmul %263, %264, %cst_122 {dimension_numbers = #tpu.dot_dimension_numbers<[1], [0], [0], [1], [0, 0, 1, 1], [], []>} : vector<128x512xf32>, vector<512x32xf32>, vector<128x32xf32> -> vector<128x32xf32>
    %cst_123 = arith.constant 0.000000e+00 : f32
    %266 = vector.broadcast %cst_123 : f32 to vector<128x32xf32>
    %267 = arith.cmpf ogt, %265, %266 : vector<128x32xf32>
    %cst_124 = arith.constant 0.000000e+00 : f32
    %268 = vector.broadcast %cst_124 : f32 to vector<128x32xf32>
    %269 = arith.minimumf %265, %268 : vector<128x32xf32>
    %270 = math.exp %269 : vector<128x32xf32>
    %cst_125 = arith.constant 1.000000e+00 : f32
    %271 = vector.broadcast %cst_125 : f32 to vector<128x32xf32>
    %272 = arith.subf %270, %271 : vector<128x32xf32>
    %273 = arith.select %267, %265, %272 : vector<128x32xi1>, vector<128x32xf32>
    %cst_126 = arith.constant 0.000000e+00 : f32
    %274 = vector.broadcast %cst_126 : f32 to vector<128x32xf32>
    %275 = arith.cmpf ogt, %273, %274 : vector<128x32xf32>
    %cst_127 = arith.constant 0.000000e+00 : f32
    %276 = vector.broadcast %cst_127 : f32 to vector<128x32xf32>
    %277 = arith.minimumf %273, %276 : vector<128x32xf32>
    %278 = math.exp %277 : vector<128x32xf32>
    %cst_128 = arith.constant 1.000000e+00 : f32
    %279 = vector.broadcast %cst_128 : f32 to vector<128x32xf32>
    %280 = arith.subf %278, %279 : vector<128x32xf32>
    %281 = arith.select %275, %273, %280 : vector<128x32xi1>, vector<128x32xf32>
    %c0_129 = arith.constant 0 : index
    %c0_130 = arith.constant 0 : index
    %282 = vector.load %arg8[%c0_129, %c0_130] : memref<128x32xf32, #tpu.memory_space<vmem>>, vector<128x32xf32>
    tpu.vector_store %arg8[%c0_129, %c0_130], %281 {strides = array<i32>} : memref<128x32xf32, #tpu.memory_space<vmem>>, vector<128x32xf32>,
    return
  }
}

</mosaic_0001>

<bundles_post_ra>
// kernel: tpu_custom_call.1
= control target key start
LH: loop header
LB: loop body
LE: loop exit
PB: predicated region body
PF: predicated region fallthrough
CT: control target
= control target key end

     0   :  { %vm64_vm0 = vcmask 261120   ;;  %v6900_v3 = vmov 0.0   ;;  %s9722_s0 = inlined_call_operand.vmem [shape: f32[128,32], index: 0, kind: input, shape index: {}]   ;;  %s9723_s1 = inlined_call_operand.vmem [shape: f32[128,128], index: 1, kind: input, shape index: {}]   ;;  %s9724_s2 = inlined_call_operand.vmem [shape: f32[32,32], index: 2, kind: input, shape index: {}]   ;;  %s9725_s3 = inlined_call_operand.vmem [shape: f32[32,4], index: 3, kind: input, shape index: {}]   ;;  %s9726_s4 = inlined_call_operand.vmem [shape: f32[32,4], index: 4, kind: input, shape index: {}]   ;;  %s9727_s5 = inlined_call_operand.vmem [shape: f32[32,32], index: 5, kind: input, shape index: {}]   ;;  %s9728_s6 = inlined_call_operand.vmem [shape: f32[32,4], index: 6, kind: input, shape index: {}]   ;;  %s9729_s7 = inlined_call_operand.vmem [shape: f32[32,4], index: 7, kind: input, shape index: {}]   ;;  %s9730_s8 = inlined_call_operand.vmem [shape: f32[128,32], index: 8, kind: output, shape index: {0}]   ;;  %s9731_s9 = inlined_call_operand.hbm [shape: f32[8,128,128], index: 9, kind: output, shape index: {1}]  }
   0x1   :  { %v6961_v0 = vld [vmem:[%s9724_s2 + $0x18] sm:$0xff]  ;;  %v6966_v1 = vld [vmem:[%s9724_s2 + $0x10] sm:$0xff]  ;;  %v6972_v2 = vld [vmem:[%s9722_s0] sm:$0xff]  ;;  %66 = vst.msk [vmem:[#allocation3 + $0x8] sm:$0xff] %vm64_vm0, %v6900_v3 }
   0x2   :  { %5914 = vmatprep.subr.mxu0 %v6961_v0  ;;  %82 = vst.msk [vmem:[#allocation3 + $0x88] sm:$0xff] %vm64_vm0, %v6900_v3  ;;  %98 = vst.msk [vmem:[#allocation3 + $0x108] sm:$0xff] %vm64_vm0, %v6900_v3  ;;  %v146_v4 = vld [vmem:[%s9724_s2 + $0x8] sm:$0xff]  ;;  %5922 = vmatprep.mubr.msk.f32.mxu0 %vm64_vm0, %v6972_v2  ;;  %v145_v5 = vld [vmem:[%s9724_s2] sm:$0xff] }
   0x3   :  { %114 = vst.msk [vmem:[#allocation3 + $0x188] sm:$0xff] %vm64_vm0, %v6900_v3  ;;  %65 = vst.msk [vmem:[#allocation3] sm:$0xff] %vm64_vm0, %v6900_v3  ;;  %5915 = vmatpush3.msra.mxu0 %v6961_v0  ;;  %v130_v6 = vld [vmem:[%s9722_s0 + $0x8] sm:$0xff]  ;;  %v345_v7 = vld [vmem:[%s9725_s3 + $0x18] sm:$0xff] }
   0x4   :  { %67 = vst.msk [vmem:[#allocation3 + $0x10] sm:$0xff] %vm64_vm0, %v6900_v3  ;;  %68 = vst.msk [vmem:[#allocation3 + $0x18] sm:$0xff] %vm64_vm0, %v6900_v3  ;;  %5916 = vmatprep.subr.mxu0 %v6966_v1  ;;  %v131_v8 = vld [vmem:[%s9722_s0 + $0x10] sm:$0xff]  ;;  %5946 = vmatprep.subr.mxu1 %v345_v7  ;;  %v349_v9 = vld [vmem:[%s9726_s4 + $0x18] sm:$0xff] }
   0x5   :  { %69 = vst.msk [vmem:[#allocation3 + $0x20] sm:$0xff] %vm64_vm0, %v6900_v3  ;;  %70 = vst.msk [vmem:[#allocation3 + $0x28] sm:$0xff] %vm64_vm0, %v6900_v3  ;;  %5917 = vmatpush3.msra.mxu0 %v6966_v1  ;;  %5947 = vmatpush3.msra.mxu1 %v345_v7  ;;  %v344_v10 = vld [vmem:[%s9725_s3 + $0x10] sm:$0xff] }
   0x6   :  { %71 = vst.msk [vmem:[#allocation3 + $0x30] sm:$0xff] %vm64_vm0, %v6900_v3  ;;  %72 = vst.msk [vmem:[#allocation3 + $0x38] sm:$0xff] %vm64_vm0, %v6900_v3  ;;  %5918 = vmatprep.subr.mxu0 %v146_v4  ;;  %v348_v11 = vld [vmem:[%s9726_s4 + $0x10] sm:$0xff] }
   0x7   :  { %73 = vst.msk [vmem:[#allocation3 + $0x40] sm:$0xff] %vm64_vm0, %v6900_v3  ;;  %74 = vst.msk [vmem:[#allocation3 + $0x48] sm:$0xff] %vm64_vm0, %v6900_v3  ;;  %5919 = vmatpush3.msra.mxu0 %v146_v4 }
   0x8   :  { %75 = vst.msk [vmem:[#allocation3 + $0x50] sm:$0xff] %vm64_vm0, %v6900_v3  ;;  %76 = vst.msk [vmem:[#allocation3 + $0x58] sm:$0xff] %vm64_vm0, %v6900_v3  ;;  %5920 = vmatprep.subr.mxu0 %v145_v5 }
   0x9   :  { %77 = vst.msk [vmem:[#allocation3 + $0x60] sm:$0xff] %vm64_vm0, %v6900_v3  ;;  %78 = vst.msk [vmem:[#allocation3 + $0x68] sm:$0xff] %vm64_vm0, %v6900_v3  ;;  %5921 = vmatpush3.msra.mxu0 %v145_v5 }
   0xa   :  { %79 = vst.msk [vmem:[#allocation3 + $0x70] sm:$0xff] %vm64_vm0, %v6900_v3  ;;  %80 = vst.msk [vmem:[#allocation3 + $0x78] sm:$0xff] %vm64_vm0, %v6900_v3 }
   0xb   :  { %81 = vst.msk [vmem:[#allocation3 + $0x80] sm:$0xff] %vm64_vm0, %v6900_v3  ;;  %83 = vst.msk [vmem:[#allocation3 + $0x90] sm:$0xff] %vm64_vm0, %v6900_v3 }
   0xc   :  { %84 = vst.msk [vmem:[#allocation3 + $0x98] sm:$0xff] %vm64_vm0, %v6900_v3  ;;  %85 = vst.msk [vmem:[#allocation3 + $0xa0] sm:$0xff] %vm64_vm0, %v6900_v3 }
   0xd   :  { %86 = vst.msk [vmem:[#allocation3 + $0xa8] sm:$0xff] %vm64_vm0, %v6900_v3  ;;  %87 = vst.msk [vmem:[#allocation3 + $0xb0] sm:$0xff] %vm64_vm0, %v6900_v3 }
   0xe   :  { %88 = vst.msk [vmem:[#allocation3 + $0xb8] sm:$0xff] %vm64_vm0, %v6900_v3  ;;  %89 = vst.msk [vmem:[#allocation3 + $0xc0] sm:$0xff] %vm64_vm0, %v6900_v3 }
   0xf   :  { %90 = vst.msk [vmem:[#allocation3 + $0xc8] sm:$0xff] %vm64_vm0, %v6900_v3  ;;  %91 = vst.msk [vmem:[#allocation3 + $0xd0] sm:$0xff] %vm64_vm0, %v6900_v3 }
  0x10   :  { %92 = vst.msk [vmem:[#allocation3 + $0xd8] sm:$0xff] %vm64_vm0, %v6900_v3  ;;  %93 = vst.msk [vmem:[#allocation3 + $0xe0] sm:$0xff] %vm64_vm0, %v6900_v3 }
  0x11   :  { %94 = vst.msk [vmem:[#allocation3 + $0xe8] sm:$0xff] %vm64_vm0, %v6900_v3  ;;  %95 = vst.msk [vmem:[#allocation3 + $0xf0] sm:$0xff] %vm64_vm0, %v6900_v3 }
  0x12   :  { %96 = vst.msk [vmem:[#allocation3 + $0xf8] sm:$0xff] %vm64_vm0, %v6900_v3  ;;  %97 = vst.msk [vmem:[#allocation3 + $0x100] sm:$0xff] %vm64_vm0, %v6900_v3 }
  0x13   :  { %99 = vst.msk [vmem:[#allocation3 + $0x110] sm:$0xff] %vm64_vm0, %v6900_v3  ;;  %100 = vst.msk [vmem:[#allocation3 + $0x118] sm:$0xff] %vm64_vm0, %v6900_v3 }
  0x14   :  { %101 = vst.msk [vmem:[#allocation3 + $0x120] sm:$0xff] %vm64_vm0, %v6900_v3  ;;  %102 = vst.msk [vmem:[#allocation3 + $0x128] sm:$0xff] %vm64_vm0, %v6900_v3 }
  0x15   :  { %103 = vst.msk [vmem:[#allocation3 + $0x130] sm:$0xff] %vm64_vm0, %v6900_v3  ;;  %104 = vst.msk [vmem:[#allocation3 + $0x138] sm:$0xff] %vm64_vm0, %v6900_v3 }
  0x16   :  { %105 = vst.msk [vmem:[#allocation3 + $0x140] sm:$0xff] %vm64_vm0, %v6900_v3  ;;  %106 = vst.msk [vmem:[#allocation3 + $0x148] sm:$0xff] %vm64_vm0, %v6900_v3 }
  0x17   :  { %107 = vst.msk [vmem:[#allocation3 + $0x150] sm:$0xff] %vm64_vm0, %v6900_v3  ;;  %108 = vst.msk [vmem:[#allocation3 + $0x158] sm:$0xff] %vm64_vm0, %v6900_v3 }
  0x18   :  { %109 = vst.msk [vmem:[#allocation3 + $0x160] sm:$0xff] %vm64_vm0, %v6900_v3  ;;  %110 = vst.msk [vmem:[#allocation3 + $0x168] sm:$0xff] %vm64_vm0, %v6900_v3 }
  0x19   :  { %111 = vst.msk [vmem:[#allocation3 + $0x170] sm:$0xff] %vm64_vm0, %v6900_v3  ;;  %112 = vst.msk [vmem:[#allocation3 + $0x178] sm:$0xff] %vm64_vm0, %v6900_v3 }
  0x1a   :  { %113 = vst.msk [vmem:[#allocation3 + $0x180] sm:$0xff] %vm64_vm0, %v6900_v3  ;;  %115 = vst.msk [vmem:[#allocation3 + $0x190] sm:$0xff] %vm64_vm0, %v6900_v3 }
  0x1b   :  { %116 = vst.msk [vmem:[#allocation3 + $0x198] sm:$0xff] %vm64_vm0, %v6900_v3  ;;  %117 = vst.msk [vmem:[#allocation3 + $0x1a0] sm:$0xff] %vm64_vm0, %v6900_v3 }
  0x1c   :  { %118 = vst.msk [vmem:[#allocation3 + $0x1a8] sm:$0xff] %vm64_vm0, %v6900_v3  ;;  %119 = vst.msk [vmem:[#allocation3 + $0x1b0] sm:$0xff] %vm64_vm0, %v6900_v3 }
  0x1d   :  { %120 = vst.msk [vmem:[#allocation3 + $0x1b8] sm:$0xff] %vm64_vm0, %v6900_v3  ;;  %121 = vst.msk [vmem:[#allocation3 + $0x1c0] sm:$0xff] %vm64_vm0, %v6900_v3 }
  0x1e   :  { %122 = vst.msk [vmem:[#allocation3 + $0x1c8] sm:$0xff] %vm64_vm0, %v6900_v3  ;;  %123 = vst.msk [vmem:[#allocation3 + $0x1d0] sm:$0xff] %vm64_vm0, %v6900_v3 }
  0x1f   :  { %124 = vst.msk [vmem:[#allocation3 + $0x1d8] sm:$0xff] %vm64_vm0, %v6900_v3  ;;  %125 = vst.msk [vmem:[#allocation3 + $0x1e0] sm:$0xff] %vm64_vm0, %v6900_v3 }
  0x20   :  { %126 = vst.msk [vmem:[#allocation3 + $0x1e8] sm:$0xff] %vm64_vm0, %v6900_v3  ;;  %127 = vst.msk [vmem:[#allocation3 + $0x1f0] sm:$0xff] %vm64_vm0, %v6900_v3 }
  0x21   :  { %128 = vst.msk [vmem:[#allocation3 + $0x1f8] sm:$0xff] %vm64_vm0, %v6900_v3 }
  0x22   :  { %15 = vsyncpa [#allocation5], 0  ;;  %5923 = vmatmul.mubr.msk.f32.vlgmr.msra.gmra.mxu0 %vm64_vm0, %v130_v6  ;;  %5978 = vmatprep.subr.mxu0 %v349_v9  ;;  %v132_v12 = vld [vmem:[%s9722_s0 + $0x18] sm:$0xff]  ;;  %v133_v13 = vld [vmem:[%s9722_s0 + $0x20] sm:$0xff]  ;;  %v9739_v29 = vmov 3   ;;  %v9741_v30 = vmov 1  }
  0x23   :  { %5925 = vmatprep.mubr.msk.f32.mxu0 %vm64_vm0, %v131_v8  ;;  %5979 = vmatpush3.msra.mxu0 %v349_v9  ;;  %v134_v14 = vld [vmem:[%s9722_s0 + $0x28] sm:$0xff]  ;;  %v135_v15 = vld [vmem:[%s9722_s0 + $0x30] sm:$0xff]  ;;  %v136_v16 = vld [vmem:[%s9722_s0 + $0x38] sm:$0xff]  ;;  %vm1060_vm1 = vcmask 64512   ;;  %vm9753_vm2 = vcmask 130112   ;;  %vm9749_vm3 = vcmask 195712  }
  0x24   :  { %5948 = vmatprep.subr.mxu1 %v344_v10  ;;  %5980 = vmatprep.subr.mxu0 %v348_v11  ;;  %v137_v17 = vld [vmem:[%s9722_s0 + $0x40] sm:$0xff]  ;;  %v138_v18 = vld [vmem:[%s9722_s0 + $0x48] sm:$0xff]  ;;  %v139_v19 = vld [vmem:[%s9722_s0 + $0x50] sm:$0xff]  ;;  %vm9748_vm4 = vcmask 261312   ;;  %s6905_s24 = smov [#allocation4]  }
  0x25   :  { %5949 = vmatpush3.msra.mxu1 %v344_v10  ;;  %5981 = vmatpush3.msra.mxu0 %v348_v11  ;;  %v140_v20 = vld [vmem:[%s9722_s0 + $0x58] sm:$0xff]  ;;  %v141_v21 = vld [vmem:[%s9722_s0 + $0x60] sm:$0xff]  ;;  %v142_v22 = vld [vmem:[%s9722_s0 + $0x68] sm:$0xff] }
  0x26   :  { %5926 = vmatmul.mubr.msk.f32.gmra.mxu0 %vm64_vm0, %v132_v12  ;;  %v143_v23 = vld [vmem:[%s9722_s0 + $0x70] sm:$0xff]  ;;  %v144_v24 = vld [vmem:[%s9722_s0 + $0x78] sm:$0xff]  ;;  %v343_v25 = vld [vmem:[%s9725_s3 + $0x8] sm:$0xff]  ;;  %6115 = vset.pattern.permute.xlu0 %v9739_v29 }
  0x27   :  { %5928 = vmatprep.mubr.msk.f32.mxu0 %vm64_vm0, %v133_v13  ;;  %v347_v26 = vld [vmem:[%s9726_s4 + $0x8] sm:$0xff]  ;;  %5950 = vmatprep.subr.mxu1 %v343_v25  ;;  %v342_v27 = vld [vmem:[%s9725_s3] sm:$0xff] }
  0x28   :  { %5982 = vmatprep.subr.mxu0 %v347_v26  ;;  %5951 = vmatpush3.msra.mxu1 %v343_v25  ;;  %v346_v28 = vld [vmem:[%s9726_s4] sm:$0xff] }
  0x29   :  { %5983 = vmatpush3.msra.mxu0 %v347_v26  ;;  %5952 = vmatprep.subr.mxu1 %v342_v27 }
  0x2a   :  { %5929 = vmatmul.mubr.msk.f32.gmra.mxu0 %vm64_vm0, %v134_v14  ;;  %5984 = vmatprep.subr.mxu0 %v346_v28 }
  0x2b   :  { %5931 = vmatprep.mubr.msk.f32.mxu0 %vm64_vm0, %v135_v15  ;;  %5953 = vmatpush3.msra.mxu1 %v342_v27 }
  0x2c   :  { %5985 = vmatpush3.msra.mxu0 %v346_v28  ;;  %6114 = vset.pattern.permute.xlu1 %v9741_v30 }
  0x2e   :  { %5932 = vmatmul.mubr.msk.f32.gmra.mxu0 %vm64_vm0, %v136_v16 }
  0x2f   :  { %5934 = vmatprep.mubr.msk.f32.mxu0 %vm64_vm0, %v137_v17 }
  0x32   :  { %5935 = vmatmul.mubr.msk.f32.gmra.mxu0 %vm64_vm0, %v138_v18 }
  0x33   :  { %5937 = vmatprep.mubr.msk.f32.mxu0 %vm64_vm0, %v139_v19 }
  0x36   :  { %5938 = vmatmul.mubr.msk.f32.gmra.mxu0 %vm64_vm0, %v140_v20 }
  0x37   :  { %5940 = vmatprep.mubr.msk.f32.mxu0 %vm64_vm0, %v141_v21 }
  0x3a   :  { %5941 = vmatmul.mubr.msk.f32.gmra.mxu0 %vm64_vm0, %v142_v22 }
  0x3b   :  { %5943 = vmatprep.mubr.msk.f32.mxu0 %vm64_vm0, %v143_v23 }
  0x3e   :  { %5944 = vmatmul.mubr.msk.f32.gmra.mxu0 %vm64_vm0, %v144_v24 }
  0xe2   :  { %v5924_v31 = vpop.f32.mrf.mxu0 }
  0xe3   :  { %1062 = vst.msk [vmem:[#allocation3 + $0x8] sm:$0xff] %vm1060_vm1, %v5924_v31 }
  0xe4   :  { %1404 = vst.msk [vmem:[#allocation3 + $0x88] sm:$0xff] %vm9753_vm2, %v5924_v31  ;;  %v263_v32 = vpop.f32.mrf.mxu0 }
  0xe5   :  { %1746 = vst.msk [vmem:[#allocation3 + $0x108] sm:$0xff] %vm9749_vm3, %v5924_v31  ;;  %1745 = vst.msk [vmem:[#allocation3 + $0x100] sm:$0xff] %vm9749_vm3, %v263_v32  ;;  %5954 = vmatprep.mubr.msk.f32.mxu1 %vm64_vm0, %v263_v32  ;;  %5986 = vmatprep.mubr.msk.f32.mxu0 %vm64_vm0, %v263_v32 }
  0xe6   :  { %2088 = vst.msk [vmem:[#allocation3 + $0x188] sm:$0xff] %vm9748_vm4, %v5924_v31  ;;  %2087 = vst.msk [vmem:[#allocation3 + $0x180] sm:$0xff] %vm9748_vm4, %v263_v32  ;;  %v5927_v33 = vpop.f32.mrf.mxu0  ;;  %5955 = vmatmul.mubr.msk.f32.vlgmr.msra.gmra.mxu1 %vm64_vm0, %v5924_v31  ;;  %5987 = vmatmul.mubr.msk.f32.vlgmr.msra.gmra.mxu0 %vm64_vm0, %v5924_v31 }
  0xe7   :  { %1061 = vst.msk [vmem:[#allocation3] sm:$0xff] %vm1060_vm1, %v263_v32  ;;  %1064 = vst.msk [vmem:[#allocation3 + $0x18] sm:$0xff] %vm1060_vm1, %v5927_v33 }
  0xe8   :  { %1403 = vst.msk [vmem:[#allocation3 + $0x80] sm:$0xff] %vm9753_vm2, %v263_v32  ;;  %1406 = vst.msk [vmem:[#allocation3 + $0x98] sm:$0xff] %vm9753_vm2, %v5927_v33  ;;  %v273_v34 = vpop.f32.mrf.mxu0 }
  0xe9   :  { %1748 = vst.msk [vmem:[#allocation3 + $0x118] sm:$0xff] %vm9749_vm3, %v5927_v33  ;;  %1747 = vst.msk [vmem:[#allocation3 + $0x110] sm:$0xff] %vm9749_vm3, %v273_v34  ;;  %5957 = vmatprep.mubr.msk.f32.mxu1 %vm64_vm0, %v273_v34  ;;  %5989 = vmatprep.mubr.msk.f32.mxu0 %vm64_vm0, %v273_v34 }
  0xea   :  { %2090 = vst.msk [vmem:[#allocation3 + $0x198] sm:$0xff] %vm9748_vm4, %v5927_v33  ;;  %2089 = vst.msk [vmem:[#allocation3 + $0x190] sm:$0xff] %vm9748_vm4, %v273_v34  ;;  %v5930_v35 = vpop.f32.mrf.mxu0  ;;  %5958 = vmatmul.mubr.msk.f32.gmra.mxu1 %vm64_vm0, %v5927_v33  ;;  %5990 = vmatmul.mubr.msk.f32.gmra.mxu0 %vm64_vm0, %v5927_v33 }
  0xeb   :  { %1063 = vst.msk [vmem:[#allocation3 + $0x10] sm:$0xff] %vm1060_vm1, %v273_v34  ;;  %1066 = vst.msk [vmem:[#allocation3 + $0x28] sm:$0xff] %vm1060_vm1, %v5930_v35 }
  0xec   :  { %1405 = vst.msk [vmem:[#allocation3 + $0x90] sm:$0xff] %vm9753_vm2, %v273_v34  ;;  %1408 = vst.msk [vmem:[#allocation3 + $0xa8] sm:$0xff] %vm9753_vm2, %v5930_v35  ;;  %v283_v36 = vpop.f32.mrf.mxu0 }
  0xed   :  { %1750 = vst.msk [vmem:[#allocation3 + $0x128] sm:$0xff] %vm9749_vm3, %v5930_v35  ;;  %1749 = vst.msk [vmem:[#allocation3 + $0x120] sm:$0xff] %vm9749_vm3, %v283_v36  ;;  %5960 = vmatprep.mubr.msk.f32.mxu1 %vm64_vm0, %v283_v36  ;;  %5992 = vmatprep.mubr.msk.f32.mxu0 %vm64_vm0, %v283_v36 }
  0xee   :  { %2092 = vst.msk [vmem:[#allocation3 + $0x1a8] sm:$0xff] %vm9748_vm4, %v5930_v35  ;;  %2091 = vst.msk [vmem:[#allocation3 + $0x1a0] sm:$0xff] %vm9748_vm4, %v283_v36  ;;  %v5933_v37 = vpop.f32.mrf.mxu0  ;;  %5961 = vmatmul.mubr.msk.f32.gmra.mxu1 %vm64_vm0, %v5930_v35  ;;  %5993 = vmatmul.mubr.msk.f32.gmra.mxu0 %vm64_vm0, %v5930_v35  ;;  %v2170_v35 = vld [vmem:[#allocation3 + $0x18] sm:$0xff] }
  0xef   :  { %1065 = vst.msk [vmem:[#allocation3 + $0x20] sm:$0xff] %vm1060_vm1, %v283_v36  ;;  %1068 = vst.msk [vmem:[#allocation3 + $0x38] sm:$0xff] %vm1060_vm1, %v5933_v37  ;;  %v2186_v33 = vld [vmem:[#allocation3 + $0x98] sm:$0xff] }
  0xf0   :  { %1407 = vst.msk [vmem:[#allocation3 + $0xa0] sm:$0xff] %vm9753_vm2, %v283_v36  ;;  %1410 = vst.msk [vmem:[#allocation3 + $0xb8] sm:$0xff] %vm9753_vm2, %v5933_v37  ;;  %v293_v38 = vpop.f32.mrf.mxu0  ;;  %v2202_v36 = vld [vmem:[#allocation3 + $0x118] sm:$0xff] }
  0xf1   :  { %1752 = vst.msk [vmem:[#allocation3 + $0x138] sm:$0xff] %vm9749_vm3, %v5933_v37  ;;  %1751 = vst.msk [vmem:[#allocation3 + $0x130] sm:$0xff] %vm9749_vm3, %v293_v38  ;;  %5963 = vmatprep.mubr.msk.f32.mxu1 %vm64_vm0, %v293_v38  ;;  %5995 = vmatprep.mubr.msk.f32.mxu0 %vm64_vm0, %v293_v38  ;;  %v2218_v34 = vld [vmem:[#allocation3 + $0x198] sm:$0xff] }
  0xf2   :  { %2094 = vst.msk [vmem:[#allocation3 + $0x1b8] sm:$0xff] %vm9748_vm4, %v5933_v37  ;;  %2093 = vst.msk [vmem:[#allocation3 + $0x1b0] sm:$0xff] %vm9748_vm4, %v293_v38  ;;  %v5936_v39 = vpop.f32.mrf.mxu0  ;;  %5964 = vmatmul.mubr.msk.f32.gmra.mxu1 %vm64_vm0, %v5933_v37  ;;  %5996 = vmatmul.mubr.msk.f32.gmra.mxu0 %vm64_vm0, %v5933_v37  ;;  %v2172_v25 = vld [vmem:[#allocation3 + $0x28] sm:$0xff] }
  0xf3   :  { %1067 = vst.msk [vmem:[#allocation3 + $0x30] sm:$0xff] %vm1060_vm1, %v293_v38  ;;  %1070 = vst.msk [vmem:[#allocation3 + $0x48] sm:$0xff] %vm1060_vm1, %v5936_v39  ;;  %v2188_v23 = vld [vmem:[#allocation3 + $0xa8] sm:$0xff]  ;;  %v2185_v37 = vld [vmem:[#allocation3 + $0x90] sm:$0xff] }
  0xf4   :  { %1409 = vst.msk [vmem:[#allocation3 + $0xb0] sm:$0xff] %vm9753_vm2, %v293_v38  ;;  %1412 = vst.msk [vmem:[#allocation3 + $0xc8] sm:$0xff] %vm9753_vm2, %v5936_v39  ;;  %v303_v40 = vpop.f32.mrf.mxu0  ;;  %v2204_v26 = vld [vmem:[#allocation3 + $0x128] sm:$0xff]  ;;  %v2203_v32 = vld [vmem:[#allocation3 + $0x120] sm:$0xff] }
  0xf5   :  { %1754 = vst.msk [vmem:[#allocation3 + $0x148] sm:$0xff] %vm9749_vm3, %v5936_v39  ;;  %1753 = vst.msk [vmem:[#allocation3 + $0x140] sm:$0xff] %vm9749_vm3, %v303_v40  ;;  %5966 = vmatprep.mubr.msk.f32.mxu1 %vm64_vm0, %v303_v40  ;;  %5998 = vmatprep.mubr.msk.f32.mxu0 %vm64_vm0, %v303_v40  ;;  %v2220_v24 = vld [vmem:[#allocation3 + $0x1a8] sm:$0xff]  ;;  %v2219_v28 = vld [vmem:[#allocation3 + $0x1a0] sm:$0xff] }
  0xf6   :  { %2096 = vst.msk [vmem:[#allocation3 + $0x1c8] sm:$0xff] %vm9748_vm4, %v5936_v39  ;;  %2095 = vst.msk [vmem:[#allocation3 + $0x1c0] sm:$0xff] %vm9748_vm4, %v303_v40  ;;  %v5939_v41 = vpop.f32.mrf.mxu0  ;;  %5967 = vmatmul.mubr.msk.f32.gmra.mxu1 %vm64_vm0, %v5936_v39  ;;  %5999 = vmatmul.mubr.msk.f32.gmra.mxu0 %vm64_vm0, %v5936_v39  ;;  %v2174_v17 = vld [vmem:[#allocation3 + $0x38] sm:$0xff]  ;;  %v2171_v31 = vld [vmem:[#allocation3 + $0x20] sm:$0xff] }
  0xf7   :  { %1069 = vst.msk [vmem:[#allocation3 + $0x40] sm:$0xff] %vm1060_vm1, %v303_v40  ;;  %1072 = vst.msk [vmem:[#allocation3 + $0x58] sm:$0xff] %vm1060_vm1, %v5939_v41  ;;  %v2190_v15 = vld [vmem:[#allocation3 + $0xb8] sm:$0xff]  ;;  %v2187_v27 = vld [vmem:[#allocation3 + $0xa0] sm:$0xff] }
  0xf8   :  { %1411 = vst.msk [vmem:[#allocation3 + $0xc0] sm:$0xff] %vm9753_vm2, %v303_v40  ;;  %1414 = vst.msk [vmem:[#allocation3 + $0xd8] sm:$0xff] %vm9753_vm2, %v5939_v41  ;;  %v313_v42 = vpop.f32.mrf.mxu0  ;;  %v2206_v18 = vld [vmem:[#allocation3 + $0x138] sm:$0xff]  ;;  %v2205_v22 = vld [vmem:[#allocation3 + $0x130] sm:$0xff] }
  0xf9   :  { %1756 = vst.msk [vmem:[#allocation3 + $0x158] sm:$0xff] %vm9749_vm3, %v5939_v41  ;;  %1755 = vst.msk [vmem:[#allocation3 + $0x150] sm:$0xff] %vm9749_vm3, %v313_v42  ;;  %5969 = vmatprep.mubr.msk.f32.mxu1 %vm64_vm0, %v313_v42  ;;  %6001 = vmatprep.mubr.msk.f32.mxu0 %vm64_vm0, %v313_v42  ;;  %v2222_v16 = vld [vmem:[#allocation3 + $0x1b8] sm:$0xff]  ;;  %v2221_v20 = vld [vmem:[#allocation3 + $0x1b0] sm:$0xff] }
  0xfa   :  { %2098 = vst.msk [vmem:[#allocation3 + $0x1d8] sm:$0xff] %vm9748_vm4, %v5939_v41  ;;  %2097 = vst.msk [vmem:[#allocation3 + $0x1d0] sm:$0xff] %vm9748_vm4, %v313_v42  ;;  %v5942_v43 = vpop.f32.mrf.mxu0  ;;  %5970 = vmatmul.mubr.msk.f32.gmra.mxu1 %vm64_vm0, %v5939_v41  ;;  %6002 = vmatmul.mubr.msk.f32.gmra.mxu0 %vm64_vm0, %v5939_v41  ;;  %v2176_v9 = vld [vmem:[#allocation3 + $0x48] sm:$0xff]  ;;  %v2173_v21 = vld [vmem:[#allocation3 + $0x30] sm:$0xff] }
  0xfb   :  { %1071 = vst.msk [vmem:[#allocation3 + $0x50] sm:$0xff] %vm1060_vm1, %v313_v42  ;;  %1074 = vst.msk [vmem:[#allocation3 + $0x68] sm:$0xff] %vm1060_vm1, %v5942_v43  ;;  %v2192_v7 = vld [vmem:[#allocation3 + $0xc8] sm:$0xff]  ;;  %v2189_v19 = vld [vmem:[#allocation3 + $0xb0] sm:$0xff] }
  0xfc   :  { %1413 = vst.msk [vmem:[#allocation3 + $0xd0] sm:$0xff] %vm9753_vm2, %v313_v42  ;;  %1416 = vst.msk [vmem:[#allocation3 + $0xe8] sm:$0xff] %vm9753_vm2, %v5942_v43  ;;  %v323_v44 = vpop.f32.mrf.mxu0  ;;  %v2208_v10 = vld [vmem:[#allocation3 + $0x148] sm:$0xff]  ;;  %v2207_v14 = vld [vmem:[#allocation3 + $0x140] sm:$0xff] }
  0xfd   :  { %1758 = vst.msk [vmem:[#allocation3 + $0x168] sm:$0xff] %vm9749_vm3, %v5942_v43  ;;  %1757 = vst.msk [vmem:[#allocation3 + $0x160] sm:$0xff] %vm9749_vm3, %v323_v44  ;;  %5972 = vmatprep.mubr.msk.f32.mxu1 %vm64_vm0, %v323_v44  ;;  %6004 = vmatprep.mubr.msk.f32.mxu0 %vm64_vm0, %v323_v44  ;;  %v2224_v8 = vld [vmem:[#allocation3 + $0x1c8] sm:$0xff]  ;;  %v2223_v12 = vld [vmem:[#allocation3 + $0x1c0] sm:$0xff] }
  0xfe   :  { %2100 = vst.msk [vmem:[#allocation3 + $0x1e8] sm:$0xff] %vm9748_vm4, %v5942_v43  ;;  %2099 = vst.msk [vmem:[#allocation3 + $0x1e0] sm:$0xff] %vm9748_vm4, %v323_v44  ;;  %v5945_v45 = vpop.f32.mrf.mxu0  ;;  %5973 = vmatmul.mubr.msk.f32.gmra.mxu1 %vm64_vm0, %v5942_v43  ;;  %6005 = vmatmul.mubr.msk.f32.gmra.mxu0 %vm64_vm0, %v5942_v43  ;;  %v2178_v1 = vld [vmem:[#allocation3 + $0x58] sm:$0xff]  ;;  %v2175_v13 = vld [vmem:[#allocation3 + $0x40] sm:$0xff] }
  0xff   :  { %1073 = vst.msk [vmem:[#allocation3 + $0x60] sm:$0xff] %vm1060_vm1, %v323_v44  ;;  %1076 = vst.msk [vmem:[#allocation3 + $0x78] sm:$0xff] %vm1060_vm1, %v5945_v45  ;;  %v2194_v63 = vld [vmem:[#allocation3 + $0xd8] sm:$0xff]  ;;  %v2191_v11 = vld [vmem:[#allocation3 + $0xc0] sm:$0xff] }
 0x100   :  { %1415 = vst.msk [vmem:[#allocation3 + $0xe0] sm:$0xff] %vm9753_vm2, %v323_v44  ;;  %1418 = vst.msk [vmem:[#allocation3 + $0xf8] sm:$0xff] %vm9753_vm2, %v5945_v45  ;;  %v333_v46 = vpop.f32.mrf.mxu0  ;;  %v2210_v2 = vld [vmem:[#allocation3 + $0x158] sm:$0xff]  ;;  %v2209_v6 = vld [vmem:[#allocation3 + $0x150] sm:$0xff] }
 0x101   :  { %1760 = vst.msk [vmem:[#allocation3 + $0x178] sm:$0xff] %vm9749_vm3, %v5945_v45  ;;  %1759 = vst.msk [vmem:[#allocation3 + $0x170] sm:$0xff] %vm9749_vm3, %v333_v46  ;;  %5975 = vmatprep.mubr.msk.f32.mxu1 %vm64_vm0, %v333_v46  ;;  %6007 = vmatprep.mubr.msk.f32.mxu0 %vm64_vm0, %v333_v46  ;;  %v2226_v0 = vld [vmem:[#allocation3 + $0x1d8] sm:$0xff]  ;;  %v2225_v4 = vld [vmem:[#allocation3 + $0x1d0] sm:$0xff] }
 0x102   :  { %2102 = vst.msk [vmem:[#allocation3 + $0x1f8] sm:$0xff] %vm9748_vm4, %v5945_v45  ;;  %2101 = vst.msk [vmem:[#allocation3 + $0x1f0] sm:$0xff] %vm9748_vm4, %v333_v46  ;;  %5976 = vmatmul.mubr.msk.f32.gmra.mxu1 %vm64_vm0, %v5945_v45  ;;  %6008 = vmatmul.mubr.msk.f32.gmra.mxu0 %vm64_vm0, %v5945_v45  ;;  %v2180_v57 = vld [vmem:[#allocation3 + $0x68] sm:$0xff]  ;;  %v2177_v5 = vld [vmem:[#allocation3 + $0x50] sm:$0xff] }
 0x103   :  { %1075 = vst.msk [vmem:[#allocation3 + $0x70] sm:$0xff] %vm1060_vm1, %v333_v46  ;;  %v2196_v51 = vld [vmem:[#allocation3 + $0xe8] sm:$0xff]  ;;  %v2193_v3 = vld [vmem:[#allocation3 + $0xd0] sm:$0xff]  ;;  %v2183_v45 = vld [vmem:[#allocation3 + $0x80] sm:$0xff] }
 0x104   :  { %1417 = vst.msk [vmem:[#allocation3 + $0xf0] sm:$0xff] %vm9753_vm2, %v333_v46  ;;  %v2212_v58 = vld [vmem:[#allocation3 + $0x168] sm:$0xff]  ;;  %v2211_v62 = vld [vmem:[#allocation3 + $0x160] sm:$0xff]  ;;  %v2217_v38 = vld [vmem:[#allocation3 + $0x190] sm:$0xff] }
 0x105   :  { %v2228_v52 = vld [vmem:[#allocation3 + $0x1e8] sm:$0xff]  ;;  %v2227_v60 = vld [vmem:[#allocation3 + $0x1e0] sm:$0xff]  ;;  %v2169_v39 = vld [vmem:[#allocation3 + $0x10] sm:$0xff] }
 0x106   :  { %v2182_v49 = vld [vmem:[#allocation3 + $0x78] sm:$0xff]  ;;  %v2179_v61 = vld [vmem:[#allocation3 + $0x60] sm:$0xff]  ;;  %v2201_v40 = vld [vmem:[#allocation3 + $0x110] sm:$0xff] }
 0x107   :  { %v2198_v47 = vld [vmem:[#allocation3 + $0xf8] sm:$0xff]  ;;  %v2195_v59 = vld [vmem:[#allocation3 + $0xe0] sm:$0xff]  ;;  %v2184_v41 = vld [vmem:[#allocation3 + $0x88] sm:$0xff] }
 0x108   :  { %5534 = vmatprep.subr.mxu1 %v2198_v47  ;;  %v2214_v50 = vld [vmem:[#allocation3 + $0x178] sm:$0xff]  ;;  %v2213_v56 = vld [vmem:[#allocation3 + $0x170] sm:$0xff]  ;;  %v2216_v42 = vld [vmem:[#allocation3 + $0x188] sm:$0xff] }
 0x109   :  { %v2230_v48 = vld [vmem:[#allocation3 + $0x1f8] sm:$0xff]  ;;  %5535 = vmatpush3.msra.mxu1 %v2182_v49  ;;  %v2229_v54 = vld [vmem:[#allocation3 + $0x1f0] sm:$0xff]  ;;  %v2168_v43 = vld [vmem:[#allocation3 + $0x8] sm:$0xff] }
 0x10a   :  { %5614 = vmatprep.subr.mxu0 %v2230_v48  ;;  %v2181_v55 = vld [vmem:[#allocation3 + $0x70] sm:$0xff]  ;;  %v2200_v44 = vld [vmem:[#allocation3 + $0x108] sm:$0xff]  ;;  %v2215_v46 = vld [vmem:[#allocation3 + $0x180] sm:$0xff] }
 0x10b   :  { %5615 = vmatpush3.msra.mxu0 %v2214_v50  ;;  %v2197_v53 = vld [vmem:[#allocation3 + $0xf0] sm:$0xff]  ;;  %v2167_v47 = vld [vmem:[#allocation3] sm:$0xff] }
 0x10c   :  { %5536 = vmatprep.subr.mxu1 %v2197_v53  ;;  %5616 = vmatprep.subr.mxu0 %v2229_v54  ;;  %v2199_v48 = vld [vmem:[#allocation3 + $0x100] sm:$0xff] }
 0x10d   :  { %5537 = vmatpush3.msra.mxu1 %v2181_v55  ;;  %5617 = vmatpush3.msra.mxu0 %v2213_v56 }
 0x10e   :  { %5538 = vmatprep.subr.mxu1 %v2196_v51  ;;  %5618 = vmatprep.subr.mxu0 %v2228_v52  ;;  %v9737_v51 = vmov 2   ;;  %v9735_v52 = vmov 0  }
 0x10f   :  { %5539 = vmatpush3.msra.mxu1 %v2180_v57  ;;  %5619 = vmatpush3.msra.mxu0 %v2212_v58 }
 0x110   :  { %5540 = vmatprep.subr.mxu1 %v2195_v59  ;;  %5620 = vmatprep.subr.mxu0 %v2227_v60 }
 0x111   :  { %5541 = vmatpush3.msra.mxu1 %v2179_v61  ;;  %5621 = vmatpush3.msra.mxu0 %v2211_v62 }
 0x112   :  { %5542 = vmatprep.subr.mxu1 %v2194_v63  ;;  %5622 = vmatprep.subr.mxu0 %v2226_v0 }
 0x113   :  { %5543 = vmatpush3.msra.mxu1 %v2178_v1  ;;  %5623 = vmatpush3.msra.mxu0 %v2210_v2 }
 0x114   :  { %5544 = vmatprep.subr.mxu1 %v2193_v3  ;;  %5624 = vmatprep.subr.mxu0 %v2225_v4 }
 0x115   :  { %5545 = vmatpush3.msra.mxu1 %v2177_v5  ;;  %5625 = vmatpush3.msra.mxu0 %v2209_v6 }
 0x116   :  { %5546 = vmatprep.subr.mxu1 %v2192_v7  ;;  %5626 = vmatprep.subr.mxu0 %v2224_v8 }
 0x117   :  { %5547 = vmatpush3.msra.mxu1 %v2176_v9  ;;  %5627 = vmatpush3.msra.mxu0 %v2208_v10 }
 0x118   :  { %5548 = vmatprep.subr.mxu1 %v2191_v11  ;;  %5628 = vmatprep.subr.mxu0 %v2223_v12 }
 0x119   :  { %5549 = vmatpush3.msra.mxu1 %v2175_v13  ;;  %5629 = vmatpush3.msra.mxu0 %v2207_v14 }
 0x11a   :  { %5550 = vmatprep.subr.mxu1 %v2190_v15  ;;  %5630 = vmatprep.subr.mxu0 %v2222_v16 }
 0x11b   :  { %5551 = vmatpush3.msra.mxu1 %v2174_v17  ;;  %5631 = vmatpush3.msra.mxu0 %v2206_v18 }
 0x11c   :  { %5552 = vmatprep.subr.mxu1 %v2189_v19  ;;  %5632 = vmatprep.subr.mxu0 %v2221_v20 }
 0x11d   :  { %5553 = vmatpush3.msra.mxu1 %v2173_v21  ;;  %5633 = vmatpush3.msra.mxu0 %v2205_v22 }
 0x11e   :  { %5554 = vmatprep.subr.mxu1 %v2188_v23  ;;  %5634 = vmatprep.subr.mxu0 %v2220_v24 }
 0x11f   :  { %5555 = vmatpush3.msra.mxu1 %v2172_v25  ;;  %5635 = vmatpush3.msra.mxu0 %v2204_v26 }
 0x120   :  { %5556 = vmatprep.subr.mxu1 %v2187_v27  ;;  %5636 = vmatprep.subr.mxu0 %v2219_v28 }
 0x121   :  { %5557 = vmatpush3.msra.mxu1 %v2171_v31  ;;  %5637 = vmatpush3.msra.mxu0 %v2203_v32 }
 0x122   :  { %5558 = vmatprep.subr.mxu1 %v2186_v33  ;;  %5638 = vmatprep.subr.mxu0 %v2218_v34 }
 0x123   :  { %5559 = vmatpush3.msra.mxu1 %v2170_v35  ;;  %5639 = vmatpush3.msra.mxu0 %v2202_v36 }
 0x124   :  { %5560 = vmatprep.subr.mxu1 %v2185_v37  ;;  %5640 = vmatprep.subr.mxu0 %v2217_v38 }
 0x125   :  { %5561 = vmatpush3.msra.mxu1 %v2169_v39  ;;  %5641 = vmatpush3.msra.mxu0 %v2201_v40 }
 0x126   :  { %5562 = vmatprep.subr.mxu1 %v2184_v41  ;;  %5642 = vmatprep.subr.mxu0 %v2216_v42 }
 0x127   :  { %5563 = vmatpush3.msra.mxu1 %v2168_v43  ;;  %5643 = vmatpush3.msra.mxu0 %v2200_v44 }
 0x128   :  { %5564 = vmatprep.subr.mxu1 %v2183_v45  ;;  %5644 = vmatprep.subr.mxu0 %v2215_v46  ;;  %v800_v46 = vlaneseq }
 0x129   :  { %5565 = vmatpush3.msra.mxu1 %v2167_v47  ;;  %5645 = vmatpush3.msra.mxu0 %v2199_v48 }
 0x12a   :  { %v7437_v48 = vshrl.u32 %v800_v46, 7 }
 0x12c   :  { %9851 = vst [vmem:[#allocation7_spill] sm:$0xff] %v7437_v48 }
 0x1a6   :  { %v5956_v49 = vpop.f32.mrf.mxu1  ;;  %v5988_v2 = vpop.f32.mrf.mxu0 }
 0x1a7   :  { %1766 = vperm.xlu0 %6115, %v5956_v49   ;;  %1082 = vperm.xlu1 %6114, %v5956_v49  }
 0x1a8   :  { %v464_v50 = vpop.f32.mrf.mxu1  ;;  %v609_v3 = vpop.f32.mrf.mxu0 }
 0x1aa   :  { %v5959_v53 = vpop.f32.mrf.mxu1  ;;  %v5991_v4 = vpop.f32.mrf.mxu0 }
 0x1ab   :  { %6117 = vset.pattern.permute.xlu0 %v9737_v51  ;;  %6116 = vset.pattern.permute.xlu1 %v9735_v52 }
 0x1ac   :  { %1424 = vperm.xlu0 %6117, %v5956_v49   ;;  %727 = vperm.xlu1 %6116, %v5956_v49   ;;  %v474_v54 = vpop.f32.mrf.mxu1  ;;  %v619_v5 = vpop.f32.mrf.mxu0 }
 0x1ae   :  { %v5962_v55 = vpop.f32.mrf.mxu1  ;;  %v5994_v6 = vpop.f32.mrf.mxu0 }
 0x1b0   :  { %6118 = vset.pattern.permute.xlu0 %v9741_v30  ;;  %722 = vperm.xlu1 %6116, %v464_v50   ;;  %v484_v56 = vpop.f32.mrf.mxu1  ;;  %v629_v7 = vpop.f32.mrf.mxu0 }
 0x1b1   :  { %1078 = vperm.xlu0 %6118, %v464_v50  }
 0x1b2   :  { %v5965_v57 = vpop.f32.mrf.mxu1  ;;  %v5997_v8 = vpop.f32.mrf.mxu0 }
 0x1b4   :  { %6120 = vset.pattern.permute.xlu1 %v9737_v51  ;;  %v7301_v58 = vpop.f32.mrf.mxu1  ;;  %v639_v9 = vpop.f32.mrf.mxu0 }
 0x1b5   :  { %1420 = vperm.xlu1 %6120, %v464_v50   ;;  %6119 = vset.pattern.permute.xlu0 %v9739_v29 }
 0x1b6   :  { %1762 = vperm.xlu0 %6119, %v464_v50   ;;  %v7305_v59 = vpop.f32.mrf.mxu1  ;;  %v6000_v10 = vpop.f32.mrf.mxu0 }
 0x1b8   :  { %v7308_v60 = vpop.f32.mrf.mxu1  ;;  %v649_v11 = vpop.f32.mrf.mxu0 }
 0x1b9   :  { %6121 = vset.pattern.permute.xlu1 %v9741_v30 }
 0x1ba   :  { %1774 = vperm.xlu0 %6119, %v5959_v53   ;;  %1090 = vperm.xlu1 %6121, %v5959_v53   ;;  %v7312_v61 = vpop.f32.mrf.mxu1  ;;  %v6003_v12 = vpop.f32.mrf.mxu0 }
 0x1bc   :  { %v7315_v62 = vpop.f32.mrf.mxu1  ;;  %v659_v13 = vpop.f32.mrf.mxu0 }
 0x1be   :  { %6126 = vset.pattern.permute.xlu0 %v9735_v52  ;;  %6122 = vset.pattern.permute.xlu1 %v9735_v52  ;;  %v7318_v63 = vpop.f32.mrf.mxu1  ;;  %v6006_v15 = vpop.f32.mrf.mxu0 }
 0x1bf   :  { %737 = vperm.xlu1 %6122, %v5959_v53   ;;  %732 = vperm.xlu0 %6126, %v474_v54  }
 0x1c0   :  { %v7323_v0 = vpop.f32.mrf.mxu1  ;;  %v669_v17 = vpop.f32.mrf.mxu0 }
 0x1c2   :  { %v7328_v1 = vpop.f32.mrf.mxu1  ;;  %v6009_v19 = vpop.f32.mrf.mxu0 }
 0x1c3   :  { %6123 = vset.pattern.permute.xlu1 %v9737_v51  ;;  %747 = vperm.xlu0 %6126, %v5962_v55  }
 0x1c4   :  { %1432 = vperm.xlu1 %6123, %v5959_v53   ;;  %v679_v21 = vpop.f32.mrf.mxu0  ;;  %v9734_v53 = vsub.s32 0, %v7437_v48 }
 0x1c7   :  { %6131 = vset.pattern.permute.xlu0 %v9741_v30 }
 0x1c8   :  { %6124 = vset.pattern.permute.xlu1 %v9741_v30  ;;  %1094 = vperm.xlu0 %6131, %v484_v56  }
 0x1c9   :  { %1086 = vperm.xlu1 %6124, %v474_v54  }
 0x1cc   :  { %6134 = vset.pattern.permute.xlu0 %v9737_v51 }
 0x1cd   :  { %6125 = vset.pattern.permute.xlu1 %v9739_v29  ;;  %1436 = vperm.xlu0 %6134, %v484_v56  }
 0x1ce   :  { %1770 = vperm.xlu1 %6125, %v474_v54  }
 0x1d1   :  { %6140 = vset.pattern.permute.xlu0 %v9739_v29 }
 0x1d2   :  { %6127 = vset.pattern.permute.xlu1 %v9737_v51  ;;  %1786 = vperm.xlu0 %6140, %v7301_v58  }
 0x1d3   :  { %1428 = vperm.xlu1 %6127, %v474_v54   ;;  %v9733_v54 = vsub.s32 1, %v7437_v48 }
 0x1d6   :  { %6166 = vset.pattern.permute.xlu0 %v9737_v51 }
 0x1d7   :  { %6128 = vset.pattern.permute.xlu1 %v9741_v30  ;;  %1468 = vperm.xlu0 %6166, %v7323_v0  }
 0x1d8   :  { %1098 = vperm.xlu1 %6128, %v5962_v55  }
 0x1db   :  { %6169 = vset.pattern.permute.xlu0 %v9735_v52 }
 0x1dc   :  { %6129 = vset.pattern.permute.xlu1 %v9739_v29  ;;  %797 = vperm.xlu0 %6169, %v7328_v1  }
 0x1dd   :  { %1782 = vperm.xlu1 %6129, %v5962_v55  }
 0x1e1   :  { %6130 = vset.pattern.permute.xlu1 %v9737_v51 }
 0x1e2   :  { %1440 = vperm.xlu1 %6130, %v5962_v55   ;;  %v9732_v55 = vsub.s32 3, %v7437_v48 }
 0x1e6   :  { %6132 = vset.pattern.permute.xlu1 %v9739_v29 }
 0x1e7   :  { %1778 = vperm.xlu1 %6132, %v484_v56  }
 0x1eb   :  { %6133 = vset.pattern.permute.xlu1 %v9735_v52 }
 0x1ec   :  { %742 = vperm.xlu1 %6133, %v484_v56  }
 0x1f0   :  { %6135 = vset.pattern.permute.xlu1 %v9741_v30 }
 0x1f1   :  { %1106 = vperm.xlu1 %6135, %v5965_v57  }
 0x1f5   :  { %6136 = vset.pattern.permute.xlu1 %v9739_v29 }
 0x1f6   :  { %1790 = vperm.xlu1 %6136, %v5965_v57  }
 0x1fa   :  { %6137 = vset.pattern.permute.xlu1 %v9735_v52  ;;  %688 = vxpose.xlu0.b32.start [1/16] (narrow) %v609_v3, 8 }
 0x1fb   :  { %757 = vperm.xlu1 %6137, %v5965_v57  }
 0x1fe   :  { %689 = vxpose.xlu0.b32.cont [2/16] (narrow) %v5988_v2, 8 }
 0x1ff   :  { %6138 = vset.pattern.permute.xlu1 %v9737_v51 }
 0x200   :  { %1448 = vperm.xlu1 %6138, %v5965_v57  }
 0x202   :  { %690 = vxpose.xlu0.b32.cont [3/16] (narrow) %v619_v5, 8 }
 0x204   :  { %6139 = vset.pattern.permute.xlu1 %v9741_v30 }
 0x205   :  { %1102 = vperm.xlu1 %6139, %v7301_v58  }
 0x206   :  { %691 = vxpose.xlu0.b32.cont [4/16] (narrow) %v5991_v4, 8 }
 0x209   :  { %6141 = vset.pattern.permute.xlu1 %v9735_v52 }
 0x20a   :  { %752 = vperm.xlu1 %6141, %v7301_v58   ;;  %692 = vxpose.xlu0.b32.cont [5/16] (narrow) %v629_v7, 8 }
 0x20e   :  { %6142 = vset.pattern.permute.xlu1 %v9737_v51  ;;  %693 = vxpose.xlu0.b32.cont [6/16] (narrow) %v5994_v6, 8 }
 0x20f   :  { %1444 = vperm.xlu1 %6142, %v7301_v58  }
 0x212   :  { %694 = vxpose.xlu0.b32.cont [7/16] (narrow) %v639_v9, 8 }
 0x213   :  { %6143 = vset.pattern.permute.xlu1 %v9741_v30 }
 0x214   :  { %1114 = vperm.xlu1 %6143, %v7305_v59  }
 0x216   :  { %695 = vxpose.xlu0.b32.cont [8/16] (narrow) %v5997_v8, 8 }
 0x218   :  { %6144 = vset.pattern.permute.xlu1 %v9739_v29 }
 0x219   :  { %1798 = vperm.xlu1 %6144, %v7305_v59  }
 0x21a   :  { %696 = vxpose.xlu0.b32.cont [9/16] (narrow) %v649_v11, 8 }
 0x21d   :  { %6145 = vset.pattern.permute.xlu1 %v9735_v52 }
 0x21e   :  { %767 = vperm.xlu1 %6145, %v7305_v59   ;;  %697 = vxpose.xlu0.b32.cont [10/16] (narrow) %v6000_v10, 8 }
 0x222   :  { %v7352_v14 = vpop.permute.xlu1 %1082  ;;  %6146 = vset.pattern.permute.xlu1 %v9737_v51  ;;  %698 = vxpose.xlu0.b32.cont [11/16] (narrow) %v659_v13, 8  ;;  %v7367_v22 = vpop.permute.xlu0 %1766 }
 0x223   :  { %1456 = vperm.xlu1 %6146, %v7305_v59  }
 0x226   :  { %699 = vxpose.xlu0.b32.cont [12/16] (narrow) %v6003_v12, 8  ;;  %v7496_v12 = vld [vmem:[%s9723_s1 + $0x8] sm:$0xff] }
 0x227   :  { %v7356_v16 = vpop.permute.xlu1 %727  ;;  %6147 = vset.pattern.permute.xlu1 %v9741_v30  ;;  %v7374_v24 = vpop.permute.xlu0 %1424  ;;  %9853 = vst [vmem:[#allocation9_spill] sm:$0xff] %v7496_v12  ;;  %vm49_vm9 = vcmp.gt.f32.partialorder %v7496_v12, 0.0 }
 0x228   :  { %1110 = vperm.xlu1 %6147, %v7308_v60  }
 0x22a   :  { %700 = vxpose.xlu0.b32.cont [13/16] (narrow) %v669_v17, 8 }
 0x22b   :  { %v7360_v18 = vpop.permute.xlu1 %722 }
 0x22c   :  { %6148 = vset.pattern.permute.xlu1 %v9739_v29  ;;  %v7380_v26 = vpop.permute.xlu0 %1078 }
 0x22d   :  { %1794 = vperm.xlu1 %6148, %v7308_v60  }
 0x22e   :  { %701 = vxpose.xlu0.b32.cont [14/16] (narrow) %v6006_v15, 8 }
 0x230   :  { %v7364_v20 = vpop.permute.xlu1 %1420 }
 0x231   :  { %6149 = vset.pattern.permute.xlu1 %v9735_v52  ;;  %v1763_v28 = vpop.permute.xlu0 %1762 }
 0x232   :  { %762 = vperm.xlu1 %6149, %v7308_v60   ;;  %702 = vxpose.xlu0.b32.cont [15/16] (narrow) %v679_v21, 8 }
 0x235   :  { %v7370_v23 = vpop.permute.xlu1 %1090  ;;  %v7392_v33 = vpop.permute.xlu0 %1774 }
 0x236   :  { %6150 = vset.pattern.permute.xlu1 %v9737_v51  ;;  %703 = vxpose.xlu0.b32.end [16/16] (narrow) %v6009_v19, 8 }
 0x237   :  { %1452 = vperm.xlu1 %6150, %v7308_v60  }
 0x23a   :  { %v7376_v25 = vpop.permute.xlu1 %737  ;;  %v7399_v35 = vpop.permute.xlu0 %732 }
 0x23b   :  { %6151 = vset.pattern.permute.xlu1 %v9741_v30 }
 0x23c   :  { %1122 = vperm.xlu1 %6151, %v7312_v61  }
 0x23e   :  { %v7404_v37 = vpop.permute.xlu0 %747 }
 0x23f   :  { %v7382_v27 = vpop.permute.xlu1 %1432 }
 0x240   :  { %6152 = vset.pattern.permute.xlu1 %v9739_v29 }
 0x241   :  { %1806 = vperm.xlu1 %6152, %v7312_v61  }
 0x243   :  { %v7411_v39 = vpop.permute.xlu0 %1094 }
 0x244   :  { %v7386_v31 = vpop.permute.xlu1 %1086 }
 0x245   :  { %6153 = vset.pattern.permute.xlu1 %v9735_v52 }
 0x246   :  { %777 = vperm.xlu1 %6153, %v7312_v61  }
 0x248   :  { %v7419_v41 = vpop.permute.xlu0 %1436 }
 0x249   :  { %v7390_v32 = vpop.permute.xlu1 %1770 }
 0x24a   :  { %6154 = vset.pattern.permute.xlu1 %v9737_v51 }
 0x24b   :  { %1464 = vperm.xlu1 %6154, %v7312_v61   ;;  %v7471_v61 = vld [vmem:[%s9723_s1] sm:$0xff] }
 0x24c   :  { %9852 = vst [vmem:[#allocation8_spill] sm:$0xff] %v7471_v61  ;;  %vm9757_vm5 = vcmp.gt.f32.partialorder %v7471_v61, 0.0 }
 0x24d   :  { %v7425_v43 = vpop.permute.xlu0 %1786 }
 0x24e   :  { %v7396_v34 = vpop.permute.xlu1 %1428 }
 0x24f   :  { %6155 = vset.pattern.permute.xlu1 %v9741_v30 }
 0x250   :  { %1118 = vperm.xlu1 %6155, %v7315_v62  }
 0x252   :  { %v7431_v45 = vpop.permute.xlu0 %1468 }
 0x253   :  { %v7402_v36 = vpop.permute.xlu1 %1098 }
 0x254   :  { %6156 = vset.pattern.permute.xlu1 %v9739_v29 }
 0x255   :  { %1802 = vperm.xlu1 %6156, %v7315_v62  }
 0x257   :  { %v7439_v49 = vpop.permute.xlu0 %797 }
 0x258   :  { %v7408_v38 = vpop.permute.xlu1 %1782 }
 0x259   :  { %6157 = vset.pattern.permute.xlu1 %v9735_v52 }
 0x25a   :  { %772 = vperm.xlu1 %6157, %v7315_v62  }
 0x25d   :  { %v7414_v40 = vpop.permute.xlu1 %1440 }
 0x25e   :  { %6158 = vset.pattern.permute.xlu1 %v9737_v51 }
 0x25f   :  { %1460 = vperm.xlu1 %6158, %v7315_v62   ;;  %6181 = vset.pattern.permute.xlu0 %v9739_v29 }
 0x262   :  { %v7421_v42 = vpop.permute.xlu1 %1778 }
 0x263   :  { %6159 = vset.pattern.permute.xlu1 %v9741_v30 }
 0x264   :  { %1130 = vperm.xlu1 %6159, %v7318_v63  }
 0x267   :  { %v7427_v44 = vpop.permute.xlu1 %742 }
 0x268   :  { %6160 = vset.pattern.permute.xlu1 %v9739_v29 }
 0x269   :  { %1814 = vperm.xlu1 %6160, %v7318_v63  }
 0x26c   :  { %v7433_v47 = vpop.permute.xlu1 %1106 }
 0x26d   :  { %6161 = vset.pattern.permute.xlu1 %v9735_v52 }
 0x26e   :  { %787 = vperm.xlu1 %6161, %v7318_v63  }
 0x271   :  { %v7441_v50 = vpop.permute.xlu1 %1790 }
 0x272   :  { %6162 = vset.pattern.permute.xlu1 %v9737_v51 }
 0x273   :  { %1472 = vperm.xlu1 %6162, %v7318_v63  }
 0x276   :  { %v7448_v56 = vpop.permute.xlu1 %757  ;;  %v7450_v57 = vpop.trf.xlu0 }
 0x277   :  { %v7455_v58 = vrot.slane %v7450_v57, %v9734_v53  ;;  %v7460_v59 = vrot.slane %v7450_v57, %v9733_v54  ;;  %v7465_v60 = vrot.slane %v7450_v57, %v9732_v55  ;;  %6163 = vset.pattern.permute.xlu1 %v9741_v30 }
 0x278   :  { %1126 = vperm.xlu1 %6163, %v7323_v0  }
 0x279   :  { %v1829_v62 = vadd.f32 %v7465_v60, %v1763_v28  ;;  %v804_v63 = vadd.f32 %v7455_v58, %v7360_v18  ;;  %v1146_v5 = vadd.f32 %v7460_v59, %v7352_v14  ;;  %v805_v10 = vadd.f32 %v7455_v58, %v7356_v16 }
 0x27a   :  { %v1148_v16 = vadd.f32 %v7460_v59, %v7370_v23  ;;  %v807_v21 = vadd.f32 %v7455_v58, %v7376_v25  ;;  %v7522_v23 = vld [vmem:[%s9723_s1 + $0x18] sm:$0xff]  ;;  %v811_v54 = vadd.f32 %v7455_v58, %v7448_v56 }
 0x27b   :  { %v7478_v2 = vpop.permute.xlu1 %1448  ;;  %vm1845_vm6 = vcmp.gt.f32.partialorder %v1829_v62, 0.0  ;;  %v1861_v3 = vmul.f32 0.2, %v1829_v62  ;;  %v836_v4 = vmul.f32 0.2, %v804_v63  ;;  %vm820_vm7 = vcmp.gt.f32.partialorder %v804_v63, 0.0 }
 0x27c   :  { %6164 = vset.pattern.permute.xlu1 %v9739_v29  ;;  %v1178_v9 = vmul.f32 0.2, %v1146_v5  ;;  %vm1162_vm8 = vcmp.gt.f32.partialorder %v1146_v5, 0.0  ;;  %v837_v15 = vmul.f32 0.2, %v805_v10  ;;  %vm821_vm10 = vcmp.gt.f32.partialorder %v805_v10, 0.0 }
 0x27d   :  { %1810 = vperm.xlu1 %6164, %v7323_v0   ;;  %v1877_v6 = vsel %vm1845_vm6, %v1829_v62, %v1861_v3  ;;  %v852_v8 = vsel %vm820_vm7, %v804_v63, %v836_v4  ;;  %v1180_v19 = vmul.f32 0.2, %v1148_v16  ;;  %9854 = vst [vmem:[#allocation10_spill] sm:$0xff] %v7522_v23  ;;  %vm1164_vm11 = vcmp.gt.f32.partialorder %v1148_v16, 0.0 }
 0x27e   :  { %v7486_v7 = vsel %vm9757_vm5, %v1877_v6, -9e+15  ;;  %v7502_v13 = vsel %vm9757_vm5, %v852_v8, -9e+15  ;;  %v1194_v14 = vsel %vm1162_vm8, %v1146_v5, %v1178_v9  ;;  %v853_v18 = vsel %vm821_vm10, %v805_v10, %v837_v15 }
 0x27f   :  { %1909 = vmax.xlane.f32.xlu0 %v7486_v7  ;;  %v7528_v46 = vsel %vm49_vm9, %v853_v18, -9e+15  ;;  %vm9763_vm12 = vcmp.gt.f32.partialorder %v7522_v23, 0.0  ;;  %v1196_v62 = vsel %vm1164_vm11, %v1148_v16, %v1180_v19  ;;  %v839_v25 = vmul.f32 0.2, %v807_v21  ;;  %v534_v16 = vpop.f32.mrf.mxu1 }
 0x280   :  { %v7491_v11 = vpop.permute.xlu1 %1102  ;;  %v1147_v63 = vadd.f32 %v7460_v59, %v7386_v31  ;;  %vm823_vm13 = vcmp.gt.f32.partialorder %v807_v21, 0.0  ;;  %v7538_v3 = vsel %vm9763_vm12, %v1196_v62, -9e+15  ;;  %v806_v8 = vadd.f32 %v7455_v58, %v7399_v35  ;;  %v7549_v31 = vld [vmem:[%s9723_s1 + $0x10] sm:$0xff] }
 0x281   :  { %6165 = vset.pattern.permute.xlu1 %v9735_v52  ;;  %v855_v5 = vsel %vm823_vm13, %v807_v21, %v839_v25  ;;  %9855 = vst [vmem:[#allocation11_spill] sm:$0xff] %v7549_v31  ;;  %vm50_vm15 = vcmp.gt.f32.partialorder %v7549_v31, 0.0  ;;  %v809_v21 = vadd.f32 %v7455_v58, %v7404_v37 }
 0x282   :  { %782 = vperm.xlu1 %6165, %v7323_v0   ;;  %v7513_v0 = vsel %vm49_vm9, %v1194_v14, -9e+15  ;;  %v1179_v6 = vmul.f32 0.2, %v1147_v63  ;;  %vm1163_vm14 = vcmp.gt.f32.partialorder %v1147_v63, 0.0  ;;  %v1150_v14 = vadd.f32 %v7460_v59, %v7402_v36  ;;  %v7573_v36 = vld [vmem:[%s9723_s1 + $0x28] sm:$0xff] }
 0x283   :  { %884 = vmax.xlane.f32.xlu0 %v7502_v13  ;;  %v7554_v9 = vsel %vm9763_vm12, %v855_v5, -9e+15  ;;  %v838_v35 = vmul.f32 0.2, %v806_v8  ;;  %vm822_vm6 = vcmp.gt.f32.partialorder %v806_v8, 0.0  ;;  %9856 = vst [vmem:[#allocation12_spill] sm:$0xff] %v7573_v36  ;;  %v1149_v5 = vadd.f32 %v7460_v59, %v7411_v39 }
 0x284   :  { %v1195_v10 = vsel %vm1163_vm14, %v1147_v63, %v1179_v6  ;;  %v1182_v19 = vmul.f32 0.2, %v1150_v14  ;;  %vm1166_vm7 = vcmp.gt.f32.partialorder %v1150_v14, 0.0  ;;  %vm53_vm8 = vcmp.gt.f32.partialorder %v7573_v36, 0.0  ;;  %v7599_v39 = vld [vmem:[%s9723_s1 + $0x20] sm:$0xff] }
 0x285   :  { %v7508_v17 = vpop.permute.xlu1 %752  ;;  %v854_v18 = vsel %vm822_vm6, %v806_v8, %v838_v35  ;;  %v841_v63 = vmul.f32 0.2, %v809_v21  ;;  %vm825_vm10 = vcmp.gt.f32.partialorder %v809_v21, 0.0  ;;  %v1181_v35 = vmul.f32 0.2, %v1149_v5  ;;  %9857 = vst [vmem:[#allocation13_spill] sm:$0xff] %v7599_v39 }
 0x286   :  { %6167 = vset.pattern.permute.xlu1 %v9741_v30  ;;  %v7580_v25 = vsel %vm50_vm15, %v854_v18, -9e+15  ;;  %v1198_v37 = vsel %vm1166_vm7, %v1150_v14, %v1182_v19  ;;  %v808_v14 = vadd.f32 %v7455_v58, %v7427_v44  ;;  %vm1165_vm11 = vcmp.gt.f32.partialorder %v1149_v5, 0.0 }
 0x287   :  { %1138 = vperm.xlu1 %6167, %v7328_v1   ;;  %1227 = vmax.xlane.f32.xlu0 %v7513_v0  ;;  %v7590_v8 = vsel %vm53_vm8, %v1198_v37, -9e+15  ;;  %vm9771_vm13 = vcmp.gt.f32.partialorder %v7599_v39, 0.0  ;;  %v1152_v44 = vadd.f32 %v7460_v59, %v7433_v47  ;;  %v7622_v47 = vld [vmem:[%s9723_s1 + $0x38] sm:$0xff]  ;;  %v810_v53 = vadd.f32 %v7455_v58, %v7508_v17 }
 0x288   :  { %v840_v37 = vmul.f32 0.2, %v808_v14  ;;  %vm824_vm14 = vcmp.gt.f32.partialorder %v808_v14, 0.0  ;;  %9858 = vst [vmem:[#allocation14_spill] sm:$0xff] %v7622_v47  ;;  %vm9778_vm7 = vcmp.gt.f32.partialorder %v7622_v47, 0.0 }
 0x289   :  { %v1184_v55 = vmul.f32 0.2, %v1152_v44  ;;  %vm1168_vm6 = vcmp.gt.f32.partialorder %v1152_v44, 0.0 }
 0x28a   :  { %v7524_v28 = vpop.permute.xlu1 %1444 }
 0x28b   :  { %6168 = vset.pattern.permute.xlu1 %v9739_v29  ;;  %886 = vmax.xlane.f32.xlu0 %v7528_v46  ;;  %v1200_v56 = vsel %vm1168_vm6, %v1152_v44, %v1184_v55  ;;  %v7649_v44 = vld [vmem:[%s9723_s1 + $0x30] sm:$0xff] }
 0x28c   :  { %1822 = vperm.xlu1 %6168, %v7328_v1   ;;  %9861 = vst [vmem:[#allocation17_spill] sm:$0xff] %v7649_v44  ;;  %vm9782_vm6 = vcmp.gt.f32.partialorder %v7649_v44, 0.0 }
 0x28f   :  { %v7540_v4 = vpop.permute.xlu1 %1114  ;;  %1231 = vmax.xlane.f32.xlu0 %v7538_v3 }
 0x290   :  { %6170 = vset.pattern.permute.xlu1 %v9737_v51 }
 0x291   :  { %1480 = vperm.xlu1 %6170, %v7328_v1   ;;  %v7565_v1 = vsel %vm50_vm15, %v1195_v10, -9e+15  ;;  %v857_v10 = vsel %vm825_vm10, %v809_v21, %v841_v63  ;;  %v1197_v21 = vsel %vm1165_vm11, %v1149_v5, %v1181_v35  ;;  %v1151_v35 = vadd.f32 %v7460_v59, %v7491_v11 }
 0x292   :  { %v7603_v18 = vsel %vm53_vm8, %v857_v10, -9e+15  ;;  %v7612_v63 = vsel %vm9771_vm13, %v1197_v21, -9e+15  ;;  %v856_v10 = vsel %vm824_vm14, %v808_v14, %v840_v37  ;;  %v843_v14 = vmul.f32 0.2, %v811_v54 }
 0x293   :  { %890 = vmax.xlane.f32.xlu0 %v7554_v9  ;;  %vm827_vm10 = vcmp.gt.f32.partialorder %v811_v54, 0.0  ;;  %v7635_v37 = vsel %vm9778_vm7, %v1200_v56, -9e+15  ;;  %vm1167_vm11 = vcmp.gt.f32.partialorder %v1151_v35, 0.0  ;;  %v1154_v56 = vadd.f32 %v7460_v59, %v7540_v4 }
 0x294   :  { %v7560_v15 = vpop.permute.xlu1 %1798  ;;  %9859 = vst [vmem:[#allocation15_spill] sm:$0xff] %v7635_v37  ;;  %vm826_vm14 = vcmp.gt.f32.partialorder %v810_v53, 0.0  ;;  %v9747_v4 = vsub.s32 2, %v7437_v48  ;;  %v7693_v48 = vld [vmem:[%s9723_s1 + $0x40] sm:$0xff] }
 0x295   :  { %6171 = vset.pattern.permute.xlu1 %v9741_v30  ;;  %v1186_v30 = vmul.f32 0.2, %v1154_v56  ;;  %9866 = vst [vmem:[#allocation22_spill] sm:$0xff] %v7693_v48 }
 0x296   :  { %1134 = vperm.xlu1 %6171, %v534_v16  }
 0x297   :  { %1229 = vmax.xlane.f32.xlu0 %v7565_v1 }
 0x299   :  { %v7575_v62 = vpop.permute.xlu1 %767 }
 0x29a   :  { %6172 = vset.pattern.permute.xlu1 %v9739_v29 }
 0x29b   :  { %1818 = vperm.xlu1 %6172, %v534_v16   ;;  %888 = vmax.xlane.f32.xlu0 %v7580_v25 }
 0x29e   :  { %v7586_v6 = vpop.permute.xlu1 %1456 }
 0x29f   :  { %6173 = vset.pattern.permute.xlu1 %v9735_v52  ;;  %1235 = vmax.xlane.f32.xlu0 %v7590_v8 }
 0x2a0   :  { %792 = vperm.xlu1 %6173, %v534_v16  }
 0x2a3   :  { %v1111_v19 = vpop.permute.xlu1 %1110  ;;  %894 = vmax.xlane.f32.xlu0 %v7603_v18 }
 0x2a4   :  { %6174 = vset.pattern.permute.xlu1 %v9737_v51 }
 0x2a5   :  { %1476 = vperm.xlu1 %6174, %v534_v16   ;;  %v7627_v16 = vsel %vm9771_vm13, %v856_v10, -9e+15  ;;  %v859_v10 = vsel %vm827_vm10, %v811_v54, %v843_v14  ;;  %v842_v54 = vmul.f32 0.2, %v810_v53  ;;  %vm1170_vm10 = vcmp.gt.f32.partialorder %v1154_v56, 0.0 }
 0x2a6   :  { %v7644_v55 = vsel %vm9778_vm7, %v859_v10, -9e+15  ;;  %v813_v10 = vadd.f32 %v7455_v58, %v7575_v62 }
 0x2a7   :  { %1233 = vmax.xlane.f32.xlu0 %v7612_v63  ;;  %9860 = vst [vmem:[#allocation16_spill] sm:$0xff] %v7644_v55  ;;  %v858_v29 = vsel %vm826_vm14, %v810_v53, %v842_v54  ;;  %v1202_v53 = vsel %vm1170_vm10, %v1154_v56, %v1186_v30 }
 0x2a8   :  { %v7617_v5 = vpop.permute.xlu1 %1794  ;;  %v845_v62 = vmul.f32 0.2, %v813_v10  ;;  %vm829_vm14 = vcmp.gt.f32.partialorder %v813_v10, 0.0 }
 0x2a9   :  { %6175 = vset.pattern.permute.xlu1 %v9735_v52  ;;  %v1183_v52 = vmul.f32 0.2, %v1151_v35 }
 0x2aa   :  { %v861_v30 = vsel %vm829_vm14, %v813_v10, %v845_v62  ;;  %vm56_vm14 = vcmp.gt.f32.partialorder %v7693_v48, 0.0 }
 0x2ab   :  { %892 = vmax.xlane.f32.xlu0 %v7627_v16  ;;  %v1199_v17 = vsel %vm1167_vm11, %v1151_v35, %v1183_v52  ;;  %v7665_v52 = vld [vmem:[%s9723_s1 + $0x48] sm:$0xff]  ;;  %v7670_v35 = vsel %vm9782_vm6, %v858_v29, -9e+15  ;;  %v1145_v29 = vadd.f32 %v7460_v59, %v7380_v26 }
 0x2ac   :  { %v7657_v14 = vsel %vm9782_vm6, %v1199_v17, -9e+15  ;;  %9863 = vst [vmem:[#allocation19_spill] sm:$0xff] %v7665_v52  ;;  %9864 = vst [vmem:[#allocation20_spill] sm:$0xff] %v7670_v35  ;;  %v1153_v17 = vadd.f32 %v7460_v59, %v1111_v19  ;;  %vm57_vm11 = vcmp.gt.f32.partialorder %v7665_v52, 0.0 }
 0x2ad   :  { %v763_v21 = vpop.permute.xlu1 %762  ;;  %9862 = vst [vmem:[#allocation18_spill] sm:$0xff] %v7657_v14  ;;  %v7686_v19 = vsel %vm57_vm11, %v1202_v53, -9e+15  ;;  %v7699_v53 = vsel %vm57_vm11, %v861_v30, -9e+15  ;;  %vm1161_vm4 = vcmp.gt.f32.partialorder %v1145_v29, 0.0 }
 0x2ae   :  { %9865 = vst [vmem:[#allocation21_spill] sm:$0xff] %v7686_v19  ;;  %v1185_v56 = vmul.f32 0.2, %v1153_v17  ;;  %vm1169_vm10 = vcmp.gt.f32.partialorder %v1153_v17, 0.0  ;;  %9867 = vst [vmem:[#allocation23_spill] sm:$0xff] %v7699_v53 }
 0x2af   :  { %1239 = vmax.xlane.f32.xlu0 %v7635_v37  ;;  %v1830_v37 = vadd.f32 %v7465_v60, %v7367_v22  ;;  %v7721_v22 = vld [vmem:[%s9723_s1 + $0x58] sm:$0xff] }
 0x2b0   :  { %v1201_v10 = vsel %vm1169_vm10, %v1153_v17, %v1185_v56  ;;  %9869 = vst [vmem:[#allocation25_spill] sm:$0xff] %v7721_v22  ;;  %vm59_vm10 = vcmp.gt.f32.partialorder %v7721_v22, 0.0 }
 0x2b1   :  { %v7710_v30 = vsel %vm56_vm14, %v1201_v10, -9e+15  ;;  %v1862_v56 = vmul.f32 0.2, %v1830_v37 }
 0x2b2   :  { %v7640_v11 = vpop.permute.xlu1 %1452  ;;  %9868 = vst [vmem:[#allocation24_spill] sm:$0xff] %v7710_v30 }
 0x2b3   :  { %898 = vmax.xlane.f32.xlu0 %v7644_v55 }
 0x2b7   :  { %v1123_v51 = vpop.permute.xlu1 %1122  ;;  %1237 = vmax.xlane.f32.xlu0 %v7657_v14  ;;  %v7680_v14 = vrot.slane %v7450_v57, %v9747_v4  ;;  %v1177_v4 = vmul.f32 0.2, %v1145_v29 }
 0x2b9   :  { %v1487_v26 = vadd.f32 %v7680_v14, %v7364_v20 }
 0x2bb   :  { %896 = vmax.xlane.f32.xlu0 %v7670_v35  ;;  %v812_v35 = vadd.f32 %v7455_v58, %v763_v21  ;;  %v1156_v21 = vadd.f32 %v7460_v59, %v1123_v51  ;;  %v1519_v55 = vmul.f32 0.2, %v1487_v26  ;;  %vm1503_vm2 = vcmp.gt.f32.partialorder %v1487_v26, 0.0 }
 0x2bc   :  { %v7675_v54 = vpop.permute.xlu1 %1806 }
 0x2bd   :  { %v844_v62 = vmul.f32 0.2, %v812_v35  ;;  %vm828_vm3 = vcmp.gt.f32.partialorder %v812_v35, 0.0  ;;  %v1188_v17 = vmul.f32 0.2, %v1156_v21 }
 0x2bf   :  { %1243 = vmax.xlane.f32.xlu0 %v7686_v19  ;;  %v1193_v19 = vsel %vm1161_vm4, %v1145_v29, %v1177_v4  ;;  %vm1172_vm4 = vcmp.gt.f32.partialorder %v1156_v21, 0.0  ;;  %v1535_v29 = vsel %vm1503_vm2, %v1487_v26, %v1519_v55 }
 0x2c0   :  { %v7716_v4 = vsel %vm9757_vm5, %v1193_v19, -9e+15  ;;  %v1204_v10 = vsel %vm1172_vm4, %v1156_v21, %v1188_v17  ;;  %v7735_v55 = vsel %vm9757_vm5, %v1535_v29, -9e+15 }
 0x2c1   :  { %v778_v57 = vpop.permute.xlu1 %777 }
 0x2c2   :  { %v815_v51 = vadd.f32 %v7455_v58, %v778_v57  ;;  %v1488_v57 = vadd.f32 %v7680_v14, %v7374_v24 }
 0x2c3   :  { %902 = vmax.xlane.f32.xlu0 %v7699_v53  ;;  %v860_v53 = vsel %vm828_vm3, %v812_v35, %v844_v62  ;;  %vm1846_vm3 = vcmp.gt.f32.partialorder %v1830_v37, 0.0 }
 0x2c4   :  { %v7728_v35 = vsel %vm56_vm14, %v860_v53, -9e+15  ;;  %v847_v62 = vmul.f32 0.2, %v815_v51  ;;  %vm831_vm2 = vcmp.gt.f32.partialorder %v815_v51, 0.0  ;;  %v1878_v24 = vsel %vm1846_vm3, %v1830_v37, %v1862_v56  ;;  %v7754_v37 = vld [vmem:[%s9723_s1 + $0x50] sm:$0xff] }
 0x2c5   :  { %9870 = vst [vmem:[#allocation26_spill] sm:$0xff] %v7728_v35  ;;  %v1520_v26 = vmul.f32 0.2, %v1488_v57  ;;  %v1832_v53 = vadd.f32 %v7465_v60, %v7392_v33  ;;  %vm1504_vm4 = vcmp.gt.f32.partialorder %v1488_v57, 0.0  ;;  %v7749_v29 = vsel %vm49_vm9, %v1878_v24, -9e+15 }
 0x2c6   :  { %v7706_v20 = vpop.permute.xlu1 %1464  ;;  %v863_v21 = vsel %vm831_vm2, %v815_v51, %v847_v62  ;;  %9872 = vst [vmem:[#allocation28_spill] sm:$0xff] %v7754_v37  ;;  %v1490_v51 = vadd.f32 %v7680_v14, %v7382_v27  ;;  %vm58_vm5 = vcmp.gt.f32.partialorder %v7754_v37, 0.0  ;;  %v1831_v27 = vadd.f32 %v7465_v60, %v7390_v32 }
 0x2c7   :  { %1241 = vmax.xlane.f32.xlu0 %v7710_v30  ;;  %v1536_v33 = vsel %vm1504_vm4, %v1488_v57, %v1520_v26  ;;  %v1864_v56 = vmul.f32 0.2, %v1832_v53  ;;  %vm1848_vm2 = vcmp.gt.f32.partialorder %v1832_v53, 0.0  ;;  %v1489_v32 = vadd.f32 %v7680_v14, %v7396_v34 }
 0x2c8   :  { %v7767_v24 = vsel %vm49_vm9, %v1536_v33, -9e+15  ;;  %v1522_v26 = vmul.f32 0.2, %v1490_v51  ;;  %vm1506_vm4 = vcmp.gt.f32.partialorder %v1490_v51, 0.0  ;;  %v1834_v34 = vadd.f32 %v7465_v60, %v7408_v38 }
 0x2c9   :  { %1225 = vmax.xlane.f32.xlu1 %v7716_v4  ;;  %v1880_v57 = vsel %vm1848_vm2, %v1832_v53, %v1864_v56  ;;  %v1863_v33 = vmul.f32 0.2, %v1831_v27  ;;  %vm1847_vm2 = vcmp.gt.f32.partialorder %v1831_v27, 0.0  ;;  %v1492_v38 = vadd.f32 %v7680_v14, %v7414_v40 }
 0x2ca   :  { %v1538_v53 = vsel %vm1506_vm4, %v1490_v51, %v1522_v26  ;;  %v1521_v26 = vmul.f32 0.2, %v1489_v32  ;;  %vm1505_vm4 = vcmp.gt.f32.partialorder %v1489_v32, 0.0 }
 0x2cb   :  { %v1119_v19 = vpop.permute.xlu1 %1118  ;;  %900 = vmax.xlane.f32.xlu0 %v7728_v35  ;;  %v7742_v35 = vsel %vm59_vm10, %v1204_v10, -9e+15  ;;  %v7761_v10 = vsel %vm59_vm10, %v863_v21, -9e+15  ;;  %v1879_v51 = vsel %vm1847_vm2, %v1831_v27, %v1863_v33  ;;  %v1866_v33 = vmul.f32 0.2, %v1834_v34 }
 0x2cc   :  { %v1155_v30 = vadd.f32 %v7460_v59, %v1119_v19  ;;  %9871 = vst [vmem:[#allocation27_spill] sm:$0xff] %v7742_v35  ;;  %9873 = vst [vmem:[#allocation29_spill] sm:$0xff] %v7761_v10  ;;  %v1537_v27 = vsel %vm1505_vm4, %v1489_v32, %v1521_v26  ;;  %v1524_v40 = vmul.f32 0.2, %v1492_v38  ;;  %vm1508_vm4 = vcmp.gt.f32.partialorder %v1492_v38, 0.0 }
 0x2cd   :  { %1567 = vmax.xlane.f32.xlu1 %v7735_v55 }
 0x2ce   :  { %v1187_v17 = vmul.f32 0.2, %v1155_v30  ;;  %vm1171_vm3 = vcmp.gt.f32.partialorder %v1155_v30, 0.0 }
 0x2cf   :  { %1247 = vmax.xlane.f32.xlu0 %v7742_v35 }
 0x2d0   :  { %v7745_v19 = vpop.permute.xlu1 %1802  ;;  %v1203_v62 = vsel %vm1171_vm3, %v1155_v30, %v1187_v17  ;;  %v7780_v30 = vsel %vm9763_vm12, %v1880_v57, -9e+15  ;;  %v7794_v57 = vsel %vm9763_vm12, %v1538_v53, -9e+15  ;;  %v7807_v53 = vsel %vm50_vm15, %v1879_v51, -9e+15 }
 0x2d1   :  { %1911 = vmax.xlane.f32.xlu1 %v7749_v29  ;;  %vm1850_vm12 = vcmp.gt.f32.partialorder %v1834_v34, 0.0 }
 0x2d2   :  { %v1882_v26 = vsel %vm1850_vm12, %v1834_v34, %v1866_v33 }
 0x2d3   :  { %906 = vmax.xlane.f32.xlu0 %v7761_v10  ;;  %v7775_v10 = vsel %vm58_vm5, %v1203_v62, -9e+15  ;;  %v7829_v31 = vsel %vm53_vm8, %v1882_v26, -9e+15 }
 0x2d4   :  { %9874 = vst [vmem:[#allocation30_spill] sm:$0xff] %v7775_v10 }
 0x2d5   :  { %v773_v61 = vpop.permute.xlu1 %772  ;;  %1569 = vmax.xlane.f32.xlu1 %v7767_v24 }
 0x2d6   :  { %v814_v21 = vadd.f32 %v7455_v58, %v773_v61 }
 0x2d7   :  { %1245 = vmax.xlane.f32.xlu0 %v7775_v10 }
 0x2d8   :  { %vm830_vm3 = vcmp.gt.f32.partialorder %v814_v21, 0.0  ;;  %v846_v17 = vmul.f32 0.2, %v814_v21 }
 0x2d9   :  { %1915 = vmax.xlane.f32.xlu1 %v7780_v30 }
 0x2da   :  { %v7785_v61 = vpop.permute.xlu1 %1460  ;;  %v862_v56 = vsel %vm830_vm3, %v814_v21, %v846_v17  ;;  %v7802_v17 = vld [vmem:[%s9723_s1 + $0x68] sm:$0xff] }
 0x2db   :  { %v7789_v62 = vsel %vm58_vm5, %v862_v56, -9e+15  ;;  %9876 = vst [vmem:[#allocation32_spill] sm:$0xff] %v7802_v17  ;;  %vm9821_vm3 = vcmp.gt.f32.partialorder %v7802_v17, 0.0 }
 0x2dc   :  { %9875 = vst [vmem:[#allocation31_spill] sm:$0xff] %v7789_v62  ;;  %904 = vmax.xlane.f32.xlu0 %v7789_v62  ;;  %v1833_v62 = vadd.f32 %v7465_v60, %v7421_v42 }
 0x2dd   :  { %1573 = vmax.xlane.f32.xlu1 %v7794_v57 }
 0x2de   :  { %vm1849_vm12 = vcmp.gt.f32.partialorder %v1833_v62, 0.0 }
 0x2df   :  { %v1131_v21 = vpop.permute.xlu1 %1130 }
 0x2e0   :  { %v1158_v56 = vadd.f32 %v7460_v59, %v1131_v21  ;;  %v7817_v21 = vsel %vm50_vm15, %v1537_v27, -9e+15 }
 0x2e1   :  { %1913 = vmax.xlane.f32.xlu1 %v7807_v53 }
 0x2e2   :  { %vm1174_vm2 = vcmp.gt.f32.partialorder %v1158_v56, 0.0  ;;  %v1190_v23 = vmul.f32 0.2, %v1158_v56 }
 0x2e4   :  { %v7813_v12 = vpop.permute.xlu1 %1814  ;;  %v1206_v51 = vsel %vm1174_vm2, %v1158_v56, %v1190_v23  ;;  %v1540_v23 = vsel %vm1508_vm4, %v1492_v38, %v1524_v40  ;;  %v1865_v56 = vmul.f32 0.2, %v1833_v62  ;;  %v1836_v38 = vadd.f32 %v7465_v60, %v7441_v50 }
 0x2e5   :  { %1571 = vmax.xlane.f32.xlu1 %v7817_v21  ;;  %v7822_v32 = vsel %vm9821_vm3, %v1206_v51, -9e+15  ;;  %v1491_v51 = vadd.f32 %v7680_v14, %v7419_v41  ;;  %v7837_v42 = vsel %vm53_vm8, %v1540_v23, -9e+15 }
 0x2e6   :  { %9877 = vst [vmem:[#allocation33_spill] sm:$0xff] %v7822_v32  ;;  %1251 = vmax.xlane.f32.xlu0 %v7822_v32  ;;  %v1881_v26 = vsel %vm1849_vm12, %v1833_v62, %v1865_v56  ;;  %v1494_v62 = vadd.f32 %v7680_v14, %v7478_v2  ;;  %v1868_v23 = vmul.f32 0.2, %v1836_v38  ;;  %vm1852_vm12 = vcmp.gt.f32.partialorder %v1836_v38, 0.0  ;;  %v7865_v2 = vld [vmem:[%s9723_s1 + $0x60] sm:$0xff] }
 0x2e7   :  { %v1523_v32 = vmul.f32 0.2, %v1491_v51  ;;  %vm1507_vm4 = vcmp.gt.f32.partialorder %v1491_v51, 0.0  ;;  %9879 = vst [vmem:[#allocation35_spill] sm:$0xff] %v7865_v2 }
 0x2e9   :  { %v788_v27 = vpop.permute.xlu1 %787  ;;  %1919 = vmax.xlane.f32.xlu1 %v7829_v31  ;;  %v1539_v50 = vsel %vm1507_vm4, %v1491_v51, %v1523_v32  ;;  %v1835_v32 = vadd.f32 %v7465_v60, %v7425_v43  ;;  %vm1510_vm4 = vcmp.gt.f32.partialorder %v1494_v62, 0.0 }
 0x2ea   :  { %v817_v34 = vadd.f32 %v7455_v58, %v788_v27  ;;  %v7851_v27 = vsel %vm9771_vm13, %v1881_v26, -9e+15  ;;  %v1884_v26 = vsel %vm1852_vm12, %v1836_v38, %v1868_v23  ;;  %v1493_v23 = vadd.f32 %v7680_v14, %v7524_v28 }
 0x2eb   :  { %v1867_v36 = vmul.f32 0.2, %v1835_v32  ;;  %vm1851_vm12 = vcmp.gt.f32.partialorder %v1835_v32, 0.0 }
 0x2ec   :  { %vm833_vm2 = vcmp.gt.f32.partialorder %v817_v34, 0.0  ;;  %v849_v33 = vmul.f32 0.2, %v817_v34 }
 0x2ed   :  { %1577 = vmax.xlane.f32.xlu1 %v7837_v42 }
 0x2ee   :  { %v7842_v40 = vpop.permute.xlu1 %1472  ;;  %v865_v10 = vsel %vm833_vm2, %v817_v34, %v849_v33  ;;  %v1526_v33 = vmul.f32 0.2, %v1494_v62 }
 0x2ef   :  { %v7846_v41 = vsel %vm9821_vm3, %v865_v10, -9e+15  ;;  %v7859_v10 = vsel %vm9771_vm13, %v1539_v50, -9e+15  ;;  %v7873_v50 = vsel %vm9778_vm7, %v1884_v26, -9e+15  ;;  %v1838_v26 = vadd.f32 %v7465_v60, %v7560_v15 }
 0x2f0   :  { %9878 = vst [vmem:[#allocation34_spill] sm:$0xff] %v7846_v41  ;;  %910 = vmax.xlane.f32.xlu0 %v7846_v41  ;;  %vm9820_vm13 = vcmp.gt.f32.partialorder %v7865_v2, 0.0  ;;  %v1542_v39 = vsel %vm1510_vm4, %v1494_v62, %v1526_v33  ;;  %v1883_v41 = vsel %vm1851_vm12, %v1835_v32, %v1867_v36  ;;  %v1496_v33 = vadd.f32 %v7680_v14, %v7586_v6 }
 0x2f1   :  { %1917 = vmax.xlane.f32.xlu1 %v7851_v27  ;;  %v1870_v62 = vmul.f32 0.2, %v1838_v26  ;;  %v819_v36 = vadd.f32 %v7455_v58, %v7439_v49  ;;  %v7914_v49 = vld [vmem:[%s9723_s1 + $0x78] sm:$0xff] }
 0x2f2   :  { %v1528_v35 = vmul.f32 0.2, %v1496_v33  ;;  %9882 = vst [vmem:[#allocation38_spill] sm:$0xff] %v7914_v49 }
 0x2f3   :  { %v1127_v56 = vpop.permute.xlu1 %1126 }
 0x2f4   :  { %v1157_v34 = vadd.f32 %v7460_v59, %v1127_v56 }
 0x2f5   :  { %1575 = vmax.xlane.f32.xlu1 %v7859_v10 }
 0x2f6   :  { %vm1173_vm2 = vcmp.gt.f32.partialorder %v1157_v34, 0.0  ;;  %v1189_v51 = vmul.f32 0.2, %v1157_v34 }
 0x2f8   :  { %v7869_v56 = vpop.permute.xlu1 %1810  ;;  %v1205_v38 = vsel %vm1173_vm2, %v1157_v34, %v1189_v51  ;;  %v7888_v34 = vsel %vm9778_vm7, %v1542_v39, -9e+15  ;;  %v1525_v51 = vmul.f32 0.2, %v1493_v23  ;;  %vm1509_vm2 = vcmp.gt.f32.partialorder %v1493_v23, 0.0 }
 0x2f9   :  { %1923 = vmax.xlane.f32.xlu1 %v7873_v50  ;;  %v7881_v43 = vsel %vm9820_vm13, %v1205_v38, -9e+15  ;;  %vm1854_vm7 = vcmp.gt.f32.partialorder %v1838_v26, 0.0 }
 0x2fa   :  { %9880 = vst [vmem:[#allocation36_spill] sm:$0xff] %v7881_v43  ;;  %1249 = vmax.xlane.f32.xlu0 %v7881_v43  ;;  %v7896_v43 = vsel %vm9782_vm6, %v1883_v41, -9e+15  ;;  %v1541_v39 = vsel %vm1509_vm2, %v1493_v23, %v1525_v51  ;;  %v1886_v23 = vsel %vm1854_vm7, %v1838_v26, %v1870_v62  ;;  %v1837_v51 = vadd.f32 %v7465_v60, %v7617_v5 }
 0x2fb   :  { %v7909_v41 = vsel %vm9782_vm6, %v1541_v39, -9e+15  ;;  %vm1512_vm2 = vcmp.gt.f32.partialorder %v1496_v33, 0.0  ;;  %vm9819_vm6 = vcmp.gt.f32.partialorder %v7914_v49, 0.0  ;;  %v7924_v62 = vsel %vm57_vm11, %v1886_v23, -9e+15 }
 0x2fc   :  { %v1869_v5 = vmul.f32 0.2, %v1837_v51  ;;  %v1544_v44 = vsel %vm1512_vm2, %v1496_v33, %v1528_v35  ;;  %vm1853_vm7 = vcmp.gt.f32.partialorder %v1837_v51, 0.0 }
 0x2fd   :  { %v783_v28 = vpop.permute.xlu1 %782  ;;  %1581 = vmax.xlane.f32.xlu1 %v7888_v34  ;;  %v7938_v23 = vsel %vm57_vm11, %v1544_v44, -9e+15 }
 0x2fe   :  { %v816_v38 = vadd.f32 %v7455_v58, %v783_v28  ;;  %v1885_v35 = vsel %vm1853_vm7, %v1837_v51, %v1869_v5 }
 0x2ff   :  { %v7950_v33 = vsel %vm56_vm14, %v1885_v35, -9e+15 }
 0x300   :  { %vm832_vm4 = vcmp.gt.f32.partialorder %v816_v38, 0.0  ;;  %v848_v15 = vmul.f32 0.2, %v816_v38 }
 0x301   :  { %1921 = vmax.xlane.f32.xlu1 %v7896_v43 }
 0x302   :  { %v1139_v32 = vpop.permute.xlu1 %1138  ;;  %v864_v28 = vsel %vm832_vm4, %v816_v38, %v848_v15  ;;  %v851_v15 = vmul.f32 0.2, %v819_v36  ;;  %vm835_vm4 = vcmp.gt.f32.partialorder %v819_v36, 0.0 }
 0x303   :  { %v1160_v47 = vadd.f32 %v7460_v59, %v1139_v32  ;;  %v7904_v6 = vsel %vm9820_vm13, %v864_v28, -9e+15  ;;  %v1495_v28 = vadd.f32 %v7680_v14, %v7640_v11  ;;  %v1840_v11 = vadd.f32 %v7465_v60, %v7675_v54  ;;  %v7958_v54 = vld [vmem:[%s9723_s1 + $0x70] sm:$0xff]  ;;  %s5301_s1 = sshll.u32 %s6905_s24, 4  ;;  %s5302_s1 = int_to_ptr.vmem [resolvable:$true] %s5301_s1 }
 0x304   :  { %9881 = vst [vmem:[#allocation37_spill] sm:$0xff] %v7904_v6  ;;  %908 = vmax.xlane.f32.xlu0 %v7904_v6  ;;  %v867_v6 = vsel %vm835_vm4, %v819_v36, %v851_v15  ;;  %v1498_v36 = vadd.f32 %v7680_v14, %v7706_v20  ;;  %9885 = vst [vmem:[#allocation41_spill] sm:$0xff] %v7958_v54  ;;  %vm9818_vm4 = vcmp.gt.f32.partialorder %v7958_v54, 0.0  ;;  %s6878_s25 = scalar_lea.vmem %s5302_s1, 16384  ;;  %p6883_p1 = scmp.lt.s32.totalorder %s5302_s1, %s5302_s1 }
 0x305   :  { %1579 = vmax.xlane.f32.xlu1 %v7909_v41  ;;  %vm1176_vm12 = vcmp.gt.f32.partialorder %v1160_v47, 0.0  ;;  %v1192_v38 = vmul.f32 0.2, %v1160_v47  ;;  %v1872_v44 = vmul.f32 0.2, %v1840_v11  ;;  %vm1856_vm2 = vcmp.gt.f32.partialorder %v1840_v11, 0.0  ;;  %p6879_p0 = scmp.ne.s32.totalorder %s5302_s1, %s6878_s25  ;;  %p6884_p2 = scmp.lt.s32.totalorder %s6878_s25, %s6878_s25 }
 0x306   :  { %v1530_v35 = vmul.f32 0.2, %v1498_v36 }
 0x307   :  { %v7919_v32 = vpop.permute.xlu1 %1822  ;;  %v1208_v26 = vsel %vm1176_vm12, %v1160_v47, %v1192_v38  ;;  %v7942_v38 = vsel %vm9819_vm6, %v867_v6, -9e+15  ;;  %vm1511_vm12 = vcmp.gt.f32.partialorder %v1495_v28, 0.0  ;;  %v1888_v52 = vsel %vm1856_vm2, %v1840_v11, %v1872_v44  ;;  %p6885_p3 = por %p6884_p2, %p6883_p1 }
 0x308   :  { %v7928_v39 = vsel %vm9819_vm6, %v1208_v26, -9e+15  ;;  %9884 = vst [vmem:[#allocation40_spill] sm:$0xff] %v7942_v38  ;;  %v1527_v26 = vmul.f32 0.2, %v1495_v28 }
 0x309   :  { %9883 = vst [vmem:[#allocation39_spill] sm:$0xff] %v7928_v39  ;;  %1927 = vmax.xlane.f32.xlu1 %v7924_v62  ;;  %1255 = vmax.xlane.f32.xlu0 %v7928_v39  ;;  %p6886_p4 = pnand %p6885_p3, %p6879_p0 }
 0x30a   :  { %v1543_v15 = vsel %vm1511_vm12, %v1495_v28, %v1527_v26  ;;  %v1839_v28 = vadd.f32 %v7465_v60, %v7745_v19  ;;  %v7968_v26 = vpop.xlane.xlu0 %1909  ;;  %vm1514_vm12 = vcmp.gt.f32.partialorder %v1498_v36, 0.0  ;;  %v1497_v19 = vadd.f32 %v7680_v14, %v7785_v61 }
 0x30b   :  { %v7963_v5 = vsel %vm56_vm14, %v1543_v15, -9e+15  ;;  %v7978_v15 = vsel %vm59_vm10, %v1888_v52, -9e+15  ;;  %v1546_v11 = vsel %vm1514_vm12, %v1498_v36, %v1530_v35  ;;  %v1842_v52 = vadd.f32 %v7465_v60, %v7813_v12 }
 0x30c   :  { %v7934_v47 = vpop.permute.xlu1 %1480  ;;  %v1871_v48 = vmul.f32 0.2, %v1839_v28  ;;  %vm1855_vm2 = vcmp.gt.f32.partialorder %v1839_v28, 0.0  ;;  %vm1513_vm12 = vcmp.gt.f32.partialorder %v1497_v19, 0.0 }
 0x30d   :  { %1585 = vmax.xlane.f32.xlu1 %v7938_v23  ;;  %914 = vmax.xlane.f32.xlu0 %v7942_v38 }
 0x30e   :  { %v7983_v44 = vpop.xlane.xlu0 %884  ;;  %v1887_v61 = vsel %vm1855_vm2, %v1839_v28, %v1871_v48  ;;  %vm1858_vm2 = vcmp.gt.f32.partialorder %v1842_v52, 0.0 }
 0x30f   :  { %v7995_v36 = vsel %vm58_vm5, %v1887_v61, -9e+15 }
 0x311   :  { %v1135_v6 = vpop.permute.xlu1 %1134  ;;  %1925 = vmax.xlane.f32.xlu1 %v7950_v33 }
 0x312   :  { %v1159_v51 = vadd.f32 %v7460_v59, %v1135_v6 }
 0x314   :  { %vm1175_vm7 = vcmp.gt.f32.partialorder %v1159_v51, 0.0  ;;  %v1191_v20 = vmul.f32 0.2, %v1159_v51 }
 0x315   :  { %1583 = vmax.xlane.f32.xlu1 %v7963_v5 }
 0x316   :  { %v1819_v38 = vpop.permute.xlu1 %1818  ;;  %v1207_v59 = vsel %vm1175_vm7, %v1159_v51, %v1191_v20 }
 0x317   :  { %v7973_v6 = vsel %vm9818_vm4, %v1207_v59, -9e+15  ;;  %v7988_v59 = vsel %vm59_vm10, %v1546_v11, -9e+15  ;;  %v1500_v11 = vadd.f32 %v7680_v14, %v7842_v40  ;;  %v1841_v40 = vadd.f32 %v7465_v60, %v7869_v56 }
 0x318   :  { %9886 = vst [vmem:[#allocation42_spill] sm:$0xff] %v7973_v6  ;;  %1253 = vmax.xlane.f32.xlu0 %v7973_v6  ;;  %v1529_v6 = vmul.f32 0.2, %v1497_v19 }
 0x319   :  { %1931 = vmax.xlane.f32.xlu1 %v7978_v15 }
 0x31a   :  { %v1545_v48 = vsel %vm1513_vm12, %v1497_v19, %v1529_v6  ;;  %v1873_v19 = vmul.f32 0.2, %v1841_v40  ;;  %vm1857_vm12 = vcmp.gt.f32.partialorder %v1841_v40, 0.0 }
 0x31b   :  { %v793_v51 = vpop.permute.xlu1 %792  ;;  %v8009_v28 = vsel %vm58_vm5, %v1545_v48, -9e+15  ;;  %v1499_v48 = vadd.f32 %v7680_v14, %v7431_v45 }
 0x31c   :  { %v818_v20 = vadd.f32 %v7455_v58, %v793_v51  ;;  %v1874_v58 = vmul.f32 0.2, %v1842_v52  ;;  %v7999_v51 = vpop.xlane.xlu0 %1227 }
 0x31d   :  { %1589 = vmax.xlane.f32.xlu1 %v7988_v59  ;;  %v1531_v37 = vmul.f32 0.2, %v1499_v48 }
 0x31e   :  { %vm834_vm7 = vcmp.gt.f32.partialorder %v818_v20, 0.0  ;;  %v850_v39 = vmul.f32 0.2, %v818_v20 }
 0x320   :  { %v866_v35 = vsel %vm834_vm7, %v818_v20, %v850_v39  ;;  %v1532_v39 = vmul.f32 0.2, %v1500_v11  ;;  %v1890_v20 = vsel %vm1858_vm2, %v1842_v52, %v1874_v58  ;;  %vm1516_vm7 = vcmp.gt.f32.partialorder %v1500_v11, 0.0  ;;  %v8014_v61 = vpop.xlane.xlu0 %886 }
 0x321   :  { %1929 = vmax.xlane.f32.xlu1 %v7995_v36  ;;  %v8004_v12 = vsel %vm9818_vm4, %v866_v35, -9e+15  ;;  %v8018_v6 = vsel %vm9821_vm3, %v1890_v20, -9e+15  ;;  %v1844_v52 = vadd.f32 %v7465_v60, %v7919_v32  ;;  %v1889_v20 = vsel %vm1857_vm12, %v1841_v40, %v1873_v19 }
 0x322   :  { %9887 = vst [vmem:[#allocation43_spill] sm:$0xff] %v8004_v12  ;;  %912 = vmax.xlane.f32.xlu0 %v8004_v12  ;;  %v1548_v35 = vsel %vm1516_vm7, %v1500_v11, %v1532_v39  ;;  %vm1515_vm2 = vcmp.gt.f32.partialorder %v1499_v48, 0.0  ;;  %v8034_v11 = vsel %vm9820_vm13, %v1889_v20, -9e+15  ;;  %v1502_v39 = vadd.f32 %v7680_v14, %v7934_v47  ;;  %v1477_v47 = vpop.permute.xlu1 %1476 }
 0x323   :  { %v8025_v56 = vsel %vm9821_vm3, %v1548_v35, -9e+15  ;;  %v1876_v45 = vmul.f32 0.2, %v1844_v52  ;;  %v1547_v35 = vsel %vm1515_vm2, %v1499_v48, %v1531_v37  ;;  %vm1860_vm7 = vcmp.gt.f32.partialorder %v1844_v52, 0.0 }
 0x324   :  { %v8029_v58 = vpop.xlane.xlu0 %1231  ;;  %v1941_v32 = vsub.f32 %v7486_v7, %v7968_v26  ;;  %v8045_v40 = vsel %vm9820_vm13, %v1547_v35, -9e+15  ;;  %v1534_v19 = vmul.f32 0.2, %v1502_v39  ;;  %v1843_v20 = vadd.f32 %v7465_v60, %v1819_v38 }
 0x325   :  { %1587 = vmax.xlane.f32.xlu1 %v8009_v28  ;;  %v1892_v22 = vsel %vm1860_vm7, %v1844_v52, %v1876_v45  ;;  %vm1518_vm12 = vcmp.gt.f32.partialorder %v1502_v39, 0.0  ;;  %v1501_v26 = vadd.f32 %v7680_v14, %v1477_v47  ;;  %v916_v47 = vsub.f32 %v7502_v13, %v7983_v44 }
 0x326   :  { %v1957_v12 = vmul.f32 1.442695, %v1941_v32  ;;  %v8051_v37 = vsel %vm9819_vm6, %v1892_v22, -9e+15  ;;  %v1875_v7 = vmul.f32 0.2, %v1843_v20  ;;  %v1550_v35 = vsel %vm1518_vm12, %v1502_v39, %v1534_v19 }
 0x327   :  { %vm1859_vm2 = vcmp.gt.f32.partialorder %v1843_v20, 0.0  ;;  %v8059_v60 = vsel %vm9819_vm6, %v1550_v35, -9e+15  ;;  %v1533_v38 = vmul.f32 0.2, %v1501_v26  ;;  %vm1517_vm7 = vcmp.gt.f32.partialorder %v1501_v26, 0.0 }
 0x328   :  { %v8041_v17 = vpop.xlane.xlu0 %890  ;;  %6238 = vpow2.f32 %v1957_v12  ;;  %v1891_v52 = vsel %vm1859_vm2, %v1843_v20, %v1875_v7  ;;  %v917_v13 = vsub.f32 %v7528_v46, %v8014_v61  ;;  %vm9934_vm6 = vcmask 261312  }
 0x329   :  { %1935 = vmax.xlane.f32.xlu1 %v8018_v6  ;;  %v8066_v14 = vsel %vm9818_vm4, %v1891_v52, -9e+15  ;;  %v1549_v45 = vsel %vm1517_vm7, %v1501_v26, %v1533_v38  ;;  %v932_v38 = vmul.f32 1.442695, %v916_v47  ;;  %v1258_v52 = vsub.f32 %v7513_v0, %v7999_v51  ;;  %vm9937_vm3 = vmmov %vm9934_vm6 }
 0x32a   :  { %v8071_v12 = vsel %vm9818_vm4, %v1549_v45, -9e+15  ;;  %v934_v0 = vmul.f32 1.442695, %v917_v13  ;;  %v1260_v51 = vsub.f32 %v7538_v3, %v8029_v58  ;;  %v919_v46 = vsub.f32 %v7554_v9, %v8041_v17 }
 0x32c   :  { %v8054_v48 = vpop.xlane.xlu0 %1229  ;;  %v938_v3 = vmul.f32 1.442695, %v919_v46 }
 0x32d   :  { %1593 = vmax.xlane.f32.xlu1 %v8025_v56 }
 0x330   :  { %v8062_v22 = vpop.xlane.xlu0 %888 }
 0x331   :  { %1933 = vmax.xlane.f32.xlu1 %v8034_v11 }
 0x334   :  { %v8073_v39 = vpop.xlane.xlu0 %1235 }
 0x335   :  { %1591 = vmax.xlane.f32.xlu1 %v8045_v40  ;;  %v8076_v32 = vpop.eup %6238 }
 0x336   :  { %9888 = vst [vmem:[#allocation44_spill] sm:$0xff] %v8076_v32 }
 0x338   :  { %v8079_v19 = vpop.xlane.xlu0 %894 }
 0x339   :  { %1939 = vmax.xlane.f32.xlu1 %v8051_v37 }
 0x33c   :  { %v8081_v20 = vpop.xlane.xlu0 %1233 }
 0x33d   :  { %1597 = vmax.xlane.f32.xlu1 %v8059_v60 }
 0x340   :  { %v8088_v54 = vpop.xlane.xlu0 %892 }
 0x341   :  { %1937 = vmax.xlane.f32.xlu1 %v8066_v14 }
 0x344   :  { %v8094_v47 = vpop.xlane.xlu0 %1239 }
 0x345   :  { %1595 = vmax.xlane.f32.xlu1 %v8071_v12 }
 0x349   :  { %1989 = vadd.xlane.f32.xlu1 %v8076_v32  ;;  %v1275_v32 = vmul.f32 1.442695, %v1258_v52 }
 0x352   :  { %v1226_v7 = vpop.xlane.xlu1 %1225 }
 0x353   :  { %v1257_v26 = vsub.f32 %v7716_v4, %v1226_v7 }
 0x355   :  { %v1273_v35 = vmul.f32 1.442695, %v1257_v26 }
 0x356   :  { %v1568_v45 = vpop.xlane.xlu1 %1567 }
 0x357   :  { %6240 = vpow2.f32 %v1273_v35  ;;  %v1599_v49 = vsub.f32 %v7735_v55, %v1568_v45  ;;  %v1279_v35 = vmul.f32 1.442695, %v1260_v51  ;;  %v1262_v51 = vsub.f32 %v7590_v8, %v8073_v39 }
 0x358   :  { %6242 = vpow2.f32 %v932_v38  ;;  %v921_v8 = vsub.f32 %v7603_v18, %v8079_v19  ;;  %v1261_v18 = vsub.f32 %v7612_v63, %v8081_v20 }
 0x359   :  { %v1615_v2 = vmul.f32 1.442695, %v1599_v49 }
 0x35a   :  { %v1912_v44 = vpop.xlane.xlu1 %1911 }
 0x35b   :  { %6244 = vpow2.f32 %v1615_v2  ;;  %v1942_v4 = vsub.f32 %v7749_v29, %v1912_v44  ;;  %v8101_v29 = vpop.xlane.xlu0 %898 }
 0x35c   :  { %6246 = vpow2.f32 %v1275_v32 }
 0x35d   :  { %v1959_v7 = vmul.f32 1.442695, %v1942_v4 }
 0x35e   :  { %v1570_v26 = vpop.xlane.xlu1 %1569 }
 0x35f   :  { %6248 = vpow2.f32 %v1959_v7  ;;  %v1600_v55 = vsub.f32 %v7767_v24, %v1570_v26  ;;  %v1259_v24 = vsub.f32 %v7565_v1, %v8054_v48  ;;  %v8114_v45 = vpop.xlane.xlu0 %1237  ;;  %v918_v1 = vsub.f32 %v7580_v25, %v8062_v22 }
 0x360   :  { %6250 = vpow2.f32 %v934_v0 }
 0x361   :  { %v1617_v49 = vmul.f32 1.442695, %v1600_v55  ;;  %v1277_v13 = vmul.f32 1.442695, %v1259_v24  ;;  %v936_v0 = vmul.f32 1.442695, %v918_v1 }
 0x362   :  { %v1916_v2 = vpop.xlane.xlu1 %1915 }
 0x363   :  { %6252 = vpow2.f32 %v1617_v49  ;;  %v1944_v61 = vsub.f32 %v7780_v30, %v1916_v2  ;;  %v8131_v22 = vpop.xlane.xlu0 %896 }
 0x364   :  { %v8104_v32 = vpop.eup %6240  ;;  %6254 = vpow2.f32 %v1279_v35  ;;  %v1283_v35 = vmul.f32 1.442695, %v1262_v51 }
 0x365   :  { %v1963_v38 = vmul.f32 1.442695, %v1944_v61  ;;  %1305 = vadd.xlane.f32.xlu0 %v8104_v32  ;;  %v8109_v52 = vpop.eup %6242 }
 0x366   :  { %v1574_v58 = vpop.xlane.xlu1 %1573 }
 0x367   :  { %6256 = vpow2.f32 %v1963_v38  ;;  %v1602_v9 = vsub.f32 %v7794_v57, %v1574_v58 }
 0x368   :  { %v8112_v17 = vpop.eup %6244  ;;  %6258 = vpow2.f32 %v938_v3  ;;  %v942_v3 = vmul.f32 1.442695, %v921_v8  ;;  %v9890_v8 = vld [vmem:[#allocation16_spill] sm:$0xff] }
 0x369   :  { %v1621_v30 = vmul.f32 1.442695, %v1602_v9  ;;  %1647 = vadd.xlane.f32.xlu1 %v8112_v17  ;;  %964 = vadd.xlane.f32.xlu0 %v8109_v52  ;;  %v8120_v44 = vpop.eup %6246 }
 0x36a   :  { %v1914_v48 = vpop.xlane.xlu1 %1913 }
 0x36b   :  { %6260 = vpow2.f32 %v1621_v30  ;;  %v1943_v57 = vsub.f32 %v7807_v53, %v1914_v48  ;;  %v1281_v30 = vmul.f32 1.442695, %v1261_v18 }
 0x36c   :  { %v8123_v4 = vpop.eup %6248  ;;  %6262 = vpow2.f32 %v1277_v13  ;;  %v920_v13 = vsub.f32 %v7627_v16, %v8088_v54 }
 0x36d   :  { %v1961_v7 = vmul.f32 1.442695, %v1943_v57  ;;  %1991 = vadd.xlane.f32.xlu1 %v8123_v4  ;;  %1307 = vadd.xlane.f32.xlu0 %v8120_v44  ;;  %v8129_v25 = vpop.eup %6250 }
 0x36e   :  { %v1572_v26 = vpop.xlane.xlu1 %1571 }
 0x36f   :  { %6264 = vpow2.f32 %v1961_v7  ;;  %v1601_v53 = vsub.f32 %v7817_v21, %v1572_v26  ;;  %v8145_v21 = vpop.xlane.xlu0 %1243  ;;  %v940_v7 = vmul.f32 1.442695, %v920_v13 }
 0x370   :  { %v8134_v55 = vpop.eup %6252  ;;  %6266 = vpow2.f32 %v936_v0  ;;  %v9889_v0 = vld [vmem:[#allocation15_spill] sm:$0xff] }
 0x371   :  { %v1619_v49 = vmul.f32 1.442695, %v1601_v53  ;;  %1649 = vadd.xlane.f32.xlu1 %v8134_v55  ;;  %966 = vadd.xlane.f32.xlu0 %v8129_v25  ;;  %v8140_v46 = vpop.eup %6254  ;;  %v1264_v16 = vsub.f32 %v9889_v0, %v8094_v47  ;;  %v923_v47 = vsub.f32 %v9890_v8, %v8101_v29 }
 0x372   :  { %v1920_v39 = vpop.xlane.xlu1 %1919 }
 0x373   :  { %6268 = vpow2.f32 %v1619_v49  ;;  %v1946_v2 = vsub.f32 %v7829_v31, %v1920_v39  ;;  %v8162_v20 = vpop.xlane.xlu0 %902  ;;  %v946_v18 = vmul.f32 1.442695, %v923_v47 }
 0x374   :  { %v8143_v61 = vpop.eup %6256  ;;  %6270 = vpow2.f32 %v1283_v35  ;;  %v1287_v35 = vmul.f32 1.442695, %v1264_v16 }
 0x375   :  { %v1967_v38 = vmul.f32 1.442695, %v1946_v2  ;;  %1995 = vadd.xlane.f32.xlu1 %v8143_v61  ;;  %1311 = vadd.xlane.f32.xlu0 %v8140_v46  ;;  %v8151_v24 = vpop.eup %6258 }
 0x376   :  { %v1578_v19 = vpop.xlane.xlu1 %1577 }
 0x377   :  { %6272 = vpow2.f32 %v1967_v38  ;;  %v1604_v31 = vsub.f32 %v7837_v42, %v1578_v19  ;;  %v9891_v19 = vld [vmem:[#allocation18_spill] sm:$0xff] }
 0x378   :  { %v8154_v58 = vpop.eup %6260  ;;  %6274 = vpow2.f32 %v942_v3 }
 0x379   :  { %v1625_v9 = vmul.f32 1.442695, %v1604_v31  ;;  %1653 = vadd.xlane.f32.xlu1 %v8154_v58  ;;  %970 = vadd.xlane.f32.xlu0 %v8151_v24  ;;  %v8160_v63 = vpop.eup %6262  ;;  %v1263_v31 = vsub.f32 %v9891_v19, %v8114_v45 }
 0x37a   :  { %v1918_v1 = vpop.xlane.xlu1 %1917 }
 0x37b   :  { %6276 = vpow2.f32 %v1625_v9  ;;  %v1945_v42 = vsub.f32 %v7851_v27, %v1918_v1  ;;  %v8176_v27 = vpop.xlane.xlu0 %1241 }
 0x37c   :  { %v8165_v48 = vpop.eup %6264  ;;  %6278 = vpow2.f32 %v1281_v30 }
 0x37d   :  { %v1965_v57 = vmul.f32 1.442695, %v1945_v42  ;;  %1993 = vadd.xlane.f32.xlu1 %v8165_v48  ;;  %1309 = vadd.xlane.f32.xlu0 %v8160_v63  ;;  %v8171_v51 = vpop.eup %6266  ;;  %v1285_v42 = vmul.f32 1.442695, %v1263_v31 }
 0x37e   :  { %v1576_v54 = vpop.xlane.xlu1 %1575 }
 0x37f   :  { %6280 = vpow2.f32 %v1965_v57  ;;  %v1603_v26 = vsub.f32 %v7859_v10, %v1576_v54  ;;  %v8193_v30 = vpop.xlane.xlu0 %900  ;;  %v9892_v57 = vld [vmem:[#allocation20_spill] sm:$0xff] }
 0x380   :  { %v8174_v53 = vpop.eup %6268  ;;  %6282 = vpow2.f32 %v940_v7  ;;  %v922_v45 = vsub.f32 %v9892_v57, %v8131_v22  ;;  %v9895_v57 = vld [vmem:[#allocation24_spill] sm:$0xff] }
 0x381   :  { %v1623_v49 = vmul.f32 1.442695, %v1603_v26  ;;  %1651 = vadd.xlane.f32.xlu1 %v8174_v53  ;;  %968 = vadd.xlane.f32.xlu0 %v8171_v51  ;;  %v8182_v2 = vpop.eup %6270 }
 0x382   :  { %v1924_v39 = vpop.xlane.xlu1 %1923 }
 0x383   :  { %6284 = vpow2.f32 %v1623_v49  ;;  %v1948_v10 = vsub.f32 %v7873_v50, %v1924_v39  ;;  %v944_v49 = vmul.f32 1.442695, %v922_v45  ;;  %v1265_v45 = vsub.f32 %v9895_v57, %v8176_v27 }
 0x384   :  { %v8185_v38 = vpop.eup %6272  ;;  %6286 = vpow2.f32 %v1287_v35  ;;  %v9893_v35 = vld [vmem:[#allocation21_spill] sm:$0xff] }
 0x385   :  { %v1971_v3 = vmul.f32 1.442695, %v1948_v10  ;;  %1999 = vadd.xlane.f32.xlu1 %v8185_v38  ;;  %1315 = vadd.xlane.f32.xlu0 %v8182_v2  ;;  %v8191_v29 = vpop.eup %6274  ;;  %v1266_v22 = vsub.f32 %v9893_v35, %v8145_v21  ;;  %v1289_v35 = vmul.f32 1.442695, %v1265_v45 }
 0x386   :  { %v1582_v9 = vpop.xlane.xlu1 %1581 }
 0x387   :  { %6288 = vpow2.f32 %v1971_v3  ;;  %v1606_v50 = vsub.f32 %v7888_v34, %v1582_v9  ;;  %v8207_v34 = vpop.xlane.xlu0 %1247  ;;  %v1291_v3 = vmul.f32 1.442695, %v1266_v22  ;;  %v9896_v22 = vld [vmem:[#allocation26_spill] sm:$0xff] }
 0x388   :  { %v8196_v13 = vpop.eup %6276  ;;  %6290 = vpow2.f32 %v946_v18  ;;  %v9894_v18 = vld [vmem:[#allocation23_spill] sm:$0xff] }
 0x389   :  { %v1629_v1 = vmul.f32 1.442695, %v1606_v50  ;;  %1657 = vadd.xlane.f32.xlu1 %v8196_v13  ;;  %974 = vadd.xlane.f32.xlu0 %v8191_v29  ;;  %v8202_v0 = vpop.eup %6278  ;;  %v925_v19 = vsub.f32 %v9894_v18, %v8162_v20 }
 0x38a   :  { %v1922_v7 = vpop.xlane.xlu1 %1921 }
 0x38b   :  { %6292 = vpow2.f32 %v1629_v1  ;;  %v1947_v16 = vsub.f32 %v7896_v43, %v1922_v7  ;;  %v907_v9 = vpop.xlane.xlu0 %906 }
 0x38c   :  { %v8205_v54 = vpop.eup %6280  ;;  %6294 = vpow2.f32 %v1285_v42  ;;  %v950_v42 = vmul.f32 1.442695, %v925_v19  ;;  %v9897_v19 = vld [vmem:[#allocation27_spill] sm:$0xff] }
 0x38d   :  { %v1969_v26 = vmul.f32 1.442695, %v1947_v16  ;;  %1997 = vadd.xlane.f32.xlu1 %v8205_v54  ;;  %1313 = vadd.xlane.f32.xlu0 %v8202_v0  ;;  %v8213_v47 = vpop.eup %6282 }
 0x38e   :  { %v1580_v8 = vpop.xlane.xlu1 %1579 }
 0x38f   :  { %6296 = vpow2.f32 %v1969_v26  ;;  %v1605_v43 = vsub.f32 %v7909_v41, %v1580_v8  ;;  %v924_v8 = vsub.f32 %v9896_v22, %v8193_v30 }
 0x390   :  { %v8216_v39 = vpop.eup %6284  ;;  %6298 = vpow2.f32 %v944_v49 }
 0x391   :  { %v1627_v10 = vmul.f32 1.442695, %v1605_v43  ;;  %1655 = vadd.xlane.f32.xlu1 %v8216_v39  ;;  %972 = vadd.xlane.f32.xlu0 %v8213_v47  ;;  %v8222_v21 = vpop.eup %6286  ;;  %v948_v18 = vmul.f32 1.442695, %v924_v8 }
 0x392   :  { %v1928_v31 = vpop.xlane.xlu1 %1927 }
 0x393   :  { %6300 = vpow2.f32 %v1627_v10  ;;  %v1950_v50 = vsub.f32 %v7924_v62, %v1928_v31  ;;  %v1246_v62 = vpop.xlane.xlu0 %1245  ;;  %v1268_v31 = vsub.f32 %v9897_v19, %v8207_v34 }
 0x394   :  { %v8225_v41 = vpop.eup %6288  ;;  %6302 = vpow2.f32 %v1291_v3 }
 0x395   :  { %v1975_v1 = vmul.f32 1.442695, %v1950_v50  ;;  %2003 = vadd.xlane.f32.xlu1 %v8225_v41  ;;  %1319 = vadd.xlane.f32.xlu0 %v8222_v21  ;;  %v8231_v7 = vpop.eup %6290  ;;  %v1295_v45 = vmul.f32 1.442695, %v1268_v31 }
 0x396   :  { %v1586_v20 = vpop.xlane.xlu1 %1585 }
 0x397   :  { %6304 = vpow2.f32 %v1975_v1  ;;  %v1608_v16 = vsub.f32 %v7938_v23, %v1586_v20  ;;  %v905_v1 = vpop.xlane.xlu0 %904  ;;  %v9898_v20 = vld [vmem:[#allocation29_spill] sm:$0xff] }
 0x398   :  { %v8234_v26 = vpop.eup %6292  ;;  %6306 = vpow2.f32 %v950_v42 }
 0x399   :  { %v1633_v49 = vmul.f32 1.442695, %v1608_v16  ;;  %1661 = vadd.xlane.f32.xlu1 %v8234_v26  ;;  %978 = vadd.xlane.f32.xlu0 %v8231_v7  ;;  %v8240_v43 = vpop.eup %6294  ;;  %v927_v16 = vsub.f32 %v9898_v20, %v907_v9 }
 0x39a   :  { %v1926_v27 = vpop.xlane.xlu1 %1925 }
 0x39b   :  { %6308 = vpow2.f32 %v1633_v49  ;;  %v1949_v10 = vsub.f32 %v7950_v33, %v1926_v27  ;;  %v954_v27 = vmul.f32 1.442695, %v927_v16 }
 0x39c   :  { %v8243_v23 = vpop.eup %6296  ;;  %6310 = vpow2.f32 %v1289_v35  ;;  %v1252_v35 = vpop.xlane.xlu0 %1251 }
 0x39d   :  { %v1973_v3 = vmul.f32 1.442695, %v1949_v10  ;;  %2001 = vadd.xlane.f32.xlu1 %v8243_v23  ;;  %1317 = vadd.xlane.f32.xlu0 %v8240_v43  ;;  %v8249_v30 = vpop.eup %6298  ;;  %v9899_v10 = vld [vmem:[#allocation30_spill] sm:$0xff] }
 0x39e   :  { %v1584_v50 = vpop.xlane.xlu1 %1583 }
 0x39f   :  { %6312 = vpow2.f32 %v1973_v3  ;;  %v1607_v42 = vsub.f32 %v7963_v5, %v1584_v50  ;;  %v1267_v3 = vsub.f32 %v9899_v10, %v1246_v62 }
 0x3a0   :  { %v8252_v33 = vpop.eup %6300  ;;  %6314 = vpow2.f32 %v948_v18  ;;  %v911_v19 = vpop.xlane.xlu0 %910 }
 0x3a1   :  { %v1631_v57 = vmul.f32 1.442695, %v1607_v42  ;;  %1659 = vadd.xlane.f32.xlu1 %v8252_v33  ;;  %976 = vadd.xlane.f32.xlu0 %v8249_v30  ;;  %v8257_v34 = vpop.eup %6302  ;;  %v1293_v42 = vmul.f32 1.442695, %v1267_v3 }
 0x3a2   :  { %v1932_v49 = vpop.xlane.xlu1 %1931 }
 0x3a3   :  { %6316 = vpow2.f32 %v1631_v57  ;;  %v1952_v22 = vsub.f32 %v7978_v15, %v1932_v49  ;;  %v9900_v57 = vld [vmem:[#allocation31_spill] sm:$0xff] }
 0x3a4   :  { %v8260_v8 = vpop.eup %6304  ;;  %6318 = vpow2.f32 %v1295_v45  ;;  %v926_v45 = vsub.f32 %v9900_v57, %v905_v1  ;;  %v1250_v16 = vpop.xlane.xlu0 %1249 }
 0x3a5   :  { %v1979_v5 = vmul.f32 1.442695, %v1952_v22  ;;  %2007 = vadd.xlane.f32.xlu1 %v8260_v8  ;;  %1323 = vadd.xlane.f32.xlu0 %v8257_v34  ;;  %v8265_v9 = vpop.eup %6306 }
 0x3a6   :  { %v1590_v18 = vpop.xlane.xlu1 %1589 }
 0x3a7   :  { %6320 = vpow2.f32 %v1979_v5  ;;  %v1610_v31 = vsub.f32 %v7988_v59, %v1590_v18  ;;  %v952_v5 = vmul.f32 1.442695, %v926_v45 }
 0x3a8   :  { %v8268_v50 = vpop.eup %6308  ;;  %6322 = vpow2.f32 %v954_v27  ;;  %v9901_v27 = vld [vmem:[#allocation33_spill] sm:$0xff]  ;;  %v909_v18 = vpop.xlane.xlu0 %908 }
 0x3a9   :  { %v1637_v15 = vmul.f32 1.442695, %v1610_v31  ;;  %1665 = vadd.xlane.f32.xlu1 %v8268_v50  ;;  %982 = vadd.xlane.f32.xlu0 %v8265_v9  ;;  %v8273_v62 = vpop.eup %6310  ;;  %v1270_v10 = vsub.f32 %v9901_v27, %v1252_v35 }
 0x3aa   :  { %v1930_v20 = vpop.xlane.xlu1 %1929 }
 0x3ab   :  { %6324 = vpow2.f32 %v1637_v15  ;;  %v1951_v49 = vsub.f32 %v7995_v36, %v1930_v20  ;;  %v1299_v57 = vmul.f32 1.442695, %v1270_v10 }
 0x3ac   :  { %v8276_v22 = vpop.eup %6312  ;;  %6326 = vpow2.f32 %v1293_v42  ;;  %v9902_v42 = vld [vmem:[#allocation34_spill] sm:$0xff] }
 0x3ad   :  { %v1977_v59 = vmul.f32 1.442695, %v1951_v49  ;;  %2005 = vadd.xlane.f32.xlu1 %v8276_v22  ;;  %1321 = vadd.xlane.f32.xlu0 %v8273_v62  ;;  %v8281_v1 = vpop.eup %6314  ;;  %v929_v45 = vsub.f32 %v9902_v42, %v911_v19 }
 0x3ae   :  { %v1588_v3 = vpop.xlane.xlu1 %1587 }
 0x3af   :  { %6328 = vpow2.f32 %v1977_v59  ;;  %v1609_v31 = vsub.f32 %v8009_v28, %v1588_v3  ;;  %v1256_v28 = vpop.xlane.xlu0 %1255  ;;  %v958_v3 = vmul.f32 1.442695, %v929_v45 }
 0x3b0   :  { %v8284_v15 = vpop.eup %6316  ;;  %6330 = vpow2.f32 %v952_v5  ;;  %v9904_v5 = vld [vmem:[#allocation36_spill] sm:$0xff] }
 0x3b1   :  { %v1635_v36 = vmul.f32 1.442695, %v1609_v31  ;;  %1663 = vadd.xlane.f32.xlu1 %v8284_v15  ;;  %980 = vadd.xlane.f32.xlu0 %v8281_v1  ;;  %v8289_v35 = vpop.eup %6318  ;;  %v1269_v10 = vsub.f32 %v9904_v5, %v1250_v16 }
 0x3b2   :  { %v1936_v20 = vpop.xlane.xlu1 %1935  ;;  %9903 = vst [vmem:[#allocation15_spill] sm:$0xff] %v8289_v35 }
 0x3b3   :  { %6332 = vpow2.f32 %v1635_v36  ;;  %v1954_v49 = vsub.f32 %v8018_v6, %v1936_v20  ;;  %v1297_v20 = vmul.f32 1.442695, %v1269_v10  ;;  %v915_v16 = vpop.xlane.xlu0 %914 }
 0x3b4   :  { %v8292_v59 = vpop.eup %6320  ;;  %6334 = vpow2.f32 %v1299_v57 }
 0x3b5   :  { %v1983_v27 = vmul.f32 1.442695, %v1954_v49  ;;  %2011 = vadd.xlane.f32.xlu1 %v8292_v59  ;;  %1327 = vadd.xlane.f32.xlu0 %v8289_v35  ;;  %v8297_v19 = vpop.eup %6322  ;;  %v9906_v49 = vld [vmem:[#allocation37_spill] sm:$0xff] }
 0x3b6   :  { %v1594_v31 = vpop.xlane.xlu1 %1593  ;;  %9905 = vst [vmem:[#allocation16_spill] sm:$0xff] %v8297_v19  ;;  %v928_v57 = vsub.f32 %v9906_v49, %v909_v18 }
 0x3b7   :  { %6336 = vpow2.f32 %v1983_v27  ;;  %v1612_v36 = vsub.f32 %v8025_v56, %v1594_v31  ;;  %v1254_v49 = vpop.xlane.xlu0 %1253 }
 0x3b8   :  { %v8300_v42 = vpop.eup %6324  ;;  %6338 = vpow2.f32 %v958_v3  ;;  %v956_v31 = vmul.f32 1.442695, %v928_v57  ;;  %v9908_v3 = vld [vmem:[#allocation39_spill] sm:$0xff] }
 0x3b9   :  { %v1641_v6 = vmul.f32 1.442695, %v1612_v36  ;;  %1669 = vadd.xlane.f32.xlu1 %v8300_v42  ;;  %986 = vadd.xlane.f32.xlu0 %v8297_v19  ;;  %v8305_v35 = vpop.eup %6326  ;;  %v1272_v10 = vsub.f32 %v9908_v3, %v1256_v28  ;;  %v9910_v28 = vld [vmem:[#allocation42_spill] sm:$0xff] }
 0x3ba   :  { %v1934_v45 = vpop.xlane.xlu1 %1933  ;;  %9907 = vst [vmem:[#allocation18_spill] sm:$0xff] %v8305_v35 }
 0x3bb   :  { %6340 = vpow2.f32 %v1641_v6  ;;  %v1953_v27 = vsub.f32 %v8034_v11, %v1934_v45  ;;  %v1303_v45 = vmul.f32 1.442695, %v1272_v10  ;;  %v913_v3 = vpop.xlane.xlu0 %912 }
 0x3bc   :  { %v8308_v5 = vpop.eup %6328  ;;  %6342 = vpow2.f32 %v1297_v20 }
 0x3bd   :  { %v1981_v56 = vmul.f32 1.442695, %v1953_v27  ;;  %2009 = vadd.xlane.f32.xlu1 %v8308_v5  ;;  %1325 = vadd.xlane.f32.xlu0 %v8305_v35  ;;  %v8313_v18 = vpop.eup %6330  ;;  %v1271_v27 = vsub.f32 %v9910_v28, %v1254_v49 }
 0x3be   :  { %v1592_v36 = vpop.xlane.xlu1 %1591  ;;  %9909 = vst [vmem:[#allocation20_spill] sm:$0xff] %v8313_v18 }
 0x3bf   :  { %6344 = vpow2.f32 %v1981_v56  ;;  %v1611_v6 = vsub.f32 %v8045_v40, %v1592_v36  ;;  %v9911_v36 = vld [vmem:[#allocation43_spill] sm:$0xff] }
 0x3c0   :  { %v8316_v19 = vpop.eup %6332  ;;  %6346 = vpow2.f32 %v956_v31  ;;  %v930_v31 = vsub.f32 %v9911_v36, %v913_v3 }
 0x3c1   :  { %v1639_v11 = vmul.f32 1.442695, %v1611_v6  ;;  %1667 = vadd.xlane.f32.xlu1 %v8316_v19  ;;  %984 = vadd.xlane.f32.xlu0 %v8313_v18  ;;  %v8320_v57 = vpop.eup %6334  ;;  %v1301_v18 = vmul.f32 1.442695, %v1271_v27 }
 0x3c2   :  { %v1940_v20 = vpop.xlane.xlu1 %1939 }
 0x3c3   :  { %6348 = vpow2.f32 %v1639_v11  ;;  %v1956_v56 = vsub.f32 %v8051_v37, %v1940_v20  ;;  %v9913_v37 = vld [vmem:[#allocation40_spill] sm:$0xff]  ;;  %v960_v20 = vmul.f32 1.442695, %v930_v31 }
 0x3c4   :  { %v8324_v35 = vpop.eup %6336  ;;  %6350 = vpow2.f32 %v1303_v45  ;;  %v931_v11 = vsub.f32 %v9913_v37, %v915_v16 }
 0x3c5   :  { %v1987_v40 = vmul.f32 1.442695, %v1956_v56  ;;  %2015 = vadd.xlane.f32.xlu1 %v8324_v35  ;;  %1331 = vadd.xlane.f32.xlu0 %v8320_v57  ;;  %v8329_v6 = vpop.eup %6338 }
 0x3c6   :  { %v1598_v10 = vpop.xlane.xlu1 %1597  ;;  %9912 = vst [vmem:[#allocation21_spill] sm:$0xff] %v8329_v6  ;;  %v962_v27 = vmul.f32 1.442695, %v931_v11 }
 0x3c7   :  { %6352 = vpow2.f32 %v1987_v40  ;;  %v1614_v16 = vsub.f32 %v8059_v60, %v1598_v10 }
 0x3c8   :  { %v8331_v49 = vpop.eup %6340  ;;  %6354 = vpow2.f32 %v1301_v18 }
 0x3c9   :  { %1673 = vadd.xlane.f32.xlu1 %v8331_v49  ;;  %990 = vadd.xlane.f32.xlu0 %v8329_v6  ;;  %v8336_v56 = vpop.eup %6342  ;;  %6356 = vpow2.f32 %v960_v20  ;;  %v1645_v11 = vmul.f32 1.442695, %v1614_v16 }
 0x3ca   :  { %v1938_v28 = vpop.xlane.xlu1 %1937 }
 0x3cb   :  { %v1955_v45 = vsub.f32 %v8066_v14, %v1938_v28 }
 0x3cc   :  { %v8339_v3 = vpop.eup %6344 }
 0x3cd   :  { %v1985_v36 = vmul.f32 1.442695, %v1955_v45  ;;  %2013 = vadd.xlane.f32.xlu1 %v8339_v3  ;;  %1329 = vadd.xlane.f32.xlu0 %v8336_v56  ;;  %v8343_v6 = vpop.eup %6346 }
 0x3ce   :  { %v1596_v40 = vpop.xlane.xlu1 %1595 }
 0x3cf   :  { %6358 = vpow2.f32 %v1985_v36  ;;  %v1613_v31 = vsub.f32 %v8071_v12, %v1596_v40  ;;  %v9919_v40 = vld [vmem:[#allocation44_spill] sm:$0xff] }
 0x3d0   :  { %v8347_v18 = vpop.eup %6348  ;;  %6360 = vpow2.f32 %v962_v27 }
 0x3d1   :  { %v1643_v14 = vmul.f32 1.442695, %v1613_v31  ;;  %1671 = vadd.xlane.f32.xlu1 %v8347_v18  ;;  %988 = vadd.xlane.f32.xlu0 %v8343_v6  ;;  %v8351_v28 = vpop.eup %6350 }
 0x3d2   :  { %v1990_v37 = vpop.xlane.xlu1 %1989 }
 0x3d3   :  { %6362 = vpow2.f32 %v1643_v14 }
 0x3d4   :  { %v8353_v20 = vpop.eup %6352  ;;  %6364 = vrcp.f32 %v1990_v37 }
 0x3d5   :  { %2019 = vadd.xlane.f32.xlu1 %v8353_v20  ;;  %1335 = vadd.xlane.f32.xlu0 %v8351_v28  ;;  %6366 = vpow2.f32 %v1645_v11  ;;  %v8357_v60 = vpop.eup %6354 }
 0x3d6   :  { %9914 = vst [vmem:[#allocation23_spill] sm:$0xff] %v8357_v60  ;;  %v8360_v12 = vpop.eup %6356 }
 0x3d7   :  { %9915 = vst [vmem:[#allocation24_spill] sm:$0xff] %v8360_v12 }
 0x3d9   :  { %1333 = vadd.xlane.f32.xlu0 %v8357_v60 }
 0x3dc   :  { %v8362_v10 = vpop.eup %6358 }
 0x3dd   :  { %9916 = vst [vmem:[#allocation26_spill] sm:$0xff] %v8362_v10  ;;  %2017 = vadd.xlane.f32.xlu1 %v8362_v10  ;;  %992 = vadd.xlane.f32.xlu0 %v8360_v12  ;;  %v8366_v45 = vpop.eup %6360 }
 0x3de   :  { %9917 = vst [vmem:[#allocation27_spill] sm:$0xff] %v8366_v45 }
 0x3e0   :  { %v8368_v36 = vpop.eup %6362 }
 0x3e1   :  { %9918 = vst [vmem:[#allocation29_spill] sm:$0xff] %v8368_v36  ;;  %v6365_v27 = vpop.eup %6364  ;;  %1675 = vadd.xlane.f32.xlu1 %v8368_v36  ;;  %994 = vadd.xlane.f32.xlu0 %v8366_v45 }
 0x3e2   :  { %v2037_v16 = vmul.f32 %v6365_v27, %v9919_v40  ;;  %v8373_v31 = vpop.eup %6366 }
 0x3e3   :  { %9920 = vst [vmem:[#allocation30_spill] sm:$0xff] %v8373_v31 }
 0x3e4   :  { %2054 = vst [vmem:[#allocation4 + $0x180] sm:$0xff] %v2037_v16  ;;  %2440 = vmatprep.mubr.f32.mxu0 %v2037_v16 }
 0x3e5   :  { %1677 = vadd.xlane.f32.xlu1 %v8373_v31 }
 0x3ee   :  { %v1306_v14 = vpop.xlane.xlu0 %1305 }
 0x3ef   :  { %6368 = vrcp.f32 %v1306_v14 }
 0x3f2   :  { %v1648_v37 = vpop.xlane.xlu1 %1647  ;;  %v965_v11 = vpop.xlane.xlu0 %964 }
 0x3f3   :  { %6370 = vrcp.f32 %v1648_v37 }
 0x3f4   :  { %6372 = vrcp.f32 %v965_v11 }
 0x3f6   :  { %v1992_v12 = vpop.xlane.xlu1 %1991  ;;  %v1308_v10 = vpop.xlane.xlu0 %1307 }
 0x3f7   :  { %6374 = vrcp.f32 %v1992_v12 }
 0x3f8   :  { %6376 = vrcp.f32 %v1308_v10 }
 0x3fa   :  { %v1650_v36 = vpop.xlane.xlu1 %1649  ;;  %v967_v45 = vpop.xlane.xlu0 %966 }
 0x3fb   :  { %6378 = vrcp.f32 %v1650_v36 }
 0x3fc   :  { %v6369_v27 = vpop.eup %6368  ;;  %6380 = vrcp.f32 %v967_v45 }
 0x3fd   :  { %v1353_v40 = vmul.f32 %v6369_v27, %v8104_v32 }
 0x3fe   :  { %v1996_v16 = vpop.xlane.xlu1 %1995  ;;  %v1312_v60 = vpop.xlane.xlu0 %1311 }
 0x3ff   :  { %6382 = vrcp.f32 %v1996_v16  ;;  %1370 = vst [vmem:[#allocation4 + $0x80] sm:$0xff] %v1353_v40  ;;  %2295 = vmatprep.mubr.f32.mxu1 %v1353_v40 }
 0x400   :  { %v6371_v14 = vpop.eup %6370  ;;  %6384 = vrcp.f32 %v1312_v60 }
 0x401   :  { %v6373_v37 = vpop.eup %6372  ;;  %v1695_v11 = vmul.f32 %v6371_v14, %v8112_v17 }
 0x402   :  { %v1654_v31 = vpop.xlane.xlu1 %1653  ;;  %v971_v12 = vpop.xlane.xlu0 %970  ;;  %v1012_v10 = vmul.f32 %v6373_v37, %v8109_v52 }
 0x403   :  { %6386 = vrcp.f32 %v1654_v31  ;;  %1712 = vst [vmem:[#allocation4 + $0x100] sm:$0xff] %v1695_v11  ;;  %2441 = vmatmul.mubr.f32.vlgmr.msra.gmra.mxu0 %v1695_v11 }
 0x404   :  { %v6375_v45 = vpop.eup %6374  ;;  %6388 = vrcp.f32 %v971_v12  ;;  %1028 = vst [vmem:[#allocation4] sm:$0xff] %v1012_v10  ;;  %2296 = vmatmul.mubr.f32.vlgmr.msra.gmra.mxu1 %v1012_v10 }
 0x405   :  { %v6377_v32 = vpop.eup %6376  ;;  %v2038_v36 = vmul.f32 %v6375_v45, %v8123_v4 }
 0x406   :  { %v1994_v27 = vpop.xlane.xlu1 %1993  ;;  %v1310_v40 = vpop.xlane.xlu0 %1309  ;;  %v1354_v60 = vmul.f32 %v6377_v32, %v8120_v44 }
 0x407   :  { %6390 = vrcp.f32 %v1994_v27  ;;  %2055 = vst [vmem:[#allocation4 + $0x188] sm:$0xff] %v2038_v36  ;;  %2445 = vmatprep.mubr.f32.mxu0 %v2038_v36 }
 0x408   :  { %v6379_v17 = vpop.eup %6378  ;;  %6392 = vrcp.f32 %v1310_v40  ;;  %1371 = vst [vmem:[#allocation4 + $0x88] sm:$0xff] %v1354_v60  ;;  %2300 = vmatprep.mubr.f32.mxu1 %v1354_v60 }
 0x409   :  { %v6381_v52 = vpop.eup %6380  ;;  %v1696_v31 = vmul.f32 %v6379_v17, %v8134_v55 }
 0x40a   :  { %v1652_v16 = vpop.xlane.xlu1 %1651  ;;  %v969_v14 = vpop.xlane.xlu0 %968  ;;  %v1013_v37 = vmul.f32 %v6381_v52, %v8129_v25 }
 0x40b   :  { %6394 = vrcp.f32 %v1652_v16  ;;  %1713 = vst [vmem:[#allocation4 + $0x108] sm:$0xff] %v1696_v31  ;;  %2446 = vmatmul.mubr.f32.gmra.mxu0 %v1696_v31 }
 0x40c   :  { %v6383_v4 = vpop.eup %6382  ;;  %6396 = vrcp.f32 %v969_v14  ;;  %1029 = vst [vmem:[#allocation4 + $0x8] sm:$0xff] %v1013_v37  ;;  %2301 = vmatmul.mubr.f32.gmra.mxu1 %v1013_v37 }
 0x40d   :  { %v6385_v44 = vpop.eup %6384  ;;  %v2040_v11 = vmul.f32 %v6383_v4, %v8143_v61 }
 0x40e   :  { %v2000_v12 = vpop.xlane.xlu1 %1999  ;;  %v1316_v10 = vpop.xlane.xlu0 %1315  ;;  %v1356_v45 = vmul.f32 %v6385_v44, %v8140_v46 }
 0x40f   :  { %6398 = vrcp.f32 %v2000_v12  ;;  %2057 = vst [vmem:[#allocation4 + $0x198] sm:$0xff] %v2040_v11 }
 0x410   :  { %v6387_v55 = vpop.eup %6386  ;;  %6400 = vrcp.f32 %v1316_v10  ;;  %1373 = vst [vmem:[#allocation4 + $0x98] sm:$0xff] %v1356_v45 }
 0x411   :  { %v6389_v25 = vpop.eup %6388  ;;  %v1698_v32 = vmul.f32 %v6387_v55, %v8154_v58 }
 0x412   :  { %v1658_v36 = vpop.xlane.xlu1 %1657  ;;  %v975_v27 = vpop.xlane.xlu0 %974  ;;  %v1015_v40 = vmul.f32 %v6389_v25, %v8151_v24 }
 0x413   :  { %6402 = vrcp.f32 %v1658_v36  ;;  %1715 = vst [vmem:[#allocation4 + $0x118] sm:$0xff] %v1698_v32 }
 0x414   :  { %v6391_v60 = vpop.eup %6390  ;;  %6404 = vrcp.f32 %v975_v27  ;;  %1031 = vst [vmem:[#allocation4 + $0x18] sm:$0xff] %v1015_v40 }
 0x415   :  { %v6393_v61 = vpop.eup %6392  ;;  %v2039_v46 = vmul.f32 %v6391_v60, %v8165_v48 }
 0x416   :  { %v1998_v17 = vpop.xlane.xlu1 %1997  ;;  %v1314_v52 = vpop.xlane.xlu0 %1313  ;;  %v1355_v31 = vmul.f32 %v6393_v61, %v8160_v63 }
 0x417   :  { %6406 = vrcp.f32 %v1998_v17  ;;  %2056 = vst [vmem:[#allocation4 + $0x190] sm:$0xff] %v2039_v46  ;;  %2450 = vmatprep.mubr.f32.mxu0 %v2039_v46 }
 0x418   :  { %v6395_v58 = vpop.eup %6394  ;;  %6408 = vrcp.f32 %v1314_v52  ;;  %1372 = vst [vmem:[#allocation4 + $0x90] sm:$0xff] %v1355_v31  ;;  %2305 = vmatprep.mubr.f32.mxu1 %v1355_v31 }
 0x419   :  { %v6397_v24 = vpop.eup %6396  ;;  %v1697_v16 = vmul.f32 %v6395_v58, %v8174_v53 }
 0x41a   :  { %v1656_v14 = vpop.xlane.xlu1 %1655  ;;  %v973_v37 = vpop.xlane.xlu0 %972  ;;  %v1014_v4 = vmul.f32 %v6397_v24, %v8171_v51 }
 0x41b   :  { %6410 = vrcp.f32 %v1656_v14  ;;  %1714 = vst [vmem:[#allocation4 + $0x110] sm:$0xff] %v1697_v16  ;;  %2451 = vmatmul.mubr.f32.gmra.mxu0 %v1697_v16 }
 0x41c   :  { %v6399_v48 = vpop.eup %6398  ;;  %6412 = vrcp.f32 %v973_v37  ;;  %1030 = vst [vmem:[#allocation4 + $0x10] sm:$0xff] %v1014_v4  ;;  %2306 = vmatmul.mubr.f32.gmra.mxu1 %v1014_v4  ;;  %2455 = vmatprep.mubr.f32.mxu0 %v2040_v11 }
 0x41d   :  { %v6401_v63 = vpop.eup %6400  ;;  %2310 = vmatprep.mubr.f32.mxu1 %v1356_v45  ;;  %v2042_v44 = vmul.f32 %v6399_v48, %v8185_v38 }
 0x41e   :  { %v2004_v12 = vpop.xlane.xlu1 %2003  ;;  %v1320_v10 = vpop.xlane.xlu0 %1319  ;;  %v1358_v53 = vmul.f32 %v6401_v63, %v8182_v2 }
 0x41f   :  { %6414 = vrcp.f32 %v2004_v12  ;;  %2456 = vmatmul.mubr.f32.gmra.mxu0 %v1698_v32  ;;  %2059 = vst [vmem:[#allocation4 + $0x1a8] sm:$0xff] %v2042_v44 }
 0x420   :  { %v6403_v51 = vpop.eup %6402  ;;  %6416 = vrcp.f32 %v1320_v10  ;;  %2311 = vmatmul.mubr.f32.gmra.mxu1 %v1015_v40  ;;  %1375 = vst [vmem:[#allocation4 + $0xa8] sm:$0xff] %v1358_v53 }
 0x421   :  { %v6405_v55 = vpop.eup %6404  ;;  %v1700_v25 = vmul.f32 %v6403_v51, %v8196_v13 }
 0x422   :  { %v1662_v36 = vpop.xlane.xlu1 %1661  ;;  %v979_v11 = vpop.xlane.xlu0 %978  ;;  %v1017_v45 = vmul.f32 %v6405_v55, %v8191_v29 }
 0x423   :  { %6418 = vrcp.f32 %v1662_v36  ;;  %1717 = vst [vmem:[#allocation4 + $0x128] sm:$0xff] %v1700_v25 }
 0x424   :  { %v6407_v38 = vpop.eup %6406  ;;  %6420 = vrcp.f32 %v979_v11  ;;  %1033 = vst [vmem:[#allocation4 + $0x28] sm:$0xff] %v1017_v45 }
 0x425   :  { %v6409_v2 = vpop.eup %6408  ;;  %v2041_v32 = vmul.f32 %v6407_v38, %v8205_v54 }
 0x426   :  { %v2002_v27 = vpop.xlane.xlu1 %2001  ;;  %v1318_v60 = vpop.xlane.xlu0 %1317  ;;  %v1357_v40 = vmul.f32 %v6409_v2, %v8202_v0 }
 0x427   :  { %6422 = vrcp.f32 %v2002_v27  ;;  %2058 = vst [vmem:[#allocation4 + $0x1a0] sm:$0xff] %v2041_v32  ;;  %2460 = vmatprep.mubr.f32.mxu0 %v2041_v32 }
 0x428   :  { %v6411_v13 = vpop.eup %6410  ;;  %6424 = vrcp.f32 %v1318_v60  ;;  %1374 = vst [vmem:[#allocation4 + $0xa0] sm:$0xff] %v1357_v40  ;;  %2315 = vmatprep.mubr.f32.mxu1 %v1357_v40 }
 0x429   :  { %v6413_v29 = vpop.eup %6412  ;;  %v1699_v61 = vmul.f32 %v6411_v13, %v8216_v39 }
 0x42a   :  { %v1660_v46 = vpop.xlane.xlu1 %1659  ;;  %v977_v17 = vpop.xlane.xlu0 %976  ;;  %v1016_v52 = vmul.f32 %v6413_v29, %v8213_v47 }
 0x42b   :  { %6426 = vrcp.f32 %v1660_v46  ;;  %1716 = vst [vmem:[#allocation4 + $0x120] sm:$0xff] %v1699_v61  ;;  %2461 = vmatmul.mubr.f32.gmra.mxu0 %v1699_v61 }
 0x42c   :  { %v6415_v54 = vpop.eup %6414  ;;  %6428 = vrcp.f32 %v977_v17  ;;  %1032 = vst [vmem:[#allocation4 + $0x20] sm:$0xff] %v1016_v52  ;;  %2316 = vmatmul.mubr.f32.gmra.mxu1 %v1016_v52  ;;  %2465 = vmatprep.mubr.f32.mxu0 %v2042_v44 }
 0x42d   :  { %v6417_v0 = vpop.eup %6416  ;;  %2320 = vmatprep.mubr.f32.mxu1 %v1358_v53  ;;  %v2044_v31 = vmul.f32 %v6415_v54, %v8225_v41 }
 0x42e   :  { %v2008_v58 = vpop.xlane.xlu1 %2007  ;;  %v1324_v24 = vpop.xlane.xlu0 %1323  ;;  %v1360_v39 = vmul.f32 %v6417_v0, %v8222_v21 }
 0x42f   :  { %6430 = vrcp.f32 %v2008_v58  ;;  %2466 = vmatmul.mubr.f32.gmra.mxu0 %v1700_v25  ;;  %2061 = vst [vmem:[#allocation4 + $0x1b8] sm:$0xff] %v2044_v31 }
 0x430   :  { %v6419_v47 = vpop.eup %6418  ;;  %6432 = vrcp.f32 %v1324_v24  ;;  %2321 = vmatmul.mubr.f32.gmra.mxu1 %v1017_v45  ;;  %1377 = vst [vmem:[#allocation4 + $0xb8] sm:$0xff] %v1360_v39  ;;  %v9921_v24 = vld [vmem:[#allocation15_spill] sm:$0xff] }
 0x431   :  { %v6421_v16 = vpop.eup %6420  ;;  %v1702_v14 = vmul.f32 %v6419_v47, %v8234_v26 }
 0x432   :  { %v1666_v37 = vpop.xlane.xlu1 %1665  ;;  %v983_v4 = vpop.xlane.xlu0 %982  ;;  %v1019_v48 = vmul.f32 %v6421_v16, %v8231_v7 }
 0x433   :  { %6434 = vrcp.f32 %v1666_v37  ;;  %1719 = vst [vmem:[#allocation4 + $0x138] sm:$0xff] %v1702_v14  ;;  %v9922_v37 = vld [vmem:[#allocation16_spill] sm:$0xff] }
 0x434   :  { %v6423_v41 = vpop.eup %6422  ;;  %6436 = vrcp.f32 %v983_v4  ;;  %1035 = vst [vmem:[#allocation4 + $0x38] sm:$0xff] %v1019_v48 }
 0x435   :  { %v6425_v21 = vpop.eup %6424  ;;  %v2043_v63 = vmul.f32 %v6423_v41, %v8243_v23 }
 0x436   :  { %v2006_v44 = vpop.xlane.xlu1 %2005  ;;  %v1322_v12 = vpop.xlane.xlu0 %1321  ;;  %v1359_v10 = vmul.f32 %v6425_v21, %v8240_v43 }
 0x437   :  { %6438 = vrcp.f32 %v2006_v44  ;;  %2060 = vst [vmem:[#allocation4 + $0x1b0] sm:$0xff] %v2043_v63  ;;  %2470 = vmatprep.mubr.f32.mxu0 %v2043_v63  ;;  %v9923_v44 = vld [vmem:[#allocation18_spill] sm:$0xff] }
 0x438   :  { %v6427_v26 = vpop.eup %6426  ;;  %6440 = vrcp.f32 %v1322_v12  ;;  %1376 = vst [vmem:[#allocation4 + $0xb0] sm:$0xff] %v1359_v10  ;;  %2325 = vmatprep.mubr.f32.mxu1 %v1359_v10 }
 0x439   :  { %v6429_v7 = vpop.eup %6428  ;;  %v1701_v53 = vmul.f32 %v6427_v26, %v8252_v33 }
 0x43a   :  { %v1664_v51 = vpop.xlane.xlu1 %1663  ;;  %v981_v55 = vpop.xlane.xlu0 %980  ;;  %v1018_v25 = vmul.f32 %v6429_v7, %v8249_v30 }
 0x43b   :  { %6442 = vrcp.f32 %v1664_v51  ;;  %1718 = vst [vmem:[#allocation4 + $0x130] sm:$0xff] %v1701_v53  ;;  %2471 = vmatmul.mubr.f32.gmra.mxu0 %v1701_v53  ;;  %v9924_v51 = vld [vmem:[#allocation20_spill] sm:$0xff] }
 0x43c   :  { %v6431_v23 = vpop.eup %6430  ;;  %6444 = vrcp.f32 %v981_v55  ;;  %1034 = vst [vmem:[#allocation4 + $0x30] sm:$0xff] %v1018_v25  ;;  %2326 = vmatmul.mubr.f32.gmra.mxu1 %v1018_v25  ;;  %2475 = vmatprep.mubr.f32.mxu0 %v2044_v31 }
 0x43d   :  { %v6433_v43 = vpop.eup %6432  ;;  %2330 = vmatprep.mubr.f32.mxu1 %v1360_v39  ;;  %v2046_v36 = vmul.f32 %v6431_v23, %v8260_v8 }
 0x43e   :  { %v2012_v11 = vpop.xlane.xlu1 %2011  ;;  %v1328_v45 = vpop.xlane.xlu0 %1327  ;;  %v1362_v33 = vmul.f32 %v6433_v43, %v8257_v34 }
 0x43f   :  { %6446 = vrcp.f32 %v2012_v11  ;;  %2476 = vmatmul.mubr.f32.gmra.mxu0 %v1702_v14  ;;  %2063 = vst [vmem:[#allocation4 + $0x1c8] sm:$0xff] %v2046_v36 }
 0x440   :  { %v6435_v30 = vpop.eup %6434  ;;  %6448 = vrcp.f32 %v1328_v45  ;;  %2331 = vmatmul.mubr.f32.gmra.mxu1 %v1019_v48  ;;  %1379 = vst [vmem:[#allocation4 + $0xc8] sm:$0xff] %v1362_v33 }
 0x441   :  { %v6437_v38 = vpop.eup %6436  ;;  %v1704_v2 = vmul.f32 %v6435_v30, %v8268_v50 }
 0x442   :  { %v1670_v32 = vpop.xlane.xlu1 %1669  ;;  %v987_v27 = vpop.xlane.xlu0 %986  ;;  %v1021_v60 = vmul.f32 %v6437_v38, %v8265_v9  ;;  %v9925_v38 = vld [vmem:[#allocation21_spill] sm:$0xff] }
 0x443   :  { %6450 = vrcp.f32 %v1670_v32  ;;  %1721 = vst [vmem:[#allocation4 + $0x148] sm:$0xff] %v1704_v2 }
 0x444   :  { %v6439_v8 = vpop.eup %6438  ;;  %6452 = vrcp.f32 %v987_v27  ;;  %1037 = vst [vmem:[#allocation4 + $0x48] sm:$0xff] %v1021_v60 }
 0x445   :  { %v6441_v34 = vpop.eup %6440  ;;  %v2045_v40 = vmul.f32 %v6439_v8, %v8276_v22 }
 0x446   :  { %v2010_v13 = vpop.xlane.xlu1 %2009  ;;  %v1326_v29 = vpop.xlane.xlu0 %1325  ;;  %v1361_v61 = vmul.f32 %v6441_v34, %v8273_v62 }
 0x447   :  { %6454 = vrcp.f32 %v2010_v13  ;;  %2062 = vst [vmem:[#allocation4 + $0x1c0] sm:$0xff] %v2045_v40  ;;  %2480 = vmatprep.mubr.f32.mxu0 %v2045_v40 }
 0x448   :  { %v6443_v50 = vpop.eup %6442  ;;  %6456 = vrcp.f32 %v1326_v29  ;;  %1378 = vst [vmem:[#allocation4 + $0xc0] sm:$0xff] %v1361_v61  ;;  %2335 = vmatprep.mubr.f32.mxu1 %v1361_v61 }
 0x449   :  { %v6445_v9 = vpop.eup %6444  ;;  %v1703_v46 = vmul.f32 %v6443_v50, %v8284_v15 }
 0x44a   :  { %v1668_v17 = vpop.xlane.xlu1 %1667  ;;  %v985_v52 = vpop.xlane.xlu0 %984  ;;  %v1020_v54 = vmul.f32 %v6445_v9, %v8281_v1 }
 0x44b   :  { %6458 = vrcp.f32 %v1668_v17  ;;  %1720 = vst [vmem:[#allocation4 + $0x140] sm:$0xff] %v1703_v46  ;;  %2481 = vmatmul.mubr.f32.gmra.mxu0 %v1703_v46 }
 0x44c   :  { %v6447_v22 = vpop.eup %6446  ;;  %6460 = vrcp.f32 %v985_v52  ;;  %1036 = vst [vmem:[#allocation4 + $0x40] sm:$0xff] %v1020_v54  ;;  %2336 = vmatmul.mubr.f32.gmra.mxu1 %v1020_v54  ;;  %2485 = vmatprep.mubr.f32.mxu0 %v2046_v36  ;;  %v9926_v52 = vld [vmem:[#allocation23_spill] sm:$0xff] }
 0x44d   :  { %v6449_v62 = vpop.eup %6448  ;;  %2340 = vmatprep.mubr.f32.mxu1 %v1362_v33  ;;  %v2048_v0 = vmul.f32 %v6447_v22, %v8292_v59 }
 0x44e   :  { %v2016_v31 = vpop.xlane.xlu1 %2015  ;;  %v1332_v58 = vpop.xlane.xlu0 %1331  ;;  %v1364_v15 = vmul.f32 %v6449_v62, %v9921_v24 }
 0x44f   :  { %6462 = vrcp.f32 %v2016_v31  ;;  %2486 = vmatmul.mubr.f32.gmra.mxu0 %v1704_v2  ;;  %2065 = vst [vmem:[#allocation4 + $0x1d8] sm:$0xff] %v2048_v0  ;;  %v9928_v31 = vld [vmem:[#allocation24_spill] sm:$0xff] }
 0x450   :  { %v6451_v1 = vpop.eup %6450  ;;  %6464 = vrcp.f32 %v1332_v58  ;;  %2341 = vmatmul.mubr.f32.gmra.mxu1 %v1021_v60  ;;  %1381 = vst [vmem:[#allocation4 + $0xd8] sm:$0xff] %v1364_v15 }
 0x451   :  { %v6453_v39 = vpop.eup %6452  ;;  %v1706_v47 = vmul.f32 %v6451_v1, %v8300_v42 }
 0x452   :  { %v1674_v16 = vpop.xlane.xlu1 %1673  ;;  %v991_v14 = vpop.xlane.xlu0 %990  ;;  %v1023_v4 = vmul.f32 %v6453_v39, %v9922_v37  ;;  %v9930_v39 = vld [vmem:[#allocation27_spill] sm:$0xff] }
 0x453   :  { %6466 = vrcp.f32 %v1674_v16  ;;  %1723 = vst [vmem:[#allocation4 + $0x158] sm:$0xff] %v1706_v47  ;;  %v2714_v16 = vld [vmem:[%s9727_s5 + $0x8] sm:$0xff]  ;;  %v2713_v37 = vld [vmem:[%s9727_s5] sm:$0xff] }
 0x454   :  { %v6455_v59 = vpop.eup %6454  ;;  %6468 = vrcp.f32 %v991_v14  ;;  %1039 = vst [vmem:[#allocation4 + $0x58] sm:$0xff] %v1023_v4 }
 0x455   :  { %v6457_v48 = vpop.eup %6456  ;;  %v2047_v41 = vmul.f32 %v6455_v59, %v8308_v5 }
 0x456   :  { %v2014_v21 = vpop.xlane.xlu1 %2013  ;;  %v1330_v63 = vpop.xlane.xlu0 %1329  ;;  %v1363_v12 = vmul.f32 %v6457_v48, %v9923_v44 }
 0x457   :  { %6470 = vrcp.f32 %v2014_v21  ;;  %2064 = vst [vmem:[#allocation4 + $0x1d0] sm:$0xff] %v2047_v41  ;;  %2490 = vmatprep.mubr.f32.mxu0 %v2047_v41 }
 0x458   :  { %v6459_v42 = vpop.eup %6458  ;;  %6472 = vrcp.f32 %v1330_v63  ;;  %1380 = vst [vmem:[#allocation4 + $0xd0] sm:$0xff] %v1363_v12  ;;  %2345 = vmatprep.mubr.f32.mxu1 %v1363_v12 }
 0x459   :  { %v6461_v10 = vpop.eup %6460  ;;  %v1705_v26 = vmul.f32 %v6459_v42, %v8316_v19 }
 0x45a   :  { %v1672_v7 = vpop.xlane.xlu1 %1671  ;;  %v989_v53 = vpop.xlane.xlu0 %988  ;;  %v1022_v55 = vmul.f32 %v6461_v10, %v9924_v51 }
 0x45b   :  { %6474 = vrcp.f32 %v1672_v7  ;;  %1722 = vst [vmem:[#allocation4 + $0x150] sm:$0xff] %v1705_v26  ;;  %2491 = vmatmul.mubr.f32.gmra.mxu0 %v1705_v26 }
 0x45c   :  { %v6463_v5 = vpop.eup %6462  ;;  %6476 = vrcp.f32 %v989_v53  ;;  %1038 = vst [vmem:[#allocation4 + $0x50] sm:$0xff] %v1022_v55  ;;  %2346 = vmatmul.mubr.f32.gmra.mxu1 %v1022_v55  ;;  %2495 = vmatprep.mubr.f32.mxu0 %v2048_v0 }
 0x45d   :  { %v6465_v25 = vpop.eup %6464  ;;  %2350 = vmatprep.mubr.f32.mxu1 %v1364_v15  ;;  %v2050_v23 = vmul.f32 %v6463_v5, %v8324_v35  ;;  %v9929_v15 = vld [vmem:[#allocation29_spill] sm:$0xff] }
 0x45e   :  { %v2020_v43 = vpop.xlane.xlu1 %2019  ;;  %v1336_v36 = vpop.xlane.xlu0 %1335  ;;  %v1366_v19 = vmul.f32 %v6465_v25, %v8320_v57 }
 0x45f   :  { %6478 = vrcp.f32 %v2020_v43  ;;  %2496 = vmatmul.mubr.f32.gmra.mxu0 %v1706_v47  ;;  %2067 = vst [vmem:[#allocation4 + $0x1e8] sm:$0xff] %v2050_v23 }
 0x460   :  { %v6467_v11 = vpop.eup %6466  ;;  %6480 = vrcp.f32 %v1336_v36  ;;  %2351 = vmatmul.mubr.f32.gmra.mxu1 %v1023_v4  ;;  %1383 = vst [vmem:[#allocation4 + $0xe8] sm:$0xff] %v1366_v19  ;;  %v9931_v4 = vld [vmem:[#allocation30_spill] sm:$0xff] }
 0x461   :  { %v6469_v45 = vpop.eup %6468  ;;  %v1708_v33 = vmul.f32 %v6467_v11, %v8331_v49 }
 0x462   :  { %v1334_v30 = vpop.xlane.xlu0 %1333  ;;  %v1025_v2 = vmul.f32 %v6469_v45, %v9925_v38 }
 0x463   :  { %6482 = vrcp.f32 %v1334_v30  ;;  %1725 = vst [vmem:[#allocation4 + $0x168] sm:$0xff] %v1708_v33 }
 0x464   :  { %v6471_v35 = vpop.eup %6470  ;;  %1041 = vst [vmem:[#allocation4 + $0x68] sm:$0xff] %v1025_v2 }
 0x465   :  { %v6473_v32 = vpop.eup %6472  ;;  %v2049_v57 = vmul.f32 %v6471_v35, %v8339_v3 }
 0x466   :  { %v2018_v27 = vpop.xlane.xlu1 %2017  ;;  %v993_v60 = vpop.xlane.xlu0 %992  ;;  %v1365_v8 = vmul.f32 %v6473_v32, %v8336_v56  ;;  %v2716_v56 = vld [vmem:[%s9727_s5 + $0x18] sm:$0xff] }
 0x467   :  { %6484 = vrcp.f32 %v2018_v27  ;;  %2066 = vst [vmem:[#allocation4 + $0x1e0] sm:$0xff] %v2049_v57  ;;  %2500 = vmatprep.mubr.f32.mxu0 %v2049_v57  ;;  %6010 = vmatprep.subr.mxu1 %v2716_v56 }
 0x468   :  { %v6475_v34 = vpop.eup %6474  ;;  %6486 = vrcp.f32 %v993_v60  ;;  %1382 = vst [vmem:[#allocation4 + $0xe0] sm:$0xff] %v1365_v8  ;;  %2355 = vmatprep.mubr.f32.mxu1 %v1365_v8  ;;  %6011 = vmatpush3.msra.mxu1 %v2716_v56 }
 0x469   :  { %v6477_v49 = vpop.eup %6476  ;;  %v1707_v40 = vmul.f32 %v6475_v34, %v8347_v18  ;;  %v2715_v18 = vld [vmem:[%s9727_s5 + $0x10] sm:$0xff] }
 0x46a   :  { %v1676_v13 = vpop.xlane.xlu1 %1675  ;;  %v995_v29 = vpop.xlane.xlu0 %994  ;;  %v1024_v61 = vmul.f32 %v6477_v49, %v8343_v6  ;;  %6012 = vmatprep.subr.mxu1 %v2715_v18 }
 0x46b   :  { %6488 = vrcp.f32 %v1676_v13  ;;  %1724 = vst [vmem:[#allocation4 + $0x160] sm:$0xff] %v1707_v40  ;;  %2501 = vmatmul.mubr.f32.gmra.mxu0 %v1707_v40  ;;  %6013 = vmatpush3.msra.mxu1 %v2715_v18 }
 0x46c   :  { %v6479_v3 = vpop.eup %6478  ;;  %6490 = vrcp.f32 %v995_v29  ;;  %1040 = vst [vmem:[#allocation4 + $0x60] sm:$0xff] %v1024_v61  ;;  %2356 = vmatmul.mubr.f32.gmra.mxu1 %v1024_v61  ;;  %2505 = vmatprep.mubr.f32.mxu0 %v2050_v23 }
 0x46d   :  { %v6481_v50 = vpop.eup %6480  ;;  %2360 = vmatprep.mubr.f32.mxu1 %v1366_v19  ;;  %v2052_v6 = vmul.f32 %v6479_v3, %v8353_v20  ;;  %v9927_v20 = vld [vmem:[#allocation26_spill] sm:$0xff]  ;;  %6014 = vmatprep.subr.mxu1 %v2714_v16 }
 0x46e   :  { %v1678_v9 = vpop.xlane.xlu1 %1677  ;;  %v1368_v46 = vmul.f32 %v6481_v50, %v8351_v28  ;;  %6015 = vmatpush3.msra.mxu1 %v2714_v16  ;;  %v2917_v16 = vld [vmem:[%s9729_s7 + $0x18] sm:$0xff] }
 0x46f   :  { %6492 = vrcp.f32 %v1678_v9  ;;  %2506 = vmatmul.mubr.f32.gmra.mxu0 %v1708_v33  ;;  %2069 = vst [vmem:[#allocation4 + $0x1f8] sm:$0xff] %v2052_v6  ;;  %6016 = vmatprep.subr.mxu1 %v2713_v37 }
 0x470   :  { %v6483_v17 = vpop.eup %6482  ;;  %2361 = vmatmul.mubr.f32.gmra.mxu1 %v1025_v2  ;;  %1385 = vst [vmem:[#allocation4 + $0xf8] sm:$0xff] %v1368_v46 }
 0x471   :  { %v1367_v54 = vmul.f32 %v6483_v17, %v9926_v52  ;;  %6017 = vmatpush3.msra.mxu1 %v2713_v37 }
 0x472   :  { %6074 = vmatprep.subr.mxu1 %v2917_v16 }
 0x473   :  { %1384 = vst [vmem:[#allocation4 + $0xf0] sm:$0xff] %v1367_v54  ;;  %2365 = vmatprep.mubr.f32.mxu1 %v1367_v54 }
 0x474   :  { %v6485_v22 = vpop.eup %6484 }
 0x475   :  { %v6487_v62 = vpop.eup %6486  ;;  %v2051_v0 = vmul.f32 %v6485_v22, %v9927_v20 }
 0x476   :  { %v1026_v58 = vmul.f32 %v6487_v62, %v9928_v31 }
 0x477   :  { %2068 = vst [vmem:[#allocation4 + $0x1f0] sm:$0xff] %v2051_v0  ;;  %2510 = vmatprep.mubr.f32.mxu0 %v2051_v0 }
 0x478   :  { %v6489_v28 = vpop.eup %6488  ;;  %1042 = vst [vmem:[#allocation4 + $0x70] sm:$0xff] %v1026_v58  ;;  %2366 = vmatmul.mubr.f32.gmra.mxu1 %v1026_v58 }
 0x479   :  { %v6491_v24 = vpop.eup %6490  ;;  %2370 = vmatprep.mubr.f32.mxu1 %v1368_v46  ;;  %v1709_v1 = vmul.f32 %v6489_v28, %v9929_v15  ;;  %v2912_v15 = vld [vmem:[%s9728_s6 + $0x10] sm:$0xff] }
 0x47a   :  { %v1027_v47 = vmul.f32 %v6491_v24, %v9930_v39  ;;  %v2913_v24 = vld [vmem:[%s9728_s6 + $0x18] sm:$0xff] }
 0x47b   :  { %1726 = vst [vmem:[#allocation4 + $0x170] sm:$0xff] %v1709_v1  ;;  %2511 = vmatmul.mubr.f32.gmra.mxu0 %v1709_v1  ;;  %6042 = vmatprep.subr.mxu0 %v2913_v24 }
 0x47c   :  { %v6493_v14 = vpop.eup %6492  ;;  %1043 = vst [vmem:[#allocation4 + $0x78] sm:$0xff] %v1027_v47  ;;  %2371 = vmatmul.mubr.f32.gmra.mxu1 %v1027_v47  ;;  %2515 = vmatprep.mubr.f32.mxu0 %v2052_v6 }
 0x47d   :  { %v1710_v59 = vmul.f32 %v6493_v14, %v9931_v4  ;;  %6043 = vmatpush3.msra.mxu0 %v2913_v24 }
 0x47e   :  { %6044 = vmatprep.subr.mxu0 %v2912_v15 }
 0x47f   :  { %1727 = vst [vmem:[#allocation4 + $0x178] sm:$0xff] %v1710_v59  ;;  %2516 = vmatmul.mubr.f32.gmra.mxu0 %v1710_v59  ;;  %v2911_v59 = vld [vmem:[%s9728_s6 + $0x8] sm:$0xff] }
 0x480   :  { %6045 = vmatpush3.msra.mxu0 %v2912_v15 }
 0x481   :  { %6046 = vmatprep.subr.mxu0 %v2911_v59 }
 0x482   :  { %6047 = vmatpush3.msra.mxu0 %v2911_v59 }
 0x4c3   :  { %v5646_v48 = vpop.f32.mrf.mxu0 }
 0x4c4   :  { %v5566_v41 = vpop.f32.mrf.mxu1 }
 0x4c5   :  { %v5647_v21 = vpop.f32.mrf.mxu0 }
 0x4c6   :  { %v5567_v63 = vpop.f32.mrf.mxu1  ;;  %v5648_v44 = vadd.f32 %v5647_v21, %v5646_v48 }
 0x4c7   :  { %v5568_v12 = vadd.f32 %v5567_v63, %v5566_v41 }
 0x4c9   :  { %v2443_v42 = vadd.f32 %v5648_v44, %v5568_v12 }
 0x4cb   :  { %v2537_v10 = vmin.f32 %v2443_v42, 0.0  ;;  %v5649_v26 = vpop.f32.mrf.mxu0  ;;  %vm2521_vm12 = vcmp.gt.f32.partialorder %v2443_v42, 0.0 }
 0x4cc   :  { %v5569_v7 = vpop.f32.mrf.mxu1 }
 0x4cd   :  { %v2553_v53 = vmul.f32 1.442695, %v2537_v10  ;;  %v5650_v51 = vpop.f32.mrf.mxu0 }
 0x4ce   :  { %v5570_v55 = vpop.f32.mrf.mxu1  ;;  %v5651_v5 = vadd.f32 %v5650_v51, %v5649_v26 }
 0x4cf   :  { %6494 = vpow2.f32 %v2553_v53  ;;  %v5571_v25 = vadd.f32 %v5570_v55, %v5569_v7 }
 0x4d1   :  { %v2448_v23 = vadd.f32 %v5651_v5, %v5571_v25 }
 0x4d3   :  { %v2538_v43 = vmin.f32 %v2448_v23, 0.0  ;;  %vm2522_vm2 = vcmp.gt.f32.partialorder %v2448_v23, 0.0 }
 0x4d5   :  { %v2555_v36 = vmul.f32 1.442695, %v2538_v43 }
 0x4d7   :  { %6496 = vpow2.f32 %v2555_v36 }
 0x4db   :  { %v5652_v19 = vpop.f32.mrf.mxu0 }
 0x4dc   :  { %v6495_v11 = vpop.eup %6494  ;;  %v5572_v45 = vpop.f32.mrf.mxu1 }
 0x4dd   :  { %v5653_v33 = vpop.f32.mrf.mxu0  ;;  %v5362_v30 = vadd.f32 -1.0, %v6495_v11 }
 0x4de   :  { %v5573_v38 = vpop.f32.mrf.mxu1  ;;  %v5654_v2 = vadd.f32 %v5653_v33, %v5652_v19  ;;  %v2916_v33 = vld [vmem:[%s9729_s7 + $0x10] sm:$0xff] }
 0x4df   :  { %v5574_v35 = vadd.f32 %v5573_v38, %v5572_v45  ;;  %v5655_v32 = vpop.f32.mrf.mxu0  ;;  %v2601_v57 = vsel %vm2521_vm12, %v2443_v42, %v5362_v30 }
 0x4e0   :  { %v5575_v27 = vpop.f32.mrf.mxu1  ;;  %v2633_v60 = vmin.f32 %v2601_v57, 0.0  ;;  %vm2617_vm7 = vcmp.gt.f32.partialorder %v2601_v57, 0.0 }
 0x4e1   :  { %v2453_v8 = vadd.f32 %v5654_v2, %v5574_v35  ;;  %v5656_v34 = vpop.f32.mrf.mxu0 }
 0x4e2   :  { %v5576_v49 = vpop.f32.mrf.mxu1  ;;  %v5657_v40 = vadd.f32 %v5656_v34, %v5655_v32  ;;  %v2649_v13 = vmul.f32 1.442695, %v2633_v60 }
 0x4e3   :  { %v2539_v29 = vmin.f32 %v2453_v8, 0.0  ;;  %v5577_v61 = vadd.f32 %v5576_v49, %v5575_v27  ;;  %vm2523_vm12 = vcmp.gt.f32.partialorder %v2453_v8, 0.0 }
 0x4e4   :  { %v6497_v3 = vpop.eup %6496  ;;  %6498 = vpow2.f32 %v2649_v13 }
 0x4e5   :  { %v5363_v56 = vadd.f32 -1.0, %v6497_v3  ;;  %v2557_v18 = vmul.f32 1.442695, %v2539_v29  ;;  %v2458_v50 = vadd.f32 %v5657_v40, %v5577_v61 }
 0x4e7   :  { %v2602_v6 = vsel %vm2522_vm2, %v2448_v23, %v5363_v56  ;;  %6500 = vpow2.f32 %v2557_v18  ;;  %v2540_v9 = vmin.f32 %v2458_v50, 0.0  ;;  %vm2524_vm2 = vcmp.gt.f32.partialorder %v2458_v50, 0.0 }
 0x4e8   :  { %v2634_v46 = vmin.f32 %v2602_v6, 0.0 }
 0x4e9   :  { %v2559_v17 = vmul.f32 1.442695, %v2540_v9 }
 0x4ea   :  { %v2651_v52 = vmul.f32 1.442695, %v2634_v46 }
 0x4eb   :  { %6502 = vpow2.f32 %v2559_v17  ;;  %v5658_v54 = vpop.f32.mrf.mxu0 }
 0x4ec   :  { %6504 = vpow2.f32 %v2651_v52  ;;  %v5578_v22 = vpop.f32.mrf.mxu1 }
 0x4ed   :  { %v5659_v62 = vpop.f32.mrf.mxu0 }
 0x4ee   :  { %v5579_v20 = vpop.f32.mrf.mxu1  ;;  %v5660_v0 = vadd.f32 %v5659_v62, %v5658_v54 }
 0x4ef   :  { %v5580_v31 = vadd.f32 %v5579_v20, %v5578_v22  ;;  %v5661_v58 = vpop.f32.mrf.mxu0 }
 0x4f0   :  { %v5581_v28 = vpop.f32.mrf.mxu1 }
 0x4f1   :  { %v6499_v1 = vpop.eup %6498  ;;  %v8457_v39 = vadd.f32 %v5660_v0, %v5580_v31  ;;  %v5662_v47 = vpop.f32.mrf.mxu0 }
 0x4f2   :  { %v5582_v14 = vpop.f32.mrf.mxu1  ;;  %v5663_v37 = vadd.f32 %v5662_v47, %v5661_v58  ;;  %v5378_v4 = vadd.f32 -1.0, %v6499_v1 }
 0x4f3   :  { %v2541_v48 = vmin.f32 %v8457_v39, 0.0  ;;  %v5583_v41 = vadd.f32 %v5582_v14, %v5581_v28 }
 0x4f4   :  { %v6501_v21 = vpop.eup %6500  ;;  %v2697_v63 = vsel %vm2617_vm7, %v2601_v57, %v5378_v4  ;;  %vm2618_vm7 = vcmp.gt.f32.partialorder %v2602_v6, 0.0 }
 0x4f5   :  { %v2561_v44 = vmul.f32 1.442695, %v2541_v48  ;;  %v8466_v12 = vadd.f32 %v5663_v37, %v5583_v41  ;;  %6018 = vmatprep.mubr.msk.f32.mxu1 %vm64_vm0, %v2697_v63  ;;  %v5364_v42 = vadd.f32 -1.0, %v6501_v21 }
 0x4f7   :  { %6506 = vpow2.f32 %v2561_v44  ;;  %v2542_v10 = vmin.f32 %v8466_v12, 0.0  ;;  %v2603_v26 = vsel %vm2523_vm12, %v2453_v8, %v5364_v42  ;;  %vm2525_vm12 = vcmp.gt.f32.partialorder %v8457_v39, 0.0 }
 0x4f8   :  { %v6503_v7 = vpop.eup %6502  ;;  %v2635_v53 = vmin.f32 %v2603_v26, 0.0 }
 0x4f9   :  { %v6505_v51 = vpop.eup %6504  ;;  %v2563_v55 = vmul.f32 1.442695, %v2542_v10  ;;  %v5365_v5 = vadd.f32 -1.0, %v6503_v7 }
 0x4fa   :  { %v5379_v25 = vadd.f32 -1.0, %v6505_v51  ;;  %v2653_v23 = vmul.f32 1.442695, %v2635_v53 }
 0x4fb   :  { %6508 = vpow2.f32 %v2563_v55  ;;  %v5664_v43 = vpop.f32.mrf.mxu0  ;;  %v2604_v36 = vsel %vm2524_vm2, %v2458_v50, %v5365_v5  ;;  %vm2526_vm2 = vcmp.gt.f32.partialorder %v8466_v12, 0.0 }
 0x4fc   :  { %v5584_v19 = vpop.f32.mrf.mxu1  ;;  %v2698_v11 = vsel %vm2618_vm7, %v2602_v6, %v5379_v25  ;;  %6510 = vpow2.f32 %v2653_v23  ;;  %v2636_v45 = vmin.f32 %v2604_v36, 0.0  ;;  %vm2619_vm7 = vcmp.gt.f32.partialorder %v2603_v26, 0.0 }
 0x4fd   :  { %6019 = vmatmul.mubr.msk.f32.vlgmr.msra.gmra.mxu1 %vm64_vm0, %v2698_v11  ;;  %v5665_v30 = vpop.f32.mrf.mxu0 }
 0x4fe   :  { %v5585_v38 = vpop.f32.mrf.mxu1  ;;  %v5666_v2 = vadd.f32 %v5665_v30, %v5664_v43  ;;  %v2655_v35 = vmul.f32 1.442695, %v2636_v45  ;;  %6075 = vmatpush3.msra.mxu1 %v2917_v16 }
 0x4ff   :  { %v5586_v32 = vadd.f32 %v5585_v38, %v5584_v19  ;;  %v5667_v57 = vpop.f32.mrf.mxu0  ;;  %6076 = vmatprep.subr.mxu1 %v2916_v33 }
 0x500   :  { %v5587_v27 = vpop.f32.mrf.mxu1  ;;  %6512 = vpow2.f32 %v2655_v35  ;;  %6077 = vmatpush3.msra.mxu1 %v2916_v33 }
 0x501   :  { %v2473_v60 = vadd.f32 %v5666_v2, %v5586_v32  ;;  %v5668_v8 = vpop.f32.mrf.mxu0 }
 0x502   :  { %v5588_v34 = vpop.f32.mrf.mxu1  ;;  %v5669_v49 = vadd.f32 %v5668_v8, %v5667_v57 }
 0x503   :  { %v2543_v40 = vmin.f32 %v2473_v60, 0.0  ;;  %v5589_v13 = vadd.f32 %v5588_v34, %v5587_v27 }
 0x504   :  { %v6507_v29 = vpop.eup %6506 }
 0x505   :  { %v2565_v61 = vmul.f32 1.442695, %v2543_v40  ;;  %v2478_v3 = vadd.f32 %v5669_v49, %v5589_v13  ;;  %v5366_v56 = vadd.f32 -1.0, %v6507_v29 }
 0x507   :  { %6514 = vpow2.f32 %v2565_v61  ;;  %v2544_v18 = vmin.f32 %v2478_v3, 0.0  ;;  %v2605_v50 = vsel %vm2525_vm12, %v8457_v39, %v5366_v56  ;;  %vm2620_vm12 = vcmp.gt.f32.partialorder %v2604_v36, 0.0 }
 0x508   :  { %v6509_v6 = vpop.eup %6508  ;;  %v2637_v9 = vmin.f32 %v2605_v50, 0.0 }
 0x509   :  { %v6511_v46 = vpop.eup %6510  ;;  %v2567_v17 = vmul.f32 1.442695, %v2544_v18  ;;  %v5367_v52 = vadd.f32 -1.0, %v6509_v6 }
 0x50a   :  { %v5380_v54 = vadd.f32 -1.0, %v6511_v46  ;;  %v2657_v22 = vmul.f32 1.442695, %v2637_v9 }
 0x50b   :  { %6516 = vpow2.f32 %v2567_v17  ;;  %v5670_v62 = vpop.f32.mrf.mxu0  ;;  %v2606_v20 = vsel %vm2526_vm2, %v8466_v12, %v5367_v52  ;;  %vm2527_vm2 = vcmp.gt.f32.partialorder %v2473_v60, 0.0 }
 0x50c   :  { %v5590_v0 = vpop.f32.mrf.mxu1  ;;  %v2699_v31 = vsel %vm2619_vm7, %v2603_v26, %v5380_v54  ;;  %6518 = vpow2.f32 %v2657_v22  ;;  %v2638_v58 = vmin.f32 %v2606_v20, 0.0  ;;  %vm2528_vm7 = vcmp.gt.f32.partialorder %v2478_v3, 0.0 }
 0x50d   :  { %v6513_v28 = vpop.eup %6512  ;;  %6021 = vmatprep.mubr.msk.f32.mxu1 %vm64_vm0, %v2699_v31  ;;  %v5671_v24 = vpop.f32.mrf.mxu0 }
 0x50e   :  { %v5591_v15 = vpop.f32.mrf.mxu1  ;;  %v5672_v1 = vadd.f32 %v5671_v24, %v5670_v62  ;;  %v5381_v39 = vadd.f32 -1.0, %v6513_v28  ;;  %v2659_v47 = vmul.f32 1.442695, %v2638_v58 }
 0x50f   :  { %v5592_v16 = vadd.f32 %v5591_v15, %v5590_v0  ;;  %v5673_v14 = vpop.f32.mrf.mxu0 }
 0x510   :  { %v5593_v37 = vpop.f32.mrf.mxu1  ;;  %v2700_v4 = vsel %vm2620_vm12, %v2604_v36, %v5381_v39  ;;  %6520 = vpow2.f32 %v2659_v47  ;;  %vm2621_vm12 = vcmp.gt.f32.partialorder %v2605_v50, 0.0 }
 0x511   :  { %v2483_v59 = vadd.f32 %v5672_v1, %v5592_v16  ;;  %6022 = vmatmul.mubr.msk.f32.gmra.mxu1 %vm64_vm0, %v2700_v4  ;;  %v5674_v48 = vpop.f32.mrf.mxu0 }
 0x512   :  { %v5594_v41 = vpop.f32.mrf.mxu1  ;;  %v5675_v21 = vadd.f32 %v5674_v48, %v5673_v14 }
 0x513   :  { %v2545_v63 = vmin.f32 %v2483_v59, 0.0  ;;  %v5595_v44 = vadd.f32 %v5594_v41, %v5593_v37 }
 0x514   :  { %v6515_v12 = vpop.eup %6514 }
 0x515   :  { %v2569_v42 = vmul.f32 1.442695, %v2545_v63  ;;  %v2488_v10 = vadd.f32 %v5675_v21, %v5595_v44  ;;  %v5368_v26 = vadd.f32 -1.0, %v6515_v12 }
 0x517   :  { %6522 = vpow2.f32 %v2569_v42  ;;  %v2546_v7 = vmin.f32 %v2488_v10, 0.0  ;;  %v2607_v53 = vsel %vm2527_vm2, %v2473_v60, %v5368_v26  ;;  %vm2622_vm2 = vcmp.gt.f32.partialorder %v2606_v20, 0.0 }
 0x518   :  { %v6517_v51 = vpop.eup %6516  ;;  %v2639_v55 = vmin.f32 %v2607_v53, 0.0 }
 0x519   :  { %v6519_v5 = vpop.eup %6518  ;;  %v2571_v25 = vmul.f32 1.442695, %v2546_v7  ;;  %v5369_v23 = vadd.f32 -1.0, %v6517_v51 }
 0x51a   :  { %v5382_v43 = vadd.f32 -1.0, %v6519_v5  ;;  %v2661_v36 = vmul.f32 1.442695, %v2639_v55 }
 0x51b   :  { %6524 = vpow2.f32 %v2571_v25  ;;  %v5676_v19 = vpop.f32.mrf.mxu0  ;;  %v2608_v11 = vsel %vm2528_vm7, %v2478_v3, %v5369_v23  ;;  %vm2529_vm7 = vcmp.gt.f32.partialorder %v2483_v59, 0.0 }
 0x51c   :  { %v5596_v45 = vpop.f32.mrf.mxu1  ;;  %v2701_v33 = vsel %vm2621_vm12, %v2605_v50, %v5382_v43  ;;  %6526 = vpow2.f32 %v2661_v36  ;;  %v2640_v30 = vmin.f32 %v2608_v11, 0.0  ;;  %vm2530_vm12 = vcmp.gt.f32.partialorder %v2488_v10, 0.0 }
 0x51d   :  { %v6521_v38 = vpop.eup %6520  ;;  %6024 = vmatprep.mubr.msk.f32.mxu1 %vm64_vm0, %v2701_v33  ;;  %v5677_v2 = vpop.f32.mrf.mxu0 }
 0x51e   :  { %v5597_v35 = vpop.f32.mrf.mxu1  ;;  %v5678_v32 = vadd.f32 %v5677_v2, %v5676_v19  ;;  %v5383_v57 = vadd.f32 -1.0, %v6521_v38  ;;  %v2663_v27 = vmul.f32 1.442695, %v2640_v30 }
 0x51f   :  { %v5598_v60 = vadd.f32 %v5597_v35, %v5596_v45  ;;  %v5679_v8 = vpop.f32.mrf.mxu0 }
 0x520   :  { %v5599_v34 = vpop.f32.mrf.mxu1  ;;  %v2702_v49 = vsel %vm2622_vm2, %v2606_v20, %v5383_v57  ;;  %6528 = vpow2.f32 %v2663_v27  ;;  %vm2623_vm2 = vcmp.gt.f32.partialorder %v2607_v53, 0.0 }
 0x521   :  { %v2493_v40 = vadd.f32 %v5678_v32, %v5598_v60  ;;  %6025 = vmatmul.mubr.msk.f32.gmra.mxu1 %vm64_vm0, %v2702_v49  ;;  %v5680_v13 = vpop.f32.mrf.mxu0 }
 0x522   :  { %v5600_v29 = vpop.f32.mrf.mxu1  ;;  %v5681_v61 = vadd.f32 %v5680_v13, %v5679_v8 }
 0x523   :  { %v2547_v3 = vmin.f32 %v2493_v40, 0.0  ;;  %v5601_v56 = vadd.f32 %v5600_v29, %v5599_v34  ;;  %v2915_v29 = vld [vmem:[%s9729_s7 + $0x8] sm:$0xff] }
 0x524   :  { %v6523_v18 = vpop.eup %6522  ;;  %6078 = vmatprep.subr.mxu1 %v2915_v29 }
 0x525   :  { %v2573_v50 = vmul.f32 1.442695, %v2547_v3  ;;  %v8482_v6 = vadd.f32 %v5681_v61, %v5601_v56  ;;  %v5370_v9 = vadd.f32 -1.0, %v6523_v18  ;;  %6079 = vmatpush3.msra.mxu1 %v2915_v29 }
 0x527   :  { %6530 = vpow2.f32 %v2573_v50  ;;  %v2548_v46 = vmin.f32 %v8482_v6, 0.0  ;;  %v2609_v17 = vsel %vm2529_vm7, %v2483_v59, %v5370_v9  ;;  %vm2624_vm7 = vcmp.gt.f32.partialorder %v2608_v11, 0.0  ;;  %v2910_v50 = vld [vmem:[%s9728_s6] sm:$0xff] }
 0x528   :  { %v6525_v52 = vpop.eup %6524  ;;  %v2641_v54 = vmin.f32 %v2609_v17, 0.0  ;;  %6048 = vmatprep.subr.mxu0 %v2910_v50 }
 0x529   :  { %v6527_v22 = vpop.eup %6526  ;;  %v2575_v62 = vmul.f32 1.442695, %v2548_v46  ;;  %v5371_v20 = vadd.f32 -1.0, %v6525_v52  ;;  %6049 = vmatpush3.msra.mxu0 %v2910_v50 }
 0x52a   :  { %v5384_v0 = vadd.f32 -1.0, %v6527_v22  ;;  %v2665_v31 = vmul.f32 1.442695, %v2641_v54 }
 0x52b   :  { %6532 = vpow2.f32 %v2575_v62  ;;  %v5682_v58 = vpop.f32.mrf.mxu0  ;;  %v8485_v28 = vsel %vm2530_vm12, %v2488_v10, %v5371_v20  ;;  %vm2531_vm12 = vcmp.gt.f32.partialorder %v2493_v40, 0.0 }
 0x52c   :  { %v5602_v24 = vpop.f32.mrf.mxu1  ;;  %v2703_v15 = vsel %vm2623_vm2, %v2607_v53, %v5384_v0  ;;  %6534 = vpow2.f32 %v2665_v31  ;;  %v2642_v1 = vmin.f32 %v8485_v28, 0.0  ;;  %vm2532_vm2 = vcmp.gt.f32.partialorder %v8482_v6, 0.0 }
 0x52d   :  { %v6529_v39 = vpop.eup %6528  ;;  %6027 = vmatprep.mubr.msk.f32.mxu1 %vm64_vm0, %v2703_v15  ;;  %v5683_v47 = vpop.f32.mrf.mxu0 }
 0x52e   :  { %v5603_v16 = vpop.f32.mrf.mxu1  ;;  %v5684_v14 = vadd.f32 %v5683_v47, %v5682_v58  ;;  %v5385_v37 = vadd.f32 -1.0, %v6529_v39  ;;  %v2667_v4 = vmul.f32 1.442695, %v2642_v1 }
 0x52f   :  { %v5604_v59 = vadd.f32 %v5603_v16, %v5602_v24  ;;  %v5685_v48 = vpop.f32.mrf.mxu0 }
 0x530   :  { %v5605_v41 = vpop.f32.mrf.mxu1  ;;  %v2704_v21 = vsel %vm2624_vm7, %v2608_v11, %v5385_v37  ;;  %6536 = vpow2.f32 %v2667_v4  ;;  %vm2625_vm7 = vcmp.gt.f32.partialorder %v2609_v17, 0.0 }
 0x531   :  { %v8489_v63 = vadd.f32 %v5684_v14, %v5604_v59  ;;  %6028 = vmatmul.mubr.msk.f32.gmra.mxu1 %vm64_vm0, %v2704_v21  ;;  %v5686_v44 = vpop.f32.mrf.mxu0 }
 0x532   :  { %v5606_v12 = vpop.f32.mrf.mxu1  ;;  %v5687_v42 = vadd.f32 %v5686_v44, %v5685_v48 }
 0x533   :  { %v2549_v10 = vmin.f32 %v8489_v63, 0.0  ;;  %v5607_v26 = vadd.f32 %v5606_v12, %v5605_v41 }
 0x534   :  { %v6531_v7 = vpop.eup %6530 }
 0x535   :  { %v2577_v53 = vmul.f32 1.442695, %v2549_v10  ;;  %v8493_v51 = vadd.f32 %v5687_v42, %v5607_v26  ;;  %v5372_v55 = vadd.f32 -1.0, %v6531_v7 }
 0x537   :  { %6538 = vpow2.f32 %v2577_v53  ;;  %v2550_v5 = vmin.f32 %v8493_v51, 0.0  ;;  %v8496_v25 = vsel %vm2531_vm12, %v2493_v40, %v5372_v55  ;;  %vm2626_vm12 = vcmp.gt.f32.partialorder %v8485_v28, 0.0 }
 0x538   :  { %v6533_v23 = vpop.eup %6532  ;;  %v5608_v43 = vpop.f32.mrf.mxu1  ;;  %v2643_v36 = vmin.f32 %v8496_v25, 0.0 }
 0x539   :  { %v6535_v19 = vpop.eup %6534  ;;  %v2579_v11 = vmul.f32 1.442695, %v2550_v5  ;;  %v5373_v45 = vadd.f32 -1.0, %v6533_v23 }
 0x53a   :  { %v5609_v33 = vpop.f32.mrf.mxu1  ;;  %v5386_v30 = vadd.f32 -1.0, %v6535_v19  ;;  %v2669_v38 = vmul.f32 1.442695, %v2643_v36 }
 0x53b   :  { %6540 = vpow2.f32 %v2579_v11  ;;  %v5688_v2 = vpop.f32.mrf.mxu0  ;;  %v2612_v35 = vsel %vm2532_vm2, %v8482_v6, %v5373_v45  ;;  %v5610_v34 = vadd.f32 %v5609_v33, %v5608_v43  ;;  %v2914_v6 = vld [vmem:[%s9729_s7] sm:$0xff]  ;;  %vm2533_vm2 = vcmp.gt.f32.partialorder %v8489_v63, 0.0 }
 0x53c   :  { %v5611_v32 = vpop.f32.mrf.mxu1  ;;  %v2705_v57 = vsel %vm2625_vm7, %v2609_v17, %v5386_v30  ;;  %6542 = vpow2.f32 %v2669_v38  ;;  %v2644_v27 = vmin.f32 %v2612_v35, 0.0  ;;  %6080 = vmatprep.subr.mxu1 %v2914_v6  ;;  %vm2534_vm7 = vcmp.gt.f32.partialorder %v8493_v51, 0.0 }
 0x53d   :  { %v6537_v60 = vpop.eup %6536  ;;  %6030 = vmatprep.mubr.msk.f32.mxu1 %vm64_vm0, %v2705_v57  ;;  %v5689_v8 = vpop.f32.mrf.mxu0  ;;  %6081 = vmatpush3.msra.mxu1 %v2914_v6 }
 0x53e   :  { %v5690_v49 = vadd.f32 %v5689_v8, %v5688_v2  ;;  %v5387_v40 = vadd.f32 -1.0, %v6537_v60  ;;  %v2671_v13 = vmul.f32 1.442695, %v2644_v27  ;;  %v5612_v61 = vpop.f32.mrf.mxu1 }
 0x53f   :  { %v5691_v3 = vpop.f32.mrf.mxu0  ;;  %v5613_v46 = vadd.f32 %v5612_v61, %v5611_v32 }
 0x540   :  { %v2513_v56 = vadd.f32 %v5690_v49, %v5610_v34  ;;  %v2706_v18 = vsel %vm2626_vm12, %v8485_v28, %v5387_v40  ;;  %6544 = vpow2.f32 %v2671_v13  ;;  %vm2627_vm12 = vcmp.gt.f32.partialorder %v8496_v25, 0.0 }
 0x541   :  { %6031 = vmatmul.mubr.msk.f32.gmra.mxu1 %vm64_vm0, %v2706_v18  ;;  %v5692_v9 = vpop.f32.mrf.mxu0 }
 0x542   :  { %v2551_v17 = vmin.f32 %v2513_v56, 0.0  ;;  %v5693_v52 = vadd.f32 %v5692_v9, %v5691_v3  ;;  %vm2535_vm4 = vcmp.gt.f32.partialorder %v2513_v56, 0.0 }
 0x544   :  { %v6539_v54 = vpop.eup %6538  ;;  %v2581_v22 = vmul.f32 1.442695, %v2551_v17  ;;  %v2518_v62 = vadd.f32 %v5693_v52, %v5613_v46 }
 0x545   :  { %v5374_v20 = vadd.f32 -1.0, %v6539_v54 }
 0x546   :  { %6546 = vpow2.f32 %v2581_v22  ;;  %v2552_v0 = vmin.f32 %v2518_v62, 0.0 }
 0x547   :  { %v2613_v31 = vsel %vm2533_vm2, %v8489_v63, %v5374_v20  ;;  %vm2628_vm2 = vcmp.gt.f32.partialorder %v2612_v35, 0.0 }
 0x548   :  { %v6541_v58 = vpop.eup %6540  ;;  %v2583_v28 = vmul.f32 1.442695, %v2552_v0  ;;  %v2645_v24 = vmin.f32 %v2613_v31, 0.0 }
 0x549   :  { %v6543_v15 = vpop.eup %6542  ;;  %v5375_v1 = vadd.f32 -1.0, %v6541_v58 }
 0x54a   :  { %6548 = vpow2.f32 %v2583_v28  ;;  %v5388_v39 = vadd.f32 -1.0, %v6543_v15  ;;  %v2673_v47 = vmul.f32 1.442695, %v2645_v24 }
 0x54b   :  { %v2614_v16 = vsel %vm2534_vm7, %v8493_v51, %v5375_v1  ;;  %vm2536_vm7 = vcmp.gt.f32.partialorder %v2518_v62, 0.0 }
 0x54c   :  { %v2707_v14 = vsel %vm2627_vm12, %v8496_v25, %v5388_v39  ;;  %6550 = vpow2.f32 %v2673_v47  ;;  %v2646_v37 = vmin.f32 %v2614_v16, 0.0  ;;  %vm2629_vm12 = vcmp.gt.f32.partialorder %v2613_v31, 0.0 }
 0x54d   :  { %v6545_v4 = vpop.eup %6544  ;;  %6033 = vmatprep.mubr.msk.f32.mxu1 %vm64_vm0, %v2707_v14 }
 0x54e   :  { %v5389_v59 = vadd.f32 -1.0, %v6545_v4  ;;  %v2675_v48 = vmul.f32 1.442695, %v2646_v37 }
 0x550   :  { %v2708_v41 = vsel %vm2628_vm2, %v2612_v35, %v5389_v59  ;;  %6552 = vpow2.f32 %v2675_v48  ;;  %vm2630_vm2 = vcmp.gt.f32.partialorder %v2614_v16, 0.0 }
 0x551   :  { %6034 = vmatmul.mubr.msk.f32.gmra.mxu1 %vm64_vm0, %v2708_v41 }
 0x553   :  { %v6547_v21 = vpop.eup %6546 }
 0x554   :  { %v5376_v63 = vadd.f32 -1.0, %v6547_v21 }
 0x556   :  { %v2615_v44 = vsel %vm2535_vm4, %v2513_v56, %v5376_v63 }
 0x557   :  { %v6549_v12 = vpop.eup %6548  ;;  %v2647_v42 = vmin.f32 %v2615_v44, 0.0  ;;  %vm2631_vm4 = vcmp.gt.f32.partialorder %v2615_v44, 0.0 }
 0x558   :  { %v5377_v10 = vadd.f32 -1.0, %v6549_v12 }
 0x559   :  { %v6551_v26 = vpop.eup %6550  ;;  %v2677_v7 = vmul.f32 1.442695, %v2647_v42 }
 0x55a   :  { %v5390_v53 = vadd.f32 -1.0, %v6551_v26  ;;  %v2616_v51 = vsel %vm2536_vm7, %v2518_v62, %v5377_v10 }
 0x55b   :  { %6554 = vpow2.f32 %v2677_v7  ;;  %v2648_v55 = vmin.f32 %v2616_v51, 0.0  ;;  %vm2632_vm7 = vcmp.gt.f32.partialorder %v2616_v51, 0.0 }
 0x55c   :  { %v2709_v5 = vsel %vm2629_vm12, %v2613_v31, %v5390_v53  ;;  %vm9932_vm12 = vcmask 130112  }
 0x55d   :  { %v6553_v25 = vpop.eup %6552  ;;  %6036 = vmatprep.mubr.msk.f32.mxu1 %vm64_vm0, %v2709_v5  ;;  %v2679_v23 = vmul.f32 1.442695, %v2648_v55 }
 0x55e   :  { %v5391_v43 = vadd.f32 -1.0, %v6553_v25 }
 0x55f   :  { %6556 = vpow2.f32 %v2679_v23 }
 0x560   :  { %v2710_v36 = vsel %vm2630_vm2, %v2614_v16, %v5391_v43  ;;  %vm9933_vm2 = vcmask 195712  }
 0x561   :  { %6037 = vmatmul.mubr.msk.f32.gmra.mxu1 %vm64_vm0, %v2710_v36  ;;  %vm9936_vm13 = vmmov %vm9933_vm2 }
 0x568   :  { %v6555_v19 = vpop.eup %6554 }
 0x569   :  { %v5392_v11 = vadd.f32 -1.0, %v6555_v19 }
 0x56b   :  { %v2711_v45 = vsel %vm2631_vm4, %v2615_v44, %v5392_v11  ;;  %vm9935_vm4 = vmmov %vm9932_vm12 }
 0x56c   :  { %v6557_v33 = vpop.eup %6556  ;;  %6039 = vmatprep.mubr.msk.f32.mxu1 %vm64_vm0, %v2711_v45 }
 0x56d   :  { %v5393_v30 = vadd.f32 -1.0, %v6557_v33 }
 0x56f   :  { %v2712_v38 = vsel %vm2632_vm7, %v2616_v51, %v5393_v30  ;;  %vm9939_vm7 = vmmov %vm9933_vm2 }
 0x570   :  { %6040 = vmatmul.mubr.msk.f32.gmra.mxu1 %vm64_vm0, %v2712_v38 }
 0x5bd   :  { %v6020_v2 = vpop.f32.mrf.mxu1 }
 0x5be   :  { %3630 = vst.msk [vmem:[#allocation3 + $0x8] sm:$0xff] %vm1060_vm1, %v6020_v2 }
 0x5bf   :  { %3971 = vst.msk [vmem:[#allocation3 + $0x88] sm:$0xff] %vm9932_vm12, %v6020_v2  ;;  %v2831_v35 = vpop.f32.mrf.mxu1  ;;  %vm9940_vm12 = vmmov %vm9937_vm3 }
 0x5c0   :  { %4312 = vst.msk [vmem:[#allocation3 + $0x108] sm:$0xff] %vm9933_vm2, %v6020_v2  ;;  %6050 = vmatprep.mubr.msk.f32.mxu0 %vm64_vm0, %v2831_v35  ;;  %6082 = vmatprep.mubr.msk.f32.mxu1 %vm64_vm0, %v2831_v35 }
 0x5c1   :  { %4653 = vst.msk [vmem:[#allocation3 + $0x188] sm:$0xff] %vm9934_vm6, %v6020_v2  ;;  %6051 = vmatmul.mubr.msk.f32.vlgmr.msra.gmra.mxu0 %vm64_vm0, %v6020_v2  ;;  %6083 = vmatmul.mubr.msk.f32.vlgmr.msra.gmra.mxu1 %vm64_vm0, %v6020_v2  ;;  %vm9938_vm6 = vmmov %vm9935_vm4 }
 0x5c2   :  { %3629 = vst.msk [vmem:[#allocation3] sm:$0xff] %vm1060_vm1, %v2831_v35 }
 0x5c3   :  { %3970 = vst.msk [vmem:[#allocation3 + $0x80] sm:$0xff] %vm9935_vm4, %v2831_v35 }
 0x5c4   :  { %4311 = vst.msk [vmem:[#allocation3 + $0x100] sm:$0xff] %vm9936_vm13, %v2831_v35  ;;  %vm9941_vm13 = vmmov %vm9935_vm4 }
 0x5c5   :  { %4652 = vst.msk [vmem:[#allocation3 + $0x180] sm:$0xff] %vm9937_vm3, %v2831_v35  ;;  %vm9942_vm3 = vmmov %vm9933_vm2 }
 0x5c6   :  { %vm9943_vm2 = vmmov %vm9940_vm12 }
 0x5d1   :  { %v6023_v32 = vpop.f32.mrf.mxu1 }
 0x5d2   :  { %3632 = vst.msk [vmem:[#allocation3 + $0x18] sm:$0xff] %vm1060_vm1, %v6023_v32 }
 0x5d3   :  { %3973 = vst.msk [vmem:[#allocation3 + $0x98] sm:$0xff] %vm9938_vm6, %v6023_v32  ;;  %v2841_v57 = vpop.f32.mrf.mxu1  ;;  %vm9944_vm6 = vmmov %vm9942_vm3 }
 0x5d4   :  { %4314 = vst.msk [vmem:[#allocation3 + $0x118] sm:$0xff] %vm9939_vm7, %v6023_v32  ;;  %6053 = vmatprep.mubr.msk.f32.mxu0 %vm64_vm0, %v2841_v57  ;;  %6085 = vmatprep.mubr.msk.f32.mxu1 %vm64_vm0, %v2841_v57  ;;  %vm9945_vm7 = vmmov %vm9943_vm2 }
 0x5d5   :  { %4655 = vst.msk [vmem:[#allocation3 + $0x198] sm:$0xff] %vm9940_vm12, %v6023_v32  ;;  %6054 = vmatmul.mubr.msk.f32.gmra.mxu0 %vm64_vm0, %v6023_v32  ;;  %6086 = vmatmul.mubr.msk.f32.gmra.mxu1 %vm64_vm0, %v6023_v32  ;;  %vm9946_vm12 = vmmov %vm9935_vm4 }
 0x5d6   :  { %3631 = vst.msk [vmem:[#allocation3 + $0x10] sm:$0xff] %vm1060_vm1, %v2841_v57 }
 0x5d7   :  { %3972 = vst.msk [vmem:[#allocation3 + $0x90] sm:$0xff] %vm9941_vm13, %v2841_v57  ;;  %vm9947_vm13 = vmmov %vm9942_vm3 }
 0x5d8   :  { %4313 = vst.msk [vmem:[#allocation3 + $0x110] sm:$0xff] %vm9942_vm3, %v2841_v57  ;;  %vm9948_vm3 = vmmov %vm9943_vm2 }
 0x5d9   :  { %4654 = vst.msk [vmem:[#allocation3 + $0x190] sm:$0xff] %vm9943_vm2, %v2841_v57  ;;  %vm9949_vm2 = vmmov %vm9935_vm4  ;;  %v4735_v32 = vld [vmem:[#allocation3 + $0x18] sm:$0xff] }
 0x5da   :  { %v4751_v2 = vld [vmem:[#allocation3 + $0x98] sm:$0xff] }
 0x5db   :  { %v4767_v57 = vld [vmem:[#allocation3 + $0x118] sm:$0xff] }
 0x5dc   :  { %v4783_v35 = vld [vmem:[#allocation3 + $0x198] sm:$0xff] }
 0x5e1   :  { %v6026_v27 = vpop.f32.mrf.mxu1 }
 0x5e2   :  { %3634 = vst.msk [vmem:[#allocation3 + $0x28] sm:$0xff] %vm1060_vm1, %v6026_v27 }
 0x5e3   :  { %3975 = vst.msk [vmem:[#allocation3 + $0xa8] sm:$0xff] %vm9935_vm4, %v6026_v27  ;;  %v2851_v60 = vpop.f32.mrf.mxu1  ;;  %vm9950_vm4 = vmmov %vm9944_vm6 }
 0x5e4   :  { %4316 = vst.msk [vmem:[#allocation3 + $0x128] sm:$0xff] %vm9944_vm6, %v6026_v27  ;;  %6056 = vmatprep.mubr.msk.f32.mxu0 %vm64_vm0, %v2851_v60  ;;  %6088 = vmatprep.mubr.msk.f32.mxu1 %vm64_vm0, %v2851_v60  ;;  %vm9951_vm6 = vmmov %vm9948_vm3 }
 0x5e5   :  { %4657 = vst.msk [vmem:[#allocation3 + $0x1a8] sm:$0xff] %vm9945_vm7, %v6026_v27  ;;  %6057 = vmatmul.mubr.msk.f32.gmra.mxu0 %vm64_vm0, %v6026_v27  ;;  %6089 = vmatmul.mubr.msk.f32.gmra.mxu1 %vm64_vm0, %v6026_v27  ;;  %vm9952_vm7 = vmmov %vm9949_vm2  ;;  %v4750_v27 = vld [vmem:[#allocation3 + $0x90] sm:$0xff] }
 0x5e6   :  { %3633 = vst.msk [vmem:[#allocation3 + $0x20] sm:$0xff] %vm1060_vm1, %v2851_v60 }
 0x5e7   :  { %3974 = vst.msk [vmem:[#allocation3 + $0xa0] sm:$0xff] %vm9946_vm12, %v2851_v60  ;;  %vm9953_vm12 = vmmov %vm9950_vm4 }
 0x5e8   :  { %4315 = vst.msk [vmem:[#allocation3 + $0x120] sm:$0xff] %vm9947_vm13, %v2851_v60  ;;  %vm9954_vm13 = vmmov %vm9948_vm3 }
 0x5e9   :  { %4656 = vst.msk [vmem:[#allocation3 + $0x1a0] sm:$0xff] %vm9948_vm3, %v2851_v60  ;;  %vm9955_vm3 = vmmov %vm9949_vm2  ;;  %v4737_v19 = vld [vmem:[#allocation3 + $0x28] sm:$0xff]  ;;  %v4782_v60 = vld [vmem:[#allocation3 + $0x190] sm:$0xff] }
 0x5ea   :  { %v4753_v43 = vld [vmem:[#allocation3 + $0xa8] sm:$0xff] }
 0x5eb   :  { %v4769_v11 = vld [vmem:[#allocation3 + $0x128] sm:$0xff] }
 0x5ec   :  { %v4785_v36 = vld [vmem:[#allocation3 + $0x1a8] sm:$0xff] }
 0x5ed   :  { %v4736_v30 = vld [vmem:[#allocation3 + $0x20] sm:$0xff] }
 0x5ee   :  { %v4752_v45 = vld [vmem:[#allocation3 + $0xa0] sm:$0xff] }
 0x5ef   :  { %v4768_v38 = vld [vmem:[#allocation3 + $0x120] sm:$0xff] }
 0x5f0   :  { %v4784_v33 = vld [vmem:[#allocation3 + $0x1a0] sm:$0xff] }
 0x5f1   :  { %v6029_v8 = vpop.f32.mrf.mxu1 }
 0x5f2   :  { %3636 = vst.msk [vmem:[#allocation3 + $0x38] sm:$0xff] %vm1060_vm1, %v6029_v8 }
 0x5f3   :  { %3977 = vst.msk [vmem:[#allocation3 + $0xb8] sm:$0xff] %vm9949_vm2, %v6029_v8  ;;  %v2861_v34 = vpop.f32.mrf.mxu1  ;;  %vm9956_vm2 = vmmov %vm9950_vm4 }
 0x5f4   :  { %4318 = vst.msk [vmem:[#allocation3 + $0x138] sm:$0xff] %vm9950_vm4, %v6029_v8  ;;  %6059 = vmatprep.mubr.msk.f32.mxu0 %vm64_vm0, %v2861_v34  ;;  %6091 = vmatprep.mubr.msk.f32.mxu1 %vm64_vm0, %v2861_v34  ;;  %vm9957_vm4 = vmmov %vm9951_vm6 }
 0x5f5   :  { %4659 = vst.msk [vmem:[#allocation3 + $0x1b8] sm:$0xff] %vm9951_vm6, %v6029_v8  ;;  %6060 = vmatmul.mubr.msk.f32.gmra.mxu0 %vm64_vm0, %v6029_v8  ;;  %6092 = vmatmul.mubr.msk.f32.gmra.mxu1 %vm64_vm0, %v6029_v8  ;;  %vm9958_vm6 = vmmov %vm9955_vm3  ;;  %v4734_v8 = vld [vmem:[#allocation3 + $0x10] sm:$0xff] }
 0x5f6   :  { %3635 = vst.msk [vmem:[#allocation3 + $0x30] sm:$0xff] %vm1060_vm1, %v2861_v34 }
 0x5f7   :  { %3976 = vst.msk [vmem:[#allocation3 + $0xb0] sm:$0xff] %vm9952_vm7, %v2861_v34  ;;  %vm9959_vm7 = vmmov %vm9956_vm2 }
 0x5f8   :  { %4317 = vst.msk [vmem:[#allocation3 + $0x130] sm:$0xff] %vm9953_vm12, %v2861_v34  ;;  %vm9960_vm12 = vmmov %vm9957_vm4 }
 0x5f9   :  { %4658 = vst.msk [vmem:[#allocation3 + $0x1b0] sm:$0xff] %vm9954_vm13, %v2861_v34  ;;  %vm9961_vm13 = vmmov %vm9955_vm3  ;;  %v4739_v53 = vld [vmem:[#allocation3 + $0x38] sm:$0xff]  ;;  %v4766_v34 = vld [vmem:[#allocation3 + $0x110] sm:$0xff] }
 0x5fa   :  { %v4755_v26 = vld [vmem:[#allocation3 + $0xb8] sm:$0xff] }
 0x5fb   :  { %v4771_v51 = vld [vmem:[#allocation3 + $0x138] sm:$0xff] }
 0x5fc   :  { %v4787_v7 = vld [vmem:[#allocation3 + $0x1b8] sm:$0xff] }
 0x5fd   :  { %v4738_v25 = vld [vmem:[#allocation3 + $0x30] sm:$0xff] }
 0x5fe   :  { %v4754_v55 = vld [vmem:[#allocation3 + $0xb0] sm:$0xff] }
 0x5ff   :  { %v4770_v23 = vld [vmem:[#allocation3 + $0x130] sm:$0xff] }
 0x600   :  { %v4786_v5 = vld [vmem:[#allocation3 + $0x1b0] sm:$0xff] }
 0x601   :  { %v6032_v49 = vpop.f32.mrf.mxu1 }
 0x602   :  { %3638 = vst.msk [vmem:[#allocation3 + $0x48] sm:$0xff] %vm1060_vm1, %v6032_v49 }
 0x603   :  { %3979 = vst.msk [vmem:[#allocation3 + $0xc8] sm:$0xff] %vm9955_vm3, %v6032_v49  ;;  %v2871_v40 = vpop.f32.mrf.mxu1  ;;  %vm9962_vm3 = vmmov %vm9956_vm2 }
 0x604   :  { %4320 = vst.msk [vmem:[#allocation3 + $0x148] sm:$0xff] %vm9956_vm2, %v6032_v49  ;;  %6062 = vmatprep.mubr.msk.f32.mxu0 %vm64_vm0, %v2871_v40  ;;  %6094 = vmatprep.mubr.msk.f32.mxu1 %vm64_vm0, %v2871_v40  ;;  %vm9963_vm2 = vmmov %vm9957_vm4 }
 0x605   :  { %4661 = vst.msk [vmem:[#allocation3 + $0x1c8] sm:$0xff] %vm9957_vm4, %v6032_v49  ;;  %6063 = vmatmul.mubr.msk.f32.gmra.mxu0 %vm64_vm0, %v6032_v49  ;;  %6095 = vmatmul.mubr.msk.f32.gmra.mxu1 %vm64_vm0, %v6032_v49  ;;  %vm9964_vm4 = vmmov %vm9958_vm6  ;;  %v4749_v49 = vld [vmem:[#allocation3 + $0x88] sm:$0xff] }
 0x606   :  { %3637 = vst.msk [vmem:[#allocation3 + $0x40] sm:$0xff] %vm1060_vm1, %v2871_v40 }
 0x607   :  { %3978 = vst.msk [vmem:[#allocation3 + $0xc0] sm:$0xff] %vm9958_vm6, %v2871_v40  ;;  %vm9965_vm6 = vmmov %vm9962_vm3 }
 0x608   :  { %4319 = vst.msk [vmem:[#allocation3 + $0x140] sm:$0xff] %vm9959_vm7, %v2871_v40  ;;  %vm9966_vm7 = vmmov %vm9963_vm2 }
 0x609   :  { %4660 = vst.msk [vmem:[#allocation3 + $0x1c0] sm:$0xff] %vm9960_vm12, %v2871_v40  ;;  %vm9967_vm12 = vmmov %vm9964_vm4  ;;  %v4741_v21 = vld [vmem:[#allocation3 + $0x48] sm:$0xff] }
 0x60a   :  { %v4757_v48 = vld [vmem:[#allocation3 + $0xc8] sm:$0xff] }
 0x60b   :  { %v4773_v63 = vld [vmem:[#allocation3 + $0x148] sm:$0xff] }
 0x60c   :  { %v4789_v41 = vld [vmem:[#allocation3 + $0x1c8] sm:$0xff] }
 0x60d   :  { %v4740_v42 = vld [vmem:[#allocation3 + $0x40] sm:$0xff]  ;;  %v4781_v40 = vld [vmem:[#allocation3 + $0x188] sm:$0xff] }
 0x60e   :  { %v4756_v44 = vld [vmem:[#allocation3 + $0xc0] sm:$0xff] }
 0x60f   :  { %v4772_v10 = vld [vmem:[#allocation3 + $0x140] sm:$0xff] }
 0x610   :  { %v4788_v12 = vld [vmem:[#allocation3 + $0x1c0] sm:$0xff] }
 0x611   :  { %v6035_v13 = vpop.f32.mrf.mxu1 }
 0x612   :  { %3640 = vst.msk [vmem:[#allocation3 + $0x58] sm:$0xff] %vm1060_vm1, %v6035_v13 }
 0x613   :  { %3981 = vst.msk [vmem:[#allocation3 + $0xd8] sm:$0xff] %vm9961_vm13, %v6035_v13  ;;  %v2881_v29 = vpop.f32.mrf.mxu1  ;;  %vm9968_vm13 = vmmov %vm9962_vm3 }
 0x614   :  { %4322 = vst.msk [vmem:[#allocation3 + $0x158] sm:$0xff] %vm9962_vm3, %v6035_v13  ;;  %6065 = vmatprep.mubr.msk.f32.mxu0 %vm64_vm0, %v2881_v29  ;;  %6097 = vmatprep.mubr.msk.f32.mxu1 %vm64_vm0, %v2881_v29  ;;  %vm9969_vm3 = vmmov %vm9963_vm2 }
 0x615   :  { %4663 = vst.msk [vmem:[#allocation3 + $0x1d8] sm:$0xff] %vm9963_vm2, %v6035_v13  ;;  %6066 = vmatmul.mubr.msk.f32.gmra.mxu0 %vm64_vm0, %v6035_v13  ;;  %6098 = vmatmul.mubr.msk.f32.gmra.mxu1 %vm64_vm0, %v6035_v13  ;;  %vm9970_vm2 = vmmov %vm9964_vm4  ;;  %v4733_v13 = vld [vmem:[#allocation3 + $0x8] sm:$0xff] }
 0x616   :  { %3639 = vst.msk [vmem:[#allocation3 + $0x50] sm:$0xff] %vm1060_vm1, %v2881_v29 }
 0x617   :  { %3980 = vst.msk [vmem:[#allocation3 + $0xd0] sm:$0xff] %vm9964_vm4, %v2881_v29  ;;  %vm9971_vm4 = vmmov %vm9965_vm6 }
 0x618   :  { %4321 = vst.msk [vmem:[#allocation3 + $0x150] sm:$0xff] %vm9965_vm6, %v2881_v29  ;;  %vm9972_vm6 = vmmov %vm9969_vm3 }
 0x619   :  { %4662 = vst.msk [vmem:[#allocation3 + $0x1d0] sm:$0xff] %vm9966_vm7, %v2881_v29  ;;  %vm9973_vm7 = vmmov %vm9970_vm2  ;;  %v4743_v47 = vld [vmem:[#allocation3 + $0x58] sm:$0xff]  ;;  %v4765_v29 = vld [vmem:[#allocation3 + $0x108] sm:$0xff] }
 0x61a   :  { %v4759_v1 = vld [vmem:[#allocation3 + $0xd8] sm:$0xff] }
 0x61b   :  { %v4775_v16 = vld [vmem:[#allocation3 + $0x158] sm:$0xff] }
 0x61c   :  { %v4791_v39 = vld [vmem:[#allocation3 + $0x1d8] sm:$0xff] }
 0x61d   :  { %v4742_v4 = vld [vmem:[#allocation3 + $0x50] sm:$0xff] }
 0x61e   :  { %v4758_v14 = vld [vmem:[#allocation3 + $0xd0] sm:$0xff] }
 0x61f   :  { %v4774_v59 = vld [vmem:[#allocation3 + $0x150] sm:$0xff] }
 0x620   :  { %v4790_v37 = vld [vmem:[#allocation3 + $0x1d0] sm:$0xff] }
 0x621   :  { %v6038_v61 = vpop.f32.mrf.mxu1 }
 0x622   :  { %3642 = vst.msk [vmem:[#allocation3 + $0x68] sm:$0xff] %vm1060_vm1, %v6038_v61 }
 0x623   :  { %3983 = vst.msk [vmem:[#allocation3 + $0xe8] sm:$0xff] %vm9967_vm12, %v6038_v61  ;;  %v2891_v3 = vpop.f32.mrf.mxu1  ;;  %vm9974_vm12 = vmmov %vm9971_vm4 }
 0x624   :  { %4324 = vst.msk [vmem:[#allocation3 + $0x168] sm:$0xff] %vm9968_vm13, %v6038_v61  ;;  %6068 = vmatprep.mubr.msk.f32.mxu0 %vm64_vm0, %v2891_v3  ;;  %6100 = vmatprep.mubr.msk.f32.mxu1 %vm64_vm0, %v2891_v3  ;;  %vm9975_vm13 = vmmov %vm9969_vm3 }
 0x625   :  { %4665 = vst.msk [vmem:[#allocation3 + $0x1e8] sm:$0xff] %vm9969_vm3, %v6038_v61  ;;  %6069 = vmatmul.mubr.msk.f32.gmra.mxu0 %vm64_vm0, %v6038_v61  ;;  %6101 = vmatmul.mubr.msk.f32.gmra.mxu1 %vm64_vm0, %v6038_v61  ;;  %vm9976_vm3 = vmmov %vm9970_vm2  ;;  %v4748_v61 = vld [vmem:[#allocation3 + $0x80] sm:$0xff] }
 0x626   :  { %3641 = vst.msk [vmem:[#allocation3 + $0x60] sm:$0xff] %vm1060_vm1, %v2891_v3 }
 0x627   :  { %3982 = vst.msk [vmem:[#allocation3 + $0xe0] sm:$0xff] %vm9970_vm2, %v2891_v3  ;;  %vm9977_vm2 = vmmov %vm9971_vm4 }
 0x628   :  { %4323 = vst.msk [vmem:[#allocation3 + $0x160] sm:$0xff] %vm9971_vm4, %v2891_v3  ;;  %vm9978_vm4 = vmmov %vm9972_vm6 }
 0x629   :  { %4664 = vst.msk [vmem:[#allocation3 + $0x1e0] sm:$0xff] %vm9972_vm6, %v2891_v3  ;;  %v4745_v0 = vld [vmem:[#allocation3 + $0x68] sm:$0xff]  ;;  %v4780_v3 = vld [vmem:[#allocation3 + $0x180] sm:$0xff] }
 0x62a   :  { %v4761_v62 = vld [vmem:[#allocation3 + $0xe8] sm:$0xff] }
 0x62b   :  { %v4777_v31 = vld [vmem:[#allocation3 + $0x168] sm:$0xff] }
 0x62c   :  { %v4793_v20 = vld [vmem:[#allocation3 + $0x1e8] sm:$0xff] }
 0x62d   :  { %v4744_v24 = vld [vmem:[#allocation3 + $0x60] sm:$0xff] }
 0x62e   :  { %v4760_v58 = vld [vmem:[#allocation3 + $0xe0] sm:$0xff] }
 0x62f   :  { %v4776_v15 = vld [vmem:[#allocation3 + $0x160] sm:$0xff] }
 0x630   :  { %v6041_v56 = vpop.f32.mrf.mxu1  ;;  %v4792_v28 = vld [vmem:[#allocation3 + $0x1e0] sm:$0xff] }
 0x631   :  { %3644 = vst.msk [vmem:[#allocation3 + $0x78] sm:$0xff] %vm1060_vm1, %v6041_v56 }
 0x632   :  { %3985 = vst.msk [vmem:[#allocation3 + $0xf8] sm:$0xff] %vm9973_vm7, %v6041_v56  ;;  %v2901_v18 = vpop.f32.mrf.mxu1 }
 0x633   :  { %4326 = vst.msk [vmem:[#allocation3 + $0x178] sm:$0xff] %vm9974_vm12, %v6041_v56  ;;  %6071 = vmatprep.mubr.msk.f32.mxu0 %vm64_vm0, %v2901_v18  ;;  %6103 = vmatprep.mubr.msk.f32.mxu1 %vm64_vm0, %v2901_v18 }
 0x634   :  { %4667 = vst.msk [vmem:[#allocation3 + $0x1f8] sm:$0xff] %vm9975_vm13, %v6041_v56  ;;  %6072 = vmatmul.mubr.msk.f32.gmra.mxu0 %vm64_vm0, %v6041_v56  ;;  %6104 = vmatmul.mubr.msk.f32.gmra.mxu1 %vm64_vm0, %v6041_v56  ;;  %v4732_v56 = vld [vmem:[#allocation3] sm:$0xff] }
 0x635   :  { %3643 = vst.msk [vmem:[#allocation3 + $0x70] sm:$0xff] %vm1060_vm1, %v2901_v18 }
 0x636   :  { %3984 = vst.msk [vmem:[#allocation3 + $0xf0] sm:$0xff] %vm9976_vm3, %v2901_v18 }
 0x637   :  { %4325 = vst.msk [vmem:[#allocation3 + $0x170] sm:$0xff] %vm9977_vm2, %v2901_v18 }
 0x638   :  { %4666 = vst.msk [vmem:[#allocation3 + $0x1f0] sm:$0xff] %vm9978_vm4, %v2901_v18  ;;  %v4747_v9 = vld [vmem:[#allocation3 + $0x78] sm:$0xff]  ;;  %v4764_v18 = vld [vmem:[#allocation3 + $0x100] sm:$0xff] }
 0x639   :  { %v4763_v50 = vld [vmem:[#allocation3 + $0xf8] sm:$0xff] }
 0x63a   :  { %5754 = vmatprep.subr.mxu0 %v4763_v50  ;;  %v4779_v46 = vld [vmem:[#allocation3 + $0x178] sm:$0xff] }
 0x63b   :  { %v4795_v6 = vld [vmem:[#allocation3 + $0x1f8] sm:$0xff]  ;;  %5755 = vmatpush3.msra.mxu0 %v4747_v9  ;;  %v9979_v9 = vmov 1  }
 0x63c   :  { %5834 = vmatprep.subr.mxu1 %v4795_v6  ;;  %v4746_v54 = vld [vmem:[#allocation3 + $0x70] sm:$0xff] }
 0x63d   :  { %5835 = vmatpush3.msra.mxu1 %v4779_v46  ;;  %v4762_v17 = vld [vmem:[#allocation3 + $0xf0] sm:$0xff]  ;;  %v9980_v46 = vmov 3  }
 0x63e   :  { %5756 = vmatprep.subr.mxu0 %v4762_v17  ;;  %v4778_v22 = vld [vmem:[#allocation3 + $0x170] sm:$0xff]  ;;  %v9981_v17 = vmov 2  }
 0x63f   :  { %v4794_v52 = vld [vmem:[#allocation3 + $0x1f0] sm:$0xff]  ;;  %5757 = vmatpush3.msra.mxu0 %v4746_v54 }
 0x640   :  { %5836 = vmatprep.subr.mxu1 %v4794_v52  ;;  %5758 = vmatprep.subr.mxu0 %v4761_v62  ;;  %v9982_v52 = vmov 0  }
 0x641   :  { %5837 = vmatpush3.msra.mxu1 %v4778_v22  ;;  %5759 = vmatpush3.msra.mxu0 %v4745_v0 }
 0x642   :  { %5838 = vmatprep.subr.mxu1 %v4793_v20  ;;  %5760 = vmatprep.subr.mxu0 %v4760_v58 }
 0x643   :  { %5839 = vmatpush3.msra.mxu1 %v4777_v31  ;;  %5761 = vmatpush3.msra.mxu0 %v4744_v24 }
 0x644   :  { %5840 = vmatprep.subr.mxu1 %v4792_v28  ;;  %5762 = vmatprep.subr.mxu0 %v4759_v1 }
 0x645   :  { %5841 = vmatpush3.msra.mxu1 %v4776_v15  ;;  %5763 = vmatpush3.msra.mxu0 %v4743_v47 }
 0x646   :  { %5842 = vmatprep.subr.mxu1 %v4791_v39  ;;  %5764 = vmatprep.subr.mxu0 %v4758_v14 }
 0x647   :  { %5843 = vmatpush3.msra.mxu1 %v4775_v16  ;;  %5765 = vmatpush3.msra.mxu0 %v4742_v4 }
 0x648   :  { %5844 = vmatprep.subr.mxu1 %v4790_v37  ;;  %5766 = vmatprep.subr.mxu0 %v4757_v48 }
 0x649   :  { %5845 = vmatpush3.msra.mxu1 %v4774_v59  ;;  %5767 = vmatpush3.msra.mxu0 %v4741_v21 }
 0x64a   :  { %5846 = vmatprep.subr.mxu1 %v4789_v41  ;;  %5768 = vmatprep.subr.mxu0 %v4756_v44 }
 0x64b   :  { %5847 = vmatpush3.msra.mxu1 %v4773_v63  ;;  %5769 = vmatpush3.msra.mxu0 %v4740_v42 }
 0x64c   :  { %5848 = vmatprep.subr.mxu1 %v4788_v12  ;;  %5770 = vmatprep.subr.mxu0 %v4755_v26 }
 0x64d   :  { %5849 = vmatpush3.msra.mxu1 %v4772_v10  ;;  %5771 = vmatpush3.msra.mxu0 %v4739_v53 }
 0x64e   :  { %5850 = vmatprep.subr.mxu1 %v4787_v7  ;;  %5772 = vmatprep.subr.mxu0 %v4754_v55 }
 0x64f   :  { %5851 = vmatpush3.msra.mxu1 %v4771_v51  ;;  %5773 = vmatpush3.msra.mxu0 %v4738_v25 }
 0x650   :  { %5852 = vmatprep.subr.mxu1 %v4786_v5  ;;  %5774 = vmatprep.subr.mxu0 %v4753_v43 }
 0x651   :  { %5853 = vmatpush3.msra.mxu1 %v4770_v23  ;;  %5775 = vmatpush3.msra.mxu0 %v4737_v19 }
 0x652   :  { %5854 = vmatprep.subr.mxu1 %v4785_v36  ;;  %5776 = vmatprep.subr.mxu0 %v4752_v45 }
 0x653   :  { %5855 = vmatpush3.msra.mxu1 %v4769_v11  ;;  %5777 = vmatpush3.msra.mxu0 %v4736_v30 }
 0x654   :  { %5856 = vmatprep.subr.mxu1 %v4784_v33  ;;  %5778 = vmatprep.subr.mxu0 %v4751_v2 }
 0x655   :  { %5857 = vmatpush3.msra.mxu1 %v4768_v38  ;;  %5779 = vmatpush3.msra.mxu0 %v4735_v32 }
 0x656   :  { %5858 = vmatprep.subr.mxu1 %v4783_v35  ;;  %5780 = vmatprep.subr.mxu0 %v4750_v27 }
 0x657   :  { %5859 = vmatpush3.msra.mxu1 %v4767_v57  ;;  %5781 = vmatpush3.msra.mxu0 %v4734_v8 }
 0x658   :  { %5860 = vmatprep.subr.mxu1 %v4782_v60  ;;  %5782 = vmatprep.subr.mxu0 %v4749_v49 }
 0x659   :  { %5861 = vmatpush3.msra.mxu1 %v4766_v34  ;;  %5783 = vmatpush3.msra.mxu0 %v4733_v13 }
 0x65a   :  { %5862 = vmatprep.subr.mxu1 %v4781_v40  ;;  %5784 = vmatprep.subr.mxu0 %v4748_v61 }
 0x65b   :  { %5863 = vmatpush3.msra.mxu1 %v4765_v29  ;;  %5785 = vmatpush3.msra.mxu0 %v4732_v56 }
 0x65c   :  { %5864 = vmatprep.subr.mxu1 %v4780_v3 }
 0x65d   :  { %5865 = vmatpush3.msra.mxu1 %v4764_v18 }
 0x681   :  { %v6052_v50 = vpop.f32.mrf.mxu0  ;;  %v6084_v21 = vpop.f32.mrf.mxu1 }
 0x682   :  { %3295 = vperm.xlu1 %6175, %v6052_v50  }
 0x683   :  { %v3032_v6 = vpop.f32.mrf.mxu0  ;;  %v3177_v44 = vpop.f32.mrf.mxu1 }
 0x684   :  { %4328 = vperm.xlu0 %6181, %v3032_v6  }
 0x686   :  { %6176 = vset.pattern.permute.xlu1 %v9979_v9 }
 0x687   :  { %3650 = vperm.xlu1 %6176, %v6052_v50  }
 0x68b   :  { %6177 = vset.pattern.permute.xlu1 %v9980_v46 }
 0x68c   :  { %4332 = vperm.xlu1 %6177, %v6052_v50  }
 0x690   :  { %6178 = vset.pattern.permute.xlu1 %v9981_v17 }
 0x691   :  { %3991 = vperm.xlu1 %6178, %v6052_v50  }
 0x695   :  { %6179 = vset.pattern.permute.xlu1 %v9982_v52  ;;  %v6055_v54 = vpop.f32.mrf.mxu0  ;;  %v6087_v12 = vpop.f32.mrf.mxu1 }
 0x696   :  { %3290 = vperm.xlu1 %6179, %v3032_v6   ;;  %4340 = vperm.xlu0 %6181, %v6055_v54  }
 0x697   :  { %v3042_v22 = vpop.f32.mrf.mxu0  ;;  %v3187_v10 = vpop.f32.mrf.mxu1 }
 0x69a   :  { %6180 = vset.pattern.permute.xlu1 %v9979_v9  ;;  %6191 = vset.pattern.permute.xlu0 %v9979_v9 }
 0x69b   :  { %3646 = vperm.xlu1 %6180, %v3032_v6  }
 0x69f   :  { %6182 = vset.pattern.permute.xlu1 %v9981_v17 }
 0x6a0   :  { %3987 = vperm.xlu1 %6182, %v3032_v6  }
 0x6a4   :  { %6183 = vset.pattern.permute.xlu1 %v9982_v52 }
 0x6a5   :  { %3305 = vperm.xlu1 %6183, %v6055_v54   ;;  %v6058_v62 = vpop.f32.mrf.mxu0  ;;  %v6090_v7 = vpop.f32.mrf.mxu1 }
 0x6a6   :  { %3666 = vperm.xlu0 %6191, %v6058_v62  }
 0x6a7   :  { %v3052_v20 = vpop.f32.mrf.mxu0  ;;  %v3197_v51 = vpop.f32.mrf.mxu1 }
 0x6a9   :  { %6184 = vset.pattern.permute.xlu1 %v9979_v9 }
 0x6aa   :  { %3658 = vperm.xlu1 %6184, %v6055_v54   ;;  %6193 = vset.pattern.permute.xlu0 %v9981_v17 }
 0x6ab   :  { %4007 = vperm.xlu0 %6193, %v6058_v62  }
 0x6ae   :  { %6185 = vset.pattern.permute.xlu1 %v9981_v17 }
 0x6af   :  { %3999 = vperm.xlu1 %6185, %v6055_v54   ;;  %6195 = vset.pattern.permute.xlu0 %v9979_v9 }
 0x6b0   :  { %3662 = vperm.xlu0 %6195, %v3052_v20  }
 0x6b3   :  { %6186 = vset.pattern.permute.xlu1 %v9982_v52 }
 0x6b4   :  { %3300 = vperm.xlu1 %6186, %v3042_v22   ;;  %6200 = vset.pattern.permute.xlu0 %v9980_v46 }
 0x6b5   :  { %v6061_v0 = vpop.f32.mrf.mxu0  ;;  %v6093_v5 = vpop.f32.mrf.mxu1 }
 0x6b6   :  { %4356 = vperm.xlu0 %6200, %v6061_v0  }
 0x6b7   :  { %v3062_v31 = vpop.f32.mrf.mxu0  ;;  %v3207_v25 = vpop.f32.mrf.mxu1 }
 0x6b8   :  { %6187 = vset.pattern.permute.xlu1 %v9979_v9 }
 0x6b9   :  { %3654 = vperm.xlu1 %6187, %v3042_v22  }
 0x6ba   :  { %6205 = vset.pattern.permute.xlu0 %v9981_v17 }
 0x6bb   :  { %4011 = vperm.xlu0 %6205, %v3062_v31  }
 0x6bd   :  { %6188 = vset.pattern.permute.xlu1 %v9980_v46 }
 0x6be   :  { %4336 = vperm.xlu1 %6188, %v3042_v22  }
 0x6bf   :  { %6207 = vset.pattern.permute.xlu0 %v9979_v9 }
 0x6c2   :  { %6189 = vset.pattern.permute.xlu1 %v9981_v17 }
 0x6c3   :  { %3995 = vperm.xlu1 %6189, %v3042_v22  }
 0x6c5   :  { %v6064_v58 = vpop.f32.mrf.mxu0  ;;  %v6096_v43 = vpop.f32.mrf.mxu1 }
 0x6c6   :  { %3682 = vperm.xlu0 %6207, %v6064_v58  }
 0x6c7   :  { %6190 = vset.pattern.permute.xlu1 %v9982_v52  ;;  %v3072_v28 = vpop.f32.mrf.mxu0  ;;  %v3217_v19 = vpop.f32.mrf.mxu1 }
 0x6c8   :  { %3315 = vperm.xlu1 %6190, %v6058_v62  }
 0x6ca   :  { %6212 = vset.pattern.permute.xlu0 %v9980_v46 }
 0x6cb   :  { %4360 = vperm.xlu0 %6212, %v3072_v28  }
 0x6cc   :  { %6192 = vset.pattern.permute.xlu1 %v9980_v46 }
 0x6cd   :  { %4348 = vperm.xlu1 %6192, %v6058_v62  }
 0x6cf   :  { %6217 = vset.pattern.permute.xlu0 %v9981_v17 }
 0x6d1   :  { %6194 = vset.pattern.permute.xlu1 %v9982_v52 }
 0x6d2   :  { %3310 = vperm.xlu1 %6194, %v3052_v20  }
 0x6d5   :  { %v8646_v24 = vpop.f32.mrf.mxu0  ;;  %v6099_v45 = vpop.f32.mrf.mxu1 }
 0x6d6   :  { %6196 = vset.pattern.permute.xlu1 %v9980_v46  ;;  %4031 = vperm.xlu0 %6217, %v8646_v24  }
 0x6d7   :  { %4344 = vperm.xlu1 %6196, %v3052_v20   ;;  %v8650_v15 = vpop.f32.mrf.mxu0  ;;  %v3227_v30 = vpop.f32.mrf.mxu1 }
 0x6da   :  { %6219 = vset.pattern.permute.xlu0 %v9979_v9 }
 0x6db   :  { %6197 = vset.pattern.permute.xlu1 %v9981_v17  ;;  %3686 = vperm.xlu0 %6219, %v8650_v15  }
 0x6dc   :  { %4003 = vperm.xlu1 %6197, %v3052_v20  }
 0x6df   :  { %6221 = vset.pattern.permute.xlu0 %v9981_v17 }
 0x6e0   :  { %6198 = vset.pattern.permute.xlu1 %v9982_v52  ;;  %4027 = vperm.xlu0 %6221, %v8650_v15  }
 0x6e1   :  { %3325 = vperm.xlu1 %6198, %v6061_v0  }
 0x6e4   :  { %6224 = vset.pattern.permute.xlu0 %v9980_v46 }
 0x6e5   :  { %6199 = vset.pattern.permute.xlu1 %v9979_v9  ;;  %v8660_v1 = vpop.f32.mrf.mxu0  ;;  %v6102_v35 = vpop.f32.mrf.mxu1 }
 0x6e6   :  { %3674 = vperm.xlu1 %6199, %v6061_v0   ;;  %4380 = vperm.xlu0 %6224, %v8660_v1  }
 0x6e7   :  { %v8663_v39 = vpop.f32.mrf.mxu0  ;;  %v3237_v27 = vpop.f32.mrf.mxu1 }
 0x6ea   :  { %6201 = vset.pattern.permute.xlu1 %v9981_v17  ;;  %4376 = vperm.xlu0 %6224, %v8663_v39  }
 0x6eb   :  { %4015 = vperm.xlu1 %6201, %v6061_v0  }
 0x6ee   :  { %6230 = vset.pattern.permute.xlu0 %v9979_v9 }
 0x6ef   :  { %6202 = vset.pattern.permute.xlu1 %v9982_v52 }
 0x6f0   :  { %3320 = vperm.xlu1 %6202, %v3062_v31  }
 0x6f4   :  { %6203 = vset.pattern.permute.xlu1 %v9979_v9  ;;  %v8670_v47 = vpop.f32.mrf.mxu0  ;;  %v6105_v60 = vpop.f32.mrf.mxu1 }
 0x6f5   :  { %3670 = vperm.xlu1 %6203, %v3062_v31   ;;  %3706 = vperm.xlu0 %6230, %v8670_v47  }
 0x6f6   :  { %v8678_v14 = vpop.f32.mrf.mxu0  ;;  %v3247_v49 = vpop.f32.mrf.mxu1 }
 0x6f9   :  { %6204 = vset.pattern.permute.xlu1 %v9980_v46  ;;  %6232 = vset.pattern.permute.xlu0 %v9981_v17 }
 0x6fa   :  { %4352 = vperm.xlu1 %6204, %v3062_v31   ;;  %4047 = vperm.xlu0 %6232, %v8670_v47  }
 0x6fd   :  { %v8676_v16 = vpop.permute.xlu1 %3295 }
 0x6fe   :  { %6206 = vset.pattern.permute.xlu1 %v9982_v52  ;;  %6234 = vset.pattern.permute.xlu0 %v9979_v9 }
 0x6ff   :  { %3335 = vperm.xlu1 %6206, %v6064_v58   ;;  %3702 = vperm.xlu0 %6234, %v8678_v14   ;;  %v8730_v33 = vpop.permute.xlu0 %4328 }
 0x702   :  { %v8683_v37 = vpop.permute.xlu1 %3650 }
 0x703   :  { %6208 = vset.pattern.permute.xlu1 %v9980_v46 }
 0x704   :  { %4364 = vperm.xlu1 %6208, %v6064_v58  }
 0x707   :  { %v8686_v4 = vpop.permute.xlu1 %4332 }
 0x708   :  { %6209 = vset.pattern.permute.xlu1 %v9981_v17 }
 0x709   :  { %4023 = vperm.xlu1 %6209, %v6064_v58  }
 0x70c   :  { %v8689_v59 = vpop.permute.xlu1 %3991 }
 0x70d   :  { %6210 = vset.pattern.permute.xlu1 %v9982_v52 }
 0x70e   :  { %3330 = vperm.xlu1 %6210, %v3072_v28  }
 0x711   :  { %v8692_v48 = vpop.permute.xlu1 %3290  ;;  %v8736_v2 = vpop.permute.xlu0 %4340 }
 0x712   :  { %6211 = vset.pattern.permute.xlu1 %v9979_v9 }
 0x713   :  { %3678 = vperm.xlu1 %6211, %v3072_v28  }
 0x716   :  { %v8695_v41 = vpop.permute.xlu1 %3646 }
 0x717   :  { %6213 = vset.pattern.permute.xlu1 %v9981_v17 }
 0x718   :  { %4019 = vperm.xlu1 %6213, %v3072_v28  }
 0x71b   :  { %v8698_v63 = vpop.permute.xlu1 %3987 }
 0x71c   :  { %6214 = vset.pattern.permute.xlu1 %v9982_v52 }
 0x71d   :  { %3345 = vperm.xlu1 %6214, %v8646_v24   ;;  %3256 = vxpose.xlu0.b32.start [1/16] (narrow) %v3177_v44, 8 }
 0x720   :  { %v8702_v42 = vpop.permute.xlu1 %3305 }
 0x721   :  { %6215 = vset.pattern.permute.xlu1 %v9979_v9  ;;  %3257 = vxpose.xlu0.b32.cont [2/16] (narrow) %v6084_v21, 8  ;;  %v8740_v32 = vpop.permute.xlu0 %3666  ;;  %v9984_v21 = vld [vmem:[#allocation7_spill] sm:$0xff] }
 0x722   :  { %3690 = vperm.xlu1 %6215, %v8646_v24   ;;  %v9985_v44 = vsub.s32 0, %v9984_v21 }
 0x725   :  { %v8706_v26 = vpop.permute.xlu1 %3658  ;;  %3258 = vxpose.xlu0.b32.cont [3/16] (narrow) %v3187_v10, 8 }
 0x726   :  { %6216 = vset.pattern.permute.xlu1 %v9980_v46  ;;  %v8746_v8 = vpop.permute.xlu0 %4007 }
 0x727   :  { %4372 = vperm.xlu1 %6216, %v8646_v24  }
 0x729   :  { %3259 = vxpose.xlu0.b32.cont [4/16] (narrow) %v6087_v12, 8  ;;  %v9986_v12 = vsub.s32 1, %v9984_v21 }
 0x72a   :  { %v8710_v53 = vpop.permute.xlu1 %3999 }
 0x72b   :  { %6218 = vset.pattern.permute.xlu1 %v9982_v52  ;;  %v8752_v40 = vpop.permute.xlu0 %3662 }
 0x72c   :  { %3340 = vperm.xlu1 %6218, %v8650_v15  }
 0x72d   :  { %3260 = vxpose.xlu0.b32.cont [5/16] (narrow) %v3197_v51, 8 }
 0x72f   :  { %v8714_v55 = vpop.permute.xlu1 %3300 }
 0x730   :  { %6220 = vset.pattern.permute.xlu1 %v9980_v46 }
 0x731   :  { %4368 = vperm.xlu1 %6220, %v8650_v15   ;;  %3261 = vxpose.xlu0.b32.cont [6/16] (narrow) %v6090_v7, 8  ;;  %v8758_v29 = vpop.permute.xlu0 %4356  ;;  %v9987_v7 = vsub.s32 3, %v9984_v21 }
 0x734   :  { %v8718_v23 = vpop.permute.xlu1 %3654 }
 0x735   :  { %6222 = vset.pattern.permute.xlu1 %v9982_v52  ;;  %3262 = vxpose.xlu0.b32.cont [7/16] (narrow) %v3207_v25, 8 }
 0x736   :  { %3355 = vperm.xlu1 %6222, %v8660_v1   ;;  %v8764_v3 = vpop.permute.xlu0 %4011 }
 0x739   :  { %v8722_v36 = vpop.permute.xlu1 %4336  ;;  %3263 = vxpose.xlu0.b32.cont [8/16] (narrow) %v6093_v5, 8  ;;  %v9988_v5 = vsub.s32 2, %v9984_v21 }
 0x73a   :  { %6223 = vset.pattern.permute.xlu1 %v9979_v9 }
 0x73b   :  { %3698 = vperm.xlu1 %6223, %v8660_v1  }
 0x73d   :  { %3264 = vxpose.xlu0.b32.cont [9/16] (narrow) %v3217_v19, 8 }
 0x73e   :  { %v8726_v11 = vpop.permute.xlu1 %3995 }
 0x73f   :  { %6225 = vset.pattern.permute.xlu1 %v9981_v17 }
 0x740   :  { %4039 = vperm.xlu1 %6225, %v8660_v1  }
 0x741   :  { %3265 = vxpose.xlu0.b32.cont [10/16] (narrow) %v6096_v43, 8  ;;  %v8770_v18 = vpop.permute.xlu0 %3682 }
 0x743   :  { %v8733_v38 = vpop.permute.xlu1 %3315 }
 0x744   :  { %6226 = vset.pattern.permute.xlu1 %v9982_v52 }
 0x745   :  { %3350 = vperm.xlu1 %6226, %v8663_v39   ;;  %3266 = vxpose.xlu0.b32.cont [11/16] (narrow) %v3227_v30, 8 }
 0x746   :  { %v8776_v6 = vpop.permute.xlu0 %4360 }
 0x748   :  { %v8742_v57 = vpop.permute.xlu1 %4348 }
 0x749   :  { %6227 = vset.pattern.permute.xlu1 %v9979_v9  ;;  %3267 = vxpose.xlu0.b32.cont [12/16] (narrow) %v6099_v45, 8 }
 0x74a   :  { %3694 = vperm.xlu1 %6227, %v8663_v39  }
 0x74d   :  { %3268 = vxpose.xlu0.b32.cont [13/16] (narrow) %v3237_v27, 8  ;;  %v8748_v34 = vpop.permute.xlu1 %3310 }
 0x74e   :  { %6228 = vset.pattern.permute.xlu1 %v9981_v17 }
 0x74f   :  { %4035 = vperm.xlu1 %6228, %v8663_v39  }
 0x751   :  { %3269 = vxpose.xlu0.b32.cont [14/16] (narrow) %v6102_v35, 8  ;;  %v8778_v9 = vpop.permute.xlu0 %4031 }
 0x752   :  { %v8754_v13 = vpop.permute.xlu1 %4344 }
 0x753   :  { %6229 = vset.pattern.permute.xlu1 %v9982_v52 }
 0x754   :  { %3365 = vperm.xlu1 %6229, %v8670_v47  }
 0x755   :  { %3270 = vxpose.xlu0.b32.cont [15/16] (narrow) %v3247_v49, 8 }
 0x756   :  { %v8782_v54 = vpop.permute.xlu0 %3686 }
 0x757   :  { %v8760_v61 = vpop.permute.xlu1 %4003 }
 0x758   :  { %6231 = vset.pattern.permute.xlu1 %v9980_v46 }
 0x759   :  { %4388 = vperm.xlu1 %6231, %v8670_v47   ;;  %3271 = vxpose.xlu0.b32.end [16/16] (narrow) %v6105_v60, 8 }
 0x75b   :  { %v8786_v62 = vpop.permute.xlu0 %4027 }
 0x75c   :  { %v8767_v56 = vpop.permute.xlu1 %3325 }
 0x75d   :  { %6233 = vset.pattern.permute.xlu1 %v9982_v52 }
 0x75e   :  { %3360 = vperm.xlu1 %6233, %v8678_v14  }
 0x761   :  { %v8774_v50 = vpop.permute.xlu1 %3674  ;;  %v8790_v0 = vpop.permute.xlu0 %4380 }
 0x762   :  { %6235 = vset.pattern.permute.xlu1 %v9980_v46 }
 0x763   :  { %4384 = vperm.xlu1 %6235, %v8678_v14  }
 0x765   :  { %v8795_v31 = vpop.permute.xlu0 %4376 }
 0x766   :  { %v8780_v52 = vpop.permute.xlu1 %4015 }
 0x767   :  { %6236 = vset.pattern.permute.xlu1 %v9981_v17 }
 0x768   :  { %4043 = vperm.xlu1 %6236, %v8678_v14  }
 0x76b   :  { %v8784_v22 = vpop.permute.xlu1 %3320 }
 0x770   :  { %v8788_v20 = vpop.permute.xlu1 %3670  ;;  %v8799_v28 = vpop.permute.xlu0 %3706 }
 0x775   :  { %v8792_v17 = vpop.permute.xlu1 %4352  ;;  %v8803_v15 = vpop.permute.xlu0 %4047 }
 0x77a   :  { %v8797_v58 = vpop.permute.xlu1 %3335  ;;  %v8807_v39 = vpop.permute.xlu0 %3702 }
 0x77b   :  { %9983 = vst [vmem:[#allocation31_spill] sm:$0xff] %v8807_v39 }
 0x77f   :  { %v8801_v24 = vpop.permute.xlu1 %4364 }
 0x782   :  { %6237 = vset.pattern.permute.xlu0 %v9980_v46 }
 0x784   :  { %v8805_v1 = vpop.permute.xlu1 %4023 }
 0x789   :  { %v8809_v47 = vpop.permute.xlu1 %3330 }
 0x78e   :  { %v8837_v60 = vpop.permute.xlu1 %3678 }
 0x799   :  { %v3272_v14 = vpop.trf.xlu0 }
 0x79a   :  { %v8813_v46 = vrot.slane %v3272_v14, %v9985_v44  ;;  %v8817_v10 = vrot.slane %v3272_v14, %v9986_v12  ;;  %v8821_v51 = vrot.slane %v3272_v14, %v9987_v7  ;;  %v8825_v25 = vrot.slane %v3272_v14, %v9988_v5  ;;  %v9990_v12 = vld [vmem:[#allocation8_spill] sm:$0xff] }
 0x79b   :  { %vm9991_vm13 = vcmp.gt.f32.partialorder %v9990_v12, 0.0 }
 0x79c   :  { %v3373_v43 = vadd.f32 %v8813_v46, %v8676_v16  ;;  %v3372_v19 = vadd.f32 %v8813_v46, %v8692_v48  ;;  %v4395_v45 = vadd.f32 %v8821_v51, %v8730_v33  ;;  %v3713_v30 = vadd.f32 %v8817_v10, %v8695_v41  ;;  %vm9992_vm4 = vmmov %vm9991_vm13 }
 0x79d   :  { %v3714_v27 = vadd.f32 %v8817_v10, %v8683_v37  ;;  %v4054_v48 = vadd.f32 %v8825_v25, %v8698_v63  ;;  %v4055_v39 = vadd.f32 %v8825_v25, %v8689_v59 }
 0x79e   :  { %vm3389_vm1 = vcmp.gt.f32.partialorder %v3373_v43, 0.0  ;;  %v3405_v35 = vmul.f32 0.2, %v3373_v43  ;;  %vm3388_vm6 = vcmp.gt.f32.partialorder %v3372_v19, 0.0  ;;  %v3404_v49 = vmul.f32 0.2, %v3372_v19 }
 0x79f   :  { %vm4411_vm7 = vcmp.gt.f32.partialorder %v4395_v45, 0.0  ;;  %v4427_v16 = vmul.f32 0.2, %v4395_v45  ;;  %vm3729_vm12 = vcmp.gt.f32.partialorder %v3713_v30, 0.0  ;;  %v3745_v33 = vmul.f32 0.2, %v3713_v30 }
 0x7a0   :  { %v3421_v14 = vsel %vm3389_vm1, %v3373_v43, %v3405_v35  ;;  %v3420_v44 = vsel %vm3388_vm6, %v3372_v19, %v3404_v49  ;;  %v3746_v5 = vmul.f32 0.2, %v3714_v27  ;;  %vm3730_vm3 = vcmp.gt.f32.partialorder %v3714_v27, 0.0  ;;  %v8855_v19 = vpop.permute.xlu1 %4019  ;;  %vm9993_vm1 = vmmov %vm9992_vm4 }
 0x7a1   :  { %v8843_v41 = vsel %vm49_vm9, %v3421_v14, -9e+15  ;;  %v8848_v37 = vsel %vm9991_vm13, %v3420_v44, -9e+15  ;;  %v4443_v7 = vsel %vm4411_vm7, %v4395_v45, %v4427_v16  ;;  %v3761_v63 = vsel %vm3729_vm12, %v3713_v30, %v3745_v33  ;;  %vm9994_vm12 = vmmov %vm9993_vm1 }
 0x7a2   :  { %3454 = vmax.xlane.f32.xlu0 %v8843_v41  ;;  %3452 = vmax.xlane.f32.xlu1 %v8848_v37  ;;  %v4086_v43 = vmul.f32 0.2, %v4054_v48  ;;  %v4396_v35 = vadd.f32 %v8821_v51, %v8686_v4  ;;  %vm4070_vm2 = vcmp.gt.f32.partialorder %v4054_v48, 0.0  ;;  %v8859_v49 = vsel %vm9992_vm4, %v4443_v7, -9e+15 }
 0x7a3   :  { %v8864_v59 = vsel %vm9993_vm1, %v3761_v63, -9e+15  ;;  %v3762_v45 = vsel %vm3730_vm3, %v3714_v27, %v3746_v5  ;;  %v4087_v30 = vmul.f32 0.2, %v4055_v39  ;;  %v3716_v16 = vadd.f32 %v8817_v10, %v8706_v26 }
 0x7a4   :  { %v4102_v4 = vsel %vm4070_vm2, %v4054_v48, %v4086_v43  ;;  %vm4071_vm6 = vcmp.gt.f32.partialorder %v4055_v39, 0.0  ;;  %v4428_v14 = vmul.f32 0.2, %v4396_v35  ;;  %v3375_v33 = vadd.f32 %v8813_v46, %v8702_v42  ;;  %v8882_v5 = vpop.permute.xlu1 %3345 }
 0x7a5   :  { %vm4412_vm7 = vcmp.gt.f32.partialorder %v4396_v35, 0.0  ;;  %v8873_v44 = vsel %vm49_vm9, %v3762_v45, -9e+15  ;;  %v8878_v27 = vsel %vm9994_vm12, %v4102_v4, -9e+15  ;;  %v4103_v26 = vsel %vm4071_vm6, %v4055_v39, %v4087_v30 }
 0x7a6   :  { %4475 = vmax.xlane.f32.xlu0 %v8859_v49  ;;  %3793 = vmax.xlane.f32.xlu1 %v8864_v59  ;;  %v3748_v7 = vmul.f32 0.2, %v3716_v16  ;;  %v4057_v48 = vadd.f32 %v8825_v25, %v8710_v53  ;;  %v4444_v42 = vsel %vm4412_vm7, %v4396_v35, %v4428_v14  ;;  %vm3732_vm13 = vcmp.gt.f32.partialorder %v3716_v16, 0.0 }
 0x7a7   :  { %v3407_v63 = vmul.f32 0.2, %v3375_v33  ;;  %v4398_v43 = vadd.f32 %v8821_v51, %v8736_v2  ;;  %vm3391_vm3 = vcmp.gt.f32.partialorder %v3375_v33, 0.0  ;;  %v8889_v12 = vsel %vm49_vm9, %v4103_v26, -9e+15  ;;  %v9995_v26 = vld [vmem:[#allocation10_spill] sm:$0xff] }
 0x7a8   :  { %v8894_v53 = vsel %vm49_vm9, %v4444_v42, -9e+15  ;;  %v3764_v39 = vsel %vm3732_vm13, %v3716_v16, %v3748_v7  ;;  %v4089_v45 = vmul.f32 0.2, %v4057_v48  ;;  %v4397_v35 = vadd.f32 %v8821_v51, %v8722_v36  ;;  %v8901_v14 = vpop.permute.xlu1 %3690 }
 0x7a9   :  { %v3423_v30 = vsel %vm3391_vm3, %v3375_v33, %v3407_v63  ;;  %vm4073_vm2 = vcmp.gt.f32.partialorder %v4057_v48, 0.0  ;;  %v4430_v2 = vmul.f32 0.2, %v4398_v43  ;;  %v3374_v4 = vadd.f32 %v8813_v46, %v8714_v55 }
 0x7aa   :  { %3795 = vmax.xlane.f32.xlu0 %v8873_v44  ;;  %4134 = vmax.xlane.f32.xlu1 %v8878_v27  ;;  %vm4414_vm4 = vcmp.gt.f32.partialorder %v4398_v43, 0.0  ;;  %vm9996_vm1 = vcmp.gt.f32.partialorder %v9995_v26, 0.0  ;;  %v4105_v16 = vsel %vm4073_vm2, %v4057_v48, %v4089_v45  ;;  %v4429_v33 = vmul.f32 0.2, %v4397_v35 }
 0x7ab   :  { %v8905_v21 = vsel %vm9996_vm1, %v3764_v39, -9e+15  ;;  %vm9997_vm9 = vmmov %vm9996_vm1  ;;  %v3718_v7 = vadd.f32 %v8817_v10, %v8740_v32  ;;  %v4446_v55 = vsel %vm4414_vm4, %v4398_v43, %v4430_v2  ;;  %vm4413_vm6 = vcmp.gt.f32.partialorder %v4397_v35, 0.0 }
 0x7ac   :  { %v8910_v36 = vsel %vm9997_vm9, %v3423_v30, -9e+15  ;;  %v3406_v42 = vmul.f32 0.2, %v3374_v4  ;;  %v3715_v63 = vadd.f32 %v8817_v10, %v8718_v23  ;;  %vm3390_vm7 = vcmp.gt.f32.partialorder %v3374_v4, 0.0  ;;  %vm9998_vm12 = vmmov %vm9996_vm1  ;;  %v8928_v30 = vpop.permute.xlu1 %4372 }
 0x7ad   :  { %v8919_v39 = vsel %vm9998_vm12, %v4105_v16, -9e+15  ;;  %vm10000_vm13 = vmmov %vm9996_vm1  ;;  %v4445_v32 = vsel %vm4413_vm6, %v4397_v35, %v4429_v33  ;;  %v3750_v45 = vmul.f32 0.2, %v3718_v7  ;;  %v4059_v43 = vadd.f32 %v8825_v25, %v8746_v8 }
 0x7ae   :  { %4136 = vmax.xlane.f32.xlu0 %v8889_v12  ;;  %4477 = vmax.xlane.f32.xlu1 %v8894_v53  ;;  %9999 = vst [vmem:[#allocation33_spill] sm:$0xff] %v8919_v39  ;;  %v8924_v48 = vsel %vm10000_vm13, %v4446_v55, -9e+15  ;;  %v3422_v23 = vsel %vm3390_vm7, %v3374_v4, %v3406_v42  ;;  %vm3734_vm3 = vcmp.gt.f32.partialorder %v3718_v7, 0.0  ;;  %v3747_v2 = vmul.f32 0.2, %v3715_v63 }
 0x7af   :  { %v4056_v16 = vadd.f32 %v8825_v25, %v8726_v11  ;;  %vm3731_vm2 = vcmp.gt.f32.partialorder %v3715_v63, 0.0  ;;  %v8935_v26 = vsel %vm50_vm15, %v4445_v32, -9e+15  ;;  %v8940_v8 = vsel %vm50_vm15, %v3422_v23, -9e+15 }
 0x7b0   :  { %10002 = vst [vmem:[#allocation34_spill] sm:$0xff] %v8935_v26  ;;  %v3766_v35 = vsel %vm3734_vm3, %v3718_v7, %v3750_v45  ;;  %v4091_v33 = vmul.f32 0.2, %v4059_v43  ;;  %v4399_v4 = vadd.f32 %v8821_v51, %v8754_v13  ;;  %v3763_v55 = vsel %vm3731_vm2, %v3715_v63, %v3747_v2  ;;  %v8947_v32 = vpop.permute.xlu1 %3340 }
 0x7b1   :  { %vm4075_vm4 = vcmp.gt.f32.partialorder %v4059_v43, 0.0  ;;  %v4088_v11 = vmul.f32 0.2, %v4056_v16  ;;  %v3377_v42 = vadd.f32 %v8813_v46, %v8733_v38  ;;  %vm4072_vm1 = vcmp.gt.f32.partialorder %v4056_v16, 0.0 }
 0x7b2   :  { %3799 = vmax.xlane.f32.xlu0 %v8905_v21  ;;  %3458 = vmax.xlane.f32.xlu1 %v8910_v36  ;;  %v8951_v23 = vsel %vm53_vm8, %v3766_v35, -9e+15  ;;  %v8956_v13 = vsel %vm50_vm15, %v3763_v55, -9e+15  ;;  %v4107_v7 = vsel %vm4075_vm4, %v4059_v43, %v4091_v33  ;;  %v4431_v63 = vmul.f32 0.2, %v4399_v4 }
 0x7b3   :  { %10004 = vst [vmem:[#allocation36_spill] sm:$0xff] %v8951_v23  ;;  %v3720_v45 = vadd.f32 %v8817_v10, %v8774_v50  ;;  %v4104_v38 = vsel %vm4072_vm1, %v4056_v16, %v4088_v11  ;;  %vm4415_vm9 = vcmp.gt.f32.partialorder %v4399_v4, 0.0  ;;  %v3409_v2 = vmul.f32 0.2, %v3377_v42 }
 0x7b4   :  { %v4400_v35 = vadd.f32 %v8821_v51, %v8742_v57  ;;  %vm3393_vm6 = vcmp.gt.f32.partialorder %v3377_v42, 0.0  ;;  %v8970_v43 = vsel %vm50_vm15, %v4104_v38, -9e+15  ;;  %v4447_v50 = vsel %vm4415_vm9, %v4399_v4, %v4431_v63  ;;  %v8974_v55 = vpop.permute.xlu1 %4368 }
 0x7b5   :  { %v3752_v33 = vmul.f32 0.2, %v3720_v45  ;;  %v4061_v16 = vadd.f32 %v8825_v25, %v8780_v52  ;;  %v3425_v57 = vsel %vm3393_vm6, %v3377_v42, %v3409_v2  ;;  %vm3736_vm7 = vcmp.gt.f32.partialorder %v3720_v45, 0.0 }
 0x7b6   :  { %4140 = vmax.xlane.f32.xlu0 %v8919_v39  ;;  %4481 = vmax.xlane.f32.xlu1 %v8924_v48  ;;  %v4432_v11 = vmul.f32 0.2, %v4400_v35  ;;  %vm4416_vm12 = vcmp.gt.f32.partialorder %v4400_v35, 0.0  ;;  %v8986_v52 = vsel %vm53_vm8, %v3425_v57, -9e+15  ;;  %v4401_v42 = vadd.f32 %v8821_v51, %v8792_v17 }
 0x7b7   :  { %v3768_v4 = vsel %vm3736_vm7, %v3720_v45, %v3752_v33  ;;  %v4093_v63 = vmul.f32 0.2, %v4061_v16  ;;  %vm4077_vm15 = vcmp.gt.f32.partialorder %v4061_v16, 0.0  ;;  %v3717_v2 = vadd.f32 %v8817_v10, %v8752_v40 }
 0x7b8   :  { %v4448_v38 = vsel %vm4416_vm12, %v4400_v35, %v4432_v11  ;;  %v4433_v35 = vmul.f32 0.2, %v4401_v42  ;;  %v3722_v33 = vadd.f32 %v8817_v10, %v8770_v18  ;;  %vm4417_vm4 = vcmp.gt.f32.partialorder %v4401_v42, 0.0 }
 0x7b9   :  { %v9002_v17 = vsel %vm53_vm8, %v4448_v38, -9e+15  ;;  %v4109_v45 = vsel %vm4077_vm15, %v4061_v16, %v4093_v63  ;;  %v3749_v11 = vmul.f32 0.2, %v3717_v2  ;;  %vm3733_vm1 = vcmp.gt.f32.partialorder %v3717_v2, 0.0 }
 0x7ba   :  { %4479 = vmax.xlane.f32.xlu0 %v8935_v26  ;;  %3456 = vmax.xlane.f32.xlu1 %v8940_v8  ;;  %v4449_v18 = vsel %vm4417_vm4, %v4401_v42, %v4433_v35  ;;  %v3754_v16 = vmul.f32 0.2, %v3722_v33  ;;  %vm3738_vm6 = vcmp.gt.f32.partialorder %v3722_v33, 0.0 }
 0x7bc   :  { %v3770_v42 = vsel %vm3738_vm6, %v3722_v33, %v3754_v16  ;;  %v3383_v16 = vadd.f32 %v8813_v46, %v8882_v5 }
 0x7be   :  { %3803 = vmax.xlane.f32.xlu0 %v8951_v23  ;;  %3797 = vmax.xlane.f32.xlu1 %v8956_v13  ;;  %v8965_v23 = vsel %vm53_vm8, %v4107_v7, -9e+15  ;;  %v3376_v7 = vadd.f32 %v8813_v46, %v8748_v34 }
 0x7bf   :  { %10005 = vst [vmem:[#allocation37_spill] sm:$0xff] %v8965_v23 }
 0x7c0   :  { %v3408_v34 = vmul.f32 0.2, %v3376_v7  ;;  %vm3392_vm3 = vcmp.gt.f32.partialorder %v3376_v7, 0.0 }
 0x7c2   :  { %4144 = vmax.xlane.f32.xlu0 %v8965_v23  ;;  %4138 = vmax.xlane.f32.xlu1 %v8970_v43  ;;  %v10006_v23 = vld [vmem:[#allocation13_spill] sm:$0xff]  ;;  %v3424_v40 = vsel %vm3392_vm3, %v3376_v7, %v3408_v34  ;;  %v4063_v7 = vadd.f32 %v8825_v25, %v8805_v1  ;;  %v3379_v34 = vadd.f32 %v8813_v46, %v8767_v56 }
 0x7c3   :  { %vm10007_vm13 = vcmp.gt.f32.partialorder %v10006_v23, 0.0  ;;  %v3724_v23 = vadd.f32 %v8817_v10, %v8901_v14 }
 0x7c4   :  { %v8981_v39 = vsel %vm10007_vm13, %v4447_v50, -9e+15  ;;  %v8993_v50 = vpop.permute.xlu1 %3355  ;;  %vm10014_vm8 = vmmov %vm10007_vm13  ;;  %v4095_v35 = vmul.f32 0.2, %v4063_v7  ;;  %vm4079_vm15 = vcmp.gt.f32.partialorder %v4063_v7, 0.0  ;;  %vm3395_vm3 = vcmp.gt.f32.partialorder %v3379_v34, 0.0 }
 0x7c5   :  { %10008 = vst [vmem:[#allocation39_spill] sm:$0xff] %v8981_v39  ;;  %v9016_v26 = vsel %vm10014_vm8, %v3424_v40, -9e+15  ;;  %vm10018_vm13 = vmmov %vm10014_vm8  ;;  %v3411_v56 = vmul.f32 0.2, %v3379_v34 }
 0x7c6   :  { %4483 = vmax.xlane.f32.xlu0 %v8981_v39  ;;  %3462 = vmax.xlane.f32.xlu1 %v8986_v52  ;;  %v10009_v39 = vld [vmem:[#allocation14_spill] sm:$0xff]  ;;  %v4111_v33 = vsel %vm4079_vm15, %v4063_v7, %v4095_v35 }
 0x7c7   :  { %vm10010_vm2 = vcmp.gt.f32.partialorder %v10009_v39, 0.0 }
 0x7c8   :  { %v8997_v57 = vsel %vm10010_vm2, %v3768_v4, -9e+15  ;;  %v4058_v4 = vadd.f32 %v8825_v25, %v8760_v61  ;;  %vm10012_vm9 = vmmov %vm10010_vm2  ;;  %v9020_v63 = vpop.permute.xlu1 %3698  ;;  %v3765_v61 = vsel %vm3733_vm1, %v3717_v2, %v3749_v11  ;;  %v4403_v2 = vadd.f32 %v8821_v51, %v8776_v6 }
 0x7c9   :  { %10011 = vst [vmem:[#allocation42_spill] sm:$0xff] %v8997_v57  ;;  %v9032_v1 = vsel %vm10018_vm13, %v3765_v61, -9e+15  ;;  %v9043_v61 = vsel %vm57_vm11, %v3770_v42, -9e+15  ;;  %vm10021_vm2 = vmmov %vm10014_vm8  ;;  %v3378_v42 = vadd.f32 %v8813_v46, %v8784_v22  ;;  %vm3399_vm8 = vcmp.gt.f32.partialorder %v3383_v16, 0.0 }
 0x7ca   :  { %3807 = vmax.xlane.f32.xlu0 %v8997_v57  ;;  %4485 = vmax.xlane.f32.xlu1 %v9002_v17  ;;  %v9011_v57 = vsel %vm10012_vm9, %v4109_v45, -9e+15  ;;  %v4090_v38 = vmul.f32 0.2, %v4058_v4  ;;  %vm4074_vm7 = vcmp.gt.f32.partialorder %v4058_v4, 0.0  ;;  %v10015_v45 = vld [vmem:[#allocation17_spill] sm:$0xff] }
 0x7cb   :  { %10013 = vst [vmem:[#allocation43_spill] sm:$0xff] %v9011_v57  ;;  %vm10016_vm12 = vcmp.gt.f32.partialorder %v10015_v45, 0.0  ;;  %10020 = vst [vmem:[#allocation44_spill] sm:$0xff] %v9043_v61  ;;  %vm4419_vm4 = vcmp.gt.f32.partialorder %v4403_v2, 0.0  ;;  %vm3394_vm6 = vcmp.gt.f32.partialorder %v3378_v42, 0.0  ;;  %vm10028_vm15 = vcmp.gt.f32.partialorder %v10015_v45, 0.0 }
 0x7cc   :  { %v9027_v40 = vsel %vm10016_vm12, %v4449_v18, -9e+15  ;;  %v4106_v11 = vsel %vm4074_vm7, %v4058_v4, %v4090_v38  ;;  %v4402_v18 = vadd.f32 %v8821_v51, %v8758_v29  ;;  %v4435_v4 = vmul.f32 0.2, %v4403_v2  ;;  %vm10025_vm7 = vmmov %vm10012_vm9 }
 0x7cd   :  { %10017 = vst [vmem:[#allocation40_spill] sm:$0xff] %v9027_v40  ;;  %v9048_v6 = vsel %vm10021_vm2, %v4106_v11, -9e+15  ;;  %v3427_v29 = vsel %vm3395_vm3, %v3379_v34, %v3411_v56  ;;  %v3415_v34 = vmul.f32 0.2, %v3383_v16  ;;  %v3719_v56 = vadd.f32 %v8817_v10, %v8788_v20 }
 0x7ce   :  { %4148 = vmax.xlane.f32.xlu0 %v9011_v57  ;;  %3460 = vmax.xlane.f32.xlu1 %v9016_v26  ;;  %v9039_v57 = vpop.permute.xlu1 %4039  ;;  %v4434_v38 = vmul.f32 0.2, %v4402_v18  ;;  %vm4418_vm1 = vcmp.gt.f32.partialorder %v4402_v18, 0.0  ;;  %v9064_v5 = vsel %vm10012_vm9, %v3427_v29, -9e+15  ;;  %v4451_v7 = vsel %vm4419_vm4, %v4403_v2, %v4435_v4  ;;  %vm10030_vm4 = vmmov %vm10028_vm15 }
 0x7cf   :  { %v3410_v11 = vmul.f32 0.2, %v3378_v42  ;;  %v3431_v4 = vsel %vm3399_vm8, %v3383_v16, %v3415_v34  ;;  %vm3740_vm12 = vcmp.gt.f32.partialorder %v3724_v23, 0.0  ;;  %v3751_v20 = vmul.f32 0.2, %v3719_v56  ;;  %vm10032_vm8 = vmmov %vm10030_vm4 }
 0x7d0   :  { %v4450_v22 = vsel %vm4418_vm1, %v4402_v18, %v4434_v38  ;;  %v4065_v18 = vadd.f32 %v8825_v25, %v8778_v9  ;;  %v4060_v38 = vadd.f32 %v8825_v25, %v8764_v3  ;;  %vm3735_vm13 = vcmp.gt.f32.partialorder %v3719_v56, 0.0 }
 0x7d1   :  { %v9078_v2 = vsel %vm10025_vm7, %v4450_v22, -9e+15  ;;  %v3426_v29 = vsel %vm3394_vm6, %v3378_v42, %v3410_v11  ;;  %v9089_v39 = vsel %vm59_vm10, %v3431_v4, -9e+15  ;;  %v4405_v16 = vadd.f32 %v8821_v51, %v8974_v55 }
 0x7d2   :  { %4487 = vmax.xlane.f32.xlu0 %v9027_v40  ;;  %3801 = vmax.xlane.f32.xlu1 %v9032_v1  ;;  %v9066_v35 = vpop.permute.xlu1 %3350  ;;  %10027 = vst [vmem:[#allocation18_spill] sm:$0xff] %v9089_v39  ;;  %v9096_v9 = vsel %vm10028_vm15, %v3426_v29, -9e+15  ;;  %v4097_v34 = vmul.f32 0.2, %v4065_v18  ;;  %v3767_v3 = vsel %vm3735_vm13, %v3719_v56, %v3751_v20  ;;  %vm4081_vm3 = vcmp.gt.f32.partialorder %v4065_v18, 0.0 }
 0x7d3   :  { %v4092_v22 = vmul.f32 0.2, %v4060_v38  ;;  %v3381_v11 = vadd.f32 %v8813_v46, %v8797_v58  ;;  %vm4076_vm2 = vcmp.gt.f32.partialorder %v4060_v38, 0.0  ;;  %v4437_v4 = vmul.f32 0.2, %v4405_v16 }
 0x7d4   :  { %v3385_v29 = vadd.f32 %v8813_v46, %v8993_v50  ;;  %vm4421_vm1 = vcmp.gt.f32.partialorder %v4405_v16, 0.0  ;;  %v4067_v45 = vadd.f32 %v8825_v25, %v9039_v57 }
 0x7d5   :  { %v4108_v58 = vsel %vm4076_vm2, %v4060_v38, %v4092_v22  ;;  %v3413_v20 = vmul.f32 0.2, %v3381_v11  ;;  %vm3397_vm9 = vcmp.gt.f32.partialorder %v3381_v11, 0.0  ;;  %v4453_v38 = vsel %vm4421_vm1, %v4405_v16, %v4437_v4 }
 0x7d6   :  { %3811 = vmax.xlane.f32.xlu0 %v9043_v61  ;;  %4142 = vmax.xlane.f32.xlu1 %v9048_v6  ;;  %v9057_v61 = vsel %vm57_vm11, %v4111_v33, -9e+15  ;;  %v9073_v33 = vsel %vm56_vm14, %v4451_v7, -9e+15  ;;  %v9085_v7 = vpop.permute.xlu1 %3694  ;;  %vm3401_vm6 = vcmp.gt.f32.partialorder %v3385_v29, 0.0  ;;  %v3380_v22 = vadd.f32 %v8813_v46, %v8809_v47 }
 0x7d7   :  { %10022 = vst [vmem:[#allocation15_spill] sm:$0xff] %v9057_v61  ;;  %10024 = vst [vmem:[#allocation16_spill] sm:$0xff] %v9073_v33  ;;  %v4099_v57 = vmul.f32 0.2, %v4067_v45 }
 0x7d8   :  { %v3412_v4 = vmul.f32 0.2, %v3380_v22  ;;  %vm3396_vm13 = vcmp.gt.f32.partialorder %v3380_v22, 0.0 }
 0x7da   :  { %4152 = vmax.xlane.f32.xlu0 %v9057_v61  ;;  %3466 = vmax.xlane.f32.xlu1 %v9064_v5  ;;  %v3756_v61 = vmul.f32 0.2, %v3724_v23  ;;  %v9112_v56 = vpop.permute.xlu1 %4035 }
 0x7dc   :  { %v3772_v42 = vsel %vm3740_vm12, %v3724_v23, %v3756_v61  ;;  %v9110_v61 = vsel %vm10030_vm4, %v3767_v3, -9e+15  ;;  %v4113_v23 = vsel %vm4081_vm3, %v4065_v18, %v4097_v34  ;;  %v3726_v3 = vadd.f32 %v8817_v10, %v9020_v63 }
 0x7dd   :  { %v9103_v55 = vsel %vm59_vm10, %v3772_v42, -9e+15  ;;  %v4404_v42 = vadd.f32 %v8821_v51, %v8801_v24  ;;  %v9119_v50 = vsel %vm59_vm10, %v4113_v23, -9e+15  ;;  %v9126_v18 = vsel %vm10032_vm8, %v4108_v58, -9e+15 }
 0x7de   :  { %4491 = vmax.xlane.f32.xlu0 %v9073_v33  ;;  %4489 = vmax.xlane.f32.xlu1 %v9078_v2  ;;  %10029 = vst [vmem:[#allocation20_spill] sm:$0xff] %v9103_v55  ;;  %10031 = vst [vmem:[#allocation21_spill] sm:$0xff] %v9119_v50  ;;  %v3429_v34 = vsel %vm3397_vm9, %v3381_v11, %v3413_v20  ;;  %v3366_v23 = vpop.permute.xlu1 %3365  ;;  %v9133_v63 = vsel %vm58_vm5, %v4453_v38, -9e+15  ;;  %vm3742_vm12 = vcmp.gt.f32.partialorder %v3726_v3, 0.0  ;;  %v10034_v20 = vld [vmem:[#allocation32_spill] sm:$0xff] }
 0x7df   :  { %v4436_v24 = vmul.f32 0.2, %v4404_v42  ;;  %vm4420_vm7 = vcmp.gt.f32.partialorder %v4404_v42, 0.0  ;;  %v9140_v16 = vsel %vm57_vm11, %v3429_v34, -9e+15  ;;  %v3721_v58 = vadd.f32 %v8817_v10, %v8837_v60 }
 0x7e0   :  { %vm10035_vm15 = vcmp.gt.f32.partialorder %v10034_v20, 0.0  ;;  %v3428_v60 = vsel %vm3396_vm13, %v3380_v22, %v3412_v4  ;;  %vm4083_vm3 = vcmp.gt.f32.partialorder %v4067_v45, 0.0 }
 0x7e1   :  { %v4452_v47 = vsel %vm4420_vm7, %v4404_v42, %v4436_v24  ;;  %v3753_v24 = vmul.f32 0.2, %v3721_v58  ;;  %vm3737_vm2 = vcmp.gt.f32.partialorder %v3721_v58, 0.0  ;;  %vm10037_vm4 = vmmov %vm10035_vm15 }
 0x7e2   :  { %3474 = vmax.xlane.f32.xlu0 %v9089_v39  ;;  %3464 = vmax.xlane.f32.xlu1 %v9096_v9  ;;  %v9152_v34 = vsel %vm57_vm11, %v4452_v47, -9e+15  ;;  %v9156_v42 = vpop.permute.xlu1 %4388  ;;  %v4406_v47 = vadd.f32 %v8821_v51, %v8928_v30  ;;  %vm10039_vm9 = vmmov %vm10037_vm4  ;;  %v4066_v39 = vadd.f32 %v8825_v25, %v9112_v56 }
 0x7e6   :  { %3815 = vmax.xlane.f32.xlu0 %v9103_v55  ;;  %3805 = vmax.xlane.f32.xlu1 %v9110_v61  ;;  %v3417_v55 = vmul.f32 0.2, %v3385_v29 }
 0x7e8   :  { %v3433_v11 = vsel %vm3401_vm6, %v3385_v29, %v3417_v55  ;;  %v4407_v29 = vadd.f32 %v8821_v51, %v8795_v31  ;;  %v9169_v31 = vsel %vm56_vm14, %v3428_v60, -9e+15  ;;  %v3382_v60 = vadd.f32 %v8813_v46, %v8947_v32 }
 0x7e9   :  { %v9147_v38 = vsel %vm10035_vm15, %v3433_v11, -9e+15  ;;  %v4062_v11 = vadd.f32 %v8825_v25, %v8855_v19  ;;  %v3769_v19 = vsel %vm3737_vm2, %v3721_v58, %v3753_v24  ;;  %v3728_v58 = vadd.f32 %v8817_v10, %v8799_v28 }
 0x7ea   :  { %4156 = vmax.xlane.f32.xlu0 %v9119_v50  ;;  %4146 = vmax.xlane.f32.xlu1 %v9126_v18  ;;  %v3758_v50 = vmul.f32 0.2, %v3726_v3  ;;  %10036 = vst [vmem:[#allocation23_spill] sm:$0xff] %v9147_v38  ;;  %v4439_v22 = vmul.f32 0.2, %v4407_v29  ;;  %vm4423_vm11 = vcmp.gt.f32.partialorder %v4407_v29, 0.0  ;;  %v4069_v32 = vadd.f32 %v8825_v25, %v8803_v15 }
 0x7eb   :  { %v4094_v4 = vmul.f32 0.2, %v4062_v11  ;;  %vm4078_vm1 = vcmp.gt.f32.partialorder %v4062_v11, 0.0  ;;  %vm4422_vm6 = vcmp.gt.f32.partialorder %v4406_v47, 0.0  ;;  %vm3398_vm13 = vcmp.gt.f32.partialorder %v3382_v60, 0.0 }
 0x7ec   :  { %v3774_v55 = vsel %vm3742_vm12, %v3726_v3, %v3758_v50  ;;  %v3387_v50 = vadd.f32 %v8813_v46, %v3366_v23  ;;  %v4115_v3 = vsel %vm4083_vm3, %v4067_v45, %v4099_v57  ;;  %v9183_v45 = vsel %vm56_vm14, %v3769_v19, -9e+15 }
 0x7ed   :  { %v9163_v40 = vsel %vm10037_vm4, %v3774_v55, -9e+15  ;;  %v9174_v55 = vpop.permute.xlu1 %3360  ;;  %v9178_v23 = vsel %vm10039_vm9, %v4115_v3, -9e+15  ;;  %v4455_v30 = vsel %vm4423_vm11, %v4407_v29, %v4439_v22  ;;  %v4438_v57 = vmul.f32 0.2, %v4406_v47 }
 0x7ee   :  { %4495 = vmax.xlane.f32.xlu0 %v9133_v63  ;;  %3470 = vmax.xlane.f32.xlu1 %v9140_v16  ;;  %10038 = vst [vmem:[#allocation26_spill] sm:$0xff] %v9163_v40  ;;  %10040 = vst [vmem:[#allocation24_spill] sm:$0xff] %v9178_v23  ;;  %v4110_v24 = vsel %vm4078_vm1, %v4062_v11, %v4094_v4  ;;  %vm3403_vm8 = vcmp.gt.f32.partialorder %v3387_v50, 0.0  ;;  %v10041_v3 = vld [vmem:[#allocation35_spill] sm:$0xff]  ;;  %v3760_v22 = vmul.f32 0.2, %v3728_v58 }
 0x7ef   :  { %vm10042_vm7 = vcmp.gt.f32.partialorder %v10041_v3, 0.0  ;;  %v9197_v29 = vsel %vm56_vm14, %v4110_v24, -9e+15  ;;  %v3414_v19 = vmul.f32 0.2, %v3382_v60  ;;  %v4454_v11 = vsel %vm4422_vm6, %v4406_v47, %v4438_v57 }
 0x7f0   :  { %vm3744_vm12 = vcmp.gt.f32.partialorder %v3728_v58, 0.0  ;;  %v3723_v4 = vadd.f32 %v8817_v10, %v8782_v54  ;;  %v9212_v15 = vsel %vm59_vm10, %v4454_v11, -9e+15  ;;  %v4101_v24 = vmul.f32 0.2, %v4069_v32 }
 0x7f1   :  { %v3430_v47 = vsel %vm3398_vm13, %v3382_v60, %v3414_v19  ;;  %vm4085_vm14 = vcmp.gt.f32.partialorder %v4069_v32, 0.0  ;;  %v4064_v57 = vadd.f32 %v8825_v25, %v8786_v62  ;;  %v4408_v62 = vadd.f32 %v8821_v51, %v8790_v0  ;;  %v10047_v0 = vld [vmem:[#allocation41_spill] sm:$0xff]  ;;  %vm10050_vm13 = vmmov %vm10042_vm7 }
 0x7f2   :  { %3478 = vmax.xlane.f32.xlu0 %v9147_v38  ;;  %4493 = vmax.xlane.f32.xlu1 %v9152_v34  ;;  %v4385_v38 = vpop.permute.xlu1 %4384  ;;  %v3755_v54 = vmul.f32 0.2, %v3723_v4  ;;  %vm3739_vm3 = vcmp.gt.f32.partialorder %v3723_v4, 0.0  ;;  %v9224_v33 = vsel %vm58_vm5, %v3430_v47, -9e+15  ;;  %vm10048_vm9 = vcmp.gt.f32.partialorder %v10047_v0, 0.0 }
 0x7f3   :  { %vm4080_vm4 = vcmp.gt.f32.partialorder %v4064_v57, 0.0  ;;  %vm4424_vm1 = vcmp.gt.f32.partialorder %v4408_v62, 0.0  ;;  %vm10049_vm6 = vcmp.gt.f32.partialorder %v10034_v20, 0.0 }
 0x7f4   :  { %v3771_v60 = vsel %vm3739_vm3, %v3723_v4, %v3755_v54  ;;  %v3384_v4 = vadd.f32 %v8813_v46, %v9066_v35 }
 0x7f5   :  { %v9236_v11 = vsel %vm58_vm5, %v3771_v60, -9e+15 }
 0x7f6   :  { %3819 = vmax.xlane.f32.xlu0 %v9163_v40  ;;  %3468 = vmax.xlane.f32.xlu1 %v9169_v31  ;;  %v3419_v40 = vmul.f32 0.2, %v3387_v50 }
 0x7f8   :  { %v3435_v28 = vsel %vm3403_vm8, %v3387_v50, %v3419_v40  ;;  %v4409_v40 = vadd.f32 %v8821_v51, %v4385_v38  ;;  %v3776_v50 = vsel %vm3744_vm12, %v3728_v58, %v3760_v22  ;;  %v4117_v58 = vsel %vm4085_vm14, %v4069_v32, %v4101_v24  ;;  %vm10051_vm14 = vmmov %vm10042_vm7 }
 0x7f9   :  { %v4096_v22 = vmul.f32 0.2, %v4064_v57  ;;  %v4440_v24 = vmul.f32 0.2, %v4408_v62  ;;  %vm3400_vm8 = vcmp.gt.f32.partialorder %v3384_v4, 0.0  ;;  %vm4082_vm12 = vcmp.gt.f32.partialorder %v4066_v39, 0.0 }
 0x7fa   :  { %4160 = vmax.xlane.f32.xlu0 %v9178_v23  ;;  %3809 = vmax.xlane.f32.xlu1 %v9183_v45  ;;  %v9192_v23 = vsel %vm10042_vm7, %v4455_v30, -9e+15  ;;  %v10043_v30 = vld [vmem:[#allocation38_spill] sm:$0xff]  ;;  %vm4425_vm10 = vcmp.gt.f32.partialorder %v4409_v40, 0.0 }
 0x7fb   :  { %vm10044_vm15 = vcmp.gt.f32.partialorder %v10043_v30, 0.0  ;;  %v4456_v35 = vsel %vm4424_vm1, %v4408_v62, %v4440_v24  ;;  %v4410_v62 = vadd.f32 %v8821_v51, %v9156_v42 }
 0x7fc   :  { %v9206_v14 = vsel %vm10044_vm15, %v3435_v28, -9e+15  ;;  %vm10045_vm2 = vmmov %vm10044_vm15  ;;  %v4441_v28 = vmul.f32 0.2, %v4409_v40 }
 0x7fd   :  { %v9219_v38 = vsel %vm10045_vm2, %v3776_v50, -9e+15  ;;  %vm10046_vm11 = vmmov %vm10045_vm2  ;;  %v4112_v50 = vsel %vm4080_vm4, %v4064_v57, %v4096_v22  ;;  %v9255_v57 = vsel %vm10049_vm6, %v4456_v35, -9e+15  ;;  %v4442_v56 = vmul.f32 0.2, %v4410_v62  ;;  %v4044_v35 = vpop.permute.xlu1 %4043 }
 0x7fe   :  { %4499 = vmax.xlane.f32.xlu0 %v9192_v23  ;;  %4150 = vmax.xlane.f32.xlu1 %v9197_v29  ;;  %v9231_v19 = vsel %vm10046_vm11, %v4117_v58, -9e+15  ;;  %v4457_v32 = vsel %vm4425_vm10, %v4409_v40, %v4441_v28  ;;  %v9247_v54 = vsel %vm58_vm5, %v4112_v50, -9e+15  ;;  %v3416_v58 = vmul.f32 0.2, %v3384_v4  ;;  %vm10053_vm4 = vmmov %vm10048_vm9 }
 0x7ff   :  { %v9243_v47 = vsel %vm10048_vm9, %v4457_v32, -9e+15  ;;  %v3725_v40 = vadd.f32 %v8817_v10, %v9085_v7  ;;  %v4098_v7 = vmul.f32 0.2, %v4066_v39  ;;  %vm4426_vm15 = vcmp.gt.f32.partialorder %v4410_v62, 0.0  ;;  %vm10054_vm1 = vmmov %vm10053_vm4 }
 0x800   :  { %v3432_v60 = vsel %vm3400_vm8, %v3384_v4, %v3416_v58  ;;  %v3386_v4 = vadd.f32 %v8813_v46, %v9174_v55  ;;  %v4458_v42 = vsel %vm4426_vm15, %v4410_v62, %v4442_v56  ;;  %v10052_v58 = vld [vmem:[#allocation31_spill] sm:$0xff]  ;;  %v4068_v55 = vadd.f32 %v8825_v25, %v4044_v35  ;;  %vm10055_vm9 = vmmov %vm10054_vm1 }
 0x801   :  { %v3757_v28 = vmul.f32 0.2, %v3725_v40  ;;  %vm3741_vm5 = vcmp.gt.f32.partialorder %v3725_v40, 0.0  ;;  %v9262_v22 = vsel %vm10042_vm7, %v3432_v60, -9e+15  ;;  %v4114_v50 = vsel %vm4082_vm12, %v4066_v39, %v4098_v7 }
 0x802   :  { %3482 = vmax.xlane.f32.xlu0 %v9206_v14  ;;  %4497 = vmax.xlane.f32.xlu1 %v9212_v15  ;;  %v9276_v24 = vsel %vm10051_vm14, %v4114_v50, -9e+15  ;;  %v3418_v51 = vmul.f32 0.2, %v3386_v4  ;;  %vm3402_vm3 = vcmp.gt.f32.partialorder %v3386_v4, 0.0  ;;  %vm4084_vm11 = vcmp.gt.f32.partialorder %v4068_v55, 0.0 }
 0x803   :  { %v3773_v20 = vsel %vm3741_vm5, %v3725_v40, %v3757_v28  ;;  %v3727_v40 = vadd.f32 %v8817_v10, %v10052_v58  ;;  %v9283_v46 = vsel %vm10045_vm2, %v4458_v42, -9e+15  ;;  %v4100_v60 = vmul.f32 0.2, %v4068_v55 }
 0x804   :  { %v9269_v32 = vsel %vm10050_vm13, %v3773_v20, -9e+15  ;;  %v3434_v3 = vsel %vm3402_vm3, %v3386_v4, %v3418_v51 }
 0x805   :  { %v3759_v28 = vmul.f32 0.2, %v3727_v40  ;;  %vm3743_vm10 = vcmp.gt.f32.partialorder %v3727_v40, 0.0  ;;  %v9289_v39 = vsel %vm10053_vm4, %v3434_v3, -9e+15  ;;  %v4116_v7 = vsel %vm4084_vm11, %v4068_v55, %v4100_v60 }
 0x806   :  { %3823 = vmax.xlane.f32.xlu0 %v9219_v38  ;;  %3472 = vmax.xlane.f32.xlu1 %v9224_v33  ;;  %v9301_v50 = vsel %vm10055_vm9, %v4116_v7, -9e+15 }
 0x807   :  { %v3775_v10 = vsel %vm3743_vm10, %v3727_v40, %v3759_v28 }
 0x808   :  { %v9294_v30 = vsel %vm10054_vm1, %v3775_v10, -9e+15 }
 0x80a   :  { %4164 = vmax.xlane.f32.xlu0 %v9231_v19  ;;  %3813 = vmax.xlane.f32.xlu1 %v9236_v11 }
 0x80e   :  { %4503 = vmax.xlane.f32.xlu0 %v9243_v47  ;;  %4154 = vmax.xlane.f32.xlu1 %v9247_v54 }
 0x812   :  { %4501 = vmax.xlane.f32.xlu1 %v9255_v57 }
 0x816   :  { %3476 = vmax.xlane.f32.xlu1 %v9262_v22 }
 0x81a   :  { %3817 = vmax.xlane.f32.xlu1 %v9269_v32 }
 0x81e   :  { %4158 = vmax.xlane.f32.xlu1 %v9276_v24 }
 0x822   :  { %4505 = vmax.xlane.f32.xlu1 %v9283_v46 }
 0x826   :  { %3480 = vmax.xlane.f32.xlu1 %v9289_v39 }
 0x82a   :  { %3821 = vmax.xlane.f32.xlu1 %v9294_v30 }
 0x82b   :  { %v3455_v25 = vpop.xlane.xlu0 %3454  ;;  %v3453_v20 = vpop.xlane.xlu1 %3452 }
 0x82c   :  { %v3485_v62 = vsub.f32 %v8843_v41, %v3455_v25  ;;  %v3484_v56 = vsub.f32 %v8848_v37, %v3453_v20 }
 0x82e   :  { %v3502_v4 = vmul.f32 1.442695, %v3485_v62  ;;  %v3500_v51 = vmul.f32 1.442695, %v3484_v56  ;;  %4162 = vmax.xlane.f32.xlu1 %v9301_v50 }
 0x82f   :  { %v4476_v42 = vpop.xlane.xlu0 %4475  ;;  %v3794_v40 = vpop.xlane.xlu1 %3793 }
 0x830   :  { %6558 = vpow2.f32 %v3502_v4  ;;  %v4507_v58 = vsub.f32 %v8859_v49, %v4476_v42  ;;  %v3825_v35 = vsub.f32 %v8864_v59, %v3794_v40  ;;  %v10056_v40 = vld [vmem:[#allocation33_spill] sm:$0xff] }
 0x831   :  { %6560 = vpow2.f32 %v3500_v51 }
 0x832   :  { %v4523_v41 = vmul.f32 1.442695, %v4507_v58  ;;  %v3841_v55 = vmul.f32 1.442695, %v3825_v35 }
 0x833   :  { %v3796_v3 = vpop.xlane.xlu0 %3795  ;;  %v4135_v0 = vpop.xlane.xlu1 %4134 }
 0x834   :  { %6562 = vpow2.f32 %v4523_v41  ;;  %v3826_v37 = vsub.f32 %v8873_v44, %v3796_v3  ;;  %v4166_v28 = vsub.f32 %v8878_v27, %v4135_v0 }
 0x835   :  { %6564 = vpow2.f32 %v3841_v55 }
 0x836   :  { %v3843_v60 = vmul.f32 1.442695, %v3826_v37  ;;  %v4182_v10 = vmul.f32 1.442695, %v4166_v28  ;;  %v10057_v28 = vld [vmem:[#allocation34_spill] sm:$0xff] }
 0x837   :  { %v4137_v25 = vpop.xlane.xlu0 %4136  ;;  %v4478_v7 = vpop.xlane.xlu1 %4477 }
 0x838   :  { %6566 = vpow2.f32 %v3843_v60  ;;  %v4167_v49 = vsub.f32 %v8889_v12, %v4137_v25  ;;  %v4508_v59 = vsub.f32 %v8894_v53, %v4478_v7 }
 0x839   :  { %6568 = vpow2.f32 %v4182_v10 }
 0x83a   :  { %v4184_v62 = vmul.f32 1.442695, %v4167_v49  ;;  %v4525_v20 = vmul.f32 1.442695, %v4508_v59 }
 0x83b   :  { %v3800_v56 = vpop.xlane.xlu0 %3799  ;;  %v3459_v4 = vpop.xlane.xlu1 %3458 }
 0x83c   :  { %6570 = vpow2.f32 %v4184_v62  ;;  %v3828_v44 = vsub.f32 %v8905_v21, %v3800_v56  ;;  %v3487_v27 = vsub.f32 %v8910_v36, %v3459_v4 }
 0x83d   :  { %v9311_v51 = vpop.eup %6558  ;;  %6572 = vpow2.f32 %v4525_v20 }
 0x83e   :  { %v9314_v42 = vpop.eup %6560  ;;  %3534 = vadd.xlane.f32.xlu0 %v9311_v51  ;;  %v3506_v12 = vmul.f32 1.442695, %v3487_v27  ;;  %v3847_v58 = vmul.f32 1.442695, %v3828_v44 }
 0x83f   :  { %3532 = vadd.xlane.f32.xlu1 %v9314_v42  ;;  %v4141_v53 = vpop.xlane.xlu0 %4140  ;;  %v4482_v41 = vpop.xlane.xlu1 %4481 }
 0x840   :  { %v4169_v35 = vsub.f32 %v10056_v40, %v4141_v53  ;;  %6574 = vpow2.f32 %v3506_v12  ;;  %v4510_v21 = vsub.f32 %v8924_v48, %v4482_v41 }
 0x841   :  { %v9319_v55 = vpop.eup %6562  ;;  %6576 = vpow2.f32 %v3847_v58 }
 0x842   :  { %v9322_v3 = vpop.eup %6564  ;;  %4555 = vadd.xlane.f32.xlu0 %v9319_v55  ;;  %v4529_v36 = vmul.f32 1.442695, %v4510_v21  ;;  %v4188_v0 = vmul.f32 1.442695, %v4169_v35 }
 0x843   :  { %3873 = vadd.xlane.f32.xlu1 %v9322_v3  ;;  %v4480_v37 = vpop.xlane.xlu0 %4479  ;;  %v3457_v10 = vpop.xlane.xlu1 %3456 }
 0x844   :  { %v4509_v60 = vsub.f32 %v10057_v28, %v4480_v37  ;;  %6578 = vpow2.f32 %v4529_v36  ;;  %v3486_v49 = vsub.f32 %v8940_v8, %v3457_v10  ;;  %v10059_v10 = vld [vmem:[#allocation37_spill] sm:$0xff] }
 0x845   :  { %v9327_v25 = vpop.eup %6566  ;;  %6580 = vpow2.f32 %v4188_v0 }
 0x846   :  { %v9330_v7 = vpop.eup %6568  ;;  %3875 = vadd.xlane.f32.xlu0 %v9327_v25  ;;  %v3504_v48 = vmul.f32 1.442695, %v3486_v49  ;;  %v4527_v62 = vmul.f32 1.442695, %v4509_v60 }
 0x847   :  { %4214 = vadd.xlane.f32.xlu1 %v9330_v7  ;;  %v3804_v59 = vpop.xlane.xlu0 %3803  ;;  %v3798_v20 = vpop.xlane.xlu1 %3797 }
 0x848   :  { %6582 = vpow2.f32 %v3504_v48  ;;  %v3827_v44 = vsub.f32 %v8956_v13, %v3798_v20  ;;  %v10058_v13 = vld [vmem:[#allocation36_spill] sm:$0xff] }
 0x849   :  { %v9334_v56 = vpop.eup %6570  ;;  %6584 = vpow2.f32 %v4527_v62  ;;  %v3830_v41 = vsub.f32 %v10058_v13, %v3804_v59 }
 0x84a   :  { %v9337_v4 = vpop.eup %6572  ;;  %4216 = vadd.xlane.f32.xlu0 %v9334_v56  ;;  %v3845_v8 = vmul.f32 1.442695, %v3827_v44 }
 0x84b   :  { %4557 = vadd.xlane.f32.xlu1 %v9337_v4  ;;  %v4145_v27 = vpop.xlane.xlu0 %4144  ;;  %v4139_v12 = vpop.xlane.xlu1 %4138  ;;  %v3851_v60 = vmul.f32 1.442695, %v3830_v41 }
 0x84c   :  { %6586 = vpow2.f32 %v3845_v8  ;;  %v4168_v53 = vsub.f32 %v8970_v43, %v4139_v12  ;;  %v4171_v49 = vsub.f32 %v10059_v10, %v4145_v27  ;;  %v10060_v12 = vld [vmem:[#allocation39_spill] sm:$0xff] }
 0x84d   :  { %v9342_v58 = vpop.eup %6574 }
 0x84e   :  { %v4186_v40 = vmul.f32 1.442695, %v4168_v53  ;;  %3538 = vadd.xlane.f32.xlu0 %v9342_v58  ;;  %v9346_v36 = vpop.eup %6576  ;;  %v4192_v8 = vmul.f32 1.442695, %v4171_v49 }
 0x84f   :  { %v4484_v35 = vpop.xlane.xlu0 %4483  ;;  %v3463_v21 = vpop.xlane.xlu1 %3462 }
 0x850   :  { %6588 = vpow2.f32 %v4186_v40  ;;  %v3489_v37 = vsub.f32 %v8986_v52, %v3463_v21  ;;  %v4511_v53 = vsub.f32 %v10060_v12, %v4484_v35 }
 0x851   :  { %v9349_v0 = vpop.eup %6578 }
 0x852   :  { %v3510_v28 = vmul.f32 1.442695, %v3489_v37  ;;  %3879 = vadd.xlane.f32.xlu0 %v9346_v36  ;;  %4561 = vadd.xlane.f32.xlu1 %v9349_v0  ;;  %v9354_v62 = vpop.eup %6580  ;;  %v4531_v37 = vmul.f32 1.442695, %v4511_v53 }
 0x853   :  { %v3808_v43 = vpop.xlane.xlu0 %3807  ;;  %v4486_v48 = vpop.xlane.xlu1 %4485 }
 0x854   :  { %6590 = vpow2.f32 %v3510_v28  ;;  %v4512_v59 = vsub.f32 %v9002_v17, %v4486_v48 }
 0x855   :  { %v9357_v20 = vpop.eup %6582  ;;  %6592 = vpow2.f32 %v3851_v60 }
 0x856   :  { %v4533_v52 = vmul.f32 1.442695, %v4512_v59  ;;  %4220 = vadd.xlane.f32.xlu0 %v9354_v62  ;;  %3536 = vadd.xlane.f32.xlu1 %v9357_v20  ;;  %v9362_v27 = vpop.eup %6584 }
 0x857   :  { %v4149_v44 = vpop.xlane.xlu0 %4148  ;;  %v3461_v40 = vpop.xlane.xlu1 %3460 }
 0x858   :  { %6594 = vpow2.f32 %v4533_v52  ;;  %v3488_v13 = vsub.f32 %v9016_v26, %v3461_v40 }
 0x859   :  { %v9365_v41 = vpop.eup %6586  ;;  %6596 = vpow2.f32 %v4192_v8 }
 0x85a   :  { %v3508_v17 = vmul.f32 1.442695, %v3488_v13  ;;  %4559 = vadd.xlane.f32.xlu0 %v9362_v27  ;;  %3877 = vadd.xlane.f32.xlu1 %v9365_v41 }
 0x85b   :  { %v4488_v21 = vpop.xlane.xlu0 %4487  ;;  %v3802_v28 = vpop.xlane.xlu1 %3801 }
 0x85c   :  { %6598 = vpow2.f32 %v3508_v17  ;;  %v3829_v35 = vsub.f32 %v9032_v1, %v3802_v28  ;;  %v10061_v1 = vld [vmem:[#allocation42_spill] sm:$0xff] }
 0x85d   :  { %v9370_v60 = vpop.eup %6588  ;;  %6600 = vpow2.f32 %v4531_v37  ;;  %v3832_v12 = vsub.f32 %v10061_v1, %v3808_v43 }
 0x85e   :  { %v3849_v10 = vmul.f32 1.442695, %v3829_v35  ;;  %4218 = vadd.xlane.f32.xlu1 %v9370_v60  ;;  %v10062_v35 = vld [vmem:[#allocation43_spill] sm:$0xff] }
 0x85f   :  { %v9373_v26 = vpop.xlane.xlu0 %3811  ;;  %v4143_v49 = vpop.xlane.xlu1 %4142  ;;  %v3855_v28 = vmul.f32 1.442695, %v3832_v12  ;;  %v10063_v12 = vld [vmem:[#allocation40_spill] sm:$0xff] }
 0x860   :  { %6602 = vpow2.f32 %v3849_v10  ;;  %v4170_v48 = vsub.f32 %v9048_v6, %v4143_v49  ;;  %v4173_v10 = vsub.f32 %v10062_v35, %v4149_v44 }
 0x861   :  { %v9376_v59 = vpop.eup %6590 }
 0x862   :  { %v4190_v52 = vmul.f32 1.442695, %v4170_v48  ;;  %3542 = vadd.xlane.f32.xlu0 %v9376_v59  ;;  %v9382_v40 = vpop.eup %6592 }
 0x863   :  { %v9379_v8 = vpop.xlane.xlu0 %4152  ;;  %v3467_v53 = vpop.xlane.xlu1 %3466 }
 0x864   :  { %6604 = vpow2.f32 %v4190_v52  ;;  %v3491_v13 = vsub.f32 %v9064_v5, %v3467_v53  ;;  %v4196_v53 = vmul.f32 1.442695, %v4173_v10 }
 0x865   :  { %v9385_v17 = vpop.eup %6594 }
 0x866   :  { %v3514_v37 = vmul.f32 1.442695, %v3491_v13  ;;  %3883 = vadd.xlane.f32.xlu0 %v9382_v40  ;;  %4565 = vadd.xlane.f32.xlu1 %v9385_v17  ;;  %v9392_v43 = vpop.eup %6596  ;;  %v4513_v13 = vsub.f32 %v10063_v12, %v4488_v21 }
 0x867   :  { %v9389_v6 = vpop.xlane.xlu0 %4491  ;;  %v4490_v49 = vpop.xlane.xlu1 %4489 }
 0x868   :  { %6606 = vpow2.f32 %v3514_v37  ;;  %v4514_v48 = vsub.f32 %v9078_v2, %v4490_v49 }
 0x869   :  { %v9395_v52 = vpop.eup %6598  ;;  %6608 = vpow2.f32 %v3855_v28  ;;  %v4535_v28 = vmul.f32 1.442695, %v4513_v13 }
 0x86a   :  { %v4537_v5 = vmul.f32 1.442695, %v4514_v48  ;;  %4224 = vadd.xlane.f32.xlu0 %v9392_v43  ;;  %3540 = vadd.xlane.f32.xlu1 %v9395_v52  ;;  %v9402_v35 = vpop.eup %6600 }
 0x86b   :  { %v9399_v1 = vpop.xlane.xlu0 %3474  ;;  %v3465_v44 = vpop.xlane.xlu1 %3464 }
 0x86c   :  { %6610 = vpow2.f32 %v4537_v5  ;;  %v3490_v37 = vsub.f32 %v9096_v9, %v3465_v44 }
 0x86d   :  { %v9405_v2 = vpop.eup %6602  ;;  %6612 = vpow2.f32 %v4196_v53 }
 0x86e   :  { %10064 = vst [vmem:[#allocation29_spill] sm:$0xff] %v9405_v2  ;;  %v3512_v49 = vmul.f32 1.442695, %v3490_v37  ;;  %4563 = vadd.xlane.f32.xlu0 %v9402_v35  ;;  %3881 = vadd.xlane.f32.xlu1 %v9405_v2 }
 0x86f   :  { %v9409_v48 = vpop.xlane.xlu0 %3815  ;;  %v3806_v10 = vpop.xlane.xlu1 %3805 }
 0x870   :  { %6614 = vpow2.f32 %v3512_v49  ;;  %v3831_v21 = vsub.f32 %v9110_v61, %v3806_v10  ;;  %v10067_v61 = vld [vmem:[#allocation44_spill] sm:$0xff] }
 0x871   :  { %v9412_v12 = vpop.eup %6604  ;;  %6616 = vpow2.f32 %v4535_v28  ;;  %v3834_v49 = vsub.f32 %v10067_v61, %v9373_v26 }
 0x872   :  { %10065 = vst [vmem:[#allocation27_spill] sm:$0xff] %v9412_v12  ;;  %v3853_v5 = vmul.f32 1.442695, %v3831_v21  ;;  %4222 = vadd.xlane.f32.xlu1 %v9412_v12 }
 0x873   :  { %v9415_v9 = vpop.xlane.xlu0 %4156  ;;  %v4147_v44 = vpop.xlane.xlu1 %4146 }
 0x874   :  { %6618 = vpow2.f32 %v3853_v5  ;;  %v4172_v37 = vsub.f32 %v9126_v18, %v4147_v44  ;;  %v3859_v18 = vmul.f32 1.442695, %v3834_v49  ;;  %v10070_v44 = vld [vmem:[#allocation15_spill] sm:$0xff] }
 0x875   :  { %v9418_v2 = vpop.eup %6606 }
 0x876   :  { %10066 = vst [vmem:[#allocation30_spill] sm:$0xff] %v9418_v2  ;;  %v4194_v53 = vmul.f32 1.442695, %v4172_v37  ;;  %3546 = vadd.xlane.f32.xlu0 %v9418_v2  ;;  %v9425_v21 = vpop.eup %6608  ;;  %v4175_v37 = vsub.f32 %v10070_v44, %v9379_v8 }
 0x877   :  { %v9421_v13 = vpop.xlane.xlu0 %4495  ;;  %v3471_v10 = vpop.xlane.xlu1 %3470  ;;  %10068 = vst [vmem:[#allocation7_spill] sm:$0xff] %v9425_v21 }
 0x878   :  { %6620 = vpow2.f32 %v4194_v53  ;;  %v3493_v28 = vsub.f32 %v9140_v16, %v3471_v10  ;;  %v4200_v49 = vmul.f32 1.442695, %v4175_v37  ;;  %v10074_v37 = vld [vmem:[#allocation18_spill] sm:$0xff] }
 0x879   :  { %v9428_v12 = vpop.eup %6610 }
 0x87a   :  { %10069 = vst [vmem:[#allocation9_spill] sm:$0xff] %v9428_v12  ;;  %v3518_v5 = vmul.f32 1.442695, %v3493_v28  ;;  %3887 = vadd.xlane.f32.xlu0 %v9425_v21  ;;  %4569 = vadd.xlane.f32.xlu1 %v9428_v12  ;;  %v9436_v61 = vpop.eup %6612  ;;  %v10071_v28 = vld [vmem:[#allocation16_spill] sm:$0xff] }
 0x87b   :  { %v9434_v2 = vpop.xlane.xlu0 %3478  ;;  %v4494_v26 = vpop.xlane.xlu1 %4493  ;;  %v4515_v8 = vsub.f32 %v10071_v28, %v9389_v6  ;;  %v3495_v6 = vsub.f32 %v10074_v37, %v9399_v1  ;;  %v10076_v37 = vld [vmem:[#allocation21_spill] sm:$0xff] }
 0x87c   :  { %6622 = vpow2.f32 %v3518_v5  ;;  %v4516_v53 = vsub.f32 %v9152_v34, %v4494_v26 }
 0x87d   :  { %v9439_v16 = vpop.eup %6614  ;;  %6624 = vpow2.f32 %v3859_v18  ;;  %v4539_v18 = vmul.f32 1.442695, %v4515_v8 }
 0x87e   :  { %v4541_v10 = vmul.f32 1.442695, %v4516_v53  ;;  %4228 = vadd.xlane.f32.xlu0 %v9436_v61  ;;  %3544 = vadd.xlane.f32.xlu1 %v9439_v16  ;;  %v9445_v12 = vpop.eup %6616 }
 0x87f   :  { %v3469_v44 = vpop.xlane.xlu1 %3468  ;;  %10072 = vst [vmem:[#allocation8_spill] sm:$0xff] %v9445_v12  ;;  %v9450_v34 = vpop.xlane.xlu0 %3819 }
 0x880   :  { %6626 = vpow2.f32 %v4541_v10  ;;  %v3492_v5 = vsub.f32 %v9169_v31, %v3469_v44  ;;  %v3522_v44 = vmul.f32 1.442695, %v3495_v6 }
 0x881   :  { %v9448_v21 = vpop.eup %6618  ;;  %6628 = vpow2.f32 %v4200_v49 }
 0x882   :  { %10073 = vst [vmem:[#allocation10_spill] sm:$0xff] %v9448_v21  ;;  %v3516_v26 = vmul.f32 1.442695, %v3492_v5  ;;  %4567 = vadd.xlane.f32.xlu0 %v9445_v12  ;;  %3885 = vadd.xlane.f32.xlu1 %v9448_v21  ;;  %v10075_v5 = vld [vmem:[#allocation20_spill] sm:$0xff] }
 0x883   :  { %v3810_v53 = vpop.xlane.xlu1 %3809  ;;  %v3836_v12 = vsub.f32 %v10075_v5, %v9409_v48  ;;  %v9462_v21 = vpop.xlane.xlu0 %4160 }
 0x884   :  { %6630 = vpow2.f32 %v3516_v26  ;;  %v3833_v10 = vsub.f32 %v9183_v45, %v3810_v53 }
 0x885   :  { %v9457_v28 = vpop.eup %6620  ;;  %6632 = vpow2.f32 %v4539_v18  ;;  %v3863_v45 = vmul.f32 1.442695, %v3836_v12  ;;  %v4177_v18 = vsub.f32 %v10076_v37, %v9415_v9  ;;  %v4517_v9 = vsub.f32 %v9133_v63, %v9421_v13 }
 0x886   :  { %v3857_v31 = vmul.f32 1.442695, %v3833_v10  ;;  %4226 = vadd.xlane.f32.xlu1 %v9457_v28 }
 0x887   :  { %v4151_v49 = vpop.xlane.xlu1 %4150  ;;  %v4204_v12 = vmul.f32 1.442695, %v4177_v18 }
 0x888   :  { %6634 = vpow2.f32 %v3857_v31  ;;  %v4174_v1 = vsub.f32 %v9197_v29, %v4151_v49  ;;  %v9475_v31 = vpop.xlane.xlu0 %4499 }
 0x889   :  { %v9465_v8 = vpop.eup %6622  ;;  %6636 = vpow2.f32 %v3522_v44 }
 0x88a   :  { %v4198_v26 = vmul.f32 1.442695, %v4174_v1  ;;  %3550 = vadd.xlane.f32.xlu0 %v9465_v8  ;;  %v9470_v53 = vpop.eup %6624 }
 0x88b   :  { %v4498_v6 = vpop.xlane.xlu1 %4497 }
 0x88c   :  { %6638 = vpow2.f32 %v4198_v26  ;;  %v4518_v48 = vsub.f32 %v9212_v15, %v4498_v6  ;;  %v4543_v26 = vmul.f32 1.442695, %v4517_v9  ;;  %v3483_v18 = vpop.xlane.xlu0 %3482 }
 0x88d   :  { %v9473_v10 = vpop.eup %6626  ;;  %6640 = vpow2.f32 %v3863_v45  ;;  %v10077_v45 = vld [vmem:[#allocation23_spill] sm:$0xff] }
 0x88e   :  { %v4545_v29 = vmul.f32 1.442695, %v4518_v48  ;;  %3891 = vadd.xlane.f32.xlu0 %v9470_v53  ;;  %4573 = vadd.xlane.f32.xlu1 %v9473_v10  ;;  %v9481_v5 = vpop.eup %6628  ;;  %v3497_v37 = vsub.f32 %v10077_v45, %v9434_v2 }
 0x88f   :  { %v3473_v44 = vpop.xlane.xlu1 %3472 }
 0x890   :  { %6642 = vpow2.f32 %v4545_v29  ;;  %v3494_v15 = vsub.f32 %v9224_v33, %v3473_v44  ;;  %v3526_v29 = vmul.f32 1.442695, %v3497_v37  ;;  %v10079_v37 = vld [vmem:[#allocation24_spill] sm:$0xff] }
 0x891   :  { %v9484_v49 = vpop.eup %6630  ;;  %6644 = vpow2.f32 %v4204_v12  ;;  %v10078_v12 = vld [vmem:[#allocation26_spill] sm:$0xff] }
 0x892   :  { %v3520_v1 = vmul.f32 1.442695, %v3494_v15  ;;  %4232 = vadd.xlane.f32.xlu0 %v9481_v5  ;;  %3548 = vadd.xlane.f32.xlu1 %v9484_v49  ;;  %v9490_v13 = vpop.eup %6632  ;;  %v3838_v9 = vsub.f32 %v10078_v12, %v9450_v34 }
 0x893   :  { %v3814_v63 = vpop.xlane.xlu1 %3813 }
 0x894   :  { %6646 = vpow2.f32 %v3520_v1  ;;  %v3835_v6 = vsub.f32 %v9236_v11, %v3814_v63  ;;  %v3824_v11 = vpop.xlane.xlu0 %3823  ;;  %v4179_v63 = vsub.f32 %v10079_v37, %v9462_v21 }
 0x895   :  { %v9493_v33 = vpop.eup %6634  ;;  %6648 = vpow2.f32 %v4543_v26  ;;  %v3867_v26 = vmul.f32 1.442695, %v3838_v9 }
 0x896   :  { %v3861_v48 = vmul.f32 1.442695, %v3835_v6  ;;  %4571 = vadd.xlane.f32.xlu0 %v9490_v13  ;;  %3889 = vadd.xlane.f32.xlu1 %v9493_v33  ;;  %v9499_v44 = vpop.eup %6636 }
 0x897   :  { %v4155_v2 = vpop.xlane.xlu1 %4154 }
 0x898   :  { %6650 = vpow2.f32 %v3861_v48  ;;  %v4176_v15 = vsub.f32 %v9247_v54, %v4155_v2  ;;  %v4208_v2 = vmul.f32 1.442695, %v4179_v63  ;;  %v4165_v9 = vpop.xlane.xlu0 %4164  ;;  %v3499_v63 = vsub.f32 %v9206_v14, %v3483_v18 }
 0x899   :  { %v9502_v1 = vpop.eup %6638  ;;  %6652 = vpow2.f32 %v3526_v29  ;;  %v4519_v29 = vsub.f32 %v9192_v23, %v9475_v31 }
 0x89a   :  { %v4202_v45 = vmul.f32 1.442695, %v4176_v15  ;;  %3554 = vadd.xlane.f32.xlu0 %v9499_v44  ;;  %4230 = vadd.xlane.f32.xlu1 %v9502_v1  ;;  %v9508_v6 = vpop.eup %6640 }
 0x89b   :  { %v4502_v34 = vpop.xlane.xlu1 %4501 }
 0x89c   :  { %6654 = vpow2.f32 %v4202_v45  ;;  %v4520_v48 = vsub.f32 %v9255_v57, %v4502_v34 }
 0x89d   :  { %v9511_v54 = vpop.eup %6642  ;;  %6656 = vpow2.f32 %v3867_v26  ;;  %v4547_v26 = vmul.f32 1.442695, %v4519_v29 }
 0x89e   :  { %v4549_v12 = vmul.f32 1.442695, %v4520_v48  ;;  %3895 = vadd.xlane.f32.xlu0 %v9508_v6  ;;  %4577 = vadd.xlane.f32.xlu1 %v9511_v54  ;;  %v9517_v15 = vpop.eup %6644 }
 0x89f   :  { %v3477_v21 = vpop.xlane.xlu1 %3476 }
 0x8a0   :  { %6658 = vpow2.f32 %v4549_v12  ;;  %v3496_v45 = vsub.f32 %v9262_v22, %v3477_v21  ;;  %v4504_v22 = vpop.xlane.xlu0 %4503  ;;  %v3530_v21 = vmul.f32 1.442695, %v3499_v63 }
 0x8a1   :  { %v9520_v57 = vpop.eup %6646  ;;  %6660 = vpow2.f32 %v4208_v2  ;;  %v4521_v14 = vsub.f32 %v9243_v47, %v4504_v22 }
 0x8a2   :  { %v3524_v37 = vmul.f32 1.442695, %v3496_v45  ;;  %4236 = vadd.xlane.f32.xlu0 %v9517_v15  ;;  %3552 = vadd.xlane.f32.xlu1 %v9520_v57  ;;  %v9525_v23 = vpop.eup %6648 }
 0x8a3   :  { %v3818_v34 = vpop.xlane.xlu1 %3817 }
 0x8a4   :  { %6662 = vpow2.f32 %v3524_v37  ;;  %v3837_v31 = vsub.f32 %v9269_v32, %v3818_v34  ;;  %v3840_v37 = vsub.f32 %v9219_v38, %v3824_v11  ;;  %v4551_v34 = vmul.f32 1.442695, %v4521_v14 }
 0x8a5   :  { %v9528_v48 = vpop.eup %6650  ;;  %6664 = vpow2.f32 %v4547_v26 }
 0x8a6   :  { %v3865_v12 = vmul.f32 1.442695, %v3837_v31  ;;  %4575 = vadd.xlane.f32.xlu0 %v9525_v23  ;;  %3893 = vadd.xlane.f32.xlu1 %v9528_v48  ;;  %v9532_v29 = vpop.eup %6652  ;;  %v3871_v47 = vmul.f32 1.442695, %v3840_v37 }
 0x8a7   :  { %v4159_v2 = vpop.xlane.xlu1 %4158 }
 0x8a8   :  { %6666 = vpow2.f32 %v3865_v12  ;;  %v4178_v18 = vsub.f32 %v9276_v24, %v4159_v2  ;;  %v4181_v24 = vsub.f32 %v9231_v19, %v4165_v9 }
 0x8a9   :  { %v9536_v45 = vpop.eup %6654  ;;  %6668 = vpow2.f32 %v3530_v21 }
 0x8aa   :  { %v4206_v32 = vmul.f32 1.442695, %v4178_v18  ;;  %3558 = vadd.xlane.f32.xlu0 %v9532_v29  ;;  %4234 = vadd.xlane.f32.xlu1 %v9536_v45  ;;  %v9541_v63 = vpop.eup %6656  ;;  %v4212_v2 = vmul.f32 1.442695, %v4181_v24 }
 0x8ab   :  { %v4506_v26 = vpop.xlane.xlu1 %4505 }
 0x8ac   :  { %6670 = vpow2.f32 %v4206_v32 }
 0x8ad   :  { %v9543_v31 = vpop.eup %6658  ;;  %6672 = vpow2.f32 %v4551_v34  ;;  %v4522_v34 = vsub.f32 %v9283_v46, %v4506_v26 }
 0x8ae   :  { %3899 = vadd.xlane.f32.xlu0 %v9541_v63  ;;  %4581 = vadd.xlane.f32.xlu1 %v9543_v31  ;;  %v9548_v12 = vpop.eup %6660  ;;  %6674 = vpow2.f32 %v3871_v47 }
 0x8af   :  { %v3481_v22 = vpop.xlane.xlu1 %3480 }
 0x8b0   :  { %v3498_v38 = vsub.f32 %v9289_v39, %v3481_v22 }
 0x8b1   :  { %v9551_v11 = vpop.eup %6662 }
 0x8b2   :  { %v3528_v21 = vmul.f32 1.442695, %v3498_v38  ;;  %4240 = vadd.xlane.f32.xlu0 %v9548_v12  ;;  %3556 = vadd.xlane.f32.xlu1 %v9551_v11  ;;  %v9555_v18 = vpop.eup %6664 }
 0x8b3   :  { %v3822_v14 = vpop.xlane.xlu1 %3821 }
 0x8b4   :  { %6676 = vpow2.f32 %v3528_v21  ;;  %v3839_v19 = vsub.f32 %v9294_v30, %v3822_v14  ;;  %v4553_v30 = vmul.f32 1.442695, %v4522_v34 }
 0x8b5   :  { %v9558_v9 = vpop.eup %6666  ;;  %6678 = vpow2.f32 %v4212_v2 }
 0x8b6   :  { %v3869_v32 = vmul.f32 1.442695, %v3839_v19  ;;  %4579 = vadd.xlane.f32.xlu0 %v9555_v18  ;;  %3897 = vadd.xlane.f32.xlu1 %v9558_v9  ;;  %v9562_v37 = vpop.eup %6668 }
 0x8b7   :  { %v4163_v39 = vpop.xlane.xlu1 %4162 }
 0x8b8   :  { %6680 = vpow2.f32 %v3869_v32  ;;  %v4180_v47 = vsub.f32 %v9301_v50, %v4163_v39 }
 0x8b9   :  { %v9566_v24 = vpop.eup %6670 }
 0x8ba   :  { %v4210_v22 = vmul.f32 1.442695, %v4180_v47  ;;  %3562 = vadd.xlane.f32.xlu0 %v9562_v37  ;;  %4238 = vadd.xlane.f32.xlu1 %v9566_v24  ;;  %v9570_v38 = vpop.eup %6672 }
 0x8bb   :  { %v9573_v21 = vpop.eup %6674 }
 0x8bc   :  { %6682 = vpow2.f32 %v4210_v22 }
 0x8bd   :  { %6684 = vpow2.f32 %v4553_v30 }
 0x8be   :  { %4583 = vadd.xlane.f32.xlu0 %v9570_v38 }
 0x8c1   :  { %v9575_v46 = vpop.eup %6676 }
 0x8c2   :  { %10080 = vst [vmem:[#allocation11_spill] sm:$0xff] %v9575_v46  ;;  %3903 = vadd.xlane.f32.xlu0 %v9573_v21  ;;  %3560 = vadd.xlane.f32.xlu1 %v9575_v46  ;;  %v9579_v50 = vpop.eup %6678 }
 0x8c3   :  { %10081 = vst [vmem:[#allocation12_spill] sm:$0xff] %v9579_v50 }
 0x8c5   :  { %v9581_v26 = vpop.eup %6680 }
 0x8c6   :  { %10082 = vst [vmem:[#allocation13_spill] sm:$0xff] %v9581_v26  ;;  %4244 = vadd.xlane.f32.xlu0 %v9579_v50  ;;  %3901 = vadd.xlane.f32.xlu1 %v9581_v26 }
 0x8c7   :  { %v3535_v2 = vpop.xlane.xlu0 %3534 }
 0x8c8   :  { %6686 = vrcp.f32 %v3535_v2  ;;  %v3533_v14 = vpop.xlane.xlu1 %3532 }
 0x8c9   :  { %6688 = vrcp.f32 %v3533_v14  ;;  %v9585_v19 = vpop.eup %6682 }
 0x8ca   :  { %10083 = vst [vmem:[#allocation14_spill] sm:$0xff] %v9585_v19  ;;  %4242 = vadd.xlane.f32.xlu1 %v9585_v19  ;;  %v9588_v34 = vpop.eup %6684 }
 0x8cb   :  { %v4556_v32 = vpop.xlane.xlu0 %4555  ;;  %10084 = vst [vmem:[#allocation17_spill] sm:$0xff] %v9588_v34 }
 0x8cc   :  { %6690 = vrcp.f32 %v4556_v32  ;;  %v3874_v39 = vpop.xlane.xlu1 %3873 }
 0x8cd   :  { %6692 = vrcp.f32 %v3874_v39 }
 0x8ce   :  { %4585 = vadd.xlane.f32.xlu1 %v9588_v34 }
 0x8cf   :  { %v3876_v47 = vpop.xlane.xlu0 %3875 }
 0x8d0   :  { %6694 = vrcp.f32 %v3876_v47  ;;  %v4215_v22 = vpop.xlane.xlu1 %4214 }
 0x8d1   :  { %6696 = vrcp.f32 %v4215_v22 }
 0x8d3   :  { %v4217_v30 = vpop.xlane.xlu0 %4216 }
 0x8d4   :  { %6698 = vrcp.f32 %v4217_v30  ;;  %v4558_v2 = vpop.xlane.xlu1 %4557 }
 0x8d5   :  { %v6687_v14 = vpop.eup %6686  ;;  %6700 = vrcp.f32 %v4558_v2 }
 0x8d6   :  { %v6689_v26 = vpop.eup %6688  ;;  %v3581_v19 = vmul.f32 %v6687_v14, %v9311_v51 }
 0x8d7   :  { %v3580_v32 = vmul.f32 %v6689_v26, %v9314_v42  ;;  %v3539_v50 = vpop.xlane.xlu0 %3538 }
 0x8d8   :  { %3598 = vst [vmem:[#allocation4 + $0x208] sm:$0xff] %v3581_v19  ;;  %6702 = vrcp.f32 %v3539_v50 }
 0x8d9   :  { %v6691_v39 = vpop.eup %6690  ;;  %3597 = vst [vmem:[#allocation4 + $0x200] sm:$0xff] %v3580_v32 }
 0x8da   :  { %v6693_v34 = vpop.eup %6692  ;;  %v4603_v47 = vmul.f32 %v6691_v39, %v9319_v55 }
 0x8db   :  { %v3921_v22 = vmul.f32 %v6693_v34, %v9322_v3  ;;  %v3880_v46 = vpop.xlane.xlu0 %3879  ;;  %v4562_v30 = vpop.xlane.xlu1 %4561 }
 0x8dc   :  { %4620 = vst [vmem:[#allocation4 + $0x380] sm:$0xff] %v4603_v47  ;;  %5005 = vmatprep.mubr.f32.mxu1 %v4603_v47  ;;  %6704 = vrcp.f32 %v3880_v46 }
 0x8dd   :  { %v6695_v2 = vpop.eup %6694  ;;  %3938 = vst [vmem:[#allocation4 + $0x280] sm:$0xff] %v3921_v22  ;;  %4860 = vmatprep.mubr.f32.mxu0 %v3921_v22  ;;  %6706 = vrcp.f32 %v4562_v30 }
 0x8de   :  { %v6697_v51 = vpop.eup %6696  ;;  %4861 = vmatmul.mubr.f32.vlgmr.msra.gmra.mxu0 %v3580_v32  ;;  %v3922_v42 = vmul.f32 %v6695_v2, %v9327_v25 }
 0x8df   :  { %v4262_v50 = vmul.f32 %v6697_v51, %v9330_v7  ;;  %v4221_v26 = vpop.xlane.xlu0 %4220  ;;  %v3537_v14 = vpop.xlane.xlu1 %3536 }
 0x8e0   :  { %3939 = vst [vmem:[#allocation4 + $0x288] sm:$0xff] %v3922_v42  ;;  %4865 = vmatprep.mubr.f32.mxu0 %v3922_v42  ;;  %6708 = vrcp.f32 %v4221_v26 }
 0x8e1   :  { %v6699_v55 = vpop.eup %6698  ;;  %4279 = vst [vmem:[#allocation4 + $0x300] sm:$0xff] %v4262_v50  ;;  %5006 = vmatmul.mubr.f32.vlgmr.msra.gmra.mxu1 %v4262_v50  ;;  %6710 = vrcp.f32 %v3537_v14 }
 0x8e2   :  { %v6701_v3 = vpop.eup %6700  ;;  %4866 = vmatmul.mubr.f32.gmra.mxu0 %v3581_v19  ;;  %v4263_v46 = vmul.f32 %v6699_v55, %v9334_v56 }
 0x8e3   :  { %v4604_v34 = vmul.f32 %v6701_v3, %v9337_v4  ;;  %v4560_v32 = vpop.xlane.xlu0 %4559  ;;  %v3878_v39 = vpop.xlane.xlu1 %3877 }
 0x8e4   :  { %4280 = vst [vmem:[#allocation4 + $0x308] sm:$0xff] %v4263_v46  ;;  %6712 = vrcp.f32 %v4560_v32 }
 0x8e5   :  { %4621 = vst [vmem:[#allocation4 + $0x388] sm:$0xff] %v4604_v34  ;;  %5010 = vmatprep.mubr.f32.mxu1 %v4604_v34  ;;  %v6703_v25 = vpop.eup %6702  ;;  %6714 = vrcp.f32 %v3878_v39 }
 0x8e6   :  { %5011 = vmatmul.mubr.f32.gmra.mxu1 %v4263_v46  ;;  %v3583_v7 = vmul.f32 %v6703_v25, %v9342_v58 }
 0x8e7   :  { %v4219_v47 = vpop.xlane.xlu1 %4218 }
 0x8e8   :  { %6716 = vrcp.f32 %v4219_v47  ;;  %3600 = vst [vmem:[#allocation4 + $0x218] sm:$0xff] %v3583_v7 }
 0x8e9   :  { %v6705_v22 = vpop.eup %6704 }
 0x8ea   :  { %v6707_v19 = vpop.eup %6706  ;;  %v3924_v56 = vmul.f32 %v6705_v22, %v9346_v36 }
 0x8eb   :  { %v3543_v30 = vpop.xlane.xlu0 %3542  ;;  %v4606_v4 = vmul.f32 %v6707_v19, %v9349_v0 }
 0x8ec   :  { %6718 = vrcp.f32 %v3543_v30  ;;  %3941 = vst [vmem:[#allocation4 + $0x298] sm:$0xff] %v3924_v56 }
 0x8ed   :  { %v6709_v2 = vpop.eup %6708  ;;  %4623 = vst [vmem:[#allocation4 + $0x398] sm:$0xff] %v4606_v4 }
 0x8ee   :  { %v6711_v51 = vpop.eup %6710  ;;  %v4265_v42 = vmul.f32 %v6709_v2, %v9354_v62 }
 0x8ef   :  { %v3884_v50 = vpop.xlane.xlu0 %3883  ;;  %v4566_v26 = vpop.xlane.xlu1 %4565  ;;  %v3582_v58 = vmul.f32 %v6711_v51, %v9357_v20 }
 0x8f0   :  { %6720 = vrcp.f32 %v3884_v50  ;;  %4282 = vst [vmem:[#allocation4 + $0x318] sm:$0xff] %v4265_v42 }
 0x8f1   :  { %v6713_v14 = vpop.eup %6712  ;;  %6722 = vrcp.f32 %v4566_v26  ;;  %3599 = vst [vmem:[#allocation4 + $0x210] sm:$0xff] %v3582_v58  ;;  %v10085_v26 = vld [vmem:[#allocation29_spill] sm:$0xff] }
 0x8f2   :  { %v6715_v36 = vpop.eup %6714  ;;  %v4605_v55 = vmul.f32 %v6713_v14, %v9362_v27 }
 0x8f3   :  { %v4225_v0 = vpop.xlane.xlu0 %4224  ;;  %v3541_v3 = vpop.xlane.xlu1 %3540  ;;  %v3923_v46 = vmul.f32 %v6715_v36, %v9365_v41 }
 0x8f4   :  { %6724 = vrcp.f32 %v4225_v0  ;;  %4622 = vst [vmem:[#allocation4 + $0x390] sm:$0xff] %v4605_v55  ;;  %5015 = vmatprep.mubr.f32.mxu1 %v4605_v55  ;;  %v10087_v0 = vld [vmem:[#allocation30_spill] sm:$0xff] }
 0x8f5   :  { %v6717_v62 = vpop.eup %6716  ;;  %6726 = vrcp.f32 %v3541_v3  ;;  %3940 = vst [vmem:[#allocation4 + $0x290] sm:$0xff] %v3923_v46  ;;  %4870 = vmatprep.mubr.f32.mxu0 %v3923_v46 }
 0x8f6   :  { %4871 = vmatmul.mubr.f32.gmra.mxu0 %v3582_v58  ;;  %v4264_v20 = vmul.f32 %v6717_v62, %v9370_v60 }
 0x8f7   :  { %4875 = vmatprep.mubr.f32.mxu0 %v3924_v56  ;;  %v4564_v34 = vpop.xlane.xlu0 %4563  ;;  %v3882_v32 = vpop.xlane.xlu1 %3881 }
 0x8f8   :  { %6728 = vrcp.f32 %v4564_v34  ;;  %4281 = vst [vmem:[#allocation4 + $0x310] sm:$0xff] %v4264_v20  ;;  %5016 = vmatmul.mubr.f32.gmra.mxu1 %v4264_v20  ;;  %v10088_v34 = vld [vmem:[#allocation7_spill] sm:$0xff] }
 0x8f9   :  { %v6719_v27 = vpop.eup %6718  ;;  %6730 = vrcp.f32 %v3882_v32  ;;  %5020 = vmatprep.mubr.f32.mxu1 %v4606_v4 }
 0x8fa   :  { %4876 = vmatmul.mubr.f32.gmra.mxu0 %v3583_v7  ;;  %v3585_v41 = vmul.f32 %v6719_v27, %v9376_v59 }
 0x8fb   :  { %v4223_v39 = vpop.xlane.xlu1 %4222 }
 0x8fc   :  { %6732 = vrcp.f32 %v4223_v39  ;;  %5021 = vmatmul.mubr.f32.gmra.mxu1 %v4265_v42  ;;  %3602 = vst [vmem:[#allocation4 + $0x228] sm:$0xff] %v3585_v41  ;;  %v10089_v39 = vld [vmem:[#allocation9_spill] sm:$0xff] }
 0x8fd   :  { %v6721_v25 = vpop.eup %6720 }
 0x8fe   :  { %v6723_v47 = vpop.eup %6722  ;;  %v3926_v60 = vmul.f32 %v6721_v25, %v9382_v40 }
 0x8ff   :  { %v3547_v22 = vpop.xlane.xlu0 %3546  ;;  %v4608_v19 = vmul.f32 %v6723_v47, %v9385_v17 }
 0x900   :  { %6734 = vrcp.f32 %v3547_v22  ;;  %3943 = vst [vmem:[#allocation4 + $0x2a8] sm:$0xff] %v3926_v60 }
 0x901   :  { %v6725_v56 = vpop.eup %6724  ;;  %4625 = vst [vmem:[#allocation4 + $0x3a8] sm:$0xff] %v4608_v19 }
 0x902   :  { %v6727_v30 = vpop.eup %6726  ;;  %v4267_v7 = vmul.f32 %v6725_v56, %v9392_v43 }
 0x903   :  { %v3888_v4 = vpop.xlane.xlu0 %3887  ;;  %v4570_v59 = vpop.xlane.xlu1 %4569  ;;  %v3584_v2 = vmul.f32 %v6727_v30, %v9395_v52  ;;  %v10086_v52 = vld [vmem:[#allocation27_spill] sm:$0xff] }
 0x904   :  { %6736 = vrcp.f32 %v3888_v4  ;;  %4284 = vst [vmem:[#allocation4 + $0x328] sm:$0xff] %v4267_v7  ;;  %v10090_v4 = vld [vmem:[#allocation8_spill] sm:$0xff] }
 0x905   :  { %v6729_v51 = vpop.eup %6728  ;;  %6738 = vrcp.f32 %v4570_v59  ;;  %3601 = vst [vmem:[#allocation4 + $0x220] sm:$0xff] %v3584_v2 }
 0x906   :  { %v6731_v40 = vpop.eup %6730  ;;  %v4607_v42 = vmul.f32 %v6729_v51, %v9402_v35 }
 0x907   :  { %v4229_v17 = vpop.xlane.xlu0 %4228  ;;  %v3545_v50 = vpop.xlane.xlu1 %3544  ;;  %v3925_v58 = vmul.f32 %v6731_v40, %v10085_v26  ;;  %v10091_v40 = vld [vmem:[#allocation10_spill] sm:$0xff] }
 0x908   :  { %6740 = vrcp.f32 %v4229_v17  ;;  %4624 = vst [vmem:[#allocation4 + $0x3a0] sm:$0xff] %v4607_v42  ;;  %5025 = vmatprep.mubr.f32.mxu1 %v4607_v42 }
 0x909   :  { %v6733_v43 = vpop.eup %6732  ;;  %6742 = vrcp.f32 %v3545_v50  ;;  %3942 = vst [vmem:[#allocation4 + $0x2a0] sm:$0xff] %v3925_v58  ;;  %4880 = vmatprep.mubr.f32.mxu0 %v3925_v58 }
 0x90a   :  { %4881 = vmatmul.mubr.f32.gmra.mxu0 %v3584_v2  ;;  %v4266_v14 = vmul.f32 %v6733_v43, %v10086_v52 }
 0x90b   :  { %4885 = vmatprep.mubr.f32.mxu0 %v3926_v60  ;;  %v4568_v36 = vpop.xlane.xlu0 %4567  ;;  %v3886_v55 = vpop.xlane.xlu1 %3885 }
 0x90c   :  { %6744 = vrcp.f32 %v4568_v36  ;;  %4283 = vst [vmem:[#allocation4 + $0x320] sm:$0xff] %v4266_v14  ;;  %5026 = vmatmul.mubr.f32.gmra.mxu1 %v4266_v14 }
 0x90d   :  { %v6735_v35 = vpop.eup %6734  ;;  %6746 = vrcp.f32 %v3886_v55  ;;  %5030 = vmatprep.mubr.f32.mxu1 %v4608_v19 }
 0x90e   :  { %4886 = vmatmul.mubr.f32.gmra.mxu0 %v3585_v41  ;;  %v3587_v3 = vmul.f32 %v6735_v35, %v10087_v0 }
 0x90f   :  { %v4227_v46 = vpop.xlane.xlu1 %4226 }
 0x910   :  { %6748 = vrcp.f32 %v4227_v46  ;;  %5031 = vmatmul.mubr.f32.gmra.mxu1 %v4267_v7  ;;  %3604 = vst [vmem:[#allocation4 + $0x238] sm:$0xff] %v3587_v3 }
 0x911   :  { %v6737_v62 = vpop.eup %6736 }
 0x912   :  { %v6739_v20 = vpop.eup %6738  ;;  %v3928_v32 = vmul.f32 %v6737_v62, %v10088_v34 }
 0x913   :  { %v3551_v27 = vpop.xlane.xlu0 %3550  ;;  %v4610_v25 = vmul.f32 %v6739_v20, %v10089_v39 }
 0x914   :  { %6750 = vrcp.f32 %v3551_v27  ;;  %3945 = vst [vmem:[#allocation4 + $0x2b8] sm:$0xff] %v3928_v32 }
 0x915   :  { %v6741_v47 = vpop.eup %6740  ;;  %4627 = vst [vmem:[#allocation4 + $0x3b8] sm:$0xff] %v4610_v25 }
 0x916   :  { %v6743_v60 = vpop.eup %6742  ;;  %v4269_v41 = vmul.f32 %v6741_v47, %v9436_v61 }
 0x917   :  { %v3892_v22 = vpop.xlane.xlu0 %3891  ;;  %v4574_v19 = vpop.xlane.xlu1 %4573  ;;  %v3586_v56 = vmul.f32 %v6743_v60, %v9439_v16 }
 0x918   :  { %6752 = vrcp.f32 %v3892_v22  ;;  %4286 = vst [vmem:[#allocation4 + $0x338] sm:$0xff] %v4269_v41 }
 0x919   :  { %v6745_v30 = vpop.eup %6744  ;;  %6754 = vrcp.f32 %v4574_v19  ;;  %3603 = vst [vmem:[#allocation4 + $0x230] sm:$0xff] %v3586_v56 }
 0x91a   :  { %v6747_v7 = vpop.eup %6746  ;;  %v4609_v59 = vmul.f32 %v6745_v30, %v10090_v4 }
 0x91b   :  { %v4233_v2 = vpop.xlane.xlu0 %4232  ;;  %v3549_v51 = vpop.xlane.xlu1 %3548  ;;  %v3927_v42 = vmul.f32 %v6747_v7, %v10091_v40 }
 0x91c   :  { %6756 = vrcp.f32 %v4233_v2  ;;  %4626 = vst [vmem:[#allocation4 + $0x3b0] sm:$0xff] %v4609_v59  ;;  %5035 = vmatprep.mubr.f32.mxu1 %v4609_v59 }
 0x91d   :  { %v6749_v61 = vpop.eup %6748  ;;  %6758 = vrcp.f32 %v3549_v51  ;;  %3944 = vst [vmem:[#allocation4 + $0x2b0] sm:$0xff] %v3927_v42  ;;  %4890 = vmatprep.mubr.f32.mxu0 %v3927_v42 }
 0x91e   :  { %4891 = vmatmul.mubr.f32.gmra.mxu0 %v3586_v56  ;;  %v4268_v16 = vmul.f32 %v6749_v61, %v9457_v28 }
 0x91f   :  { %4895 = vmatprep.mubr.f32.mxu0 %v3928_v32  ;;  %v4572_v17 = vpop.xlane.xlu0 %4571  ;;  %v3890_v50 = vpop.xlane.xlu1 %3889 }
 0x920   :  { %6760 = vrcp.f32 %v4572_v17  ;;  %4285 = vst [vmem:[#allocation4 + $0x330] sm:$0xff] %v4268_v16  ;;  %5036 = vmatmul.mubr.f32.gmra.mxu1 %v4268_v16 }
 0x921   :  { %v6751_v26 = vpop.eup %6750  ;;  %6762 = vrcp.f32 %v3890_v50  ;;  %5040 = vmatprep.mubr.f32.mxu1 %v4610_v25 }
 0x922   :  { %4896 = vmatmul.mubr.f32.gmra.mxu0 %v3587_v3  ;;  %v3589_v58 = vmul.f32 %v6751_v26, %v9465_v8 }
 0x923   :  { %v3555_v43 = vpop.xlane.xlu0 %3554  ;;  %v4231_v52 = vpop.xlane.xlu1 %4230 }
 0x924   :  { %6764 = vrcp.f32 %v3555_v43  ;;  %5041 = vmatmul.mubr.f32.gmra.mxu1 %v4269_v41  ;;  %3606 = vst [vmem:[#allocation4 + $0x248] sm:$0xff] %v3589_v58 }
 0x925   :  { %v6753_v14 = vpop.eup %6752  ;;  %6766 = vrcp.f32 %v4231_v52 }
 0x926   :  { %v6755_v28 = vpop.eup %6754  ;;  %v3930_v36 = vmul.f32 %v6753_v14, %v9470_v53 }
 0x927   :  { %v3896_v55 = vpop.xlane.xlu0 %3895  ;;  %v4578_v35 = vpop.xlane.xlu1 %4577  ;;  %v4612_v0 = vmul.f32 %v6755_v28, %v9473_v10 }
 0x928   :  { %6768 = vrcp.f32 %v3896_v55  ;;  %3947 = vst [vmem:[#allocation4 + $0x2c8] sm:$0xff] %v3930_v36 }
 0x929   :  { %v6757_v46 = vpop.eup %6756  ;;  %6770 = vrcp.f32 %v4578_v35  ;;  %4629 = vst [vmem:[#allocation4 + $0x3c8] sm:$0xff] %v4612_v0 }
 0x92a   :  { %v6759_v8 = vpop.eup %6758  ;;  %v4271_v3 = vmul.f32 %v6757_v46, %v9481_v5 }
 0x92b   :  { %v4237_v62 = vpop.xlane.xlu0 %4236  ;;  %v3553_v20 = vpop.xlane.xlu1 %3552  ;;  %v3588_v34 = vmul.f32 %v6759_v8, %v9484_v49 }
 0x92c   :  { %6772 = vrcp.f32 %v4237_v62  ;;  %4288 = vst [vmem:[#allocation4 + $0x348] sm:$0xff] %v4271_v3 }
 0x92d   :  { %v6761_v32 = vpop.eup %6760  ;;  %6774 = vrcp.f32 %v3553_v20  ;;  %3605 = vst [vmem:[#allocation4 + $0x240] sm:$0xff] %v3588_v34 }
 0x92e   :  { %v6763_v53 = vpop.eup %6762  ;;  %v4611_v10 = vmul.f32 %v6761_v32, %v9490_v13 }
 0x92f   :  { %v4576_v27 = vpop.xlane.xlu0 %4575  ;;  %v3894_v39 = vpop.xlane.xlu1 %3893  ;;  %v3929_v25 = vmul.f32 %v6763_v53, %v9493_v33 }
 0x930   :  { %6776 = vrcp.f32 %v4576_v27  ;;  %4628 = vst [vmem:[#allocation4 + $0x3c0] sm:$0xff] %v4611_v10  ;;  %5045 = vmatprep.mubr.f32.mxu1 %v4611_v10  ;;  %v10092_v27 = vld [vmem:[#allocation11_spill] sm:$0xff] }
 0x931   :  { %v6765_v5 = vpop.eup %6764  ;;  %6778 = vrcp.f32 %v3894_v39  ;;  %3946 = vst [vmem:[#allocation4 + $0x2c0] sm:$0xff] %v3929_v25  ;;  %4900 = vmatprep.mubr.f32.mxu0 %v3929_v25 }
 0x932   :  { %v6767_v49 = vpop.eup %6766  ;;  %4901 = vmatmul.mubr.f32.gmra.mxu0 %v3588_v34  ;;  %v3591_v47 = vmul.f32 %v6765_v5, %v9499_v44  ;;  %v10093_v5 = vld [vmem:[#allocation12_spill] sm:$0xff] }
 0x933   :  { %4905 = vmatprep.mubr.f32.mxu0 %v3930_v36  ;;  %v3559_v60 = vpop.xlane.xlu0 %3558  ;;  %v4235_v41 = vpop.xlane.xlu1 %4234  ;;  %v4270_v13 = vmul.f32 %v6767_v49, %v9502_v1 }
 0x934   :  { %6780 = vrcp.f32 %v3559_v60  ;;  %3608 = vst [vmem:[#allocation4 + $0x258] sm:$0xff] %v3591_v47 }
 0x935   :  { %v6769_v22 = vpop.eup %6768  ;;  %6782 = vrcp.f32 %v4235_v41  ;;  %4287 = vst [vmem:[#allocation4 + $0x340] sm:$0xff] %v4270_v13  ;;  %5046 = vmatmul.mubr.f32.gmra.mxu1 %v4270_v13  ;;  %v10095_v41 = vld [vmem:[#allocation14_spill] sm:$0xff] }
 0x936   :  { %v6771_v33 = vpop.eup %6770  ;;  %4906 = vmatmul.mubr.f32.gmra.mxu0 %v3589_v58  ;;  %5050 = vmatprep.mubr.f32.mxu1 %v4612_v0  ;;  %v3932_v19 = vmul.f32 %v6769_v22, %v9508_v6  ;;  %v10096_v22 = vld [vmem:[#allocation17_spill] sm:$0xff] }
 0x937   :  { %v3900_v56 = vpop.xlane.xlu0 %3899  ;;  %v4582_v30 = vpop.xlane.xlu1 %4581  ;;  %v4614_v44 = vmul.f32 %v6771_v33, %v9511_v54 }
 0x938   :  { %6784 = vrcp.f32 %v3900_v56  ;;  %3949 = vst [vmem:[#allocation4 + $0x2d8] sm:$0xff] %v3932_v19 }
 0x939   :  { %v6773_v7 = vpop.eup %6772  ;;  %6786 = vrcp.f32 %v4582_v30  ;;  %5051 = vmatmul.mubr.f32.gmra.mxu1 %v4271_v3  ;;  %4631 = vst [vmem:[#allocation4 + $0x3d8] sm:$0xff] %v4614_v44 }
 0x93a   :  { %v6775_v1 = vpop.eup %6774  ;;  %v4273_v4 = vmul.f32 %v6773_v7, %v9517_v15 }
 0x93b   :  { %v4241_v59 = vpop.xlane.xlu0 %4240  ;;  %v3557_v2 = vpop.xlane.xlu1 %3556  ;;  %v3590_v51 = vmul.f32 %v6775_v1, %v9520_v57 }
 0x93c   :  { %6788 = vrcp.f32 %v4241_v59  ;;  %4290 = vst [vmem:[#allocation4 + $0x358] sm:$0xff] %v4273_v4 }
 0x93d   :  { %v6777_v6 = vpop.eup %6776  ;;  %6790 = vrcp.f32 %v3557_v2  ;;  %3607 = vst [vmem:[#allocation4 + $0x250] sm:$0xff] %v3590_v51 }
 0x93e   :  { %v6779_v40 = vpop.eup %6778  ;;  %v4613_v54 = vmul.f32 %v6777_v6, %v9525_v23 }
 0x93f   :  { %v4580_v42 = vpop.xlane.xlu0 %4579  ;;  %v3898_v61 = vpop.xlane.xlu1 %3897  ;;  %v3931_v16 = vmul.f32 %v6779_v40, %v9528_v48 }
 0x940   :  { %6792 = vrcp.f32 %v4580_v42  ;;  %4630 = vst [vmem:[#allocation4 + $0x3d0] sm:$0xff] %v4613_v54  ;;  %5055 = vmatprep.mubr.f32.mxu1 %v4613_v54 }
 0x941   :  { %v6781_v15 = vpop.eup %6780  ;;  %6794 = vrcp.f32 %v3898_v61  ;;  %3948 = vst [vmem:[#allocation4 + $0x2d0] sm:$0xff] %v3931_v16  ;;  %4910 = vmatprep.mubr.f32.mxu0 %v3931_v16 }
 0x942   :  { %v6783_v57 = vpop.eup %6782  ;;  %4911 = vmatmul.mubr.f32.gmra.mxu0 %v3590_v51  ;;  %v3593_v17 = vmul.f32 %v6781_v15, %v9532_v29 }
 0x943   :  { %4915 = vmatprep.mubr.f32.mxu0 %v3932_v19  ;;  %v3563_v50 = vpop.xlane.xlu0 %3562  ;;  %v4239_v26 = vpop.xlane.xlu1 %4238  ;;  %v4272_v23 = vmul.f32 %v6783_v57, %v9536_v45 }
 0x944   :  { %6796 = vrcp.f32 %v3563_v50  ;;  %3610 = vst [vmem:[#allocation4 + $0x268] sm:$0xff] %v3593_v17 }
 0x945   :  { %v6785_v58 = vpop.eup %6784  ;;  %6798 = vrcp.f32 %v4239_v26  ;;  %4289 = vst [vmem:[#allocation4 + $0x350] sm:$0xff] %v4272_v23  ;;  %5056 = vmatmul.mubr.f32.gmra.mxu1 %v4272_v23 }
 0x946   :  { %v6787_v48 = vpop.eup %6786  ;;  %4916 = vmatmul.mubr.f32.gmra.mxu0 %v3591_v47  ;;  %5060 = vmatprep.mubr.f32.mxu1 %v4614_v44  ;;  %v3934_v43 = vmul.f32 %v6785_v58, %v9541_v63  ;;  %v10094_v47 = vld [vmem:[#allocation13_spill] sm:$0xff] }
 0x947   :  { %v4584_v52 = vpop.xlane.xlu0 %4583  ;;  %v4616_v14 = vmul.f32 %v6787_v48, %v9543_v31 }
 0x948   :  { %6800 = vrcp.f32 %v4584_v52  ;;  %3951 = vst [vmem:[#allocation4 + $0x2e8] sm:$0xff] %v3934_v43 }
 0x949   :  { %v6789_v29 = vpop.eup %6788  ;;  %5061 = vmatmul.mubr.f32.gmra.mxu1 %v4273_v4  ;;  %4633 = vst [vmem:[#allocation4 + $0x3e8] sm:$0xff] %v4616_v14 }
 0x94a   :  { %v6791_v45 = vpop.eup %6790  ;;  %v4275_v28 = vmul.f32 %v6789_v29, %v9548_v12 }
 0x94b   :  { %v3904_v36 = vpop.xlane.xlu0 %3903  ;;  %v3561_v55 = vpop.xlane.xlu1 %3560  ;;  %v3592_v35 = vmul.f32 %v6791_v45, %v9551_v11 }
 0x94c   :  { %6802 = vrcp.f32 %v3904_v36  ;;  %4292 = vst [vmem:[#allocation4 + $0x368] sm:$0xff] %v4275_v28 }
 0x94d   :  { %v6793_v0 = vpop.eup %6792  ;;  %6804 = vrcp.f32 %v3561_v55  ;;  %3609 = vst [vmem:[#allocation4 + $0x260] sm:$0xff] %v3592_v35 }
 0x94e   :  { %v6795_v63 = vpop.eup %6794  ;;  %v4615_v31 = vmul.f32 %v6793_v0, %v9555_v18 }
 0x94f   :  { %v4245_v46 = vpop.xlane.xlu0 %4244  ;;  %v3902_v8 = vpop.xlane.xlu1 %3901  ;;  %v3933_v3 = vmul.f32 %v6795_v63, %v9558_v9 }
 0x950   :  { %6806 = vrcp.f32 %v4245_v46  ;;  %4632 = vst [vmem:[#allocation4 + $0x3e0] sm:$0xff] %v4615_v31  ;;  %5065 = vmatprep.mubr.f32.mxu1 %v4615_v31 }
 0x951   :  { %v6797_v12 = vpop.eup %6796  ;;  %6808 = vrcp.f32 %v3902_v8  ;;  %3950 = vst [vmem:[#allocation4 + $0x2e0] sm:$0xff] %v3933_v3  ;;  %4920 = vmatprep.mubr.f32.mxu0 %v3933_v3 }
 0x952   :  { %v6799_v11 = vpop.eup %6798  ;;  %4921 = vmatmul.mubr.f32.gmra.mxu0 %v3592_v35  ;;  %v3595_v62 = vmul.f32 %v6797_v12, %v9562_v37 }
 0x953   :  { %4925 = vmatprep.mubr.f32.mxu0 %v3934_v43  ;;  %v4243_v20 = vpop.xlane.xlu1 %4242  ;;  %v4274_v34 = vmul.f32 %v6799_v11, %v9566_v24 }
 0x954   :  { %6810 = vrcp.f32 %v4243_v20  ;;  %3612 = vst [vmem:[#allocation4 + $0x278] sm:$0xff] %v3595_v62 }
 0x955   :  { %v6801_v18 = vpop.eup %6800  ;;  %4291 = vst [vmem:[#allocation4 + $0x360] sm:$0xff] %v4274_v34  ;;  %5066 = vmatmul.mubr.f32.gmra.mxu1 %v4274_v34 }
 0x956   :  { %4926 = vmatmul.mubr.f32.gmra.mxu0 %v3593_v17  ;;  %5070 = vmatprep.mubr.f32.mxu1 %v4616_v14  ;;  %v4617_v9 = vmul.f32 %v6801_v18, %v9570_v38 }
 0x957   :  { %v4586_v32 = vpop.xlane.xlu1 %4585 }
 0x958   :  { %6812 = vrcp.f32 %v4586_v32  ;;  %4634 = vst [vmem:[#allocation4 + $0x3f0] sm:$0xff] %v4617_v9 }
 0x959   :  { %v6803_v53 = vpop.eup %6802  ;;  %5071 = vmatmul.mubr.f32.gmra.mxu1 %v4275_v28 }
 0x95a   :  { %v6805_v10 = vpop.eup %6804  ;;  %5075 = vmatprep.mubr.f32.mxu1 %v4617_v9  ;;  %v3936_v37 = vmul.f32 %v6803_v53, %v9573_v21 }
 0x95b   :  { %v3594_v24 = vmul.f32 %v6805_v10, %v10092_v27 }
 0x95c   :  { %3953 = vst [vmem:[#allocation4 + $0x2f8] sm:$0xff] %v3936_v37 }
 0x95d   :  { %v6807_v39 = vpop.eup %6806  ;;  %3611 = vst [vmem:[#allocation4 + $0x270] sm:$0xff] %v3594_v24 }
 0x95e   :  { %v6809_v25 = vpop.eup %6808  ;;  %v4277_v49 = vmul.f32 %v6807_v39, %v10093_v5 }
 0x95f   :  { %v3935_v60 = vmul.f32 %v6809_v25, %v10094_v47 }
 0x960   :  { %4294 = vst [vmem:[#allocation4 + $0x378] sm:$0xff] %v4277_v49 }
 0x961   :  { %v6811_v38 = vpop.eup %6810  ;;  %3952 = vst [vmem:[#allocation4 + $0x2f0] sm:$0xff] %v3935_v60  ;;  %4930 = vmatprep.mubr.f32.mxu0 %v3935_v60 }
 0x962   :  { %4931 = vmatmul.mubr.f32.gmra.mxu0 %v3594_v24  ;;  %v4276_v13 = vmul.f32 %v6811_v38, %v10095_v41 }
 0x963   :  { %4935 = vmatprep.mubr.f32.mxu0 %v3936_v37 }
 0x964   :  { %4293 = vst [vmem:[#allocation4 + $0x370] sm:$0xff] %v4276_v13  ;;  %5076 = vmatmul.mubr.f32.gmra.mxu1 %v4276_v13 }
 0x965   :  { %v6813_v21 = vpop.eup %6812 }
 0x966   :  { %4936 = vmatmul.mubr.f32.gmra.mxu0 %v3595_v62  ;;  %v4618_v33 = vmul.f32 %v6813_v21, %v10096_v22 }
 0x968   :  { %4635 = vst [vmem:[#allocation4 + $0x3f8] sm:$0xff] %v4618_v33  ;;  %5080 = vmatprep.mubr.f32.mxu1 %v4618_v33 }
 0x969   :  { %5081 = vmatmul.mubr.f32.gmra.mxu1 %v4277_v49 }
 0x99e   :  { %v5786_v19 = vpop.f32.mrf.mxu0 }
 0x9a0   :  { %v5787_v56 = vpop.f32.mrf.mxu0 }
 0x9a1   :  { %v5866_v30 = vpop.f32.mrf.mxu1  ;;  %v5788_v1 = vadd.f32 %v5787_v56, %v5786_v19 }
 0x9a2   :  { %v5789_v44 = vpop.f32.mrf.mxu0 }
 0x9a3   :  { %v5867_v7 = vpop.f32.mrf.mxu1 }
 0x9a4   :  { %v5868_v4 = vadd.f32 %v5867_v7, %v5866_v30  ;;  %v5790_v2 = vpop.f32.mrf.mxu0 }
 0x9a5   :  { %v5791_v54 = vadd.f32 %v5790_v2, %v5789_v44 }
 0x9a6   :  { %v5008_v59 = vadd.f32 %v5868_v4, %v5788_v1  ;;  %v5869_v51 = vpop.f32.mrf.mxu1 }
 0x9a8   :  { %v5102_v6 = vmin.f32 %v5008_v59, 0.0  ;;  %v5870_v40 = vpop.f32.mrf.mxu1  ;;  %vm5086_vm8 = vcmp.gt.f32.partialorder %v5008_v59, 0.0 }
 0x9a9   :  { %v5871_v42 = vadd.f32 %v5870_v40, %v5869_v51 }
 0x9aa   :  { %v5118_v61 = vmul.f32 1.442695, %v5102_v6 }
 0x9ab   :  { %v5013_v16 = vadd.f32 %v5871_v42, %v5791_v54 }
 0x9ac   :  { %6814 = vpow2.f32 %v5118_v61 }
 0x9ad   :  { %v5103_v15 = vmin.f32 %v5013_v16, 0.0  ;;  %vm5087_vm6 = vcmp.gt.f32.partialorder %v5013_v16, 0.0 }
 0x9af   :  { %v5120_v57 = vmul.f32 1.442695, %v5103_v15 }
 0x9b1   :  { %6816 = vpow2.f32 %v5120_v57 }
 0x9b6   :  { %v5792_v17 = vpop.f32.mrf.mxu0 }
 0x9b8   :  { %v5793_v26 = vpop.f32.mrf.mxu0  ;;  %v5872_v23 = vpop.f32.mrf.mxu1 }
 0x9b9   :  { %v6815_v50 = vpop.eup %6814  ;;  %v5794_v14 = vadd.f32 %v5793_v26, %v5792_v17 }
 0x9ba   :  { %v5442_v58 = vadd.f32 -1.0, %v6815_v50  ;;  %v5795_v48 = vpop.f32.mrf.mxu0  ;;  %v5873_v43 = vpop.f32.mrf.mxu1 }
 0x9bb   :  { %v5874_v29 = vadd.f32 %v5873_v43, %v5872_v23 }
 0x9bc   :  { %v5166_v52 = vsel %vm5086_vm8, %v5008_v59, %v5442_v58  ;;  %v5796_v28 = vpop.f32.mrf.mxu0  ;;  %v5875_v36 = vpop.f32.mrf.mxu1 }
 0x9bd   :  { %v5198_v45 = vmin.f32 %v5166_v52, 0.0  ;;  %v5018_v35 = vadd.f32 %v5874_v29, %v5794_v14  ;;  %v5797_v8 = vadd.f32 %v5796_v28, %v5795_v48  ;;  %vm5182_vm5 = vcmp.gt.f32.partialorder %v5166_v52, 0.0 }
 0x9be   :  { %v6817_v55 = vpop.eup %6816  ;;  %v5876_v31 = vpop.f32.mrf.mxu1 }
 0x9bf   :  { %v5214_v0 = vmul.f32 1.442695, %v5198_v45  ;;  %v5443_v63 = vadd.f32 -1.0, %v6817_v55  ;;  %v5104_v46 = vmin.f32 %v5018_v35, 0.0  ;;  %v5877_v3 = vadd.f32 %v5876_v31, %v5875_v36 }
 0x9c0   :  { %vm5088_vm7 = vcmp.gt.f32.partialorder %v5018_v35, 0.0 }
 0x9c1   :  { %6818 = vpow2.f32 %v5214_v0  ;;  %v5167_v12 = vsel %vm5087_vm6, %v5013_v16, %v5443_v63  ;;  %v5122_v62 = vmul.f32 1.442695, %v5104_v46  ;;  %v5023_v20 = vadd.f32 %v5877_v3, %v5797_v8 }
 0x9c2   :  { %v5199_v11 = vmin.f32 %v5167_v12, 0.0  ;;  %vm5183_vm12 = vcmp.gt.f32.partialorder %v5167_v12, 0.0 }
 0x9c3   :  { %6820 = vpow2.f32 %v5122_v62  ;;  %v5105_v18 = vmin.f32 %v5023_v20, 0.0  ;;  %vm5089_vm13 = vcmp.gt.f32.partialorder %v5023_v20, 0.0 }
 0x9c4   :  { %v5216_v34 = vmul.f32 1.442695, %v5199_v11 }
 0x9c5   :  { %v5124_v9 = vmul.f32 1.442695, %v5105_v18 }
 0x9c6   :  { %6822 = vpow2.f32 %v5216_v34 }
 0x9c7   :  { %6824 = vpow2.f32 %v5124_v9 }
 0x9ca   :  { %v5798_v32 = vpop.f32.mrf.mxu0 }
 0x9cc   :  { %v5799_v53 = vpop.f32.mrf.mxu0  ;;  %v5878_v10 = vpop.f32.mrf.mxu1 }
 0x9cd   :  { %v5800_v25 = vadd.f32 %v5799_v53, %v5798_v32 }
 0x9ce   :  { %v6819_v37 = vpop.eup %6818  ;;  %v5801_v24 = vpop.f32.mrf.mxu0 }
 0x9cf   :  { %v5458_v27 = vadd.f32 -1.0, %v6819_v37  ;;  %v5879_v39 = vpop.f32.mrf.mxu1 }
 0x9d0   :  { %v5880_v5 = vadd.f32 %v5879_v39, %v5878_v10  ;;  %v6821_v49 = vpop.eup %6820  ;;  %v5802_v13 = vpop.f32.mrf.mxu0 }
 0x9d1   :  { %v5262_v47 = vsel %vm5182_vm5, %v5166_v52, %v5458_v27  ;;  %v5881_v60 = vpop.f32.mrf.mxu1  ;;  %v5444_v38 = vadd.f32 -1.0, %v6821_v49  ;;  %v5803_v7 = vadd.f32 %v5802_v13, %v5801_v24 }
 0x9d2   :  { %5278 = vst.msk [vmem:[%s9730_s8] sm:$0xff] %vm64_vm0, %v5262_v47  ;;  %v5028_v41 = vadd.f32 %v5880_v5, %v5800_v25 }
 0x9d3   :  { %v6823_v21 = vpop.eup %6822  ;;  %v5882_v22 = vpop.f32.mrf.mxu1  ;;  %v5168_v19 = vsel %vm5088_vm7, %v5018_v35, %v5444_v38 }
 0x9d4   :  { %v5459_v33 = vadd.f32 -1.0, %v6823_v21  ;;  %v5106_v56 = vmin.f32 %v5028_v41, 0.0  ;;  %v6825_v30 = vpop.eup %6824  ;;  %v5200_v44 = vmin.f32 %v5168_v19, 0.0  ;;  %v5883_v1 = vadd.f32 %v5882_v22, %v5881_v60 }
 0x9d5   :  { %v5445_v59 = vadd.f32 -1.0, %v6825_v30 }
 0x9d6   :  { %v5263_v4 = vsel %vm5183_vm12, %v5167_v12, %v5459_v33  ;;  %v5126_v2 = vmul.f32 1.442695, %v5106_v56  ;;  %v5218_v51 = vmul.f32 1.442695, %v5200_v44  ;;  %v5033_v6 = vadd.f32 %v5883_v1, %v5803_v7 }
 0x9d7   :  { %5279 = vst.msk [vmem:[%s9730_s8 + $0x8] sm:$0xff] %vm64_vm0, %v5263_v4  ;;  %v5169_v40 = vsel %vm5089_vm13, %v5023_v20, %v5445_v59 }
 0x9d8   :  { %6826 = vpow2.f32 %v5126_v2  ;;  %v5201_v54 = vmin.f32 %v5169_v40, 0.0  ;;  %v5107_v42 = vmin.f32 %v5033_v6, 0.0 }
 0x9d9   :  { %6828 = vpow2.f32 %v5218_v51 }
 0x9da   :  { %v5220_v61 = vmul.f32 1.442695, %v5201_v54  ;;  %v5128_v16 = vmul.f32 1.442695, %v5107_v42 }
 0x9dc   :  { %6830 = vpow2.f32 %v5220_v61 }
 0x9dd   :  { %6832 = vpow2.f32 %v5128_v16 }
 0x9de   :  { %6889 = shalt.err (!%p6886_p4)
}
 0x9df   :  { %s6906_s26 = smov 128   ;;  %s6907_s2 = smov 8   ;;  %v5804_v15 = vpop.f32.mrf.mxu0  ;;  %vm5184_vm15 = vcmp.gt.f32.partialorder %v5168_v19, 0.0  ;;  %vm5090_vm14 = vcmp.gt.f32.partialorder %v5028_v41, 0.0  ;;  %vm5185_vm3 = vcmp.gt.f32.partialorder %v5169_v40, 0.0  ;;  %vm5091_vm2 = vcmp.gt.f32.partialorder %v5033_v6, 0.0 }
 0x9e0   :  { %5307 = dma.vmem_to_hbm [thread:$0]  %s5302_s1, 16384, %s9731_s9, [#allocation5], %s6906_s26, %s6906_s26, %s6907_s2   ;;  %v5884_v17 = vpop.f32.mrf.mxu1 }
 0x9e1   :  { %v5805_v57 = vpop.f32.mrf.mxu0 }
 0x9e2   :  { %v5885_v26 = vpop.f32.mrf.mxu1  ;;  %v5806_v23 = vadd.f32 %v5805_v57, %v5804_v15 }
 0x9e3   :  { %v5807_v50 = vpop.f32.mrf.mxu0  ;;  %v5886_v58 = vadd.f32 %v5885_v26, %v5884_v17 }
 0x9e4   :  { %v5887_v52 = vpop.f32.mrf.mxu1 }
 0x9e5   :  { %v6827_v48 = vpop.eup %6826  ;;  %v5808_v43 = vpop.f32.mrf.mxu0  ;;  %v5038_v45 = vadd.f32 %v5886_v58, %v5806_v23 }
 0x9e6   :  { %v6829_v14 = vpop.eup %6828  ;;  %v5446_v29 = vadd.f32 -1.0, %v6827_v48  ;;  %v5888_v36 = vpop.f32.mrf.mxu1  ;;  %v5809_v0 = vadd.f32 %v5808_v43, %v5807_v50 }
 0x9e7   :  { %v5460_v28 = vadd.f32 -1.0, %v6829_v14  ;;  %v5108_v35 = vmin.f32 %v5038_v45, 0.0  ;;  %v5889_v63 = vadd.f32 %v5888_v36, %v5887_v52  ;;  %vm5092_vm10 = vcmp.gt.f32.partialorder %v5038_v45, 0.0 }
 0x9e8   :  { %v5170_v55 = vsel %vm5090_vm14, %v5028_v41, %v5446_v29 }
 0x9e9   :  { %v5264_v31 = vsel %vm5184_vm15, %v5168_v19, %v5460_v28  ;;  %v5202_v46 = vmin.f32 %v5170_v55, 0.0  ;;  %v6831_v8 = vpop.eup %6830  ;;  %v5130_v3 = vmul.f32 1.442695, %v5108_v35  ;;  %v5043_v12 = vadd.f32 %v5889_v63, %v5809_v0 }
 0x9ea   :  { %5280 = vst.msk [vmem:[%s9730_s8 + $0x10] sm:$0xff] %vm64_vm0, %v5264_v31  ;;  %v6833_v11 = vpop.eup %6832  ;;  %v5461_v62 = vadd.f32 -1.0, %v6831_v8  ;;  %vm5186_vm4 = vcmp.gt.f32.partialorder %v5170_v55, 0.0 }
 0x9eb   :  { %v5222_v20 = vmul.f32 1.442695, %v5202_v46  ;;  %v5447_v34 = vadd.f32 -1.0, %v6833_v11  ;;  %6834 = vpow2.f32 %v5130_v3  ;;  %v5109_v18 = vmin.f32 %v5043_v12, 0.0 }
 0x9ec   :  { %v5265_v9 = vsel %vm5185_vm3, %v5169_v40, %v5461_v62  ;;  %vm5093_vm11 = vcmp.gt.f32.partialorder %v5043_v12, 0.0 }
 0x9ed   :  { %6836 = vpow2.f32 %v5222_v20  ;;  %5281 = vst.msk [vmem:[%s9730_s8 + $0x18] sm:$0xff] %vm64_vm0, %v5265_v9  ;;  %v5171_v32 = vsel %vm5091_vm2, %v5033_v6, %v5447_v34  ;;  %v5132_v53 = vmul.f32 1.442695, %v5109_v18 }
 0x9ee   :  { %v5203_v10 = vmin.f32 %v5171_v32, 0.0  ;;  %vm5187_vm1 = vcmp.gt.f32.partialorder %v5171_v32, 0.0 }
 0x9ef   :  { %6838 = vpow2.f32 %v5132_v53 }
 0x9f0   :  { %v5224_v37 = vmul.f32 1.442695, %v5203_v10 }
 0x9f2   :  { %6840 = vpow2.f32 %v5224_v37  ;;  %v5810_v27 = vpop.f32.mrf.mxu0 }
 0x9f4   :  { %v5811_v24 = vpop.f32.mrf.mxu0 }
 0x9f5   :  { %v5890_v39 = vpop.f32.mrf.mxu1  ;;  %v5812_v47 = vadd.f32 %v5811_v24, %v5810_v27 }
 0x9f6   :  { %v5813_v25 = vpop.f32.mrf.mxu0 }
 0x9f7   :  { %v5891_v5 = vpop.f32.mrf.mxu1 }
 0x9f8   :  { %v6835_v49 = vpop.eup %6834  ;;  %v5892_v60 = vadd.f32 %v5891_v5, %v5890_v39  ;;  %v5814_v33 = vpop.f32.mrf.mxu0 }
 0x9f9   :  { %v5448_v41 = vadd.f32 -1.0, %v6835_v49  ;;  %v5893_v13 = vpop.f32.mrf.mxu1  ;;  %v5815_v59 = vadd.f32 %v5814_v33, %v5813_v25 }
 0x9fa   :  { %v6837_v38 = vpop.eup %6836  ;;  %v5048_v22 = vadd.f32 %v5892_v60, %v5812_v47 }
 0x9fb   :  { %v5462_v21 = vadd.f32 -1.0, %v6837_v38  ;;  %v5172_v19 = vsel %vm5092_vm10, %v5038_v45, %v5448_v41  ;;  %v5894_v56 = vpop.f32.mrf.mxu1 }
 0x9fc   :  { %v6839_v30 = vpop.eup %6838  ;;  %v5204_v7 = vmin.f32 %v5172_v19, 0.0  ;;  %v5110_v4 = vmin.f32 %v5048_v22, 0.0  ;;  %v5895_v2 = vadd.f32 %v5894_v56, %v5893_v13  ;;  %vm5188_vm9 = vcmp.gt.f32.partialorder %v5172_v19, 0.0 }
 0x9fd   :  { %v5266_v44 = vsel %vm5186_vm4, %v5170_v55, %v5462_v21  ;;  %v5449_v1 = vadd.f32 -1.0, %v6839_v30  ;;  %vm5094_vm8 = vcmp.gt.f32.partialorder %v5048_v22, 0.0 }
 0x9fe   :  { %5282 = vst.msk [vmem:[%s9730_s8 + $0x20] sm:$0xff] %vm64_vm0, %v5266_v44  ;;  %v5226_v51 = vmul.f32 1.442695, %v5204_v7  ;;  %v5134_v54 = vmul.f32 1.442695, %v5110_v4  ;;  %v5053_v42 = vadd.f32 %v5895_v2, %v5815_v59 }
 0x9ff   :  { %v6841_v6 = vpop.eup %6840  ;;  %v5173_v40 = vsel %vm5093_vm11, %v5043_v12, %v5449_v1 }
 0xa00   :  { %v5463_v61 = vadd.f32 -1.0, %v6841_v6  ;;  %6842 = vpow2.f32 %v5226_v51  ;;  %v5205_v16 = vmin.f32 %v5173_v40, 0.0  ;;  %v5111_v15 = vmin.f32 %v5053_v42, 0.0 }
 0xa01   :  { %6844 = vpow2.f32 %v5134_v54  ;;  %vm5189_vm6 = vcmp.gt.f32.partialorder %v5173_v40, 0.0  ;;  %vm5095_vm5 = vcmp.gt.f32.partialorder %v5053_v42, 0.0 }
 0xa02   :  { %v5267_v57 = vsel %vm5187_vm1, %v5171_v32, %v5463_v61  ;;  %v5228_v17 = vmul.f32 1.442695, %v5205_v16  ;;  %v5816_v50 = vpop.f32.mrf.mxu0  ;;  %v5136_v26 = vmul.f32 1.442695, %v5111_v15 }
 0xa03   :  { %5283 = vst.msk [vmem:[%s9730_s8 + $0x28] sm:$0xff] %vm64_vm0, %v5267_v57 }
 0xa04   :  { %6846 = vpow2.f32 %v5228_v17  ;;  %v5817_v23 = vpop.f32.mrf.mxu0 }
 0xa05   :  { %6848 = vpow2.f32 %v5136_v26  ;;  %v5896_v58 = vpop.f32.mrf.mxu1  ;;  %v5818_v52 = vadd.f32 %v5817_v23, %v5816_v50 }
 0xa06   :  { %v5819_v48 = vpop.f32.mrf.mxu0 }
 0xa07   :  { %v5897_v43 = vpop.f32.mrf.mxu1 }
 0xa08   :  { %v5898_v14 = vadd.f32 %v5897_v43, %v5896_v58  ;;  %v5820_v29 = vpop.f32.mrf.mxu0 }
 0xa09   :  { %v5899_v45 = vpop.f32.mrf.mxu1  ;;  %v5821_v35 = vadd.f32 %v5820_v29, %v5819_v48 }
 0xa0a   :  { %v5058_v28 = vadd.f32 %v5898_v14, %v5818_v52 }
 0xa0b   :  { %v5900_v36 = vpop.f32.mrf.mxu1 }
 0xa0c   :  { %v5112_v55 = vmin.f32 %v5058_v28, 0.0  ;;  %v5901_v0 = vadd.f32 %v5900_v36, %v5899_v45  ;;  %vm5096_vm7 = vcmp.gt.f32.partialorder %v5058_v28, 0.0 }
 0xa0d   :  { %v6843_v63 = vpop.eup %6842 }
 0xa0e   :  { %v6845_v31 = vpop.eup %6844  ;;  %v5464_v46 = vadd.f32 -1.0, %v6843_v63  ;;  %v5138_v8 = vmul.f32 1.442695, %v5112_v55  ;;  %v5063_v3 = vadd.f32 %v5901_v0, %v5821_v35 }
 0xa0f   :  { %v5450_v12 = vadd.f32 -1.0, %v6845_v31 }
 0xa10   :  { %v5268_v11 = vsel %vm5188_vm9, %v5172_v19, %v5464_v46  ;;  %6850 = vpow2.f32 %v5138_v8  ;;  %v5113_v62 = vmin.f32 %v5063_v3, 0.0  ;;  %vm5097_vm12 = vcmp.gt.f32.partialorder %v5063_v3, 0.0 }
 0xa11   :  { %v6847_v20 = vpop.eup %6846  ;;  %5284 = vst.msk [vmem:[%s9730_s8 + $0x30] sm:$0xff] %vm64_vm0, %v5268_v11  ;;  %v5174_v34 = vsel %vm5094_vm8, %v5048_v22, %v5450_v12 }
 0xa12   :  { %v6849_v18 = vpop.eup %6848  ;;  %v5465_v9 = vadd.f32 -1.0, %v6847_v20  ;;  %v5206_v32 = vmin.f32 %v5174_v34, 0.0  ;;  %v5140_v53 = vmul.f32 1.442695, %v5113_v62  ;;  %v5822_v10 = vpop.f32.mrf.mxu0  ;;  %vm5190_vm13 = vcmp.gt.f32.partialorder %v5174_v34, 0.0 }
 0xa13   :  { %v5451_v37 = vadd.f32 -1.0, %v6849_v18 }
 0xa14   :  { %v5269_v27 = vsel %vm5189_vm6, %v5173_v40, %v5465_v9  ;;  %v5230_v24 = vmul.f32 1.442695, %v5206_v32  ;;  %6852 = vpow2.f32 %v5140_v53  ;;  %v5823_v39 = vpop.f32.mrf.mxu0 }
 0xa15   :  { %5285 = vst.msk [vmem:[%s9730_s8 + $0x38] sm:$0xff] %vm64_vm0, %v5269_v27  ;;  %v5175_v25 = vsel %vm5095_vm5, %v5053_v42, %v5451_v37  ;;  %v5902_v5 = vpop.f32.mrf.mxu1  ;;  %v5824_v41 = vadd.f32 %v5823_v39, %v5822_v10 }
 0xa16   :  { %6854 = vpow2.f32 %v5230_v24  ;;  %v5207_v49 = vmin.f32 %v5175_v25, 0.0  ;;  %v5825_v47 = vpop.f32.mrf.mxu0  ;;  %vm5191_vm15 = vcmp.gt.f32.partialorder %v5175_v25, 0.0 }
 0xa17   :  { %v5903_v60 = vpop.f32.mrf.mxu1 }
 0xa18   :  { %v5232_v38 = vmul.f32 1.442695, %v5207_v49  ;;  %v5904_v13 = vadd.f32 %v5903_v60, %v5902_v5  ;;  %v5826_v21 = vpop.f32.mrf.mxu0 }
 0xa19   :  { %v5905_v22 = vpop.f32.mrf.mxu1  ;;  %v5827_v30 = vadd.f32 %v5826_v21, %v5825_v47 }
 0xa1a   :  { %6856 = vpow2.f32 %v5232_v38  ;;  %v5068_v33 = vadd.f32 %v5904_v13, %v5824_v41 }
 0xa1b   :  { %v5906_v19 = vpop.f32.mrf.mxu1 }
 0xa1c   :  { %v5114_v56 = vmin.f32 %v5068_v33, 0.0  ;;  %v5907_v44 = vadd.f32 %v5906_v19, %v5905_v22  ;;  %vm5098_vm14 = vcmp.gt.f32.partialorder %v5068_v33, 0.0 }
 0xa1d   :  { %v6851_v7 = vpop.eup %6850 }
 0xa1e   :  { %v5452_v1 = vadd.f32 -1.0, %v6851_v7  ;;  %v5142_v4 = vmul.f32 1.442695, %v5114_v56  ;;  %v5073_v59 = vadd.f32 %v5907_v44, %v5827_v30 }
 0xa20   :  { %v5176_v2 = vsel %vm5096_vm7, %v5058_v28, %v5452_v1  ;;  %6858 = vpow2.f32 %v5142_v4  ;;  %v5115_v51 = vmin.f32 %v5073_v59, 0.0  ;;  %vm5099_vm3 = vcmp.gt.f32.partialorder %v5073_v59, 0.0 }
 0xa21   :  { %v6853_v6 = vpop.eup %6852  ;;  %v5208_v40 = vmin.f32 %v5176_v2, 0.0  ;;  %vm5192_vm2 = vcmp.gt.f32.partialorder %v5176_v2, 0.0 }
 0xa22   :  { %v5453_v54 = vadd.f32 -1.0, %v6853_v6  ;;  %v5144_v42 = vmul.f32 1.442695, %v5115_v51  ;;  %v5828_v61 = vpop.f32.mrf.mxu0 }
 0xa23   :  { %v6855_v16 = vpop.eup %6854  ;;  %v5234_v15 = vmul.f32 1.442695, %v5208_v40 }
 0xa24   :  { %v5466_v57 = vadd.f32 -1.0, %v6855_v16  ;;  %v5177_v17 = vsel %vm5097_vm12, %v5063_v3, %v5453_v54  ;;  %6860 = vpow2.f32 %v5144_v42  ;;  %v5829_v50 = vpop.f32.mrf.mxu0  ;;  %v5908_v26 = vpop.f32.mrf.mxu1 }
 0xa25   :  { %6862 = vpow2.f32 %v5234_v15  ;;  %v5209_v23 = vmin.f32 %v5177_v17, 0.0  ;;  %v5830_v29 = vadd.f32 %v5829_v50, %v5828_v61  ;;  %vm5193_vm10 = vcmp.gt.f32.partialorder %v5177_v17, 0.0 }
 0xa26   :  { %v5270_v58 = vsel %vm5190_vm13, %v5174_v34, %v5466_v57  ;;  %v5831_v48 = vpop.f32.mrf.mxu0  ;;  %v5909_v43 = vpop.f32.mrf.mxu1 }
 0xa27   :  { %v6857_v52 = vpop.eup %6856  ;;  %5286 = vst.msk [vmem:[%s9730_s8 + $0x40] sm:$0xff] %vm64_vm0, %v5270_v58  ;;  %v5236_v14 = vmul.f32 1.442695, %v5209_v23  ;;  %v5910_v45 = vadd.f32 %v5909_v43, %v5908_v26 }
 0xa28   :  { %v5467_v28 = vadd.f32 -1.0, %v6857_v52  ;;  %v5832_v55 = vpop.f32.mrf.mxu0 }
 0xa29   :  { %6864 = vpow2.f32 %v5236_v14  ;;  %v5078_v36 = vadd.f32 %v5910_v45, %v5830_v29  ;;  %v5911_v35 = vpop.f32.mrf.mxu1  ;;  %v5833_v46 = vadd.f32 %v5832_v55, %v5831_v48 }
 0xa2a   :  { %v5271_v0 = vsel %vm5191_vm15, %v5175_v25, %v5467_v28 }
 0xa2b   :  { %5287 = vst.msk [vmem:[%s9730_s8 + $0x48] sm:$0xff] %vm64_vm0, %v5271_v0  ;;  %v5116_v63 = vmin.f32 %v5078_v36, 0.0  ;;  %v5912_v31 = vpop.f32.mrf.mxu1  ;;  %vm5100_vm4 = vcmp.gt.f32.partialorder %v5078_v36, 0.0 }
 0xa2c   :  { %v5913_v8 = vadd.f32 %v5912_v31, %v5911_v35 }
 0xa2d   :  { %v6859_v3 = vpop.eup %6858  ;;  %v5146_v12 = vmul.f32 1.442695, %v5116_v63 }
 0xa2e   :  { %v5454_v11 = vadd.f32 -1.0, %v6859_v3  ;;  %v5083_v62 = vadd.f32 %v5913_v8, %v5833_v46 }
 0xa2f   :  { %6866 = vpow2.f32 %v5146_v12 }
 0xa30   :  { %v5178_v20 = vsel %vm5098_vm14, %v5068_v33, %v5454_v11  ;;  %v5117_v34 = vmin.f32 %v5083_v62, 0.0  ;;  %vm5101_vm11 = vcmp.gt.f32.partialorder %v5083_v62, 0.0 }
 0xa31   :  { %v6861_v18 = vpop.eup %6860  ;;  %v5210_v9 = vmin.f32 %v5178_v20, 0.0  ;;  %vm5194_vm1 = vcmp.gt.f32.partialorder %v5178_v20, 0.0 }
 0xa32   :  { %v6863_v32 = vpop.eup %6862  ;;  %v5455_v53 = vadd.f32 -1.0, %v6861_v18  ;;  %v5148_v10 = vmul.f32 1.442695, %v5117_v34 }
 0xa33   :  { %v5468_v37 = vadd.f32 -1.0, %v6863_v32  ;;  %v5238_v27 = vmul.f32 1.442695, %v5210_v9 }
 0xa34   :  { %v5179_v24 = vsel %vm5099_vm3, %v5073_v59, %v5455_v53  ;;  %6868 = vpow2.f32 %v5148_v10 }
 0xa35   :  { %v5272_v39 = vsel %vm5192_vm2, %v5176_v2, %v5468_v37  ;;  %6870 = vpow2.f32 %v5238_v27  ;;  %v5211_v25 = vmin.f32 %v5179_v24, 0.0  ;;  %vm5195_vm9 = vcmp.gt.f32.partialorder %v5179_v24, 0.0 }
 0xa36   :  { %v6865_v5 = vpop.eup %6864  ;;  %5288 = vst.msk [vmem:[%s9730_s8 + $0x50] sm:$0xff] %vm64_vm0, %v5272_v39 }
 0xa37   :  { %v5469_v49 = vadd.f32 -1.0, %v6865_v5  ;;  %v5240_v47 = vmul.f32 1.442695, %v5211_v25 }
 0xa39   :  { %v5273_v60 = vsel %vm5193_vm10, %v5177_v17, %v5469_v49  ;;  %6872 = vpow2.f32 %v5240_v47 }
 0xa3a   :  { %5289 = vst.msk [vmem:[%s9730_s8 + $0x58] sm:$0xff] %vm64_vm0, %v5273_v60 }
 0xa3c   :  { %v6867_v38 = vpop.eup %6866 }
 0xa3d   :  { %v5456_v41 = vadd.f32 -1.0, %v6867_v38 }
 0xa3f   :  { %v5180_v13 = vsel %vm5100_vm4, %v5078_v36, %v5456_v41 }
 0xa40   :  { %v5212_v21 = vmin.f32 %v5180_v13, 0.0  ;;  %vm5196_vm8 = vcmp.gt.f32.partialorder %v5180_v13, 0.0 }
 0xa41   :  { %v6869_v22 = vpop.eup %6868 }
 0xa42   :  { %v6871_v33 = vpop.eup %6870  ;;  %v5242_v19 = vmul.f32 1.442695, %v5212_v21  ;;  %v5457_v56 = vadd.f32 -1.0, %v6869_v22 }
 0xa43   :  { %v5470_v30 = vadd.f32 -1.0, %v6871_v33 }
 0xa44   :  { %6874 = vpow2.f32 %v5242_v19  ;;  %v5181_v44 = vsel %vm5101_vm11, %v5083_v62, %v5457_v56 }
 0xa45   :  { %v5274_v7 = vsel %vm5194_vm1, %v5178_v20, %v5470_v30  ;;  %v5213_v1 = vmin.f32 %v5181_v44, 0.0  ;;  %vm5197_vm6 = vcmp.gt.f32.partialorder %v5181_v44, 0.0 }
 0xa46   :  { %v6873_v4 = vpop.eup %6872  ;;  %5290 = vst.msk [vmem:[%s9730_s8 + $0x60] sm:$0xff] %vm64_vm0, %v5274_v7 }
 0xa47   :  { %v5471_v59 = vadd.f32 -1.0, %v6873_v4  ;;  %v5244_v2 = vmul.f32 1.442695, %v5213_v1 }
 0xa49   :  { %v5275_v51 = vsel %vm5195_vm9, %v5179_v24, %v5471_v59  ;;  %6876 = vpow2.f32 %v5244_v2 }
 0xa4a   :  { %5291 = vst.msk [vmem:[%s9730_s8 + $0x68] sm:$0xff] %vm64_vm0, %v5275_v51 }
 0xa51   :  { %v6875_v6 = vpop.eup %6874 }
 0xa52   :  { %v5472_v40 = vadd.f32 -1.0, %v6875_v6 }
 0xa54   :  { %v5276_v54 = vsel %vm5196_vm8, %v5180_v13, %v5472_v40 }
 0xa55   :  { %5292 = vst.msk [vmem:[%s9730_s8 + $0x70] sm:$0xff] %vm64_vm0, %v5276_v54 }
 0xa56   :  { %v6877_v42 = vpop.eup %6876 }
 0xa57   :  { %v5473_v61 = vadd.f32 -1.0, %v6877_v42 }
 0xa59   :  { %v5277_v16 = vsel %vm5197_vm6, %v5181_v44, %v5473_v61 }
 0xa5a   :  { %5293 = vst.msk [vmem:[%s9730_s8 + $0x78] sm:$0xff] %vm64_vm0, %v5277_v16 }
 0xa5b   :  { %6898 = dma.done.wait [#allocation5], 16384  }
 0xa5c   :  { %6899 = vsyncadd [#allocation5], 4294950912 }
 0xa5d   :  { %5313 = vsyncpa [#allocation5], 1 }

</bundles_post_ra>
